<compile_context>
chip_gen: v7x
topology: tpu7x:2x2x1
jax: 0.10.0
libtpu: 0.0.40
codegen_flags: <defaults>
</compile_context>

<pallas_src>
import functools

import jax
import jax.numpy as jnp
from jax.experimental import pallas as pl
from jax.experimental.pallas import tpu as pltpu


# ----------------------------------------------------------------------------
# Fused Pallas kernel: channel mean/max -> pad -> KxK conv -> sigmoid
# ----------------------------------------------------------------------------
def _spatial_attention_kernel(w_ref, x_ref, o_ref, pad_ref, *, C, H, W, K, P, Bt):
    """Processes Bt images per grid step.

    w_ref:   (2*K*K,) f32            conv weights (flattened OIHW, O=1), SMEM
    x_ref:   (Bt, C, H*W)            input tile, lane-dense flattened spatial, VMEM
    o_ref:   (Bt, 1, H, W)           sigmoid gate, VMEM
    pad_ref: (2, Bt, H+2P, W+2P) f32 scratch holding zero-padded [avg, max] planes
    """
    Wp = W + 2 * P

    x = x_ref[...]                                           # (Bt, C, HW)

    # Channel-wise max (exact in the source dtype) and mean (f32 accumulation),
    # both on lane-dense (H*W wide) vregs.
    mx = jnp.max(x, axis=1).astype(jnp.float32)              # (Bt, HW)
    avg = jnp.sum(x, axis=1, dtype=jnp.float32) * (1.0 / C)  # (Bt, HW)

    # Zero only the 2P-wide halo ring; the interior is rewritten every step.
    # (Per-step, not program_id==0-gated: scratch is per-core under megacore.)
    for c in range(2):
        pad_ref[c, :, 0:P, :] = jnp.zeros((Bt, P, Wp), jnp.float32)
        pad_ref[c, :, P + H:P + H + P, :] = jnp.zeros((Bt, P, Wp), jnp.float32)
        pad_ref[c, :, P:P + H, 0:P] = jnp.zeros((Bt, H, P), jnp.float32)
        pad_ref[c, :, P:P + H, P + W:P + W + P] = jnp.zeros((Bt, H, P), jnp.float32)

    # Scatter the flat pooled planes into the padded scratch row by row.
    # This touches only 2*H short rows per step; the big HBM-facing tensors
    # stay in the flattened lane-dense layout.
    for i in range(H):
        pad_ref[0, :, P + i, P:P + W] = avg[:, i * W:(i + 1) * W]
        pad_ref[1, :, P + i, P:P + W] = mx[:, i * W:(i + 1) * W]

    # K x K conv over the 2 pooled channels -> 1 output channel.
    # Each tap is a (Bt, H, W) vector * SMEM-scalar multiply-add on the VPU.
    # Four independent accumulators (pooled channel x row parity) break the
    # 2*K*K-long serial add chain so the VALU slots can overlap.
    accs = [jnp.zeros((Bt, H, W), jnp.float32) for _ in range(4)]
    for c in range(2):
        plane = pad_ref[c]                                   # (Bt, H+2P, W+2P)
        for di in range(K):
            rows = plane[:, di:di + H, :]                    # (Bt, H, W+2P)
            a = 2 * c + (di & 1)
            for dj in range(K):
                wgt = w_ref[(c * K + di) * K + dj]           # scalar from SMEM
                accs[a] = accs[a] + rows[:, :, dj:dj + W] * wgt
    z = (accs[0] + accs[1]) + (accs[2] + accs[3])

    # sigmoid(z) == 0.5 * (tanh(z/2) + 1): stable for all z, runs on the EUP.
    gate = 0.5 * (jnp.tanh(0.5 * z) + 1.0)
    o_ref[:, 0, :, :] = gate.astype(o_ref.dtype)


# ----------------------------------------------------------------------------
# Wrapper
# ----------------------------------------------------------------------------
def _pick_batch_tile(B, per_image_bytes, budget_bytes=4 * 2**20):
    """Largest divisor of B whose per-step VMEM footprint fits the budget,
    keeping >= 4 grid steps when the batch allows it (2 per megacore TC)."""
    divisors = [d for d in range(1, B + 1) if B % d == 0]
    fitting = [d for d in divisors if d * per_image_bytes <= budget_bytes] or [1]
    bt = max(fitting)
    if B // bt < 4:
        for d in reversed(fitting):
            if B // d >= 4:
                bt = d
                break
    return bt


def spatial_attention(x_nchw, w_oihw, *, kernel_size=7):
    """x_nchw: (B, C, H, W); w_oihw: (1, 2, K, K) PyTorch Conv2d weight (no bias)."""
    assert kernel_size in (3, 7), "kernel size must be 3 or 7"
    P = 3 if kernel_size == 7 else 1
    K = kernel_size
    B, C, H, W = x_nchw.shape
    assert w_oihw.shape == (1, 2, K, K), w_oihw.shape

    HW = H * W
    Hp, Wp = H + 2 * P, W + 2 * P
    itemsize = jnp.dtype(x_nchw.dtype).itemsize

    # Per-image VMEM footprint: double-buffered input + output blocks + scratch
    # (last dims padded to 128 lanes where applicable).
    per_image = 2 * C * HW * itemsize                     # input block (x2 buffers)
    per_image += 2 * H * max(W, 128) * itemsize           # output block (x2 buffers)
    per_image += 2 * Hp * max(Wp, 128) * 4                # padded f32 scratch planes
    Bt = _pick_batch_tile(B, per_image)

    vmem_limit = int(min(48 * 2**20, max(16 * 2**20, 4 * Bt * per_image)))

    # Lane-dense HBM-facing layouts (trailing-dim merges are free in XLA).
    w_flat = w_oihw.reshape(-1).astype(jnp.float32)       # (2*K*K,) -> SMEM scalars
    x_flat = x_nchw.reshape(B, C, HW)                     # contiguous C*H*W slabs

    kern = functools.partial(_spatial_attention_kernel,
                             C=C, H=H, W=W, K=K, P=P, Bt=Bt)
    return pl.pallas_call(
        kern,
        out_shape=jax.ShapeDtypeStruct((B, 1, H, W), x_nchw.dtype),
        grid=(B // Bt,),
        in_specs=[
            # conv weights: whole (tiny) array resident in SMEM
            pl.BlockSpec(memory_space=pltpu.MemorySpace.SMEM),
            # Bt lane-dense images per grid step
            pl.BlockSpec((Bt, C, HW), lambda b: (b, 0, 0)),
        ],
        out_specs=pl.BlockSpec((Bt, 1, H, W), lambda b: (b, 0, 0, 0)),
        scratch_shapes=[
            pltpu.VMEM((2, Bt, Hp, Wp), jnp.float32),
        ],
        compiler_params=pltpu.CompilerParams(
            dimension_semantics=("parallel",),
            vmem_limit_bytes=vmem_limit),
    )(w_flat, x_flat)


# ----------------------------------------------------------------------------
# Pure-JAX reference (verification only)
# ----------------------------------------------------------------------------
def _ref_spatial_attention(x, w, kernel_size=7):
    P = 3 if kernel_size == 7 else 1
    avg = jnp.mean(x, axis=1, keepdims=True)
    mx = jnp.max(x, axis=1, keepdims=True)
    cat = jnp.concatenate([avg, mx], axis=1)                      # (B, 2, H, W)
    y = jax.lax.conv_general_dilated(
        cat, w, window_strides=(1, 1), padding=[(P, P), (P, P)],
        dimension_numbers=("NCHW", "OIHW", "NCHW"))
    return jax.nn.sigmoid(y)


# ----------------------------------------------------------------------------
if __name__ == "__main__":
    key = jax.random.PRNGKey(0)
    kx, kw = jax.random.split(key)

    B, C, H, W = 2, 4, 16, 16
    ksize = 7

    x = jax.random.normal(kx, (B, C, H, W), jnp.float32)
    w = 0.3 * jax.random.normal(kw, (1, 2, ksize, ksize), jnp.float32)

    out = spatial_attention(x, w, kernel_size=ksize)
    out = jax.block_until_ready(out)

    ref = _ref_spatial_attention(x, w, kernel_size=ksize)
    assert out.shape == (B, 1, H, W), out.shape
    assert jnp.allclose(out, ref, atol=1e-5, rtol=1e-5), \
        float(jnp.max(jnp.abs(out - ref)))

    print("KERNEL_OK")
</pallas_src>

<mosaic_0001>
module attributes {stable_mosaic.version = 11 : i64} {
  func.func @_spatial_attention_kernel(%arg0: i32, %arg1: memref<98xf32, #tpu.memory_space<smem>>, %arg2: memref<2x4x256xf32, #tpu.memory_space<vmem>>, %arg3: memref<2x1x16x16xf32, #tpu.memory_space<vmem>>, %arg4: memref<2x2x22x22xf32, #tpu.memory_space<vmem>>) attributes {dimension_semantics = [#tpu.dimension_semantics<parallel>], iteration_bounds = array<i64: 1>, scalar_prefetch = 0 : i64, scratch_operands = 1 : i64, tpu.core_type = #tpu.core_type<tc>, window_params = [{transform_indices = @transform_0, window_bounds = array<i64: 98>}, {transform_indices = @transform_1, window_bounds = array<i64: 2, 4, 256>}, {transform_indices = @transform_2, window_bounds = array<i64: 2, 1, 16, 16>}]} {
    %c0 = arith.constant 0 : index
    %c0_0 = arith.constant 0 : index
    %c0_1 = arith.constant 0 : index
    %0 = vector.load %arg2[%c0, %c0_0, %c0_1] : memref<2x4x256xf32, #tpu.memory_space<vmem>>, vector<2x4x256xf32>
    %cst = arith.constant dense<0xFF800000> : vector<2x256xf32>
    %1 = vector.multi_reduction <maximumf>, %0, %cst [1] : vector<2x4x256xf32> to vector<2x256xf32>
    %cst_2 = arith.constant dense<0.000000e+00> : vector<2x256xf32>
    %2 = vector.multi_reduction <add>, %0, %cst_2 [1] : vector<2x4x256xf32> to vector<2x256xf32>
    %cst_3 = arith.constant 2.500000e-01 : f32
    %3 = vector.broadcast %cst_3 : f32 to vector<2x256xf32>
    %4 = arith.mulf %2, %3 : vector<2x256xf32>
    %cst_4 = arith.constant 0.000000e+00 : f32
    %5 = vector.broadcast %cst_4 : f32 to vector<2x3x22xf32>
    %c0_5 = arith.constant 0 : index
    %c0_6 = arith.constant 0 : index
    %c0_7 = arith.constant 0 : index
    %c0_8 = arith.constant 0 : index
    %6 = vector.load %arg4[%c0_5, %c0_6, %c0_7, %c0_8] : memref<2x2x22x22xf32, #tpu.memory_space<vmem>>, vector<1x2x3x22xf32>
    %7 = vector.shape_cast %6 : vector<1x2x3x22xf32> to vector<2x3x22xf32>
    %8 = vector.shape_cast %5 : vector<2x3x22xf32> to vector<1x2x3x22xf32>
    tpu.vector_store %arg4[%c0_5, %c0_6, %c0_7, %c0_8], %8 {strides = array<i32>} : memref<2x2x22x22xf32, #tpu.memory_space<vmem>>, vector<1x2x3x22xf32>,
    %cst_9 = arith.constant 0.000000e+00 : f32
    %9 = vector.broadcast %cst_9 : f32 to vector<2x3x22xf32>
    %c0_10 = arith.constant 0 : index
    %c0_11 = arith.constant 0 : index
    %c19 = arith.constant 19 : index
    %c0_12 = arith.constant 0 : index
    %10 = vector.load %arg4[%c0_10, %c0_11, %c19, %c0_12] : memref<2x2x22x22xf32, #tpu.memory_space<vmem>>, vector<1x2x3x22xf32>
    %11 = vector.shape_cast %10 : vector<1x2x3x22xf32> to vector<2x3x22xf32>
    %12 = vector.shape_cast %9 : vector<2x3x22xf32> to vector<1x2x3x22xf32>
    tpu.vector_store %arg4[%c0_10, %c0_11, %c19, %c0_12], %12 {strides = array<i32>} : memref<2x2x22x22xf32, #tpu.memory_space<vmem>>, vector<1x2x3x22xf32>,
    %cst_13 = arith.constant 0.000000e+00 : f32
    %13 = vector.broadcast %cst_13 : f32 to vector<2x16x3xf32>
    %c0_14 = arith.constant 0 : index
    %c0_15 = arith.constant 0 : index
    %c3 = arith.constant 3 : index
    %c0_16 = arith.constant 0 : index
    %14 = vector.load %arg4[%c0_14, %c0_15, %c3, %c0_16] : memref<2x2x22x22xf32, #tpu.memory_space<vmem>>, vector<1x2x16x3xf32>
    %15 = vector.shape_cast %14 : vector<1x2x16x3xf32> to vector<2x16x3xf32>
    %16 = vector.shape_cast %13 : vector<2x16x3xf32> to vector<1x2x16x3xf32>
    tpu.vector_store %arg4[%c0_14, %c0_15, %c3, %c0_16], %16 {strides = array<i32>} : memref<2x2x22x22xf32, #tpu.memory_space<vmem>>, vector<1x2x16x3xf32>,
    %cst_17 = arith.constant 0.000000e+00 : f32
    %17 = vector.broadcast %cst_17 : f32 to vector<2x16x3xf32>
    %c0_18 = arith.constant 0 : index
    %c0_19 = arith.constant 0 : index
    %c3_20 = arith.constant 3 : index
    %c19_21 = arith.constant 19 : index
    %18 = vector.load %arg4[%c0_18, %c0_19, %c3_20, %c19_21] : memref<2x2x22x22xf32, #tpu.memory_space<vmem>>, vector<1x2x16x3xf32>
    %19 = vector.shape_cast %18 : vector<1x2x16x3xf32> to vector<2x16x3xf32>
    %20 = vector.shape_cast %17 : vector<2x16x3xf32> to vector<1x2x16x3xf32>
    tpu.vector_store %arg4[%c0_18, %c0_19, %c3_20, %c19_21], %20 {strides = array<i32>} : memref<2x2x22x22xf32, #tpu.memory_space<vmem>>, vector<1x2x16x3xf32>,
    %cst_22 = arith.constant 0.000000e+00 : f32
    %21 = vector.broadcast %cst_22 : f32 to vector<2x3x22xf32>
    %c1 = arith.constant 1 : index
    %c0_23 = arith.constant 0 : index
    %c0_24 = arith.constant 0 : index
    %c0_25 = arith.constant 0 : index
    %22 = vector.load %arg4[%c1, %c0_23, %c0_24, %c0_25] : memref<2x2x22x22xf32, #tpu.memory_space<vmem>>, vector<1x2x3x22xf32>
    %23 = vector.shape_cast %22 : vector<1x2x3x22xf32> to vector<2x3x22xf32>
    %24 = vector.shape_cast %21 : vector<2x3x22xf32> to vector<1x2x3x22xf32>
    tpu.vector_store %arg4[%c1, %c0_23, %c0_24, %c0_25], %24 {strides = array<i32>} : memref<2x2x22x22xf32, #tpu.memory_space<vmem>>, vector<1x2x3x22xf32>,
    %cst_26 = arith.constant 0.000000e+00 : f32
    %25 = vector.broadcast %cst_26 : f32 to vector<2x3x22xf32>
    %c1_27 = arith.constant 1 : index
    %c0_28 = arith.constant 0 : index
    %c19_29 = arith.constant 19 : index
    %c0_30 = arith.constant 0 : index
    %26 = vector.load %arg4[%c1_27, %c0_28, %c19_29, %c0_30] : memref<2x2x22x22xf32, #tpu.memory_space<vmem>>, vector<1x2x3x22xf32>
    %27 = vector.shape_cast %26 : vector<1x2x3x22xf32> to vector<2x3x22xf32>
    %28 = vector.shape_cast %25 : vector<2x3x22xf32> to vector<1x2x3x22xf32>
    tpu.vector_store %arg4[%c1_27, %c0_28, %c19_29, %c0_30], %28 {strides = array<i32>} : memref<2x2x22x22xf32, #tpu.memory_space<vmem>>, vector<1x2x3x22xf32>,
    %cst_31 = arith.constant 0.000000e+00 : f32
    %29 = vector.broadcast %cst_31 : f32 to vector<2x16x3xf32>
    %c1_32 = arith.constant 1 : index
    %c0_33 = arith.constant 0 : index
    %c3_34 = arith.constant 3 : index
    %c0_35 = arith.constant 0 : index
    %30 = vector.load %arg4[%c1_32, %c0_33, %c3_34, %c0_35] : memref<2x2x22x22xf32, #tpu.memory_space<vmem>>, vector<1x2x16x3xf32>
    %31 = vector.shape_cast %30 : vector<1x2x16x3xf32> to vector<2x16x3xf32>
    %32 = vector.shape_cast %29 : vector<2x16x3xf32> to vector<1x2x16x3xf32>
    tpu.vector_store %arg4[%c1_32, %c0_33, %c3_34, %c0_35], %32 {strides = array<i32>} : memref<2x2x22x22xf32, #tpu.memory_space<vmem>>, vector<1x2x16x3xf32>,
    %cst_36 = arith.constant 0.000000e+00 : f32
    %33 = vector.broadcast %cst_36 : f32 to vector<2x16x3xf32>
    %c1_37 = arith.constant 1 : index
    %c0_38 = arith.constant 0 : index
    %c3_39 = arith.constant 3 : index
    %c19_40 = arith.constant 19 : index
    %34 = vector.load %arg4[%c1_37, %c0_38, %c3_39, %c19_40] : memref<2x2x22x22xf32, #tpu.memory_space<vmem>>, vector<1x2x16x3xf32>
    %35 = vector.shape_cast %34 : vector<1x2x16x3xf32> to vector<2x16x3xf32>
    %36 = vector.shape_cast %33 : vector<2x16x3xf32> to vector<1x2x16x3xf32>
    tpu.vector_store %arg4[%c1_37, %c0_38, %c3_39, %c19_40], %36 {strides = array<i32>} : memref<2x2x22x22xf32, #tpu.memory_space<vmem>>, vector<1x2x16x3xf32>,
    %37 = vector.extract_strided_slice %4 {offsets = [0, 0], sizes = [2, 16], strides = [1, 1]} : vector<2x256xf32> to vector<2x16xf32>
    %c0_41 = arith.constant 0 : index
    %c0_42 = arith.constant 0 : index
    %c3_43 = arith.constant 3 : index
    %c3_44 = arith.constant 3 : index
    %38 = vector.load %arg4[%c0_41, %c0_42, %c3_43, %c3_44] : memref<2x2x22x22xf32, #tpu.memory_space<vmem>>, vector<1x2x1x16xf32>
    %39 = vector.shape_cast %38 : vector<1x2x1x16xf32> to vector<2x16xf32>
    %40 = vector.shape_cast %37 : vector<2x16xf32> to vector<1x2x1x16xf32>
    tpu.vector_store %arg4[%c0_41, %c0_42, %c3_43, %c3_44], %40 {strides = array<i32>} : memref<2x2x22x22xf32, #tpu.memory_space<vmem>>, vector<1x2x1x16xf32>,
    %41 = vector.extract_strided_slice %1 {offsets = [0, 0], sizes = [2, 16], strides = [1, 1]} : vector<2x256xf32> to vector<2x16xf32>
    %c1_45 = arith.constant 1 : index
    %c0_46 = arith.constant 0 : index
    %c3_47 = arith.constant 3 : index
    %c3_48 = arith.constant 3 : index
    %42 = vector.load %arg4[%c1_45, %c0_46, %c3_47, %c3_48] : memref<2x2x22x22xf32, #tpu.memory_space<vmem>>, vector<1x2x1x16xf32>
    %43 = vector.shape_cast %42 : vector<1x2x1x16xf32> to vector<2x16xf32>
    %44 = vector.shape_cast %41 : vector<2x16xf32> to vector<1x2x1x16xf32>
    tpu.vector_store %arg4[%c1_45, %c0_46, %c3_47, %c3_48], %44 {strides = array<i32>} : memref<2x2x22x22xf32, #tpu.memory_space<vmem>>, vector<1x2x1x16xf32>,
    %45 = vector.extract_strided_slice %4 {offsets = [0, 16], sizes = [2, 16], strides = [1, 1]} : vector<2x256xf32> to vector<2x16xf32>
    %c0_49 = arith.constant 0 : index
    %c0_50 = arith.constant 0 : index
    %c4 = arith.constant 4 : index
    %c3_51 = arith.constant 3 : index
    %46 = vector.load %arg4[%c0_49, %c0_50, %c4, %c3_51] : memref<2x2x22x22xf32, #tpu.memory_space<vmem>>, vector<1x2x1x16xf32>
    %47 = vector.shape_cast %46 : vector<1x2x1x16xf32> to vector<2x16xf32>
    %48 = vector.shape_cast %45 : vector<2x16xf32> to vector<1x2x1x16xf32>
    tpu.vector_store %arg4[%c0_49, %c0_50, %c4, %c3_51], %48 {strides = array<i32>} : memref<2x2x22x22xf32, #tpu.memory_space<vmem>>, vector<1x2x1x16xf32>,
    %49 = vector.extract_strided_slice %1 {offsets = [0, 16], sizes = [2, 16], strides = [1, 1]} : vector<2x256xf32> to vector<2x16xf32>
    %c1_52 = arith.constant 1 : index
    %c0_53 = arith.constant 0 : index
    %c4_54 = arith.constant 4 : index
    %c3_55 = arith.constant 3 : index
    %50 = vector.load %arg4[%c1_52, %c0_53, %c4_54, %c3_55] : memref<2x2x22x22xf32, #tpu.memory_space<vmem>>, vector<1x2x1x16xf32>
    %51 = vector.shape_cast %50 : vector<1x2x1x16xf32> to vector<2x16xf32>
    %52 = vector.shape_cast %49 : vector<2x16xf32> to vector<1x2x1x16xf32>
    tpu.vector_store %arg4[%c1_52, %c0_53, %c4_54, %c3_55], %52 {strides = array<i32>} : memref<2x2x22x22xf32, #tpu.memory_space<vmem>>, vector<1x2x1x16xf32>,
    %53 = vector.extract_strided_slice %4 {offsets = [0, 32], sizes = [2, 16], strides = [1, 1]} : vector<2x256xf32> to vector<2x16xf32>
    %c0_56 = arith.constant 0 : index
    %c0_57 = arith.constant 0 : index
    %c5 = arith.constant 5 : index
    %c3_58 = arith.constant 3 : index
    %54 = vector.load %arg4[%c0_56, %c0_57, %c5, %c3_58] : memref<2x2x22x22xf32, #tpu.memory_space<vmem>>, vector<1x2x1x16xf32>
    %55 = vector.shape_cast %54 : vector<1x2x1x16xf32> to vector<2x16xf32>
    %56 = vector.shape_cast %53 : vector<2x16xf32> to vector<1x2x1x16xf32>
    tpu.vector_store %arg4[%c0_56, %c0_57, %c5, %c3_58], %56 {strides = array<i32>} : memref<2x2x22x22xf32, #tpu.memory_space<vmem>>, vector<1x2x1x16xf32>,
    %57 = vector.extract_strided_slice %1 {offsets = [0, 32], sizes = [2, 16], strides = [1, 1]} : vector<2x256xf32> to vector<2x16xf32>
    %c1_59 = arith.constant 1 : index
    %c0_60 = arith.constant 0 : index
    %c5_61 = arith.constant 5 : index
    %c3_62 = arith.constant 3 : index
    %58 = vector.load %arg4[%c1_59, %c0_60, %c5_61, %c3_62] : memref<2x2x22x22xf32, #tpu.memory_space<vmem>>, vector<1x2x1x16xf32>
    %59 = vector.shape_cast %58 : vector<1x2x1x16xf32> to vector<2x16xf32>
    %60 = vector.shape_cast %57 : vector<2x16xf32> to vector<1x2x1x16xf32>
    tpu.vector_store %arg4[%c1_59, %c0_60, %c5_61, %c3_62], %60 {strides = array<i32>} : memref<2x2x22x22xf32, #tpu.memory_space<vmem>>, vector<1x2x1x16xf32>,
    %61 = vector.extract_strided_slice %4 {offsets = [0, 48], sizes = [2, 16], strides = [1, 1]} : vector<2x256xf32> to vector<2x16xf32>
    %c0_63 = arith.constant 0 : index
    %c0_64 = arith.constant 0 : index
    %c6 = arith.constant 6 : index
    %c3_65 = arith.constant 3 : index
    %62 = vector.load %arg4[%c0_63, %c0_64, %c6, %c3_65] : memref<2x2x22x22xf32, #tpu.memory_space<vmem>>, vector<1x2x1x16xf32>
    %63 = vector.shape_cast %62 : vector<1x2x1x16xf32> to vector<2x16xf32>
    %64 = vector.shape_cast %61 : vector<2x16xf32> to vector<1x2x1x16xf32>
    tpu.vector_store %arg4[%c0_63, %c0_64, %c6, %c3_65], %64 {strides = array<i32>} : memref<2x2x22x22xf32, #tpu.memory_space<vmem>>, vector<1x2x1x16xf32>,
    %65 = vector.extract_strided_slice %1 {offsets = [0, 48], sizes = [2, 16], strides = [1, 1]} : vector<2x256xf32> to vector<2x16xf32>
    %c1_66 = arith.constant 1 : index
    %c0_67 = arith.constant 0 : index
    %c6_68 = arith.constant 6 : index
    %c3_69 = arith.constant 3 : index
    %66 = vector.load %arg4[%c1_66, %c0_67, %c6_68, %c3_69] : memref<2x2x22x22xf32, #tpu.memory_space<vmem>>, vector<1x2x1x16xf32>
    %67 = vector.shape_cast %66 : vector<1x2x1x16xf32> to vector<2x16xf32>
    %68 = vector.shape_cast %65 : vector<2x16xf32> to vector<1x2x1x16xf32>
    tpu.vector_store %arg4[%c1_66, %c0_67, %c6_68, %c3_69], %68 {strides = array<i32>} : memref<2x2x22x22xf32, #tpu.memory_space<vmem>>, vector<1x2x1x16xf32>,
    %69 = vector.extract_strided_slice %4 {offsets = [0, 64], sizes = [2, 16], strides = [1, 1]} : vector<2x256xf32> to vector<2x16xf32>
    %c0_70 = arith.constant 0 : index
    %c0_71 = arith.constant 0 : index
    %c7 = arith.constant 7 : index
    %c3_72 = arith.constant 3 : index
    %70 = vector.load %arg4[%c0_70, %c0_71, %c7, %c3_72] : memref<2x2x22x22xf32, #tpu.memory_space<vmem>>, vector<1x2x1x16xf32>
    %71 = vector.shape_cast %70 : vector<1x2x1x16xf32> to vector<2x16xf32>
    %72 = vector.shape_cast %69 : vector<2x16xf32> to vector<1x2x1x16xf32>
    tpu.vector_store %arg4[%c0_70, %c0_71, %c7, %c3_72], %72 {strides = array<i32>} : memref<2x2x22x22xf32, #tpu.memory_space<vmem>>, vector<1x2x1x16xf32>,
    %73 = vector.extract_strided_slice %1 {offsets = [0, 64], sizes = [2, 16], strides = [1, 1]} : vector<2x256xf32> to vector<2x16xf32>
    %c1_73 = arith.constant 1 : index
    %c0_74 = arith.constant 0 : index
    %c7_75 = arith.constant 7 : index
    %c3_76 = arith.constant 3 : index
    %74 = vector.load %arg4[%c1_73, %c0_74, %c7_75, %c3_76] : memref<2x2x22x22xf32, #tpu.memory_space<vmem>>, vector<1x2x1x16xf32>
    %75 = vector.shape_cast %74 : vector<1x2x1x16xf32> to vector<2x16xf32>
    %76 = vector.shape_cast %73 : vector<2x16xf32> to vector<1x2x1x16xf32>
    tpu.vector_store %arg4[%c1_73, %c0_74, %c7_75, %c3_76], %76 {strides = array<i32>} : memref<2x2x22x22xf32, #tpu.memory_space<vmem>>, vector<1x2x1x16xf32>,
    %77 = vector.extract_strided_slice %4 {offsets = [0, 80], sizes = [2, 16], strides = [1, 1]} : vector<2x256xf32> to vector<2x16xf32>
    %c0_77 = arith.constant 0 : index
    %c0_78 = arith.constant 0 : index
    %c8 = arith.constant 8 : index
    %c3_79 = arith.constant 3 : index
    %78 = vector.load %arg4[%c0_77, %c0_78, %c8, %c3_79] : memref<2x2x22x22xf32, #tpu.memory_space<vmem>>, vector<1x2x1x16xf32>
    %79 = vector.shape_cast %78 : vector<1x2x1x16xf32> to vector<2x16xf32>
    %80 = vector.shape_cast %77 : vector<2x16xf32> to vector<1x2x1x16xf32>
    tpu.vector_store %arg4[%c0_77, %c0_78, %c8, %c3_79], %80 {strides = array<i32>} : memref<2x2x22x22xf32, #tpu.memory_space<vmem>>, vector<1x2x1x16xf32>,
    %81 = vector.extract_strided_slice %1 {offsets = [0, 80], sizes = [2, 16], strides = [1, 1]} : vector<2x256xf32> to vector<2x16xf32>
    %c1_80 = arith.constant 1 : index
    %c0_81 = arith.constant 0 : index
    %c8_82 = arith.constant 8 : index
    %c3_83 = arith.constant 3 : index
    %82 = vector.load %arg4[%c1_80, %c0_81, %c8_82, %c3_83] : memref<2x2x22x22xf32, #tpu.memory_space<vmem>>, vector<1x2x1x16xf32>
    %83 = vector.shape_cast %82 : vector<1x2x1x16xf32> to vector<2x16xf32>
    %84 = vector.shape_cast %81 : vector<2x16xf32> to vector<1x2x1x16xf32>
    tpu.vector_store %arg4[%c1_80, %c0_81, %c8_82, %c3_83], %84 {strides = array<i32>} : memref<2x2x22x22xf32, #tpu.memory_space<vmem>>, vector<1x2x1x16xf32>,
    %85 = vector.extract_strided_slice %4 {offsets = [0, 96], sizes = [2, 16], strides = [1, 1]} : vector<2x256xf32> to vector<2x16xf32>
    %c0_84 = arith.constant 0 : index
    %c0_85 = arith.constant 0 : index
    %c9 = arith.constant 9 : index
    %c3_86 = arith.constant 3 : index
    %86 = vector.load %arg4[%c0_84, %c0_85, %c9, %c3_86] : memref<2x2x22x22xf32, #tpu.memory_space<vmem>>, vector<1x2x1x16xf32>
    %87 = vector.shape_cast %86 : vector<1x2x1x16xf32> to vector<2x16xf32>
    %88 = vector.shape_cast %85 : vector<2x16xf32> to vector<1x2x1x16xf32>
    tpu.vector_store %arg4[%c0_84, %c0_85, %c9, %c3_86], %88 {strides = array<i32>} : memref<2x2x22x22xf32, #tpu.memory_space<vmem>>, vector<1x2x1x16xf32>,
    %89 = vector.extract_strided_slice %1 {offsets = [0, 96], sizes = [2, 16], strides = [1, 1]} : vector<2x256xf32> to vector<2x16xf32>
    %c1_87 = arith.constant 1 : index
    %c0_88 = arith.constant 0 : index
    %c9_89 = arith.constant 9 : index
    %c3_90 = arith.constant 3 : index
    %90 = vector.load %arg4[%c1_87, %c0_88, %c9_89, %c3_90] : memref<2x2x22x22xf32, #tpu.memory_space<vmem>>, vector<1x2x1x16xf32>
    %91 = vector.shape_cast %90 : vector<1x2x1x16xf32> to vector<2x16xf32>
    %92 = vector.shape_cast %89 : vector<2x16xf32> to vector<1x2x1x16xf32>
    tpu.vector_store %arg4[%c1_87, %c0_88, %c9_89, %c3_90], %92 {strides = array<i32>} : memref<2x2x22x22xf32, #tpu.memory_space<vmem>>, vector<1x2x1x16xf32>,
    %93 = vector.extract_strided_slice %4 {offsets = [0, 112], sizes = [2, 16], strides = [1, 1]} : vector<2x256xf32> to vector<2x16xf32>
    %c0_91 = arith.constant 0 : index
    %c0_92 = arith.constant 0 : index
    %c10 = arith.constant 10 : index
    %c3_93 = arith.constant 3 : index
    %94 = vector.load %arg4[%c0_91, %c0_92, %c10, %c3_93] : memref<2x2x22x22xf32, #tpu.memory_space<vmem>>, vector<1x2x1x16xf32>
    %95 = vector.shape_cast %94 : vector<1x2x1x16xf32> to vector<2x16xf32>
    %96 = vector.shape_cast %93 : vector<2x16xf32> to vector<1x2x1x16xf32>
    tpu.vector_store %arg4[%c0_91, %c0_92, %c10, %c3_93], %96 {strides = array<i32>} : memref<2x2x22x22xf32, #tpu.memory_space<vmem>>, vector<1x2x1x16xf32>,
    %97 = vector.extract_strided_slice %1 {offsets = [0, 112], sizes = [2, 16], strides = [1, 1]} : vector<2x256xf32> to vector<2x16xf32>
    %c1_94 = arith.constant 1 : index
    %c0_95 = arith.constant 0 : index
    %c10_96 = arith.constant 10 : index
    %c3_97 = arith.constant 3 : index
    %98 = vector.load %arg4[%c1_94, %c0_95, %c10_96, %c3_97] : memref<2x2x22x22xf32, #tpu.memory_space<vmem>>, vector<1x2x1x16xf32>
    %99 = vector.shape_cast %98 : vector<1x2x1x16xf32> to vector<2x16xf32>
    %100 = vector.shape_cast %97 : vector<2x16xf32> to vector<1x2x1x16xf32>
    tpu.vector_store %arg4[%c1_94, %c0_95, %c10_96, %c3_97], %100 {strides = array<i32>} : memref<2x2x22x22xf32, #tpu.memory_space<vmem>>, vector<1x2x1x16xf32>,
    %101 = vector.extract_strided_slice %4 {offsets = [0, 128], sizes = [2, 16], strides = [1, 1]} : vector<2x256xf32> to vector<2x16xf32>
    %c0_98 = arith.constant 0 : index
    %c0_99 = arith.constant 0 : index
    %c11 = arith.constant 11 : index
    %c3_100 = arith.constant 3 : index
    %102 = vector.load %arg4[%c0_98, %c0_99, %c11, %c3_100] : memref<2x2x22x22xf32, #tpu.memory_space<vmem>>, vector<1x2x1x16xf32>
    %103 = vector.shape_cast %102 : vector<1x2x1x16xf32> to vector<2x16xf32>
    %104 = vector.shape_cast %101 : vector<2x16xf32> to vector<1x2x1x16xf32>
    tpu.vector_store %arg4[%c0_98, %c0_99, %c11, %c3_100], %104 {strides = array<i32>} : memref<2x2x22x22xf32, #tpu.memory_space<vmem>>, vector<1x2x1x16xf32>,
    %105 = vector.extract_strided_slice %1 {offsets = [0, 128], sizes = [2, 16], strides = [1, 1]} : vector<2x256xf32> to vector<2x16xf32>
    %c1_101 = arith.constant 1 : index
    %c0_102 = arith.constant 0 : index
    %c11_103 = arith.constant 11 : index
    %c3_104 = arith.constant 3 : index
    %106 = vector.load %arg4[%c1_101, %c0_102, %c11_103, %c3_104] : memref<2x2x22x22xf32, #tpu.memory_space<vmem>>, vector<1x2x1x16xf32>
    %107 = vector.shape_cast %106 : vector<1x2x1x16xf32> to vector<2x16xf32>
    %108 = vector.shape_cast %105 : vector<2x16xf32> to vector<1x2x1x16xf32>
    tpu.vector_store %arg4[%c1_101, %c0_102, %c11_103, %c3_104], %108 {strides = array<i32>} : memref<2x2x22x22xf32, #tpu.memory_space<vmem>>, vector<1x2x1x16xf32>,
    %109 = vector.extract_strided_slice %4 {offsets = [0, 144], sizes = [2, 16], strides = [1, 1]} : vector<2x256xf32> to vector<2x16xf32>
    %c0_105 = arith.constant 0 : index
    %c0_106 = arith.constant 0 : index
    %c12 = arith.constant 12 : index
    %c3_107 = arith.constant 3 : index
    %110 = vector.load %arg4[%c0_105, %c0_106, %c12, %c3_107] : memref<2x2x22x22xf32, #tpu.memory_space<vmem>>, vector<1x2x1x16xf32>
    %111 = vector.shape_cast %110 : vector<1x2x1x16xf32> to vector<2x16xf32>
    %112 = vector.shape_cast %109 : vector<2x16xf32> to vector<1x2x1x16xf32>
    tpu.vector_store %arg4[%c0_105, %c0_106, %c12, %c3_107], %112 {strides = array<i32>} : memref<2x2x22x22xf32, #tpu.memory_space<vmem>>, vector<1x2x1x16xf32>,
    %113 = vector.extract_strided_slice %1 {offsets = [0, 144], sizes = [2, 16], strides = [1, 1]} : vector<2x256xf32> to vector<2x16xf32>
    %c1_108 = arith.constant 1 : index
    %c0_109 = arith.constant 0 : index
    %c12_110 = arith.constant 12 : index
    %c3_111 = arith.constant 3 : index
    %114 = vector.load %arg4[%c1_108, %c0_109, %c12_110, %c3_111] : memref<2x2x22x22xf32, #tpu.memory_space<vmem>>, vector<1x2x1x16xf32>
    %115 = vector.shape_cast %114 : vector<1x2x1x16xf32> to vector<2x16xf32>
    %116 = vector.shape_cast %113 : vector<2x16xf32> to vector<1x2x1x16xf32>
    tpu.vector_store %arg4[%c1_108, %c0_109, %c12_110, %c3_111], %116 {strides = array<i32>} : memref<2x2x22x22xf32, #tpu.memory_space<vmem>>, vector<1x2x1x16xf32>,
    %117 = vector.extract_strided_slice %4 {offsets = [0, 160], sizes = [2, 16], strides = [1, 1]} : vector<2x256xf32> to vector<2x16xf32>
    %c0_112 = arith.constant 0 : index
    %c0_113 = arith.constant 0 : index
    %c13 = arith.constant 13 : index
    %c3_114 = arith.constant 3 : index
    %118 = vector.load %arg4[%c0_112, %c0_113, %c13, %c3_114] : memref<2x2x22x22xf32, #tpu.memory_space<vmem>>, vector<1x2x1x16xf32>
    %119 = vector.shape_cast %118 : vector<1x2x1x16xf32> to vector<2x16xf32>
    %120 = vector.shape_cast %117 : vector<2x16xf32> to vector<1x2x1x16xf32>
    tpu.vector_store %arg4[%c0_112, %c0_113, %c13, %c3_114], %120 {strides = array<i32>} : memref<2x2x22x22xf32, #tpu.memory_space<vmem>>, vector<1x2x1x16xf32>,
    %121 = vector.extract_strided_slice %1 {offsets = [0, 160], sizes = [2, 16], strides = [1, 1]} : vector<2x256xf32> to vector<2x16xf32>
    %c1_115 = arith.constant 1 : index
    %c0_116 = arith.constant 0 : index
    %c13_117 = arith.constant 13 : index
    %c3_118 = arith.constant 3 : index
    %122 = vector.load %arg4[%c1_115, %c0_116, %c13_117, %c3_118] : memref<2x2x22x22xf32, #tpu.memory_space<vmem>>, vector<1x2x1x16xf32>
    %123 = vector.shape_cast %122 : vector<1x2x1x16xf32> to vector<2x16xf32>
    %124 = vector.shape_cast %121 : vector<2x16xf32> to vector<1x2x1x16xf32>
    tpu.vector_store %arg4[%c1_115, %c0_116, %c13_117, %c3_118], %124 {strides = array<i32>} : memref<2x2x22x22xf32, #tpu.memory_space<vmem>>, vector<1x2x1x16xf32>,
    %125 = vector.extract_strided_slice %4 {offsets = [0, 176], sizes = [2, 16], strides = [1, 1]} : vector<2x256xf32> to vector<2x16xf32>
    %c0_119 = arith.constant 0 : index
    %c0_120 = arith.constant 0 : index
    %c14 = arith.constant 14 : index
    %c3_121 = arith.constant 3 : index
    %126 = vector.load %arg4[%c0_119, %c0_120, %c14, %c3_121] : memref<2x2x22x22xf32, #tpu.memory_space<vmem>>, vector<1x2x1x16xf32>
    %127 = vector.shape_cast %126 : vector<1x2x1x16xf32> to vector<2x16xf32>
    %128 = vector.shape_cast %125 : vector<2x16xf32> to vector<1x2x1x16xf32>
    tpu.vector_store %arg4[%c0_119, %c0_120, %c14, %c3_121], %128 {strides = array<i32>} : memref<2x2x22x22xf32, #tpu.memory_space<vmem>>, vector<1x2x1x16xf32>,
    %129 = vector.extract_strided_slice %1 {offsets = [0, 176], sizes = [2, 16], strides = [1, 1]} : vector<2x256xf32> to vector<2x16xf32>
    %c1_122 = arith.constant 1 : index
    %c0_123 = arith.constant 0 : index
    %c14_124 = arith.constant 14 : index
    %c3_125 = arith.constant 3 : index
    %130 = vector.load %arg4[%c1_122, %c0_123, %c14_124, %c3_125] : memref<2x2x22x22xf32, #tpu.memory_space<vmem>>, vector<1x2x1x16xf32>
    %131 = vector.shape_cast %130 : vector<1x2x1x16xf32> to vector<2x16xf32>
    %132 = vector.shape_cast %129 : vector<2x16xf32> to vector<1x2x1x16xf32>
    tpu.vector_store %arg4[%c1_122, %c0_123, %c14_124, %c3_125], %132 {strides = array<i32>} : memref<2x2x22x22xf32, #tpu.memory_space<vmem>>, vector<1x2x1x16xf32>,
    %133 = vector.extract_strided_slice %4 {offsets = [0, 192], sizes = [2, 16], strides = [1, 1]} : vector<2x256xf32> to vector<2x16xf32>
    %c0_126 = arith.constant 0 : index
    %c0_127 = arith.constant 0 : index
    %c15 = arith.constant 15 : index
    %c3_128 = arith.constant 3 : index
    %134 = vector.load %arg4[%c0_126, %c0_127, %c15, %c3_128] : memref<2x2x22x22xf32, #tpu.memory_space<vmem>>, vector<1x2x1x16xf32>
    %135 = vector.shape_cast %134 : vector<1x2x1x16xf32> to vector<2x16xf32>
    %136 = vector.shape_cast %133 : vector<2x16xf32> to vector<1x2x1x16xf32>
    tpu.vector_store %arg4[%c0_126, %c0_127, %c15, %c3_128], %136 {strides = array<i32>} : memref<2x2x22x22xf32, #tpu.memory_space<vmem>>, vector<1x2x1x16xf32>,
    %137 = vector.extract_strided_slice %1 {offsets = [0, 192], sizes = [2, 16], strides = [1, 1]} : vector<2x256xf32> to vector<2x16xf32>
    %c1_129 = arith.constant 1 : index
    %c0_130 = arith.constant 0 : index
    %c15_131 = arith.constant 15 : index
    %c3_132 = arith.constant 3 : index
    %138 = vector.load %arg4[%c1_129, %c0_130, %c15_131, %c3_132] : memref<2x2x22x22xf32, #tpu.memory_space<vmem>>, vector<1x2x1x16xf32>
    %139 = vector.shape_cast %138 : vector<1x2x1x16xf32> to vector<2x16xf32>
    %140 = vector.shape_cast %137 : vector<2x16xf32> to vector<1x2x1x16xf32>
    tpu.vector_store %arg4[%c1_129, %c0_130, %c15_131, %c3_132], %140 {strides = array<i32>} : memref<2x2x22x22xf32, #tpu.memory_space<vmem>>, vector<1x2x1x16xf32>,
    %141 = vector.extract_strided_slice %4 {offsets = [0, 208], sizes = [2, 16], strides = [1, 1]} : vector<2x256xf32> to vector<2x16xf32>
    %c0_133 = arith.constant 0 : index
    %c0_134 = arith.constant 0 : index
    %c16 = arith.constant 16 : index
    %c3_135 = arith.constant 3 : index
    %142 = vector.load %arg4[%c0_133, %c0_134, %c16, %c3_135] : memref<2x2x22x22xf32, #tpu.memory_space<vmem>>, vector<1x2x1x16xf32>
    %143 = vector.shape_cast %142 : vector<1x2x1x16xf32> to vector<2x16xf32>
    %144 = vector.shape_cast %141 : vector<2x16xf32> to vector<1x2x1x16xf32>
    tpu.vector_store %arg4[%c0_133, %c0_134, %c16, %c3_135], %144 {strides = array<i32>} : memref<2x2x22x22xf32, #tpu.memory_space<vmem>>, vector<1x2x1x16xf32>,
    %145 = vector.extract_strided_slice %1 {offsets = [0, 208], sizes = [2, 16], strides = [1, 1]} : vector<2x256xf32> to vector<2x16xf32>
    %c1_136 = arith.constant 1 : index
    %c0_137 = arith.constant 0 : index
    %c16_138 = arith.constant 16 : index
    %c3_139 = arith.constant 3 : index
    %146 = vector.load %arg4[%c1_136, %c0_137, %c16_138, %c3_139] : memref<2x2x22x22xf32, #tpu.memory_space<vmem>>, vector<1x2x1x16xf32>
    %147 = vector.shape_cast %146 : vector<1x2x1x16xf32> to vector<2x16xf32>
    %148 = vector.shape_cast %145 : vector<2x16xf32> to vector<1x2x1x16xf32>
    tpu.vector_store %arg4[%c1_136, %c0_137, %c16_138, %c3_139], %148 {strides = array<i32>} : memref<2x2x22x22xf32, #tpu.memory_space<vmem>>, vector<1x2x1x16xf32>,
    %149 = vector.extract_strided_slice %4 {offsets = [0, 224], sizes = [2, 16], strides = [1, 1]} : vector<2x256xf32> to vector<2x16xf32>
    %c0_140 = arith.constant 0 : index
    %c0_141 = arith.constant 0 : index
    %c17 = arith.constant 17 : index
    %c3_142 = arith.constant 3 : index
    %150 = vector.load %arg4[%c0_140, %c0_141, %c17, %c3_142] : memref<2x2x22x22xf32, #tpu.memory_space<vmem>>, vector<1x2x1x16xf32>
    %151 = vector.shape_cast %150 : vector<1x2x1x16xf32> to vector<2x16xf32>
    %152 = vector.shape_cast %149 : vector<2x16xf32> to vector<1x2x1x16xf32>
    tpu.vector_store %arg4[%c0_140, %c0_141, %c17, %c3_142], %152 {strides = array<i32>} : memref<2x2x22x22xf32, #tpu.memory_space<vmem>>, vector<1x2x1x16xf32>,
    %153 = vector.extract_strided_slice %1 {offsets = [0, 224], sizes = [2, 16], strides = [1, 1]} : vector<2x256xf32> to vector<2x16xf32>
    %c1_143 = arith.constant 1 : index
    %c0_144 = arith.constant 0 : index
    %c17_145 = arith.constant 17 : index
    %c3_146 = arith.constant 3 : index
    %154 = vector.load %arg4[%c1_143, %c0_144, %c17_145, %c3_146] : memref<2x2x22x22xf32, #tpu.memory_space<vmem>>, vector<1x2x1x16xf32>
    %155 = vector.shape_cast %154 : vector<1x2x1x16xf32> to vector<2x16xf32>
    %156 = vector.shape_cast %153 : vector<2x16xf32> to vector<1x2x1x16xf32>
    tpu.vector_store %arg4[%c1_143, %c0_144, %c17_145, %c3_146], %156 {strides = array<i32>} : memref<2x2x22x22xf32, #tpu.memory_space<vmem>>, vector<1x2x1x16xf32>,
    %157 = vector.extract_strided_slice %4 {offsets = [0, 240], sizes = [2, 16], strides = [1, 1]} : vector<2x256xf32> to vector<2x16xf32>
    %c0_147 = arith.constant 0 : index
    %c0_148 = arith.constant 0 : index
    %c18 = arith.constant 18 : index
    %c3_149 = arith.constant 3 : index
    %158 = vector.load %arg4[%c0_147, %c0_148, %c18, %c3_149] : memref<2x2x22x22xf32, #tpu.memory_space<vmem>>, vector<1x2x1x16xf32>
    %159 = vector.shape_cast %158 : vector<1x2x1x16xf32> to vector<2x16xf32>
    %160 = vector.shape_cast %157 : vector<2x16xf32> to vector<1x2x1x16xf32>
    tpu.vector_store %arg4[%c0_147, %c0_148, %c18, %c3_149], %160 {strides = array<i32>} : memref<2x2x22x22xf32, #tpu.memory_space<vmem>>, vector<1x2x1x16xf32>,
    %161 = vector.extract_strided_slice %1 {offsets = [0, 240], sizes = [2, 16], strides = [1, 1]} : vector<2x256xf32> to vector<2x16xf32>
    %c1_150 = arith.constant 1 : index
    %c0_151 = arith.constant 0 : index
    %c18_152 = arith.constant 18 : index
    %c3_153 = arith.constant 3 : index
    %162 = vector.load %arg4[%c1_150, %c0_151, %c18_152, %c3_153] : memref<2x2x22x22xf32, #tpu.memory_space<vmem>>, vector<1x2x1x16xf32>
    %163 = vector.shape_cast %162 : vector<1x2x1x16xf32> to vector<2x16xf32>
    %164 = vector.shape_cast %161 : vector<2x16xf32> to vector<1x2x1x16xf32>
    tpu.vector_store %arg4[%c1_150, %c0_151, %c18_152, %c3_153], %164 {strides = array<i32>} : memref<2x2x22x22xf32, #tpu.memory_space<vmem>>, vector<1x2x1x16xf32>,
    %cst_154 = arith.constant 0.000000e+00 : f32
    %165 = vector.broadcast %cst_154 : f32 to vector<2x16x16xf32>
    %cst_155 = arith.constant 0.000000e+00 : f32
    %166 = vector.broadcast %cst_155 : f32 to vector<2x16x16xf32>
    %cst_156 = arith.constant 0.000000e+00 : f32
    %167 = vector.broadcast %cst_156 : f32 to vector<2x16x16xf32>
    %cst_157 = arith.constant 0.000000e+00 : f32
    %168 = vector.broadcast %cst_157 : f32 to vector<2x16x16xf32>
    %c0_158 = arith.constant 0 : index
    %c0_159 = arith.constant 0 : index
    %c0_160 = arith.constant 0 : index
    %c0_161 = arith.constant 0 : index
    %169 = vector.load %arg4[%c0_158, %c0_159, %c0_160, %c0_161] : memref<2x2x22x22xf32, #tpu.memory_space<vmem>>, vector<1x2x22x22xf32>
    %170 = vector.shape_cast %169 : vector<1x2x22x22xf32> to vector<2x22x22xf32>
    %171 = vector.extract_strided_slice %170 {offsets = [0, 0, 0], sizes = [2, 16, 22], strides = [1, 1, 1]} : vector<2x22x22xf32> to vector<2x16x22xf32>
    %c0_162 = arith.constant 0 : index
    %172 = memref.load %arg1[%c0_162] : memref<98xf32, #tpu.memory_space<smem>>
    %173 = vector.extract_strided_slice %171 {offsets = [0, 0, 0], sizes = [2, 16, 16], strides = [1, 1, 1]} : vector<2x16x22xf32> to vector<2x16x16xf32>
    %174 = vector.broadcast %172 : f32 to vector<2x16x16xf32>
    %175 = arith.mulf %173, %174 : vector<2x16x16xf32>
    %176 = arith.addf %165, %175 : vector<2x16x16xf32>
    %c1_163 = arith.constant 1 : index
    %177 = memref.load %arg1[%c1_163] : memref<98xf32, #tpu.memory_space<smem>>
    %178 = vector.extract_strided_slice %171 {offsets = [0, 0, 1], sizes = [2, 16, 16], strides = [1, 1, 1]} : vector<2x16x22xf32> to vector<2x16x16xf32>
    %179 = vector.broadcast %177 : f32 to vector<2x16x16xf32>
    %180 = arith.mulf %178, %179 : vector<2x16x16xf32>
    %181 = arith.addf %176, %180 : vector<2x16x16xf32>
    %c2 = arith.constant 2 : index
    %182 = memref.load %arg1[%c2] : memref<98xf32, #tpu.memory_space<smem>>
    %183 = vector.extract_strided_slice %171 {offsets = [0, 0, 2], sizes = [2, 16, 16], strides = [1, 1, 1]} : vector<2x16x22xf32> to vector<2x16x16xf32>
    %184 = vector.broadcast %182 : f32 to vector<2x16x16xf32>
    %185 = arith.mulf %183, %184 : vector<2x16x16xf32>
    %186 = arith.addf %181, %185 : vector<2x16x16xf32>
    %c3_164 = arith.constant 3 : index
    %187 = memref.load %arg1[%c3_164] : memref<98xf32, #tpu.memory_space<smem>>
    %188 = vector.extract_strided_slice %171 {offsets = [0, 0, 3], sizes = [2, 16, 16], strides = [1, 1, 1]} : vector<2x16x22xf32> to vector<2x16x16xf32>
    %189 = vector.broadcast %187 : f32 to vector<2x16x16xf32>
    %190 = arith.mulf %188, %189 : vector<2x16x16xf32>
    %191 = arith.addf %186, %190 : vector<2x16x16xf32>
    %c4_165 = arith.constant 4 : index
    %192 = memref.load %arg1[%c4_165] : memref<98xf32, #tpu.memory_space<smem>>
    %193 = vector.extract_strided_slice %171 {offsets = [0, 0, 4], sizes = [2, 16, 16], strides = [1, 1, 1]} : vector<2x16x22xf32> to vector<2x16x16xf32>
    %194 = vector.broadcast %192 : f32 to vector<2x16x16xf32>
    %195 = arith.mulf %193, %194 : vector<2x16x16xf32>
    %196 = arith.addf %191, %195 : vector<2x16x16xf32>
    %c5_166 = arith.constant 5 : index
    %197 = memref.load %arg1[%c5_166] : memref<98xf32, #tpu.memory_space<smem>>
    %198 = vector.extract_strided_slice %171 {offsets = [0, 0, 5], sizes = [2, 16, 16], strides = [1, 1, 1]} : vector<2x16x22xf32> to vector<2x16x16xf32>
    %199 = vector.broadcast %197 : f32 to vector<2x16x16xf32>
    %200 = arith.mulf %198, %199 : vector<2x16x16xf32>
    %201 = arith.addf %196, %200 : vector<2x16x16xf32>
    %c6_167 = arith.constant 6 : index
    %202 = memref.load %arg1[%c6_167] : memref<98xf32, #tpu.memory_space<smem>>
    %203 = vector.extract_strided_slice %171 {offsets = [0, 0, 6], sizes = [2, 16, 16], strides = [1, 1, 1]} : vector<2x16x22xf32> to vector<2x16x16xf32>
    %204 = vector.broadcast %202 : f32 to vector<2x16x16xf32>
    %205 = arith.mulf %203, %204 : vector<2x16x16xf32>
    %206 = arith.addf %201, %205 : vector<2x16x16xf32>
    %207 = vector.extract_strided_slice %170 {offsets = [0, 1, 0], sizes = [2, 16, 22], strides = [1, 1, 1]} : vector<2x22x22xf32> to vector<2x16x22xf32>
    %c7_168 = arith.constant 7 : index
    %208 = memref.load %arg1[%c7_168] : memref<98xf32, #tpu.memory_space<smem>>
    %209 = vector.extract_strided_slice %207 {offsets = [0, 0, 0], sizes = [2, 16, 16], strides = [1, 1, 1]} : vector<2x16x22xf32> to vector<2x16x16xf32>
    %210 = vector.broadcast %208 : f32 to vector<2x16x16xf32>
    %211 = arith.mulf %209, %210 : vector<2x16x16xf32>
    %212 = arith.addf %166, %211 : vector<2x16x16xf32>
    %c8_169 = arith.constant 8 : index
    %213 = memref.load %arg1[%c8_169] : memref<98xf32, #tpu.memory_space<smem>>
    %214 = vector.extract_strided_slice %207 {offsets = [0, 0, 1], sizes = [2, 16, 16], strides = [1, 1, 1]} : vector<2x16x22xf32> to vector<2x16x16xf32>
    %215 = vector.broadcast %213 : f32 to vector<2x16x16xf32>
    %216 = arith.mulf %214, %215 : vector<2x16x16xf32>
    %217 = arith.addf %212, %216 : vector<2x16x16xf32>
    %c9_170 = arith.constant 9 : index
    %218 = memref.load %arg1[%c9_170] : memref<98xf32, #tpu.memory_space<smem>>
    %219 = vector.extract_strided_slice %207 {offsets = [0, 0, 2], sizes = [2, 16, 16], strides = [1, 1, 1]} : vector<2x16x22xf32> to vector<2x16x16xf32>
    %220 = vector.broadcast %218 : f32 to vector<2x16x16xf32>
    %221 = arith.mulf %219, %220 : vector<2x16x16xf32>
    %222 = arith.addf %217, %221 : vector<2x16x16xf32>
    %c10_171 = arith.constant 10 : index
    %223 = memref.load %arg1[%c10_171] : memref<98xf32, #tpu.memory_space<smem>>
    %224 = vector.extract_strided_slice %207 {offsets = [0, 0, 3], sizes = [2, 16, 16], strides = [1, 1, 1]} : vector<2x16x22xf32> to vector<2x16x16xf32>
    %225 = vector.broadcast %223 : f32 to vector<2x16x16xf32>
    %226 = arith.mulf %224, %225 : vector<2x16x16xf32>
    %227 = arith.addf %222, %226 : vector<2x16x16xf32>
    %c11_172 = arith.constant 11 : index
    %228 = memref.load %arg1[%c11_172] : memref<98xf32, #tpu.memory_space<smem>>
    %229 = vector.extract_strided_slice %207 {offsets = [0, 0, 4], sizes = [2, 16, 16], strides = [1, 1, 1]} : vector<2x16x22xf32> to vector<2x16x16xf32>
    %230 = vector.broadcast %228 : f32 to vector<2x16x16xf32>
    %231 = arith.mulf %229, %230 : vector<2x16x16xf32>
    %232 = arith.addf %227, %231 : vector<2x16x16xf32>
    %c12_173 = arith.constant 12 : index
    %233 = memref.load %arg1[%c12_173] : memref<98xf32, #tpu.memory_space<smem>>
    %234 = vector.extract_strided_slice %207 {offsets = [0, 0, 5], sizes = [2, 16, 16], strides = [1, 1, 1]} : vector<2x16x22xf32> to vector<2x16x16xf32>
    %235 = vector.broadcast %233 : f32 to vector<2x16x16xf32>
    %236 = arith.mulf %234, %235 : vector<2x16x16xf32>
    %237 = arith.addf %232, %236 : vector<2x16x16xf32>
    %c13_174 = arith.constant 13 : index
    %238 = memref.load %arg1[%c13_174] : memref<98xf32, #tpu.memory_space<smem>>
    %239 = vector.extract_strided_slice %207 {offsets = [0, 0, 6], sizes = [2, 16, 16], strides = [1, 1, 1]} : vector<2x16x22xf32> to vector<2x16x16xf32>
    %240 = vector.broadcast %238 : f32 to vector<2x16x16xf32>
    %241 = arith.mulf %239, %240 : vector<2x16x16xf32>
    %242 = arith.addf %237, %241 : vector<2x16x16xf32>
    %243 = vector.extract_strided_slice %170 {offsets = [0, 2, 0], sizes = [2, 16, 22], strides = [1, 1, 1]} : vector<2x22x22xf32> to vector<2x16x22xf32>
    %c14_175 = arith.constant 14 : index
    %244 = memref.load %arg1[%c14_175] : memref<98xf32, #tpu.memory_space<smem>>
    %245 = vector.extract_strided_slice %243 {offsets = [0, 0, 0], sizes = [2, 16, 16], strides = [1, 1, 1]} : vector<2x16x22xf32> to vector<2x16x16xf32>
    %246 = vector.broadcast %244 : f32 to vector<2x16x16xf32>
    %247 = arith.mulf %245, %246 : vector<2x16x16xf32>
    %248 = arith.addf %206, %247 : vector<2x16x16xf32>
    %c15_176 = arith.constant 15 : index
    %249 = memref.load %arg1[%c15_176] : memref<98xf32, #tpu.memory_space<smem>>
    %250 = vector.extract_strided_slice %243 {offsets = [0, 0, 1], sizes = [2, 16, 16], strides = [1, 1, 1]} : vector<2x16x22xf32> to vector<2x16x16xf32>
    %251 = vector.broadcast %249 : f32 to vector<2x16x16xf32>
    %252 = arith.mulf %250, %251 : vector<2x16x16xf32>
    %253 = arith.addf %248, %252 : vector<2x16x16xf32>
    %c16_177 = arith.constant 16 : index
    %254 = memref.load %arg1[%c16_177] : memref<98xf32, #tpu.memory_space<smem>>
    %255 = vector.extract_strided_slice %243 {offsets = [0, 0, 2], sizes = [2, 16, 16], strides = [1, 1, 1]} : vector<2x16x22xf32> to vector<2x16x16xf32>
    %256 = vector.broadcast %254 : f32 to vector<2x16x16xf32>
    %257 = arith.mulf %255, %256 : vector<2x16x16xf32>
    %258 = arith.addf %253, %257 : vector<2x16x16xf32>
    %c17_178 = arith.constant 17 : index
    %259 = memref.load %arg1[%c17_178] : memref<98xf32, #tpu.memory_space<smem>>
    %260 = vector.extract_strided_slice %243 {offsets = [0, 0, 3], sizes = [2, 16, 16], strides = [1, 1, 1]} : vector<2x16x22xf32> to vector<2x16x16xf32>
    %261 = vector.broadcast %259 : f32 to vector<2x16x16xf32>
    %262 = arith.mulf %260, %261 : vector<2x16x16xf32>
    %263 = arith.addf %258, %262 : vector<2x16x16xf32>
    %c18_179 = arith.constant 18 : index
    %264 = memref.load %arg1[%c18_179] : memref<98xf32, #tpu.memory_space<smem>>
    %265 = vector.extract_strided_slice %243 {offsets = [0, 0, 4], sizes = [2, 16, 16], strides = [1, 1, 1]} : vector<2x16x22xf32> to vector<2x16x16xf32>
    %266 = vector.broadcast %264 : f32 to vector<2x16x16xf32>
    %267 = arith.mulf %265, %266 : vector<2x16x16xf32>
    %268 = arith.addf %263, %267 : vector<2x16x16xf32>
    %c19_180 = arith.constant 19 : index
    %269 = memref.load %arg1[%c19_180] : memref<98xf32, #tpu.memory_space<smem>>
    %270 = vector.extract_strided_slice %243 {offsets = [0, 0, 5], sizes = [2, 16, 16], strides = [1, 1, 1]} : vector<2x16x22xf32> to vector<2x16x16xf32>
    %271 = vector.broadcast %269 : f32 to vector<2x16x16xf32>
    %272 = arith.mulf %270, %271 : vector<2x16x16xf32>
    %273 = arith.addf %268, %272 : vector<2x16x16xf32>
    %c20 = arith.constant 20 : index
    %274 = memref.load %arg1[%c20] : memref<98xf32, #tpu.memory_space<smem>>
    %275 = vector.extract_strided_slice %243 {offsets = [0, 0, 6], sizes = [2, 16, 16], strides = [1, 1, 1]} : vector<2x16x22xf32> to vector<2x16x16xf32>
    %276 = vector.broadcast %274 : f32 to vector<2x16x16xf32>
    %277 = arith.mulf %275, %276 : vector<2x16x16xf32>
    %278 = arith.addf %273, %277 : vector<2x16x16xf32>
    %279 = vector.extract_strided_slice %170 {offsets = [0, 3, 0], sizes = [2, 16, 22], strides = [1, 1, 1]} : vector<2x22x22xf32> to vector<2x16x22xf32>
    %c21 = arith.constant 21 : index
    %280 = memref.load %arg1[%c21] : memref<98xf32, #tpu.memory_space<smem>>
    %281 = vector.extract_strided_slice %279 {offsets = [0, 0, 0], sizes = [2, 16, 16], strides = [1, 1, 1]} : vector<2x16x22xf32> to vector<2x16x16xf32>
    %282 = vector.broadcast %280 : f32 to vector<2x16x16xf32>
    %283 = arith.mulf %281, %282 : vector<2x16x16xf32>
    %284 = arith.addf %242, %283 : vector<2x16x16xf32>
    %c22 = arith.constant 22 : index
    %285 = memref.load %arg1[%c22] : memref<98xf32, #tpu.memory_space<smem>>
    %286 = vector.extract_strided_slice %279 {offsets = [0, 0, 1], sizes = [2, 16, 16], strides = [1, 1, 1]} : vector<2x16x22xf32> to vector<2x16x16xf32>
    %287 = vector.broadcast %285 : f32 to vector<2x16x16xf32>
    %288 = arith.mulf %286, %287 : vector<2x16x16xf32>
    %289 = arith.addf %284, %288 : vector<2x16x16xf32>
    %c23 = arith.constant 23 : index
    %290 = memref.load %arg1[%c23] : memref<98xf32, #tpu.memory_space<smem>>
    %291 = vector.extract_strided_slice %279 {offsets = [0, 0, 2], sizes = [2, 16, 16], strides = [1, 1, 1]} : vector<2x16x22xf32> to vector<2x16x16xf32>
    %292 = vector.broadcast %290 : f32 to vector<2x16x16xf32>
    %293 = arith.mulf %291, %292 : vector<2x16x16xf32>
    %294 = arith.addf %289, %293 : vector<2x16x16xf32>
    %c24 = arith.constant 24 : index
    %295 = memref.load %arg1[%c24] : memref<98xf32, #tpu.memory_space<smem>>
    %296 = vector.extract_strided_slice %279 {offsets = [0, 0, 3], sizes = [2, 16, 16], strides = [1, 1, 1]} : vector<2x16x22xf32> to vector<2x16x16xf32>
    %297 = vector.broadcast %295 : f32 to vector<2x16x16xf32>
    %298 = arith.mulf %296, %297 : vector<2x16x16xf32>
    %299 = arith.addf %294, %298 : vector<2x16x16xf32>
    %c25 = arith.constant 25 : index
    %300 = memref.load %arg1[%c25] : memref<98xf32, #tpu.memory_space<smem>>
    %301 = vector.extract_strided_slice %279 {offsets = [0, 0, 4], sizes = [2, 16, 16], strides = [1, 1, 1]} : vector<2x16x22xf32> to vector<2x16x16xf32>
    %302 = vector.broadcast %300 : f32 to vector<2x16x16xf32>
    %303 = arith.mulf %301, %302 : vector<2x16x16xf32>
    %304 = arith.addf %299, %303 : vector<2x16x16xf32>
    %c26 = arith.constant 26 : index
    %305 = memref.load %arg1[%c26] : memref<98xf32, #tpu.memory_space<smem>>
    %306 = vector.extract_strided_slice %279 {offsets = [0, 0, 5], sizes = [2, 16, 16], strides = [1, 1, 1]} : vector<2x16x22xf32> to vector<2x16x16xf32>
    %307 = vector.broadcast %305 : f32 to vector<2x16x16xf32>
    %308 = arith.mulf %306, %307 : vector<2x16x16xf32>
    %309 = arith.addf %304, %308 : vector<2x16x16xf32>
    %c27 = arith.constant 27 : index
    %310 = memref.load %arg1[%c27] : memref<98xf32, #tpu.memory_space<smem>>
    %311 = vector.extract_strided_slice %279 {offsets = [0, 0, 6], sizes = [2, 16, 16], strides = [1, 1, 1]} : vector<2x16x22xf32> to vector<2x16x16xf32>
    %312 = vector.broadcast %310 : f32 to vector<2x16x16xf32>
    %313 = arith.mulf %311, %312 : vector<2x16x16xf32>
    %314 = arith.addf %309, %313 : vector<2x16x16xf32>
    %315 = vector.extract_strided_slice %170 {offsets = [0, 4, 0], sizes = [2, 16, 22], strides = [1, 1, 1]} : vector<2x22x22xf32> to vector<2x16x22xf32>
    %c28 = arith.constant 28 : index
    %316 = memref.load %arg1[%c28] : memref<98xf32, #tpu.memory_space<smem>>
    %317 = vector.extract_strided_slice %315 {offsets = [0, 0, 0], sizes = [2, 16, 16], strides = [1, 1, 1]} : vector<2x16x22xf32> to vector<2x16x16xf32>
    %318 = vector.broadcast %316 : f32 to vector<2x16x16xf32>
    %319 = arith.mulf %317, %318 : vector<2x16x16xf32>
    %320 = arith.addf %278, %319 : vector<2x16x16xf32>
    %c29 = arith.constant 29 : index
    %321 = memref.load %arg1[%c29] : memref<98xf32, #tpu.memory_space<smem>>
    %322 = vector.extract_strided_slice %315 {offsets = [0, 0, 1], sizes = [2, 16, 16], strides = [1, 1, 1]} : vector<2x16x22xf32> to vector<2x16x16xf32>
    %323 = vector.broadcast %321 : f32 to vector<2x16x16xf32>
    %324 = arith.mulf %322, %323 : vector<2x16x16xf32>
    %325 = arith.addf %320, %324 : vector<2x16x16xf32>
    %c30 = arith.constant 30 : index
    %326 = memref.load %arg1[%c30] : memref<98xf32, #tpu.memory_space<smem>>
    %327 = vector.extract_strided_slice %315 {offsets = [0, 0, 2], sizes = [2, 16, 16], strides = [1, 1, 1]} : vector<2x16x22xf32> to vector<2x16x16xf32>
    %328 = vector.broadcast %326 : f32 to vector<2x16x16xf32>
    %329 = arith.mulf %327, %328 : vector<2x16x16xf32>
    %330 = arith.addf %325, %329 : vector<2x16x16xf32>
    %c31 = arith.constant 31 : index
    %331 = memref.load %arg1[%c31] : memref<98xf32, #tpu.memory_space<smem>>
    %332 = vector.extract_strided_slice %315 {offsets = [0, 0, 3], sizes = [2, 16, 16], strides = [1, 1, 1]} : vector<2x16x22xf32> to vector<2x16x16xf32>
    %333 = vector.broadcast %331 : f32 to vector<2x16x16xf32>
    %334 = arith.mulf %332, %333 : vector<2x16x16xf32>
    %335 = arith.addf %330, %334 : vector<2x16x16xf32>
    %c32 = arith.constant 32 : index
    %336 = memref.load %arg1[%c32] : memref<98xf32, #tpu.memory_space<smem>>
    %337 = vector.extract_strided_slice %315 {offsets = [0, 0, 4], sizes = [2, 16, 16], strides = [1, 1, 1]} : vector<2x16x22xf32> to vector<2x16x16xf32>
    %338 = vector.broadcast %336 : f32 to vector<2x16x16xf32>
    %339 = arith.mulf %337, %338 : vector<2x16x16xf32>
    %340 = arith.addf %335, %339 : vector<2x16x16xf32>
    %c33 = arith.constant 33 : index
    %341 = memref.load %arg1[%c33] : memref<98xf32, #tpu.memory_space<smem>>
    %342 = vector.extract_strided_slice %315 {offsets = [0, 0, 5], sizes = [2, 16, 16], strides = [1, 1, 1]} : vector<2x16x22xf32> to vector<2x16x16xf32>
    %343 = vector.broadcast %341 : f32 to vector<2x16x16xf32>
    %344 = arith.mulf %342, %343 : vector<2x16x16xf32>
    %345 = arith.addf %340, %344 : vector<2x16x16xf32>
    %c34 = arith.constant 34 : index
    %346 = memref.load %arg1[%c34] : memref<98xf32, #tpu.memory_space<smem>>
    %347 = vector.extract_strided_slice %315 {offsets = [0, 0, 6], sizes = [2, 16, 16], strides = [1, 1, 1]} : vector<2x16x22xf32> to vector<2x16x16xf32>
    %348 = vector.broadcast %346 : f32 to vector<2x16x16xf32>
    %349 = arith.mulf %347, %348 : vector<2x16x16xf32>
    %350 = arith.addf %345, %349 : vector<2x16x16xf32>
    %351 = vector.extract_strided_slice %170 {offsets = [0, 5, 0], sizes = [2, 16, 22], strides = [1, 1, 1]} : vector<2x22x22xf32> to vector<2x16x22xf32>
    %c35 = arith.constant 35 : index
    %352 = memref.load %arg1[%c35] : memref<98xf32, #tpu.memory_space<smem>>
    %353 = vector.extract_strided_slice %351 {offsets = [0, 0, 0], sizes = [2, 16, 16], strides = [1, 1, 1]} : vector<2x16x22xf32> to vector<2x16x16xf32>
    %354 = vector.broadcast %352 : f32 to vector<2x16x16xf32>
    %355 = arith.mulf %353, %354 : vector<2x16x16xf32>
    %356 = arith.addf %314, %355 : vector<2x16x16xf32>
    %c36 = arith.constant 36 : index
    %357 = memref.load %arg1[%c36] : memref<98xf32, #tpu.memory_space<smem>>
    %358 = vector.extract_strided_slice %351 {offsets = [0, 0, 1], sizes = [2, 16, 16], strides = [1, 1, 1]} : vector<2x16x22xf32> to vector<2x16x16xf32>
    %359 = vector.broadcast %357 : f32 to vector<2x16x16xf32>
    %360 = arith.mulf %358, %359 : vector<2x16x16xf32>
    %361 = arith.addf %356, %360 : vector<2x16x16xf32>
    %c37 = arith.constant 37 : index
    %362 = memref.load %arg1[%c37] : memref<98xf32, #tpu.memory_space<smem>>
    %363 = vector.extract_strided_slice %351 {offsets = [0, 0, 2], sizes = [2, 16, 16], strides = [1, 1, 1]} : vector<2x16x22xf32> to vector<2x16x16xf32>
    %364 = vector.broadcast %362 : f32 to vector<2x16x16xf32>
    %365 = arith.mulf %363, %364 : vector<2x16x16xf32>
    %366 = arith.addf %361, %365 : vector<2x16x16xf32>
    %c38 = arith.constant 38 : index
    %367 = memref.load %arg1[%c38] : memref<98xf32, #tpu.memory_space<smem>>
    %368 = vector.extract_strided_slice %351 {offsets = [0, 0, 3], sizes = [2, 16, 16], strides = [1, 1, 1]} : vector<2x16x22xf32> to vector<2x16x16xf32>
    %369 = vector.broadcast %367 : f32 to vector<2x16x16xf32>
    %370 = arith.mulf %368, %369 : vector<2x16x16xf32>
    %371 = arith.addf %366, %370 : vector<2x16x16xf32>
    %c39 = arith.constant 39 : index
    %372 = memref.load %arg1[%c39] : memref<98xf32, #tpu.memory_space<smem>>
    %373 = vector.extract_strided_slice %351 {offsets = [0, 0, 4], sizes = [2, 16, 16], strides = [1, 1, 1]} : vector<2x16x22xf32> to vector<2x16x16xf32>
    %374 = vector.broadcast %372 : f32 to vector<2x16x16xf32>
    %375 = arith.mulf %373, %374 : vector<2x16x16xf32>
    %376 = arith.addf %371, %375 : vector<2x16x16xf32>
    %c40 = arith.constant 40 : index
    %377 = memref.load %arg1[%c40] : memref<98xf32, #tpu.memory_space<smem>>
    %378 = vector.extract_strided_slice %351 {offsets = [0, 0, 5], sizes = [2, 16, 16], strides = [1, 1, 1]} : vector<2x16x22xf32> to vector<2x16x16xf32>
    %379 = vector.broadcast %377 : f32 to vector<2x16x16xf32>
    %380 = arith.mulf %378, %379 : vector<2x16x16xf32>
    %381 = arith.addf %376, %380 : vector<2x16x16xf32>
    %c41 = arith.constant 41 : index
    %382 = memref.load %arg1[%c41] : memref<98xf32, #tpu.memory_space<smem>>
    %383 = vector.extract_strided_slice %351 {offsets = [0, 0, 6], sizes = [2, 16, 16], strides = [1, 1, 1]} : vector<2x16x22xf32> to vector<2x16x16xf32>
    %384 = vector.broadcast %382 : f32 to vector<2x16x16xf32>
    %385 = arith.mulf %383, %384 : vector<2x16x16xf32>
    %386 = arith.addf %381, %385 : vector<2x16x16xf32>
    %387 = vector.extract_strided_slice %170 {offsets = [0, 6, 0], sizes = [2, 16, 22], strides = [1, 1, 1]} : vector<2x22x22xf32> to vector<2x16x22xf32>
    %c42 = arith.constant 42 : index
    %388 = memref.load %arg1[%c42] : memref<98xf32, #tpu.memory_space<smem>>
    %389 = vector.extract_strided_slice %387 {offsets = [0, 0, 0], sizes = [2, 16, 16], strides = [1, 1, 1]} : vector<2x16x22xf32> to vector<2x16x16xf32>
    %390 = vector.broadcast %388 : f32 to vector<2x16x16xf32>
    %391 = arith.mulf %389, %390 : vector<2x16x16xf32>
    %392 = arith.addf %350, %391 : vector<2x16x16xf32>
    %c43 = arith.constant 43 : index
    %393 = memref.load %arg1[%c43] : memref<98xf32, #tpu.memory_space<smem>>
    %394 = vector.extract_strided_slice %387 {offsets = [0, 0, 1], sizes = [2, 16, 16], strides = [1, 1, 1]} : vector<2x16x22xf32> to vector<2x16x16xf32>
    %395 = vector.broadcast %393 : f32 to vector<2x16x16xf32>
    %396 = arith.mulf %394, %395 : vector<2x16x16xf32>
    %397 = arith.addf %392, %396 : vector<2x16x16xf32>
    %c44 = arith.constant 44 : index
    %398 = memref.load %arg1[%c44] : memref<98xf32, #tpu.memory_space<smem>>
    %399 = vector.extract_strided_slice %387 {offsets = [0, 0, 2], sizes = [2, 16, 16], strides = [1, 1, 1]} : vector<2x16x22xf32> to vector<2x16x16xf32>
    %400 = vector.broadcast %398 : f32 to vector<2x16x16xf32>
    %401 = arith.mulf %399, %400 : vector<2x16x16xf32>
    %402 = arith.addf %397, %401 : vector<2x16x16xf32>
    %c45 = arith.constant 45 : index
    %403 = memref.load %arg1[%c45] : memref<98xf32, #tpu.memory_space<smem>>
    %404 = vector.extract_strided_slice %387 {offsets = [0, 0, 3], sizes = [2, 16, 16], strides = [1, 1, 1]} : vector<2x16x22xf32> to vector<2x16x16xf32>
    %405 = vector.broadcast %403 : f32 to vector<2x16x16xf32>
    %406 = arith.mulf %404, %405 : vector<2x16x16xf32>
    %407 = arith.addf %402, %406 : vector<2x16x16xf32>
    %c46 = arith.constant 46 : index
    %408 = memref.load %arg1[%c46] : memref<98xf32, #tpu.memory_space<smem>>
    %409 = vector.extract_strided_slice %387 {offsets = [0, 0, 4], sizes = [2, 16, 16], strides = [1, 1, 1]} : vector<2x16x22xf32> to vector<2x16x16xf32>
    %410 = vector.broadcast %408 : f32 to vector<2x16x16xf32>
    %411 = arith.mulf %409, %410 : vector<2x16x16xf32>
    %412 = arith.addf %407, %411 : vector<2x16x16xf32>
    %c47 = arith.constant 47 : index
    %413 = memref.load %arg1[%c47] : memref<98xf32, #tpu.memory_space<smem>>
    %414 = vector.extract_strided_slice %387 {offsets = [0, 0, 5], sizes = [2, 16, 16], strides = [1, 1, 1]} : vector<2x16x22xf32> to vector<2x16x16xf32>
    %415 = vector.broadcast %413 : f32 to vector<2x16x16xf32>
    %416 = arith.mulf %414, %415 : vector<2x16x16xf32>
    %417 = arith.addf %412, %416 : vector<2x16x16xf32>
    %c48 = arith.constant 48 : index
    %418 = memref.load %arg1[%c48] : memref<98xf32, #tpu.memory_space<smem>>
    %419 = vector.extract_strided_slice %387 {offsets = [0, 0, 6], sizes = [2, 16, 16], strides = [1, 1, 1]} : vector<2x16x22xf32> to vector<2x16x16xf32>
    %420 = vector.broadcast %418 : f32 to vector<2x16x16xf32>
    %421 = arith.mulf %419, %420 : vector<2x16x16xf32>
    %422 = arith.addf %417, %421 : vector<2x16x16xf32>
    %c1_181 = arith.constant 1 : index
    %c0_182 = arith.constant 0 : index
    %c0_183 = arith.constant 0 : index
    %c0_184 = arith.constant 0 : index
    %423 = vector.load %arg4[%c1_181, %c0_182, %c0_183, %c0_184] : memref<2x2x22x22xf32, #tpu.memory_space<vmem>>, vector<1x2x22x22xf32>
    %424 = vector.shape_cast %423 : vector<1x2x22x22xf32> to vector<2x22x22xf32>
    %425 = vector.extract_strided_slice %424 {offsets = [0, 0, 0], sizes = [2, 16, 22], strides = [1, 1, 1]} : vector<2x22x22xf32> to vector<2x16x22xf32>
    %c49 = arith.constant 49 : index
    %426 = memref.load %arg1[%c49] : memref<98xf32, #tpu.memory_space<smem>>
    %427 = vector.extract_strided_slice %425 {offsets = [0, 0, 0], sizes = [2, 16, 16], strides = [1, 1, 1]} : vector<2x16x22xf32> to vector<2x16x16xf32>
    %428 = vector.broadcast %426 : f32 to vector<2x16x16xf32>
    %429 = arith.mulf %427, %428 : vector<2x16x16xf32>
    %430 = arith.addf %167, %429 : vector<2x16x16xf32>
    %c50 = arith.constant 50 : index
    %431 = memref.load %arg1[%c50] : memref<98xf32, #tpu.memory_space<smem>>
    %432 = vector.extract_strided_slice %425 {offsets = [0, 0, 1], sizes = [2, 16, 16], strides = [1, 1, 1]} : vector<2x16x22xf32> to vector<2x16x16xf32>
    %433 = vector.broadcast %431 : f32 to vector<2x16x16xf32>
    %434 = arith.mulf %432, %433 : vector<2x16x16xf32>
    %435 = arith.addf %430, %434 : vector<2x16x16xf32>
    %c51 = arith.constant 51 : index
    %436 = memref.load %arg1[%c51] : memref<98xf32, #tpu.memory_space<smem>>
    %437 = vector.extract_strided_slice %425 {offsets = [0, 0, 2], sizes = [2, 16, 16], strides = [1, 1, 1]} : vector<2x16x22xf32> to vector<2x16x16xf32>
    %438 = vector.broadcast %436 : f32 to vector<2x16x16xf32>
    %439 = arith.mulf %437, %438 : vector<2x16x16xf32>
    %440 = arith.addf %435, %439 : vector<2x16x16xf32>
    %c52 = arith.constant 52 : index
    %441 = memref.load %arg1[%c52] : memref<98xf32, #tpu.memory_space<smem>>
    %442 = vector.extract_strided_slice %425 {offsets = [0, 0, 3], sizes = [2, 16, 16], strides = [1, 1, 1]} : vector<2x16x22xf32> to vector<2x16x16xf32>
    %443 = vector.broadcast %441 : f32 to vector<2x16x16xf32>
    %444 = arith.mulf %442, %443 : vector<2x16x16xf32>
    %445 = arith.addf %440, %444 : vector<2x16x16xf32>
    %c53 = arith.constant 53 : index
    %446 = memref.load %arg1[%c53] : memref<98xf32, #tpu.memory_space<smem>>
    %447 = vector.extract_strided_slice %425 {offsets = [0, 0, 4], sizes = [2, 16, 16], strides = [1, 1, 1]} : vector<2x16x22xf32> to vector<2x16x16xf32>
    %448 = vector.broadcast %446 : f32 to vector<2x16x16xf32>
    %449 = arith.mulf %447, %448 : vector<2x16x16xf32>
    %450 = arith.addf %445, %449 : vector<2x16x16xf32>
    %c54 = arith.constant 54 : index
    %451 = memref.load %arg1[%c54] : memref<98xf32, #tpu.memory_space<smem>>
    %452 = vector.extract_strided_slice %425 {offsets = [0, 0, 5], sizes = [2, 16, 16], strides = [1, 1, 1]} : vector<2x16x22xf32> to vector<2x16x16xf32>
    %453 = vector.broadcast %451 : f32 to vector<2x16x16xf32>
    %454 = arith.mulf %452, %453 : vector<2x16x16xf32>
    %455 = arith.addf %450, %454 : vector<2x16x16xf32>
    %c55 = arith.constant 55 : index
    %456 = memref.load %arg1[%c55] : memref<98xf32, #tpu.memory_space<smem>>
    %457 = vector.extract_strided_slice %425 {offsets = [0, 0, 6], sizes = [2, 16, 16], strides = [1, 1, 1]} : vector<2x16x22xf32> to vector<2x16x16xf32>
    %458 = vector.broadcast %456 : f32 to vector<2x16x16xf32>
    %459 = arith.mulf %457, %458 : vector<2x16x16xf32>
    %460 = arith.addf %455, %459 : vector<2x16x16xf32>
    %461 = vector.extract_strided_slice %424 {offsets = [0, 1, 0], sizes = [2, 16, 22], strides = [1, 1, 1]} : vector<2x22x22xf32> to vector<2x16x22xf32>
    %c56 = arith.constant 56 : index
    %462 = memref.load %arg1[%c56] : memref<98xf32, #tpu.memory_space<smem>>
    %463 = vector.extract_strided_slice %461 {offsets = [0, 0, 0], sizes = [2, 16, 16], strides = [1, 1, 1]} : vector<2x16x22xf32> to vector<2x16x16xf32>
    %464 = vector.broadcast %462 : f32 to vector<2x16x16xf32>
    %465 = arith.mulf %463, %464 : vector<2x16x16xf32>
    %466 = arith.addf %168, %465 : vector<2x16x16xf32>
    %c57 = arith.constant 57 : index
    %467 = memref.load %arg1[%c57] : memref<98xf32, #tpu.memory_space<smem>>
    %468 = vector.extract_strided_slice %461 {offsets = [0, 0, 1], sizes = [2, 16, 16], strides = [1, 1, 1]} : vector<2x16x22xf32> to vector<2x16x16xf32>
    %469 = vector.broadcast %467 : f32 to vector<2x16x16xf32>
    %470 = arith.mulf %468, %469 : vector<2x16x16xf32>
    %471 = arith.addf %466, %470 : vector<2x16x16xf32>
    %c58 = arith.constant 58 : index
    %472 = memref.load %arg1[%c58] : memref<98xf32, #tpu.memory_space<smem>>
    %473 = vector.extract_strided_slice %461 {offsets = [0, 0, 2], sizes = [2, 16, 16], strides = [1, 1, 1]} : vector<2x16x22xf32> to vector<2x16x16xf32>
    %474 = vector.broadcast %472 : f32 to vector<2x16x16xf32>
    %475 = arith.mulf %473, %474 : vector<2x16x16xf32>
    %476 = arith.addf %471, %475 : vector<2x16x16xf32>
    %c59 = arith.constant 59 : index
    %477 = memref.load %arg1[%c59] : memref<98xf32, #tpu.memory_space<smem>>
    %478 = vector.extract_strided_slice %461 {offsets = [0, 0, 3], sizes = [2, 16, 16], strides = [1, 1, 1]} : vector<2x16x22xf32> to vector<2x16x16xf32>
    %479 = vector.broadcast %477 : f32 to vector<2x16x16xf32>
    %480 = arith.mulf %478, %479 : vector<2x16x16xf32>
    %481 = arith.addf %476, %480 : vector<2x16x16xf32>
    %c60 = arith.constant 60 : index
    %482 = memref.load %arg1[%c60] : memref<98xf32, #tpu.memory_space<smem>>
    %483 = vector.extract_strided_slice %461 {offsets = [0, 0, 4], sizes = [2, 16, 16], strides = [1, 1, 1]} : vector<2x16x22xf32> to vector<2x16x16xf32>
    %484 = vector.broadcast %482 : f32 to vector<2x16x16xf32>
    %485 = arith.mulf %483, %484 : vector<2x16x16xf32>
    %486 = arith.addf %481, %485 : vector<2x16x16xf32>
    %c61 = arith.constant 61 : index
    %487 = memref.load %arg1[%c61] : memref<98xf32, #tpu.memory_space<smem>>
    %488 = vector.extract_strided_slice %461 {offsets = [0, 0, 5], sizes = [2, 16, 16], strides = [1, 1, 1]} : vector<2x16x22xf32> to vector<2x16x16xf32>
    %489 = vector.broadcast %487 : f32 to vector<2x16x16xf32>
    %490 = arith.mulf %488, %489 : vector<2x16x16xf32>
    %491 = arith.addf %486, %490 : vector<2x16x16xf32>
    %c62 = arith.constant 62 : index
    %492 = memref.load %arg1[%c62] : memref<98xf32, #tpu.memory_space<smem>>
    %493 = vector.extract_strided_slice %461 {offsets = [0, 0, 6], sizes = [2, 16, 16], strides = [1, 1, 1]} : vector<2x16x22xf32> to vector<2x16x16xf32>
    %494 = vector.broadcast %492 : f32 to vector<2x16x16xf32>
    %495 = arith.mulf %493, %494 : vector<2x16x16xf32>
    %496 = arith.addf %491, %495 : vector<2x16x16xf32>
    %497 = vector.extract_strided_slice %424 {offsets = [0, 2, 0], sizes = [2, 16, 22], strides = [1, 1, 1]} : vector<2x22x22xf32> to vector<2x16x22xf32>
    %c63 = arith.constant 63 : index
    %498 = memref.load %arg1[%c63] : memref<98xf32, #tpu.memory_space<smem>>
    %499 = vector.extract_strided_slice %497 {offsets = [0, 0, 0], sizes = [2, 16, 16], strides = [1, 1, 1]} : vector<2x16x22xf32> to vector<2x16x16xf32>
    %500 = vector.broadcast %498 : f32 to vector<2x16x16xf32>
    %501 = arith.mulf %499, %500 : vector<2x16x16xf32>
    %502 = arith.addf %460, %501 : vector<2x16x16xf32>
    %c64 = arith.constant 64 : index
    %503 = memref.load %arg1[%c64] : memref<98xf32, #tpu.memory_space<smem>>
    %504 = vector.extract_strided_slice %497 {offsets = [0, 0, 1], sizes = [2, 16, 16], strides = [1, 1, 1]} : vector<2x16x22xf32> to vector<2x16x16xf32>
    %505 = vector.broadcast %503 : f32 to vector<2x16x16xf32>
    %506 = arith.mulf %504, %505 : vector<2x16x16xf32>
    %507 = arith.addf %502, %506 : vector<2x16x16xf32>
    %c65 = arith.constant 65 : index
    %508 = memref.load %arg1[%c65] : memref<98xf32, #tpu.memory_space<smem>>
    %509 = vector.extract_strided_slice %497 {offsets = [0, 0, 2], sizes = [2, 16, 16], strides = [1, 1, 1]} : vector<2x16x22xf32> to vector<2x16x16xf32>
    %510 = vector.broadcast %508 : f32 to vector<2x16x16xf32>
    %511 = arith.mulf %509, %510 : vector<2x16x16xf32>
    %512 = arith.addf %507, %511 : vector<2x16x16xf32>
    %c66 = arith.constant 66 : index
    %513 = memref.load %arg1[%c66] : memref<98xf32, #tpu.memory_space<smem>>
    %514 = vector.extract_strided_slice %497 {offsets = [0, 0, 3], sizes = [2, 16, 16], strides = [1, 1, 1]} : vector<2x16x22xf32> to vector<2x16x16xf32>
    %515 = vector.broadcast %513 : f32 to vector<2x16x16xf32>
    %516 = arith.mulf %514, %515 : vector<2x16x16xf32>
    %517 = arith.addf %512, %516 : vector<2x16x16xf32>
    %c67 = arith.constant 67 : index
    %518 = memref.load %arg1[%c67] : memref<98xf32, #tpu.memory_space<smem>>
    %519 = vector.extract_strided_slice %497 {offsets = [0, 0, 4], sizes = [2, 16, 16], strides = [1, 1, 1]} : vector<2x16x22xf32> to vector<2x16x16xf32>
    %520 = vector.broadcast %518 : f32 to vector<2x16x16xf32>
    %521 = arith.mulf %519, %520 : vector<2x16x16xf32>
    %522 = arith.addf %517, %521 : vector<2x16x16xf32>
    %c68 = arith.constant 68 : index
    %523 = memref.load %arg1[%c68] : memref<98xf32, #tpu.memory_space<smem>>
    %524 = vector.extract_strided_slice %497 {offsets = [0, 0, 5], sizes = [2, 16, 16], strides = [1, 1, 1]} : vector<2x16x22xf32> to vector<2x16x16xf32>
    %525 = vector.broadcast %523 : f32 to vector<2x16x16xf32>
    %526 = arith.mulf %524, %525 : vector<2x16x16xf32>
    %527 = arith.addf %522, %526 : vector<2x16x16xf32>
    %c69 = arith.constant 69 : index
    %528 = memref.load %arg1[%c69] : memref<98xf32, #tpu.memory_space<smem>>
    %529 = vector.extract_strided_slice %497 {offsets = [0, 0, 6], sizes = [2, 16, 16], strides = [1, 1, 1]} : vector<2x16x22xf32> to vector<2x16x16xf32>
    %530 = vector.broadcast %528 : f32 to vector<2x16x16xf32>
    %531 = arith.mulf %529, %530 : vector<2x16x16xf32>
    %532 = arith.addf %527, %531 : vector<2x16x16xf32>
    %533 = vector.extract_strided_slice %424 {offsets = [0, 3, 0], sizes = [2, 16, 22], strides = [1, 1, 1]} : vector<2x22x22xf32> to vector<2x16x22xf32>
    %c70 = arith.constant 70 : index
    %534 = memref.load %arg1[%c70] : memref<98xf32, #tpu.memory_space<smem>>
    %535 = vector.extract_strided_slice %533 {offsets = [0, 0, 0], sizes = [2, 16, 16], strides = [1, 1, 1]} : vector<2x16x22xf32> to vector<2x16x16xf32>
    %536 = vector.broadcast %534 : f32 to vector<2x16x16xf32>
    %537 = arith.mulf %535, %536 : vector<2x16x16xf32>
    %538 = arith.addf %496, %537 : vector<2x16x16xf32>
    %c71 = arith.constant 71 : index
    %539 = memref.load %arg1[%c71] : memref<98xf32, #tpu.memory_space<smem>>
    %540 = vector.extract_strided_slice %533 {offsets = [0, 0, 1], sizes = [2, 16, 16], strides = [1, 1, 1]} : vector<2x16x22xf32> to vector<2x16x16xf32>
    %541 = vector.broadcast %539 : f32 to vector<2x16x16xf32>
    %542 = arith.mulf %540, %541 : vector<2x16x16xf32>
    %543 = arith.addf %538, %542 : vector<2x16x16xf32>
    %c72 = arith.constant 72 : index
    %544 = memref.load %arg1[%c72] : memref<98xf32, #tpu.memory_space<smem>>
    %545 = vector.extract_strided_slice %533 {offsets = [0, 0, 2], sizes = [2, 16, 16], strides = [1, 1, 1]} : vector<2x16x22xf32> to vector<2x16x16xf32>
    %546 = vector.broadcast %544 : f32 to vector<2x16x16xf32>
    %547 = arith.mulf %545, %546 : vector<2x16x16xf32>
    %548 = arith.addf %543, %547 : vector<2x16x16xf32>
    %c73 = arith.constant 73 : index
    %549 = memref.load %arg1[%c73] : memref<98xf32, #tpu.memory_space<smem>>
    %550 = vector.extract_strided_slice %533 {offsets = [0, 0, 3], sizes = [2, 16, 16], strides = [1, 1, 1]} : vector<2x16x22xf32> to vector<2x16x16xf32>
    %551 = vector.broadcast %549 : f32 to vector<2x16x16xf32>
    %552 = arith.mulf %550, %551 : vector<2x16x16xf32>
    %553 = arith.addf %548, %552 : vector<2x16x16xf32>
    %c74 = arith.constant 74 : index
    %554 = memref.load %arg1[%c74] : memref<98xf32, #tpu.memory_space<smem>>
    %555 = vector.extract_strided_slice %533 {offsets = [0, 0, 4], sizes = [2, 16, 16], strides = [1, 1, 1]} : vector<2x16x22xf32> to vector<2x16x16xf32>
    %556 = vector.broadcast %554 : f32 to vector<2x16x16xf32>
    %557 = arith.mulf %555, %556 : vector<2x16x16xf32>
    %558 = arith.addf %553, %557 : vector<2x16x16xf32>
    %c75 = arith.constant 75 : index
    %559 = memref.load %arg1[%c75] : memref<98xf32, #tpu.memory_space<smem>>
    %560 = vector.extract_strided_slice %533 {offsets = [0, 0, 5], sizes = [2, 16, 16], strides = [1, 1, 1]} : vector<2x16x22xf32> to vector<2x16x16xf32>
    %561 = vector.broadcast %559 : f32 to vector<2x16x16xf32>
    %562 = arith.mulf %560, %561 : vector<2x16x16xf32>
    %563 = arith.addf %558, %562 : vector<2x16x16xf32>
    %c76 = arith.constant 76 : index
    %564 = memref.load %arg1[%c76] : memref<98xf32, #tpu.memory_space<smem>>
    %565 = vector.extract_strided_slice %533 {offsets = [0, 0, 6], sizes = [2, 16, 16], strides = [1, 1, 1]} : vector<2x16x22xf32> to vector<2x16x16xf32>
    %566 = vector.broadcast %564 : f32 to vector<2x16x16xf32>
    %567 = arith.mulf %565, %566 : vector<2x16x16xf32>
    %568 = arith.addf %563, %567 : vector<2x16x16xf32>
    %569 = vector.extract_strided_slice %424 {offsets = [0, 4, 0], sizes = [2, 16, 22], strides = [1, 1, 1]} : vector<2x22x22xf32> to vector<2x16x22xf32>
    %c77 = arith.constant 77 : index
    %570 = memref.load %arg1[%c77] : memref<98xf32, #tpu.memory_space<smem>>
    %571 = vector.extract_strided_slice %569 {offsets = [0, 0, 0], sizes = [2, 16, 16], strides = [1, 1, 1]} : vector<2x16x22xf32> to vector<2x16x16xf32>
    %572 = vector.broadcast %570 : f32 to vector<2x16x16xf32>
    %573 = arith.mulf %571, %572 : vector<2x16x16xf32>
    %574 = arith.addf %532, %573 : vector<2x16x16xf32>
    %c78 = arith.constant 78 : index
    %575 = memref.load %arg1[%c78] : memref<98xf32, #tpu.memory_space<smem>>
    %576 = vector.extract_strided_slice %569 {offsets = [0, 0, 1], sizes = [2, 16, 16], strides = [1, 1, 1]} : vector<2x16x22xf32> to vector<2x16x16xf32>
    %577 = vector.broadcast %575 : f32 to vector<2x16x16xf32>
    %578 = arith.mulf %576, %577 : vector<2x16x16xf32>
    %579 = arith.addf %574, %578 : vector<2x16x16xf32>
    %c79 = arith.constant 79 : index
    %580 = memref.load %arg1[%c79] : memref<98xf32, #tpu.memory_space<smem>>
    %581 = vector.extract_strided_slice %569 {offsets = [0, 0, 2], sizes = [2, 16, 16], strides = [1, 1, 1]} : vector<2x16x22xf32> to vector<2x16x16xf32>
    %582 = vector.broadcast %580 : f32 to vector<2x16x16xf32>
    %583 = arith.mulf %581, %582 : vector<2x16x16xf32>
    %584 = arith.addf %579, %583 : vector<2x16x16xf32>
    %c80 = arith.constant 80 : index
    %585 = memref.load %arg1[%c80] : memref<98xf32, #tpu.memory_space<smem>>
    %586 = vector.extract_strided_slice %569 {offsets = [0, 0, 3], sizes = [2, 16, 16], strides = [1, 1, 1]} : vector<2x16x22xf32> to vector<2x16x16xf32>
    %587 = vector.broadcast %585 : f32 to vector<2x16x16xf32>
    %588 = arith.mulf %586, %587 : vector<2x16x16xf32>
    %589 = arith.addf %584, %588 : vector<2x16x16xf32>
    %c81 = arith.constant 81 : index
    %590 = memref.load %arg1[%c81] : memref<98xf32, #tpu.memory_space<smem>>
    %591 = vector.extract_strided_slice %569 {offsets = [0, 0, 4], sizes = [2, 16, 16], strides = [1, 1, 1]} : vector<2x16x22xf32> to vector<2x16x16xf32>
    %592 = vector.broadcast %590 : f32 to vector<2x16x16xf32>
    %593 = arith.mulf %591, %592 : vector<2x16x16xf32>
    %594 = arith.addf %589, %593 : vector<2x16x16xf32>
    %c82 = arith.constant 82 : index
    %595 = memref.load %arg1[%c82] : memref<98xf32, #tpu.memory_space<smem>>
    %596 = vector.extract_strided_slice %569 {offsets = [0, 0, 5], sizes = [2, 16, 16], strides = [1, 1, 1]} : vector<2x16x22xf32> to vector<2x16x16xf32>
    %597 = vector.broadcast %595 : f32 to vector<2x16x16xf32>
    %598 = arith.mulf %596, %597 : vector<2x16x16xf32>
    %599 = arith.addf %594, %598 : vector<2x16x16xf32>
    %c83 = arith.constant 83 : index
    %600 = memref.load %arg1[%c83] : memref<98xf32, #tpu.memory_space<smem>>
    %601 = vector.extract_strided_slice %569 {offsets = [0, 0, 6], sizes = [2, 16, 16], strides = [1, 1, 1]} : vector<2x16x22xf32> to vector<2x16x16xf32>
    %602 = vector.broadcast %600 : f32 to vector<2x16x16xf32>
    %603 = arith.mulf %601, %602 : vector<2x16x16xf32>
    %604 = arith.addf %599, %603 : vector<2x16x16xf32>
    %605 = vector.extract_strided_slice %424 {offsets = [0, 5, 0], sizes = [2, 16, 22], strides = [1, 1, 1]} : vector<2x22x22xf32> to vector<2x16x22xf32>
    %c84 = arith.constant 84 : index
    %606 = memref.load %arg1[%c84] : memref<98xf32, #tpu.memory_space<smem>>
    %607 = vector.extract_strided_slice %605 {offsets = [0, 0, 0], sizes = [2, 16, 16], strides = [1, 1, 1]} : vector<2x16x22xf32> to vector<2x16x16xf32>
    %608 = vector.broadcast %606 : f32 to vector<2x16x16xf32>
    %609 = arith.mulf %607, %608 : vector<2x16x16xf32>
    %610 = arith.addf %568, %609 : vector<2x16x16xf32>
    %c85 = arith.constant 85 : index
    %611 = memref.load %arg1[%c85] : memref<98xf32, #tpu.memory_space<smem>>
    %612 = vector.extract_strided_slice %605 {offsets = [0, 0, 1], sizes = [2, 16, 16], strides = [1, 1, 1]} : vector<2x16x22xf32> to vector<2x16x16xf32>
    %613 = vector.broadcast %611 : f32 to vector<2x16x16xf32>
    %614 = arith.mulf %612, %613 : vector<2x16x16xf32>
    %615 = arith.addf %610, %614 : vector<2x16x16xf32>
    %c86 = arith.constant 86 : index
    %616 = memref.load %arg1[%c86] : memref<98xf32, #tpu.memory_space<smem>>
    %617 = vector.extract_strided_slice %605 {offsets = [0, 0, 2], sizes = [2, 16, 16], strides = [1, 1, 1]} : vector<2x16x22xf32> to vector<2x16x16xf32>
    %618 = vector.broadcast %616 : f32 to vector<2x16x16xf32>
    %619 = arith.mulf %617, %618 : vector<2x16x16xf32>
    %620 = arith.addf %615, %619 : vector<2x16x16xf32>
    %c87 = arith.constant 87 : index
    %621 = memref.load %arg1[%c87] : memref<98xf32, #tpu.memory_space<smem>>
    %622 = vector.extract_strided_slice %605 {offsets = [0, 0, 3], sizes = [2, 16, 16], strides = [1, 1, 1]} : vector<2x16x22xf32> to vector<2x16x16xf32>
    %623 = vector.broadcast %621 : f32 to vector<2x16x16xf32>
    %624 = arith.mulf %622, %623 : vector<2x16x16xf32>
    %625 = arith.addf %620, %624 : vector<2x16x16xf32>
    %c88 = arith.constant 88 : index
    %626 = memref.load %arg1[%c88] : memref<98xf32, #tpu.memory_space<smem>>
    %627 = vector.extract_strided_slice %605 {offsets = [0, 0, 4], sizes = [2, 16, 16], strides = [1, 1, 1]} : vector<2x16x22xf32> to vector<2x16x16xf32>
    %628 = vector.broadcast %626 : f32 to vector<2x16x16xf32>
    %629 = arith.mulf %627, %628 : vector<2x16x16xf32>
    %630 = arith.addf %625, %629 : vector<2x16x16xf32>
    %c89 = arith.constant 89 : index
    %631 = memref.load %arg1[%c89] : memref<98xf32, #tpu.memory_space<smem>>
    %632 = vector.extract_strided_slice %605 {offsets = [0, 0, 5], sizes = [2, 16, 16], strides = [1, 1, 1]} : vector<2x16x22xf32> to vector<2x16x16xf32>
    %633 = vector.broadcast %631 : f32 to vector<2x16x16xf32>
    %634 = arith.mulf %632, %633 : vector<2x16x16xf32>
    %635 = arith.addf %630, %634 : vector<2x16x16xf32>
    %c90 = arith.constant 90 : index
    %636 = memref.load %arg1[%c90] : memref<98xf32, #tpu.memory_space<smem>>
    %637 = vector.extract_strided_slice %605 {offsets = [0, 0, 6], sizes = [2, 16, 16], strides = [1, 1, 1]} : vector<2x16x22xf32> to vector<2x16x16xf32>
    %638 = vector.broadcast %636 : f32 to vector<2x16x16xf32>
    %639 = arith.mulf %637, %638 : vector<2x16x16xf32>
    %640 = arith.addf %635, %639 : vector<2x16x16xf32>
    %641 = vector.extract_strided_slice %424 {offsets = [0, 6, 0], sizes = [2, 16, 22], strides = [1, 1, 1]} : vector<2x22x22xf32> to vector<2x16x22xf32>
    %c91 = arith.constant 91 : index
    %642 = memref.load %arg1[%c91] : memref<98xf32, #tpu.memory_space<smem>>
    %643 = vector.extract_strided_slice %641 {offsets = [0, 0, 0], sizes = [2, 16, 16], strides = [1, 1, 1]} : vector<2x16x22xf32> to vector<2x16x16xf32>
    %644 = vector.broadcast %642 : f32 to vector<2x16x16xf32>
    %645 = arith.mulf %643, %644 : vector<2x16x16xf32>
    %646 = arith.addf %604, %645 : vector<2x16x16xf32>
    %c92 = arith.constant 92 : index
    %647 = memref.load %arg1[%c92] : memref<98xf32, #tpu.memory_space<smem>>
    %648 = vector.extract_strided_slice %641 {offsets = [0, 0, 1], sizes = [2, 16, 16], strides = [1, 1, 1]} : vector<2x16x22xf32> to vector<2x16x16xf32>
    %649 = vector.broadcast %647 : f32 to vector<2x16x16xf32>
    %650 = arith.mulf %648, %649 : vector<2x16x16xf32>
    %651 = arith.addf %646, %650 : vector<2x16x16xf32>
    %c93 = arith.constant 93 : index
    %652 = memref.load %arg1[%c93] : memref<98xf32, #tpu.memory_space<smem>>
    %653 = vector.extract_strided_slice %641 {offsets = [0, 0, 2], sizes = [2, 16, 16], strides = [1, 1, 1]} : vector<2x16x22xf32> to vector<2x16x16xf32>
    %654 = vector.broadcast %652 : f32 to vector<2x16x16xf32>
    %655 = arith.mulf %653, %654 : vector<2x16x16xf32>
    %656 = arith.addf %651, %655 : vector<2x16x16xf32>
    %c94 = arith.constant 94 : index
    %657 = memref.load %arg1[%c94] : memref<98xf32, #tpu.memory_space<smem>>
    %658 = vector.extract_strided_slice %641 {offsets = [0, 0, 3], sizes = [2, 16, 16], strides = [1, 1, 1]} : vector<2x16x22xf32> to vector<2x16x16xf32>
    %659 = vector.broadcast %657 : f32 to vector<2x16x16xf32>
    %660 = arith.mulf %658, %659 : vector<2x16x16xf32>
    %661 = arith.addf %656, %660 : vector<2x16x16xf32>
    %c95 = arith.constant 95 : index
    %662 = memref.load %arg1[%c95] : memref<98xf32, #tpu.memory_space<smem>>
    %663 = vector.extract_strided_slice %641 {offsets = [0, 0, 4], sizes = [2, 16, 16], strides = [1, 1, 1]} : vector<2x16x22xf32> to vector<2x16x16xf32>
    %664 = vector.broadcast %662 : f32 to vector<2x16x16xf32>
    %665 = arith.mulf %663, %664 : vector<2x16x16xf32>
    %666 = arith.addf %661, %665 : vector<2x16x16xf32>
    %c96 = arith.constant 96 : index
    %667 = memref.load %arg1[%c96] : memref<98xf32, #tpu.memory_space<smem>>
    %668 = vector.extract_strided_slice %641 {offsets = [0, 0, 5], sizes = [2, 16, 16], strides = [1, 1, 1]} : vector<2x16x22xf32> to vector<2x16x16xf32>
    %669 = vector.broadcast %667 : f32 to vector<2x16x16xf32>
    %670 = arith.mulf %668, %669 : vector<2x16x16xf32>
    %671 = arith.addf %666, %670 : vector<2x16x16xf32>
    %c97 = arith.constant 97 : index
    %672 = memref.load %arg1[%c97] : memref<98xf32, #tpu.memory_space<smem>>
    %673 = vector.extract_strided_slice %641 {offsets = [0, 0, 6], sizes = [2, 16, 16], strides = [1, 1, 1]} : vector<2x16x22xf32> to vector<2x16x16xf32>
    %674 = vector.broadcast %672 : f32 to vector<2x16x16xf32>
    %675 = arith.mulf %673, %674 : vector<2x16x16xf32>
    %676 = arith.addf %671, %675 : vector<2x16x16xf32>
    %677 = arith.addf %422, %386 : vector<2x16x16xf32>
    %678 = arith.addf %676, %640 : vector<2x16x16xf32>
    %679 = arith.addf %677, %678 : vector<2x16x16xf32>
    %cst_185 = arith.constant 5.000000e-01 : f32
    %680 = vector.broadcast %cst_185 : f32 to vector<2x16x16xf32>
    %681 = arith.mulf %680, %679 : vector<2x16x16xf32>
    %682 = math.tanh %681 : vector<2x16x16xf32>
    %cst_186 = arith.constant 1.000000e+00 : f32
    %683 = vector.broadcast %cst_186 : f32 to vector<2x16x16xf32>
    %684 = arith.addf %682, %683 : vector<2x16x16xf32>
    %cst_187 = arith.constant 5.000000e-01 : f32
    %685 = vector.broadcast %cst_187 : f32 to vector<2x16x16xf32>
    %686 = arith.mulf %685, %684 : vector<2x16x16xf32>
    %c0_188 = arith.constant 0 : index
    %c0_189 = arith.constant 0 : index
    %c0_190 = arith.constant 0 : index
    %c0_191 = arith.constant 0 : index
    %687 = vector.load %arg3[%c0_188, %c0_189, %c0_190, %c0_191] : memref<2x1x16x16xf32, #tpu.memory_space<vmem>>, vector<2x1x16x16xf32>
    %688 = vector.shape_cast %687 : vector<2x1x16x16xf32> to vector<2x16x16xf32>
    %689 = vector.shape_cast %686 : vector<2x16x16xf32> to vector<2x1x16x16xf32>
    tpu.vector_store %arg3[%c0_188, %c0_189, %c0_190, %c0_191], %689 {strides = array<i32>} : memref<2x1x16x16xf32, #tpu.memory_space<vmem>>, vector<2x1x16x16xf32>,
    return
  }
  func.func @transform_0(%arg0: i32) -> i32 {
    %c0_i32 = arith.constant 0 : i32
    %c0_i32_0 = arith.constant 0 : i32
    return %c0_i32 : i32
  }
  func.func @transform_1(%arg0: i32) -> (i32, i32, i32) {
    %c0_i32 = arith.constant 0 : i32
    %c0_i32_0 = arith.constant 0 : i32
    %c0_i32_1 = arith.constant 0 : i32
    return %arg0, %c0_i32, %c0_i32_0 : i32, i32, i32
  }
  func.func @transform_2(%arg0: i32) -> (i32, i32, i32, i32) {
    %c0_i32 = arith.constant 0 : i32
    %c0_i32_0 = arith.constant 0 : i32
    %c0_i32_1 = arith.constant 0 : i32
    %c0_i32_2 = arith.constant 0 : i32
    return %arg0, %c0_i32, %c0_i32_0, %c0_i32_1 : i32, i32, i32, i32
  }
}

</mosaic_0001>

<bundles_post_ra>
// kernel: tpu_custom_call.1
= control target key start
LH: loop header
LB: loop body
LE: loop exit
PB: predicated region body
PF: predicated region fallthrough
CT: control target
= control target key end

     0   :  { %7 = vsyncpa [#allocation6], 0  ;;  %s9379_s0 = inlined_call_operand.hbm [shape: f32[98], index: 0, kind: input, shape index: {}]   ;;  %s9380_s1 = inlined_call_operand.hbm [shape: f32[2,4,256], index: 1, kind: input, shape index: {}]   ;;  %s9381_s2 = inlined_call_operand.hbm [shape: f32[2,1,16,16], index: 2, kind: output, shape index: {}]  }
   0x1   :  { %8 = vsyncpa [#allocation4], 0 }
   0x2   :  { %9 = vsyncpa [#allocation5], 0  ;;  %s4400_s11 = scalar_lea.hbm %s9379_s0, 16 }
   0x3   :  { %p4401_p0 = scmp.ne.s32.totalorder %s9379_s0, %s4400_s11  ;;  %p4404_p1 = scmp.lt.u32.totalorder %s4400_s11, %s9379_s0 }
   0x5   :  { %p4406_p2 = pnand %p4404_p1, %p4401_p0 }
   0x7   :  { %4409 = shalt.err (!%p4406_p2)
}
   0x8   :  { %s4460_s16 = smov [#allocation3]   ;;  %s4461_s19 = smov [#allocation7]  }
   0x9   :  { %17 = dma.hbm_to_smem %s9379_s0, 16, %s4460_s16, [#allocation6]  }
   0xa   :  { %s23_s20 = sshll.u32 %s4461_s19, 4  ;;  %s4410_s23 = scalar_lea.hbm %s9380_s1, 256  ;;  %s24_s20 = int_to_ptr.vmem [resolvable:$true] %s23_s20 }
   0xb   :  { %p4411_p3 = scmp.ne.s32.totalorder %s9380_s1, %s4410_s23  ;;  %p4414_p4 = scmp.lt.u32.totalorder %s4410_s23, %s9380_s1 }
   0xd   :  { %p4416_p5 = pnand %p4414_p4, %p4411_p3 }
   0xf   :  { %4419 = shalt.err (!%p4416_p5)
}
  0x10   :  { %s4420_s28 = scalar_lea.vmem %s24_s20, 256  ;;  %p4425_p7 = scmp.lt.s32.totalorder %s24_s20, %s24_s20 }
  0x11   :  { %p4421_p6 = scmp.ne.s32.totalorder %s24_s20, %s4420_s28  ;;  %p4426_p8 = scmp.lt.s32.totalorder %s4420_s28, %s4420_s28 }
  0x13   :  { %p4427_p9 = por %p4426_p8, %p4425_p7 }
  0x15   :  { %p4428_p10 = pnand %p4427_p9, %p4421_p6 }
  0x17   :  { %4431 = shalt.err (!%p4428_p10)
}
  0x18   :  { %s4462_s0 = smov 128   ;;  %s4463_s29 = smov 8  }
  0x19   :  { %29 = dma.hbm_to_vmem [thread:$0]  %s9380_s1, 256, %s24_s20, [#allocation4], %s4462_s0, %s4462_s0, %s4463_s29  }
  0x1a   :  { %4454 = dma.done.wait [#allocation6], 16  }
  0x1b   :  { %4455 = vsyncadd [#allocation6], 4294967280 }
  0x1c   :  { %4456 = dma.done.wait [#allocation4], 256  }
  0x1d   :  { %4457 = vsyncadd [#allocation4], 4294967040 }
  0x1e   :  { %36 = sfence }
  0x1f   :  { %v4522_v0 = vld [vmem:[#allocation7] sm:$0xff]  ;;  %vm45_vm0 = vcmask 1043456   ;;  %v4524_v1 = vld [vmem:[#allocation7 + $0x8] sm:$0xff]  ;;  %vm111_vm1 = vcmask 23552   ;;  %vm116_vm2 = vcmask 179352   ;;  %v4464_v14 = vmov 0.0  }
  0x20   :  { %v46_v2 = vsel %vm45_vm0, %v4522_v0, -inf  ;;  %v74_v3 = vsel %vm45_vm0, %v4522_v0, 0.0  ;;  %v60_v4 = vsel %vm45_vm0, %v4524_v1, -inf  ;;  %v88_v5 = vsel %vm45_vm0, %v4524_v1, 0.0  ;;  %126 = vst.msk [vmem:[#allocation2 + $0x33] sm:$0xff] %vm111_vm1, %v4464_v14  ;;  %112 = vst.msk [vmem:[#allocation2 + $0x3] sm:$0xff] %vm111_vm1, %v4464_v14 }
  0x21   :  { %v47_v6 = vrot.slane %v46_v2, 4  ;;  %v75_v7 = vrot.slane %v74_v3, 4  ;;  %v61_v8 = vrot.slane %v60_v4, 4  ;;  %v89_v9 = vrot.slane %v88_v5, 4  ;;  %113 = vst.msk [vmem:[#allocation2 + $0xb] sm:$0xff] %vm111_vm1, %v4464_v14  ;;  %114 = vst.msk [vmem:[#allocation2 + $0x1b] sm:$0xff] %vm111_vm1, %v4464_v14 }
  0x22   :  { %115 = vst.msk [vmem:[#allocation2 + $0x23] sm:$0xff] %vm111_vm1, %v4464_v14  ;;  %127 = vst.msk [vmem:[#allocation2 + $0x3b] sm:$0xff] %vm111_vm1, %v4464_v14  ;;  %s4465_s1 = smov 115   ;;  %s4466_s4 = smov 3   ;;  %vm106_vm3 = vcmask 174080   ;;  %v42_v33 = vcombine.high %v4524_v1, %v4524_v1  ;;  %v41_v34 = vcombine.high %v4522_v0, %v4522_v0  ;;  %vm142_vm4 = vcmask 147480  }
  0x23   :  { %v48_v10 = vmax.f32 %v46_v2, %v47_v6  ;;  %v76_v11 = vadd.f32 %v75_v7, %v74_v3  ;;  %v62_v12 = vmax.f32 %v60_v4, %v61_v8  ;;  %v90_v13 = vadd.f32 %v89_v9, %v88_v5  ;;  %128 = vst.msk [vmem:[#allocation2 + $0x4b] sm:$0xff] %vm111_vm1, %v4464_v14  ;;  %s4467_s5 = smov 99   ;;  %s4468_s6 = smov 83  }
  0x24   :  { %129 = vst.msk [vmem:[#allocation2 + $0x53] sm:$0xff] %vm111_vm1, %v4464_v14  ;;  %s4469_s7 = smov 67   ;;  %v95_v35 = vsel %vm45_vm0, %v42_v33, 0.0  ;;  %v81_v36 = vsel %vm45_vm0, %v41_v34, 0.0  ;;  %s4470_s8 = smov 51   ;;  %v67_v41 = vsel %vm45_vm0, %v42_v33, -inf }
  0x25   :  { %130 = vst.msk [vmem:[#allocation2 + $0x33] sm:$0xff] %vm116_vm2, %v4464_v14  ;;  %117 = vst.msk [vmem:[#allocation2 + $0x3] sm:$0xff] %vm116_vm2, %v4464_v14  ;;  %v49_v15 = vrot.slane %v48_v10, 2  ;;  %v77_v16 = vrot.slane %v76_v11, 2  ;;  %v63_v17 = vrot.slane %v62_v12, 2  ;;  %v91_v18 = vrot.slane %v90_v13, 2 }
  0x26   :  { %118 = vst.msk [vmem:[#allocation2 + $0xb] sm:$0xff] %vm116_vm2, %v4464_v14  ;;  %119 = vst.msk [vmem:[#allocation2 + $0x1b] sm:$0xff] %vm116_vm2, %v4464_v14  ;;  %v96_v37 = vrot.slane %v95_v35, 4  ;;  %v82_v38 = vrot.slane %v81_v36, 4  ;;  %v53_v42 = vsel %vm45_vm0, %v41_v34, -inf  ;;  %v68_v43 = vrot.slane %v67_v41, 4 }
  0x27   :  { %120 = vst.msk [vmem:[#allocation2 + $0x23] sm:$0xff] %vm116_vm2, %v4464_v14  ;;  %131 = vst.msk [vmem:[#allocation2 + $0x3b] sm:$0xff] %vm116_vm2, %v4464_v14  ;;  %v50_v19 = vmax.f32 %v48_v10, %v49_v15  ;;  %v78_v20 = vadd.f32 %v77_v16, %v76_v11  ;;  %v64_v21 = vmax.f32 %v62_v12, %v63_v17  ;;  %v54_v46 = vrot.slane %v53_v42, 4  ;;  %s4471_s9 = smov 35   ;;  %s4472_s10 = smov 19  }
  0x28   :  { %132 = vst.msk [vmem:[#allocation2 + $0x4b] sm:$0xff] %vm116_vm2, %v4464_v14  ;;  %133 = vst.msk [vmem:[#allocation2 + $0x53] sm:$0xff] %vm116_vm2, %v4464_v14  ;;  %v92_v22 = vadd.f32 %v91_v18, %v90_v13  ;;  %v97_v39 = vadd.f32 %v96_v37, %v95_v35  ;;  %v83_v40 = vadd.f32 %v82_v38, %v81_v36  ;;  %s4249_s11 = sld [smem:[#allocation3 + $0x1]]  ;;  %s4250_s12 = sld [smem:[#allocation3 + $0x2]]  ;;  %vm827_vm5 = vcmask 1045504  }
  0x29   :  { %v51_v23 = vrot.slane %v50_v19, 1  ;;  %v79_v24 = vrot.slane %v78_v20, 1  ;;  %v65_v25 = vrot.slane %v64_v21, 1  ;;  %107 = vst.msk [vmem:[#allocation2] sm:$0x7] %vm106_vm3, %v4464_v14  ;;  %v69_v47 = vmax.f32 %v67_v41, %v68_v43  ;;  %s4473_s13 = smov 127  }
  0x2a   :  { %v93_v26 = vrot.slane %v92_v22, 1  ;;  %108 = vst.msk [vmem:[#allocation2 + $0x18] sm:$0x7] %vm106_vm3, %v4464_v14  ;;  %109 = vst.msk [vmem:[#allocation2 + $0x13] sm:$0x7] %vm106_vm3, %v4464_v14  ;;  %v98_v44 = vrot.slane %v97_v39, 2  ;;  %v55_v50 = vmax.f32 %v53_v42, %v54_v46 }
  0x2b   :  { %v4542_v27 = vmax.f32 %v50_v19, %v51_v23  ;;  %v80_v28 = vadd.f32 %v79_v24, %v78_v20  ;;  %v4550_v30 = vmax.f32 %v64_v21, %v65_v25  ;;  %110 = vst.msk [vmem:[#allocation2 + $0x2b] sm:$0x7] %vm106_vm3, %v4464_v14  ;;  %122 = vst.msk [vmem:[#allocation2 + $0x30] sm:$0x7] %vm106_vm3, %v4464_v14  ;;  %v84_v45 = vrot.slane %v83_v40, 2  ;;  %s4251_s14 = sld [smem:[#allocation3 + $0x3]] }
  0x2c   :  { %v94_v31 = vadd.f32 %v93_v26, %v92_v22  ;;  %123 = vst.msk [vmem:[#allocation2 + $0x48] sm:$0x7] %vm106_vm3, %v4464_v14  ;;  %124 = vst.msk [vmem:[#allocation2 + $0x43] sm:$0x7] %vm106_vm3, %v4464_v14  ;;  %v99_v48 = vadd.f32 %v98_v44, %v97_v39  ;;  %v70_v51 = vrot.slane %v69_v47, 2  ;;  %v56_v54 = vrot.slane %v55_v50, 2 }
  0x2d   :  { %163 = vrot.lane.b32.xlu0 %v4542_v27, %s4465_s1  ;;  %147 = vrot.lane.b32.xlu1 %v4542_v27, %s4466_s4  ;;  %v4548_v29 = vmul.f32 0.25, %v80_v28  ;;  %125 = vst.msk [vmem:[#allocation2 + $0x5b] sm:$0x7] %vm106_vm3, %v4464_v14  ;;  %v85_v49 = vadd.f32 %v84_v45, %v83_v40  ;;  %s4474_s15 = smov 126   ;;  %s4252_s16 = sld [smem:[#allocation3 + $0x4]]  ;;  %vm2020_vm6 = vcmask 1041408  }
  0x2e   :  { %v4556_v32 = vmul.f32 0.25, %v94_v31  ;;  %v100_v52 = vrot.slane %v99_v48, 1  ;;  %v71_v55 = vmax.f32 %v69_v47, %v70_v51  ;;  %v57_v58 = vmax.f32 %v55_v50, %v56_v54  ;;  %s4475_s17 = smov 125   ;;  %s4253_s18 = sld [smem:[#allocation3 + $0x5]] }
  0x2f   :  { %v86_v53 = vrot.slane %v85_v49, 1  ;;  %v4674_v21 = vstv %s4249_s11  ;;  %s4476_s19 = smov 124   ;;  %s4254_s20 = sld [smem:[#allocation3 + $0x6]]  ;;  %vm4163_vm7 = vcmask 1046528   ;;  %vm4226_vm8 = vcmask 130048  }
  0x30   :  { %v101_v56 = vadd.f32 %v100_v52, %v99_v48  ;;  %v72_v61 = vrot.slane %v71_v55, 1  ;;  %v58_v62 = vrot.slane %v57_v58, 1  ;;  %s4477_s21 = smov 123   ;;  %s4256_s22 = sld [smem:[#allocation3 + $0x8]] }
  0x31   :  { %136 = vrot.lane.b32.xlu0 %v4548_v29, %s4466_s4  ;;  %149 = vrot.lane.b32.xlu1 %v4550_v30, %s4466_s4  ;;  %v87_v57 = vadd.f32 %v86_v53, %v85_v49  ;;  %v4701_v37 = vstv %s4251_s14  ;;  %s4478_s23 = smov 122   ;;  %s4257_s24 = sld [smem:[#allocation3 + $0x9]] }
  0x32   :  { %v105_v59 = vmul.f32 0.25, %v101_v56  ;;  %v73_v63 = vmax.f32 %v71_v55, %v72_v61  ;;  %v59_v0 = vmax.f32 %v57_v58, %v58_v62  ;;  %s4258_s25 = sld [smem:[#allocation3 + $0xa]]  ;;  %s4259_s26 = sld [smem:[#allocation3 + $0xb]] }
  0x33   :  { %v103_v60 = vmul.f32 0.25, %v87_v57  ;;  %v4713_v44 = vstv %s4252_s16  ;;  %s4260_s27 = sld [smem:[#allocation3 + $0xc]]  ;;  %s4261_s28 = sld [smem:[#allocation3 + $0xd]] }
  0x34   :  { %v4725_v51 = vstv %s4253_s18  ;;  %s4263_s30 = sld [smem:[#allocation3 + $0xf]]  ;;  %s4264_s3 = sld [smem:[#allocation3 + $0x10]] }
  0x35   :  { %138 = vrot.lane.b32.xlu0 %v4556_v32, %s4466_s4  ;;  %165 = vrot.lane.b32.xlu1 %v4550_v30, %s4465_s1  ;;  %v4737_v58 = vstv %s4254_s20  ;;  %s4274_s11 = sld [smem:[#allocation3 + $0x1a]]  ;;  %s4277_s14 = sld [smem:[#allocation3 + $0x1d]] }
  0x36   :  { %s4278_s16 = sld [smem:[#allocation3 + $0x1e]]  ;;  %s4279_s18 = sld [smem:[#allocation3 + $0x1f]] }
  0x37   :  { %s4280_s20 = sld [smem:[#allocation3 + $0x20]] }
  0x39   :  { %155 = vrot.lane.b32.xlu0 %v4548_v29, %s4465_s1  ;;  %157 = vrot.lane.b32.xlu1 %v4556_v32, %s4465_s1 }
  0x3d   :  { %171 = vrot.lane.b32.xlu0 %v4548_v29, %s4467_s5  ;;  %173 = vrot.lane.b32.xlu1 %v4556_v32, %s4467_s5 }
  0x41   :  { %179 = vrot.lane.b32.xlu0 %v4542_v27, %s4467_s5  ;;  %181 = vrot.lane.b32.xlu1 %v4550_v30, %s4467_s5 }
  0x45   :  { %187 = vrot.lane.b32.xlu0 %v4548_v29, %s4468_s6  ;;  %189 = vrot.lane.b32.xlu1 %v4556_v32, %s4468_s6 }
  0x49   :  { %195 = vrot.lane.b32.xlu0 %v4542_v27, %s4468_s6  ;;  %197 = vrot.lane.b32.xlu1 %v4550_v30, %s4468_s6 }
  0x4d   :  { %203 = vrot.lane.b32.xlu0 %v4548_v29, %s4469_s7  ;;  %205 = vrot.lane.b32.xlu1 %v4556_v32, %s4469_s7 }
  0x51   :  { %211 = vrot.lane.b32.xlu0 %v4542_v27, %s4469_s7  ;;  %213 = vrot.lane.b32.xlu1 %v4550_v30, %s4469_s7 }
  0x55   :  { %219 = vrot.lane.b32.xlu0 %v4548_v29, %s4470_s8  ;;  %221 = vrot.lane.b32.xlu1 %v4556_v32, %s4470_s8 }
  0x59   :  { %227 = vrot.lane.b32.xlu0 %v4542_v27, %s4470_s8  ;;  %229 = vrot.lane.b32.xlu1 %v4550_v30, %s4470_s8 }
  0x5d   :  { %235 = vrot.lane.b32.xlu0 %v4548_v29, %s4471_s9  ;;  %237 = vrot.lane.b32.xlu1 %v4556_v32, %s4471_s9 }
  0x61   :  { %243 = vrot.lane.b32.xlu0 %v4542_v27, %s4471_s9  ;;  %245 = vrot.lane.b32.xlu1 %v4550_v30, %s4471_s9 }
  0x65   :  { %251 = vrot.lane.b32.xlu0 %v4548_v29, %s4472_s10  ;;  %253 = vrot.lane.b32.xlu1 %v4556_v32, %s4472_s10 }
  0x69   :  { %259 = vrot.lane.b32.xlu0 %v4542_v27, %s4472_s10  ;;  %261 = vrot.lane.b32.xlu1 %v4550_v30, %s4472_s10  ;;  %v4689_v30 = vstv %s4250_s12  ;;  %s4275_s12 = sld [smem:[#allocation3 + $0x1b]] }
  0x6d   :  { %271 = vrot.lane.b32.xlu1 %v105_v59, %s4466_s4  ;;  %269 = vrot.lane.b32.xlu0 %v103_v60, %s4466_s4 }
  0x71   :  { %281 = vrot.lane.b32.xlu1 %v73_v63, %s4466_s4  ;;  %279 = vrot.lane.b32.xlu0 %v59_v0, %s4466_s4  ;;  %s4266_s4 = sld [smem:[#allocation3 + $0x12]] }
  0x75   :  { %289 = vrot.lane.b32.xlu1 %v105_v59, %s4465_s1  ;;  %287 = vrot.lane.b32.xlu0 %v103_v60, %s4465_s1 }
  0x79   :  { %297 = vrot.lane.b32.xlu1 %v73_v63, %s4465_s1  ;;  %295 = vrot.lane.b32.xlu0 %v59_v0, %s4465_s1  ;;  %s4265_s1 = sld [smem:[#allocation3 + $0x11]] }
  0x7d   :  { %305 = vrot.lane.b32.xlu1 %v105_v59, %s4467_s5  ;;  %303 = vrot.lane.b32.xlu0 %v103_v60, %s4467_s5 }
  0x81   :  { %313 = vrot.lane.b32.xlu1 %v73_v63, %s4467_s5  ;;  %311 = vrot.lane.b32.xlu0 %v59_v0, %s4467_s5  ;;  %s4267_s5 = sld [smem:[#allocation3 + $0x13]] }
  0x85   :  { %321 = vrot.lane.b32.xlu1 %v105_v59, %s4468_s6  ;;  %319 = vrot.lane.b32.xlu0 %v103_v60, %s4468_s6 }
  0x89   :  { %329 = vrot.lane.b32.xlu1 %v73_v63, %s4468_s6  ;;  %327 = vrot.lane.b32.xlu0 %v59_v0, %s4468_s6  ;;  %s4268_s6 = sld [smem:[#allocation3 + $0x14]] }
  0x8d   :  { %337 = vrot.lane.b32.xlu1 %v105_v59, %s4469_s7  ;;  %335 = vrot.lane.b32.xlu0 %v103_v60, %s4469_s7 }
  0x91   :  { %345 = vrot.lane.b32.xlu1 %v73_v63, %s4469_s7  ;;  %343 = vrot.lane.b32.xlu0 %v59_v0, %s4469_s7  ;;  %s4270_s7 = sld [smem:[#allocation3 + $0x16]] }
  0x95   :  { %353 = vrot.lane.b32.xlu1 %v105_v59, %s4470_s8  ;;  %351 = vrot.lane.b32.xlu0 %v103_v60, %s4470_s8 }
  0x99   :  { %361 = vrot.lane.b32.xlu1 %v73_v63, %s4470_s8  ;;  %359 = vrot.lane.b32.xlu0 %v59_v0, %s4470_s8  ;;  %s4271_s8 = sld [smem:[#allocation3 + $0x17]] }
  0x9d   :  { %369 = vrot.lane.b32.xlu1 %v105_v59, %s4471_s9  ;;  %367 = vrot.lane.b32.xlu0 %v103_v60, %s4471_s9 }
  0x9f   :  { %v164_v1 = vpop.permute.xlu0 %163  ;;  %v148_v2 = vpop.permute.xlu1 %147 }
  0xa0   :  { %169 = vst.msk [vmem:[#allocation2 + $0x34] sm:$0x1] %vm142_vm4, %v164_v1  ;;  %153 = vst.msk [vmem:[#allocation2 + $0x33] sm:$0x1] %vm142_vm4, %v148_v2  ;;  %v4749_v1 = vstv %s4256_s22  ;;  %s4281_s22 = sld [smem:[#allocation3 + $0x21]] }
  0xa1   :  { %377 = vrot.lane.b32.xlu1 %v73_v63, %s4471_s9  ;;  %375 = vrot.lane.b32.xlu0 %v59_v0, %s4471_s9  ;;  %s4272_s9 = sld [smem:[#allocation3 + $0x18]] }
  0xa3   :  { %v137_v3 = vpop.permute.xlu0 %136  ;;  %v150_v4 = vpop.permute.xlu1 %149 }
  0xa4   :  { %143 = vst.msk [vmem:[#allocation2 + $0x3] sm:$0x1] %vm142_vm4, %v137_v3  ;;  %154 = vst.msk [vmem:[#allocation2 + $0x4b] sm:$0x1] %vm142_vm4, %v150_v4 }
  0xa5   :  { %385 = vrot.lane.b32.xlu1 %v105_v59, %s4472_s10  ;;  %383 = vrot.lane.b32.xlu0 %v103_v60, %s4472_s10 }
  0xa7   :  { %v139_v5 = vpop.permute.xlu0 %138  ;;  %v166_v6 = vpop.permute.xlu1 %165 }
  0xa8   :  { %144 = vst.msk [vmem:[#allocation2 + $0x1b] sm:$0x1] %vm142_vm4, %v139_v5  ;;  %170 = vst.msk [vmem:[#allocation2 + $0x4c] sm:$0x1] %vm142_vm4, %v166_v6 }
  0xa9   :  { %393 = vrot.lane.b32.xlu1 %v73_v63, %s4472_s10  ;;  %391 = vrot.lane.b32.xlu0 %v59_v0, %s4472_s10  ;;  %s4273_s10 = sld [smem:[#allocation3 + $0x19]] }
  0xab   :  { %v156_v7 = vpop.permute.xlu0 %155  ;;  %v158_v8 = vpop.permute.xlu1 %157 }
  0xac   :  { %161 = vst.msk [vmem:[#allocation2 + $0x4] sm:$0x1] %vm142_vm4, %v156_v7  ;;  %162 = vst.msk [vmem:[#allocation2 + $0x1c] sm:$0x1] %vm142_vm4, %v158_v8 }
  0xaf   :  { %v172_v9 = vpop.permute.xlu0 %171  ;;  %v174_v10 = vpop.permute.xlu1 %173 }
  0xb0   :  { %177 = vst.msk [vmem:[#allocation2 + $0x5] sm:$0x1] %vm142_vm4, %v172_v9  ;;  %178 = vst.msk [vmem:[#allocation2 + $0x1d] sm:$0x1] %vm142_vm4, %v174_v10 }
  0xb3   :  { %v180_v11 = vpop.permute.xlu0 %179  ;;  %v182_v12 = vpop.permute.xlu1 %181 }
  0xb4   :  { %185 = vst.msk [vmem:[#allocation2 + $0x35] sm:$0x1] %vm142_vm4, %v180_v11  ;;  %186 = vst.msk [vmem:[#allocation2 + $0x4d] sm:$0x1] %vm142_vm4, %v182_v12 }
  0xb7   :  { %v188_v13 = vpop.permute.xlu0 %187  ;;  %v190_v14 = vpop.permute.xlu1 %189 }
  0xb8   :  { %193 = vst.msk [vmem:[#allocation2 + $0x6] sm:$0x1] %vm142_vm4, %v188_v13  ;;  %194 = vst.msk [vmem:[#allocation2 + $0x1e] sm:$0x1] %vm142_vm4, %v190_v14 }
  0xbb   :  { %v196_v15 = vpop.permute.xlu0 %195  ;;  %v198_v16 = vpop.permute.xlu1 %197 }
  0xbc   :  { %201 = vst.msk [vmem:[#allocation2 + $0x36] sm:$0x1] %vm142_vm4, %v196_v15  ;;  %202 = vst.msk [vmem:[#allocation2 + $0x4e] sm:$0x1] %vm142_vm4, %v198_v16 }
  0xbf   :  { %v204_v17 = vpop.permute.xlu0 %203  ;;  %v206_v18 = vpop.permute.xlu1 %205 }
  0xc0   :  { %209 = vst.msk [vmem:[#allocation2 + $0x7] sm:$0x1] %vm142_vm4, %v204_v17  ;;  %210 = vst.msk [vmem:[#allocation2 + $0x1f] sm:$0x1] %vm142_vm4, %v206_v18 }
  0xc3   :  { %v212_v19 = vpop.permute.xlu0 %211  ;;  %v214_v20 = vpop.permute.xlu1 %213 }
  0xc4   :  { %217 = vst.msk [vmem:[#allocation2 + $0x37] sm:$0x1] %vm142_vm4, %v212_v19  ;;  %218 = vst.msk [vmem:[#allocation2 + $0x4f] sm:$0x1] %vm142_vm4, %v214_v20 }
  0xc7   :  { %v4676_v22 = vld [vmem:[#allocation2] sm:$0xff]  ;;  %v220_v23 = vpop.permute.xlu0 %219  ;;  %v222_v24 = vpop.permute.xlu1 %221  ;;  %v4682_v26 = vld [vmem:[#allocation2 + $0x18] sm:$0xff] }
  0xc8   :  { %225 = vst.msk [vmem:[#allocation2 + $0x8] sm:$0x1] %vm142_vm4, %v220_v23  ;;  %226 = vst.msk [vmem:[#allocation2 + $0x20] sm:$0x1] %vm142_vm4, %v222_v24  ;;  %v417_v25 = vmul.f32 %v4674_v21, %v4676_v22  ;;  %v419_v29 = vmul.f32 %v4674_v21, %v4682_v26  ;;  %v443_v33 = vmul.f32 %v4689_v30, %v4676_v22 }
  0xc9   :  { %v445_v36 = vmul.f32 %v4689_v30, %v4682_v26  ;;  %v469_v40 = vmul.f32 %v4701_v37, %v4676_v22  ;;  %v471_v43 = vmul.f32 %v4701_v37, %v4682_v26  ;;  %v495_v47 = vmul.f32 %v4713_v44, %v4676_v22 }
  0xca   :  { %425 = vrot.lane.b32.xlu0 %v417_v25, %s4473_s13  ;;  %v497_v50 = vmul.f32 %v4713_v44, %v4682_v26  ;;  %v521_v54 = vmul.f32 %v4725_v51, %v4676_v22  ;;  %v523_v57 = vmul.f32 %v4725_v51, %v4682_v26  ;;  %v547_v61 = vmul.f32 %v4737_v58, %v4676_v22 }
  0xcb   :  { %v228_v27 = vpop.permute.xlu0 %227  ;;  %v230_v28 = vpop.permute.xlu1 %229  ;;  %v549_v0 = vmul.f32 %v4737_v58, %v4682_v26  ;;  %v587_v4 = vmul.f32 %v4749_v1, %v4676_v22 }
  0xcc   :  { %233 = vst.msk [vmem:[#allocation2 + $0x38] sm:$0x1] %vm142_vm4, %v228_v27  ;;  %234 = vst.msk [vmem:[#allocation2 + $0x50] sm:$0x1] %vm142_vm4, %v230_v28 }
  0xce   :  { %429 = vrot.lane.b32.xlu0 %v419_v29, %s4473_s13 }
  0xcf   :  { %v236_v31 = vpop.permute.xlu0 %235  ;;  %v238_v32 = vpop.permute.xlu1 %237 }
  0xd0   :  { %241 = vst.msk [vmem:[#allocation2 + $0x9] sm:$0x1] %vm142_vm4, %v236_v31  ;;  %242 = vst.msk [vmem:[#allocation2 + $0x21] sm:$0x1] %vm142_vm4, %v238_v32 }
  0xd2   :  { %451 = vrot.lane.b32.xlu0 %v443_v33, %s4474_s15 }
  0xd3   :  { %v244_v34 = vpop.permute.xlu0 %243  ;;  %v246_v35 = vpop.permute.xlu1 %245 }
  0xd4   :  { %249 = vst.msk [vmem:[#allocation2 + $0x39] sm:$0x1] %vm142_vm4, %v244_v34  ;;  %250 = vst.msk [vmem:[#allocation2 + $0x51] sm:$0x1] %vm142_vm4, %v246_v35 }
  0xd6   :  { %455 = vrot.lane.b32.xlu0 %v445_v36, %s4474_s15 }
  0xd7   :  { %v252_v38 = vpop.permute.xlu0 %251  ;;  %v254_v39 = vpop.permute.xlu1 %253 }
  0xd8   :  { %257 = vst.msk [vmem:[#allocation2 + $0xa] sm:$0x1] %vm142_vm4, %v252_v38  ;;  %258 = vst.msk [vmem:[#allocation2 + $0x22] sm:$0x1] %vm142_vm4, %v254_v39  ;;  %v624_v38 = vstv %s4257_s24  ;;  %s4282_s24 = sld [smem:[#allocation3 + $0x22]] }
  0xda   :  { %477 = vrot.lane.b32.xlu0 %v469_v40, %s4475_s17  ;;  %v625_v40 = vmul.f32 %v624_v38, %v4676_v22 }
  0xdb   :  { %v260_v41 = vpop.permute.xlu0 %259  ;;  %v262_v42 = vpop.permute.xlu1 %261 }
  0xdc   :  { %265 = vst.msk [vmem:[#allocation2 + $0x3a] sm:$0x1] %vm142_vm4, %v260_v41  ;;  %266 = vst.msk [vmem:[#allocation2 + $0x52] sm:$0x1] %vm142_vm4, %v262_v42 }
  0xde   :  { %481 = vrot.lane.b32.xlu0 %v471_v43, %s4475_s17 }
  0xdf   :  { %v272_v45 = vpop.permute.xlu1 %271  ;;  %v270_v46 = vpop.permute.xlu0 %269 }
  0xe0   :  { %276 = vst.msk [vmem:[#allocation2 + $0x23] sm:$0x1] %vm142_vm4, %v272_v45  ;;  %275 = vst.msk [vmem:[#allocation2 + $0xb] sm:$0x1] %vm142_vm4, %v270_v46  ;;  %v662_v45 = vstv %s4258_s25  ;;  %s4284_s25 = sld [smem:[#allocation3 + $0x24]] }
  0xe2   :  { %503 = vrot.lane.b32.xlu0 %v495_v47, %s4476_s19  ;;  %v663_v47 = vmul.f32 %v662_v45, %v4676_v22 }
  0xe3   :  { %v282_v48 = vpop.permute.xlu1 %281  ;;  %v280_v49 = vpop.permute.xlu0 %279 }
  0xe4   :  { %286 = vst.msk [vmem:[#allocation2 + $0x53] sm:$0x1] %vm142_vm4, %v282_v48  ;;  %285 = vst.msk [vmem:[#allocation2 + $0x3b] sm:$0x1] %vm142_vm4, %v280_v49 }
  0xe6   :  { %507 = vrot.lane.b32.xlu0 %v497_v50, %s4476_s19  ;;  %v590_v50 = vmul.f32 %v4749_v1, %v4682_v26 }
  0xe7   :  { %v290_v52 = vpop.permute.xlu1 %289  ;;  %v288_v53 = vpop.permute.xlu0 %287 }
  0xe8   :  { %294 = vst.msk [vmem:[#allocation2 + $0x24] sm:$0x1] %vm142_vm4, %v290_v52  ;;  %293 = vst.msk [vmem:[#allocation2 + $0xc] sm:$0x1] %vm142_vm4, %v288_v53  ;;  %v700_v52 = vstv %s4259_s26  ;;  %s4285_s26 = sld [smem:[#allocation3 + $0x25]] }
  0xea   :  { %529 = vrot.lane.b32.xlu0 %v521_v54, %s4477_s21 }
  0xeb   :  { %v298_v55 = vpop.permute.xlu1 %297  ;;  %v296_v56 = vpop.permute.xlu0 %295 }
  0xec   :  { %302 = vst.msk [vmem:[#allocation2 + $0x54] sm:$0x1] %vm142_vm4, %v298_v55  ;;  %301 = vst.msk [vmem:[#allocation2 + $0x3c] sm:$0x1] %vm142_vm4, %v296_v56  ;;  %v701_v55 = vmul.f32 %v700_v52, %v4676_v22 }
  0xee   :  { %533 = vrot.lane.b32.xlu0 %v523_v57, %s4477_s21 }
  0xef   :  { %v306_v59 = vpop.permute.xlu1 %305  ;;  %v304_v60 = vpop.permute.xlu0 %303 }
  0xf0   :  { %310 = vst.msk [vmem:[#allocation2 + $0x25] sm:$0x1] %vm142_vm4, %v306_v59  ;;  %309 = vst.msk [vmem:[#allocation2 + $0xd] sm:$0x1] %vm142_vm4, %v304_v60  ;;  %v628_v59 = vmul.f32 %v624_v38, %v4682_v26 }
  0xf2   :  { %555 = vrot.lane.b32.xlu0 %v547_v61, %s4478_s23  ;;  %v4856_v61 = vstv %s4260_s27  ;;  %s4286_s27 = sld [smem:[#allocation3 + $0x26]] }
  0xf3   :  { %v314_v62 = vpop.permute.xlu1 %313  ;;  %v312_v63 = vpop.permute.xlu0 %311 }
  0xf4   :  { %318 = vst.msk [vmem:[#allocation2 + $0x55] sm:$0x1] %vm142_vm4, %v314_v62  ;;  %317 = vst.msk [vmem:[#allocation2 + $0x3d] sm:$0x1] %vm142_vm4, %v312_v63  ;;  %v739_v63 = vmul.f32 %v4856_v61, %v4676_v22 }
  0xf6   :  { %559 = vrot.lane.b32.xlu0 %v549_v0, %s4478_s23 }
  0xf7   :  { %v322_v2 = vpop.permute.xlu1 %321  ;;  %v320_v3 = vpop.permute.xlu0 %319 }
  0xf8   :  { %326 = vst.msk [vmem:[#allocation2 + $0x26] sm:$0x1] %vm142_vm4, %v322_v2  ;;  %325 = vst.msk [vmem:[#allocation2 + $0xe] sm:$0x1] %vm142_vm4, %v320_v3 }
  0xfa   :  { %599 = vrot.lane.b32.xlu0 %v587_v4, %s4473_s13  ;;  %v666_v4 = vmul.f32 %v662_v45, %v4682_v26 }
  0xfb   :  { %v330_v5 = vpop.permute.xlu1 %329  ;;  %v328_v6 = vpop.permute.xlu0 %327 }
  0xfc   :  { %334 = vst.msk [vmem:[#allocation2 + $0x56] sm:$0x1] %vm142_vm4, %v330_v5  ;;  %333 = vst.msk [vmem:[#allocation2 + $0x3e] sm:$0x1] %vm142_vm4, %v328_v6  ;;  %v4877_v6 = vstv %s4261_s28  ;;  %s4287_s28 = sld [smem:[#allocation3 + $0x27]] }
  0xff   :  { %v338_v7 = vpop.permute.xlu1 %337  ;;  %v336_v8 = vpop.permute.xlu0 %335 }
 0x100   :  { %342 = vst.msk [vmem:[#allocation2 + $0x27] sm:$0x1] %vm142_vm4, %v338_v7  ;;  %341 = vst.msk [vmem:[#allocation2 + $0xf] sm:$0x1] %vm142_vm4, %v336_v8  ;;  %v777_v8 = vmul.f32 %v4877_v6, %v4676_v22 }
 0x103   :  { %v346_v9 = vpop.permute.xlu1 %345  ;;  %v344_v10 = vpop.permute.xlu0 %343 }
 0x104   :  { %350 = vst.msk [vmem:[#allocation2 + $0x57] sm:$0x1] %vm142_vm4, %v346_v9  ;;  %349 = vst.msk [vmem:[#allocation2 + $0x3f] sm:$0x1] %vm142_vm4, %v344_v10 }
 0x107   :  { %v4763_v11 = vld [vmem:[#allocation2 + $0x8] sm:$0xff]  ;;  %v354_v12 = vpop.permute.xlu1 %353  ;;  %v352_v13 = vpop.permute.xlu0 %351  ;;  %v4769_v15 = vld [vmem:[#allocation2 + $0x20] sm:$0xff] }
 0x108   :  { %358 = vst.msk [vmem:[#allocation2 + $0x28] sm:$0x1] %vm142_vm4, %v354_v12  ;;  %357 = vst.msk [vmem:[#allocation2 + $0x10] sm:$0x1] %vm142_vm4, %v352_v13  ;;  %v418_v14 = vmul.f32 %v4674_v21, %v4763_v11  ;;  %v420_v18 = vmul.f32 %v4674_v21, %v4769_v15  ;;  %v444_v23 = vmul.f32 %v4689_v30, %v4763_v11  ;;  %v4891_v13 = vstv %s4263_s30  ;;  %s4288_s30 = sld [smem:[#allocation3 + $0x28]] }
 0x109   :  { %v446_v21 = vmul.f32 %v4689_v30, %v4769_v15  ;;  %v470_v29 = vmul.f32 %v4701_v37, %v4763_v11  ;;  %v472_v30 = vmul.f32 %v4701_v37, %v4769_v15  ;;  %v496_v34 = vmul.f32 %v4713_v44, %v4763_v11 }
 0x10a   :  { %427 = vrot.lane.b32.xlu1 %v418_v14, %s4473_s13  ;;  %v498_v36 = vmul.f32 %v4713_v44, %v4769_v15  ;;  %v591_v37 = vmul.f32 %v4749_v1, %v4769_v15  ;;  %v522_v39 = vmul.f32 %v4725_v51, %v4763_v11  ;;  %v524_v42 = vmul.f32 %v4725_v51, %v4769_v15 }
 0x10b   :  { %v362_v16 = vpop.permute.xlu1 %361  ;;  %v360_v17 = vpop.permute.xlu0 %359  ;;  %v548_v43 = vmul.f32 %v4737_v58, %v4763_v11  ;;  %v629_v44 = vmul.f32 %v624_v38, %v4769_v15  ;;  %v550_v46 = vmul.f32 %v4737_v58, %v4769_v15  ;;  %v588_v48 = vmul.f32 %v4749_v1, %v4763_v11 }
 0x10c   :  { %366 = vst.msk [vmem:[#allocation2 + $0x58] sm:$0x1] %vm142_vm4, %v362_v16  ;;  %365 = vst.msk [vmem:[#allocation2 + $0x40] sm:$0x1] %vm142_vm4, %v360_v17  ;;  %v667_v51 = vmul.f32 %v662_v45, %v4769_v15  ;;  %v626_v56 = vmul.f32 %v624_v38, %v4763_v11  ;;  %v705_v60 = vmul.f32 %v700_v52, %v4769_v15 }
 0x10d   :  { %v743_v5 = vmul.f32 %v4856_v61, %v4769_v15  ;;  %v702_v10 = vmul.f32 %v700_v52, %v4763_v11  ;;  %v4895_v14 = vmul.f32 %v4891_v13, %v4763_v11  ;;  %v848_v16 = vmul.f32 %v4891_v13, %v4676_v22 }
 0x10e   :  { %431 = vrot.lane.b32.xlu1 %v420_v18, %s4473_s13  ;;  %v704_v18 = vmul.f32 %v700_v52, %v4682_v26 }
 0x10f   :  { %v370_v19 = vpop.permute.xlu1 %369  ;;  %v368_v20 = vpop.permute.xlu0 %367 }
 0x110   :  { %374 = vst.msk [vmem:[#allocation2 + $0x29] sm:$0x1] %vm142_vm4, %v370_v19  ;;  %373 = vst.msk [vmem:[#allocation2 + $0x11] sm:$0x1] %vm142_vm4, %v368_v20  ;;  %v781_v19 = vmul.f32 %v4877_v6, %v4769_v15  ;;  %v861_v20 = vrot.slane %v4895_v14, 2 }
 0x112   :  { %453 = vrot.lane.b32.xlu1 %v444_v23, %s4474_s15  ;;  %v4909_v23 = vmul.f32 %v4891_v13, %v4769_v15 }
 0x113   :  { %v378_v24 = vpop.permute.xlu1 %377  ;;  %v376_v25 = vpop.permute.xlu0 %375 }
 0x114   :  { %382 = vst.msk [vmem:[#allocation2 + $0x59] sm:$0x1] %vm142_vm4, %v378_v24  ;;  %381 = vst.msk [vmem:[#allocation2 + $0x41] sm:$0x1] %vm142_vm4, %v376_v25  ;;  %v860_v24 = vrot.slane %v848_v16, 2  ;;  %v851_v25 = vmul.f32 %v4891_v13, %v4682_v26 }
 0x116   :  { %457 = vrot.lane.b32.xlu1 %v446_v21, %s4474_s15 }
 0x117   :  { %v386_v27 = vpop.permute.xlu1 %385  ;;  %v384_v28 = vpop.permute.xlu0 %383 }
 0x118   :  { %390 = vst.msk [vmem:[#allocation2 + $0x2a] sm:$0x1] %vm142_vm4, %v386_v27  ;;  %389 = vst.msk [vmem:[#allocation2 + $0x12] sm:$0x1] %vm142_vm4, %v384_v28  ;;  %v4916_v27 = vstv %s4264_s3  ;;  %v862_v28 = vsel %vm827_vm5, %v860_v24, %v861_v20  ;;  %s4289_s3 = sld [smem:[#allocation3 + $0x29]] }
 0x11a   :  { %479 = vrot.lane.b32.xlu1 %v470_v29, %s4475_s17  ;;  %v866_v29 = vrot.slane %v4909_v23, 2 }
 0x11b   :  { %v394_v31 = vpop.permute.xlu1 %393  ;;  %v392_v32 = vpop.permute.xlu0 %391 }
 0x11c   :  { %398 = vst.msk [vmem:[#allocation2 + $0x5a] sm:$0x1] %vm142_vm4, %v394_v31  ;;  %397 = vst.msk [vmem:[#allocation2 + $0x42] sm:$0x1] %vm142_vm4, %v392_v32  ;;  %v4924_v31 = vmul.f32 %v4916_v27, %v4763_v11 }
 0x11e   :  { %483 = vrot.lane.b32.xlu1 %v472_v30, %s4475_s17  ;;  %v865_v30 = vrot.slane %v851_v25, 2 }
 0x11f   :  { %v4797_v33 = vld [vmem:[#allocation2 + $0x10] sm:$0x3f]  ;;  %v4841_v53 = vld [vmem:[#allocation2 + $0x28] sm:$0x3f] }
 0x120   :  { %v589_v35 = vmul.f32 %v4749_v1, %v4797_v33  ;;  %v627_v41 = vmul.f32 %v624_v38, %v4797_v33  ;;  %v665_v49 = vmul.f32 %v662_v45, %v4797_v33  ;;  %v592_v54 = vmul.f32 %v4749_v1, %v4841_v53 }
 0x121   :  { %v703_v57 = vmul.f32 %v700_v52, %v4797_v33  ;;  %v630_v62 = vmul.f32 %v624_v38, %v4841_v53  ;;  %v664_v1 = vmul.f32 %v662_v45, %v4763_v11  ;;  %v741_v2 = vmul.f32 %v4856_v61, %v4797_v33 }
 0x122   :  { %505 = vrot.lane.b32.xlu1 %v496_v34, %s4476_s19  ;;  %603 = vrot.lane.b32.xlu0 %v589_v35, %s4473_s13  ;;  %v668_v7 = vmul.f32 %v662_v45, %v4841_v53  ;;  %v779_v12 = vmul.f32 %v4877_v6, %v4797_v33  ;;  %v706_v21 = vmul.f32 %v700_v52, %v4841_v53 }
 0x123   :  { %v888_v34 = vmul.f32 %v4916_v27, %v4676_v22  ;;  %v740_v35 = vmul.f32 %v4856_v61, %v4763_v11  ;;  %v4940_v38 = vmul.f32 %v4916_v27, %v4769_v15  ;;  %v782_v24 = vmul.f32 %v4877_v6, %v4841_v53 }
 0x125   :  { %v906_v45 = vrot.slane %v4940_v38, 2 }
 0x126   :  { %509 = vrot.lane.b32.xlu1 %v498_v36, %s4476_s19  ;;  %607 = vrot.lane.b32.xlu0 %v591_v37, %s4473_s13  ;;  %v867_v36 = vsel %vm827_vm5, %v865_v30, %v866_v29  ;;  %v901_v37 = vrot.slane %v4924_v31, 2 }
 0x12a   :  { %531 = vrot.lane.b32.xlu1 %v522_v39, %s4477_s21  ;;  %637 = vrot.lane.b32.xlu0 %v625_v40, %s4474_s15  ;;  %v900_v39 = vrot.slane %v888_v34, 2  ;;  %v891_v40 = vmul.f32 %v4916_v27, %v4682_v26  ;;  %v853_v34 = vmul.f32 %v4891_v13, %v4841_v53 }
 0x12e   :  { %535 = vrot.lane.b32.xlu1 %v524_v42, %s4477_s21  ;;  %641 = vrot.lane.b32.xlu0 %v627_v41, %s4474_s15  ;;  %v742_v42 = vmul.f32 %v4856_v61, %v4682_v26 }
 0x132   :  { %557 = vrot.lane.b32.xlu1 %v548_v43, %s4478_s23  ;;  %645 = vrot.lane.b32.xlu0 %v629_v44, %s4474_s15  ;;  %v4950_v43 = vstv %s4265_s1  ;;  %v902_v44 = vsel %vm827_vm5, %v900_v39, %v901_v37  ;;  %s4291_s1 = sld [smem:[#allocation3 + $0x2b]] }
 0x133   :  { %v4972_v52 = vmul.f32 %v4950_v43, %v4769_v15 }
 0x136   :  { %561 = vrot.lane.b32.xlu1 %v550_v46, %s4478_s23  ;;  %675 = vrot.lane.b32.xlu0 %v663_v47, %s4475_s17  ;;  %v4958_v46 = vmul.f32 %v4950_v43, %v4763_v11  ;;  %v905_v47 = vrot.slane %v891_v40, 2 }
 0x13a   :  { %601 = vrot.lane.b32.xlu1 %v588_v48, %s4473_s13  ;;  %679 = vrot.lane.b32.xlu0 %v665_v49, %s4475_s17  ;;  %v928_v48 = vmul.f32 %v4950_v43, %v4676_v22  ;;  %v744_v49 = vmul.f32 %v4856_v61, %v4841_v53  ;;  %v946_v61 = vrot.slane %v4972_v52, 2 }
 0x13c   :  { %v4852_v58 = vpop.permute.xlu0 %425 }
 0x13d   :  { %9480 = vst [vmem:[#allocation12_spill] sm:$0xff] %v4852_v58 }
 0x13e   :  { %605 = vrot.lane.b32.xlu1 %v590_v50, %s4473_s13  ;;  %683 = vrot.lane.b32.xlu0 %v667_v51, %s4475_s17  ;;  %v907_v50 = vsel %vm827_vm5, %v905_v47, %v906_v45  ;;  %v941_v51 = vrot.slane %v4958_v46, 2  ;;  %v868_v47 = vrot.slane %v853_v34, 2 }
 0x140   :  { %v4863_v0 = vpop.permute.xlu0 %429 }
 0x141   :  { %9481 = vst [vmem:[#allocation13_spill] sm:$0xff] %v4863_v0 }
 0x142   :  { %609 = vrot.lane.b32.xlu1 %v592_v54, %s4473_s13  ;;  %713 = vrot.lane.b32.xlu0 %v701_v55, %s4476_s19  ;;  %v940_v55 = vrot.slane %v928_v48, 2  ;;  %v890_v48 = vmul.f32 %v4916_v27, %v4797_v33 }
 0x144   :  { %v4872_v3 = vpop.permute.xlu0 %451 }
 0x145   :  { %9482 = vst [vmem:[#allocation14_spill] sm:$0xff] %v4872_v3 }
 0x146   :  { %639 = vrot.lane.b32.xlu1 %v626_v56, %s4474_s15  ;;  %717 = vrot.lane.b32.xlu0 %v703_v57, %s4476_s19  ;;  %v931_v56 = vmul.f32 %v4950_v43, %v4682_v26  ;;  %v778_v57 = vmul.f32 %v4877_v6, %v4763_v11 }
 0x148   :  { %v4884_v9 = vpop.permute.xlu0 %455 }
 0x149   :  { %9483 = vst [vmem:[#allocation15_spill] sm:$0xff] %v4884_v9 }
 0x14a   :  { %643 = vrot.lane.b32.xlu1 %v628_v59, %s4474_s15  ;;  %721 = vrot.lane.b32.xlu0 %v705_v60, %s4476_s19  ;;  %v4982_v59 = vstv %s4266_s4  ;;  %v942_v60 = vsel %vm827_vm5, %v940_v55, %v941_v51  ;;  %v5055_v55 = vstv %s4268_s6  ;;  %s4292_s4 = sld [smem:[#allocation3 + $0x2c]]  ;;  %s4294_s6 = sld [smem:[#allocation3 + $0x2e]] }
 0x14b   :  { %v971_v16 = vmul.f32 %v4982_v59, %v4682_v26  ;;  %v1051_v31 = vmul.f32 %v5055_v55, %v4682_v26 }
 0x14c   :  { %v4901_v17 = vpop.permute.xlu0 %477 }
 0x14d   :  { %9484 = vst [vmem:[#allocation16_spill] sm:$0xff] %v4901_v17 }
 0x14e   :  { %647 = vrot.lane.b32.xlu1 %v630_v62, %s4474_s15  ;;  %751 = vrot.lane.b32.xlu0 %v739_v63, %s4477_s21  ;;  %v4990_v62 = vmul.f32 %v4982_v59, %v4763_v11  ;;  %v945_v63 = vrot.slane %v931_v56, 2 }
 0x150   :  { %v4926_v32 = vpop.permute.xlu0 %481 }
 0x151   :  { %9485 = vst [vmem:[#allocation17_spill] sm:$0xff] %v4926_v32 }
 0x152   :  { %677 = vrot.lane.b32.xlu1 %v664_v1, %s4475_s17  ;;  %755 = vrot.lane.b32.xlu0 %v741_v2, %s4477_s21  ;;  %v968_v1 = vmul.f32 %v4982_v59, %v4676_v22 }
 0x154   :  { %v4946_v41 = vpop.permute.xlu0 %503 }
 0x155   :  { %9486 = vst [vmem:[#allocation18_spill] sm:$0xff] %v4946_v41 }
 0x156   :  { %681 = vrot.lane.b32.xlu1 %v666_v4, %s4475_s17  ;;  %759 = vrot.lane.b32.xlu0 %v743_v5, %s4477_s21  ;;  %v780_v4 = vmul.f32 %v4877_v6, %v4682_v26  ;;  %v947_v5 = vsel %vm827_vm5, %v945_v63, %v946_v61  ;;  %v985_v6 = vrot.slane %v971_v16, 2 }
 0x158   :  { %v4974_v54 = vpop.permute.xlu0 %507 }
 0x159   :  { %9487 = vst [vmem:[#allocation19_spill] sm:$0xff] %v4974_v54 }
 0x15a   :  { %685 = vrot.lane.b32.xlu1 %v668_v7, %s4475_s17  ;;  %789 = vrot.lane.b32.xlu0 %v777_v8, %s4478_s23  ;;  %v981_v7 = vrot.slane %v4990_v62, 2  ;;  %v850_v8 = vmul.f32 %v4891_v13, %v4797_v33 }
 0x15c   :  { %v4996_v2 = vpop.permute.xlu0 %529 }
 0x15d   :  { %9488 = vst [vmem:[#allocation20_spill] sm:$0xff] %v4996_v2 }
 0x15e   :  { %715 = vrot.lane.b32.xlu1 %v702_v10, %s4476_s19  ;;  %793 = vrot.lane.b32.xlu0 %v779_v12, %s4478_s23  ;;  %v5008_v10 = vmul.f32 %v4982_v59, %v4769_v15  ;;  %v980_v12 = vrot.slane %v968_v1, 2  ;;  %v903_v1 = vrot.slane %v890_v48, 2 }
 0x160   :  { %v986_v30 = vrot.slane %v5008_v10, 2 }
 0x162   :  { %719 = vrot.lane.b32.xlu1 %v704_v18, %s4476_s19  ;;  %797 = vrot.lane.b32.xlu0 %v781_v19, %s4478_s23  ;;  %v5014_v18 = vstv %s4267_s5  ;;  %s4293_s5 = sld [smem:[#allocation3 + $0x2d]] }
 0x163   :  { %v5022_v25 = vmul.f32 %v5014_v18, %v4763_v11 }
 0x165   :  { %v1021_v40 = vrot.slane %v5022_v25, 2 }
 0x166   :  { %723 = vrot.lane.b32.xlu1 %v706_v21, %s4476_s19  ;;  %870 = vrot.lane.b32.xlu0 %v862_v28, %s4473_s13  ;;  %v982_v21 = vsel %vm827_vm5, %v980_v12, %v981_v7  ;;  %v863_v28 = vrot.slane %v850_v8, 2  ;;  %v1048_v8 = vmul.f32 %v5055_v55, %v4676_v22 }
 0x168   :  { %v864_v13 = vsel %vm827_vm5, %v861_v20, %v863_v28  ;;  %v1060_v34 = vrot.slane %v1048_v8, 2 }
 0x16a   :  { %753 = vrot.lane.b32.xlu1 %v740_v35, %s4477_s21  ;;  %874 = vrot.lane.b32.xlu0 %v867_v36, %s4473_s13  ;;  %v5030_v35 = vpop.permute.xlu0 %533  ;;  %v1008_v36 = vmul.f32 %v5014_v18, %v4676_v22 }
 0x16b   :  { %9490 = vst [vmem:[#allocation22_spill] sm:$0xff] %v5030_v35 }
 0x16e   :  { %757 = vrot.lane.b32.xlu1 %v742_v42, %s4477_s21  ;;  %910 = vrot.lane.b32.xlu0 %v902_v44, %s4474_s15  ;;  %v5041_v42 = vmul.f32 %v5014_v18, %v4769_v15  ;;  %v987_v44 = vsel %vm827_vm5, %v985_v6, %v986_v30  ;;  %v5057_v14 = vpop.permute.xlu0 %555  ;;  %v5099_v6 = vstv %s4270_s7  ;;  %s4295_s7 = sld [smem:[#allocation3 + $0x2f]] }
 0x16f   :  { %9492 = vst [vmem:[#allocation24_spill] sm:$0xff] %v5057_v14 }
 0x170   :  { %v1026_v56 = vrot.slane %v5041_v42, 2 }
 0x172   :  { %761 = vrot.lane.b32.xlu1 %v744_v49, %s4477_s21  ;;  %914 = vrot.lane.b32.xlu0 %v907_v50, %s4474_s15  ;;  %v1020_v49 = vrot.slane %v1008_v36, 2  ;;  %v1011_v50 = vmul.f32 %v5014_v18, %v4682_v26  ;;  %v5093_v28 = vpop.permute.xlu0 %559 }
 0x173   :  { %9495 = vst [vmem:[#allocation27_spill] sm:$0xff] %v5093_v28 }
 0x174   :  { %v1022_v63 = vsel %vm827_vm5, %v1020_v49, %v1021_v40  ;;  %v933_v49 = vmul.f32 %v4950_v43, %v4841_v53 }
 0x176   :  { %791 = vrot.lane.b32.xlu1 %v778_v57, %s4478_s23  ;;  %950 = vrot.lane.b32.xlu0 %v942_v60, %s4475_s17  ;;  %v5064_v57 = vmul.f32 %v5055_v55, %v4763_v11  ;;  %v869_v60 = vsel %vm827_vm5, %v866_v29, %v868_v47  ;;  %v5083_v29 = vmul.f32 %v5055_v55, %v4769_v15  ;;  %v5120_v38 = vpop.permute.xlu0 %599 }
 0x177   :  { %9497 = vst [vmem:[#allocation29_spill] sm:$0xff] %v5120_v38 }
 0x178   :  { %v1061_v23 = vrot.slane %v5064_v57, 2  ;;  %v9388_v36 = vrot.slane %v5083_v29, 2 }
 0x17a   :  { %795 = vrot.lane.b32.xlu1 %v780_v4, %s4478_s23  ;;  %954 = vrot.lane.b32.xlu0 %v947_v5, %s4475_s17  ;;  %v893_v4 = vmul.f32 %v4916_v27, %v4841_v53  ;;  %v1025_v5 = vrot.slane %v1011_v50, 2  ;;  %v904_v27 = vsel %vm827_vm5, %v901_v37, %v903_v1  ;;  %v1062_v47 = vsel %vm827_vm5, %v1060_v34, %v1061_v23 }
 0x17b   :  { %v1124_v50 = vmul.f32 %v5099_v6, %v4676_v22  ;;  %v973_v34 = vmul.f32 %v4982_v59, %v4841_v53 }
 0x17c   :  { %v5016_v19 = vpop.permute.xlu1 %427  ;;  %v1027_v16 = vsel %vm827_vm5, %v1025_v5, %v1026_v56  ;;  %v970_v5 = vmul.f32 %v4982_v59, %v4797_v33 }
 0x17d   :  { %9489 = vst [vmem:[#allocation21_spill] sm:$0xff] %v5016_v19  ;;  %v1136_v8 = vrot.slane %v1124_v50, 2  ;;  %v988_v50 = vrot.slane %v973_v34, 2 }
 0x17e   :  { %799 = vrot.lane.b32.xlu1 %v782_v24, %s4478_s23  ;;  %990 = vrot.lane.b32.xlu0 %v982_v21, %s4476_s19  ;;  %v908_v24 = vrot.slane %v893_v4, 2  ;;  %v930_v21 = vmul.f32 %v4950_v43, %v4797_v33  ;;  %v948_v4 = vrot.slane %v933_v49, 2 }
 0x180   :  { %v5036_v39 = vpop.permute.xlu1 %431  ;;  %v943_v48 = vrot.slane %v930_v21, 2  ;;  %v983_v21 = vrot.slane %v970_v5, 2 }
 0x181   :  { %9491 = vst [vmem:[#allocation23_spill] sm:$0xff] %v5036_v39 }
 0x182   :  { %872 = vrot.lane.b32.xlu1 %v864_v13, %s4473_s13  ;;  %994 = vrot.lane.b32.xlu0 %v987_v44, %s4476_s19  ;;  %v5106_v13 = vmul.f32 %v5099_v6, %v4763_v11  ;;  %v909_v44 = vsel %vm827_vm5, %v906_v45, %v908_v24  ;;  %v944_v1 = vsel %vm827_vm5, %v941_v51, %v943_v48 }
 0x183   :  { %v5144_v51 = vmul.f32 %v5099_v6, %v4797_v33  ;;  %v949_v24 = vsel %vm827_vm5, %v946_v61, %v948_v4  ;;  %v984_v49 = vsel %vm827_vm5, %v981_v7, %v983_v21  ;;  %v1013_v21 = vmul.f32 %v5014_v18, %v4841_v53 }
 0x184   :  { %v5059_v20 = vpop.permute.xlu1 %453 }
 0x185   :  { %9493 = vst [vmem:[#allocation25_spill] sm:$0xff] %v5059_v20  ;;  %v9387_v59 = vrot.slane %v5144_v51, 2 }
 0x186   :  { %876 = vrot.lane.b32.xlu1 %v869_v60, %s4473_s13  ;;  %1030 = vrot.lane.b32.xlu0 %v1022_v63, %s4477_s21  ;;  %v1065_v60 = vrot.slane %v1051_v31, 2  ;;  %v9385_v63 = vrot.slane %v5106_v13, 2  ;;  %v5153_v31 = vmul.f32 %v5099_v6, %v4841_v53 }
 0x188   :  { %v5078_v12 = vpop.permute.xlu1 %457  ;;  %v1067_v43 = vsel %vm827_vm5, %v1065_v60, %v9388_v36  ;;  %v1138_v46 = vsel %vm827_vm5, %v1136_v8, %v9385_v63  ;;  %v9383_v60 = vrot.slane %v5153_v31, 2  ;;  %v989_v8 = vsel %vm827_vm5, %v986_v30, %v988_v50 }
 0x189   :  { %9494 = vst [vmem:[#allocation26_spill] sm:$0xff] %v5078_v12 }
 0x18a   :  { %912 = vrot.lane.b32.xlu1 %v904_v27, %s4474_s15  ;;  %1034 = vrot.lane.b32.xlu0 %v1027_v16, %s4477_s21 }
 0x18c   :  { %v5101_v37 = vpop.permute.xlu1 %479 }
 0x18d   :  { %9496 = vst [vmem:[#allocation28_spill] sm:$0xff] %v5101_v37 }
 0x18e   :  { %916 = vrot.lane.b32.xlu1 %v909_v44, %s4474_s15  ;;  %1070 = vrot.lane.b32.xlu0 %v1062_v47, %s4478_s23  ;;  %v5159_v44 = vmul.f32 %v5099_v6, %v4769_v15  ;;  %v5161_v47 = vstv %s4271_s8  ;;  %s4296_s8 = sld [smem:[#allocation3 + $0x30]] }
 0x18f   :  { %v5170_v48 = vmul.f32 %v5161_v47, %v4763_v11  ;;  %v5211_v50 = vmul.f32 %v5161_v47, %v4797_v33 }
 0x190   :  { %v5122_v45 = vpop.permute.xlu1 %483  ;;  %v9384_v4 = vrot.slane %v5159_v44, 2 }
 0x191   :  { %9498 = vst [vmem:[#allocation30_spill] sm:$0xff] %v5122_v45  ;;  %v9382_v5 = vrot.slane %v5170_v48, 2 }
 0x192   :  { %952 = vrot.lane.b32.xlu1 %v944_v1, %s4475_s17  ;;  %1074 = vrot.lane.b32.xlu0 %v1067_v43, %s4478_s23  ;;  %v1010_v1 = vmul.f32 %v5014_v18, %v4797_v33  ;;  %v1172_v43 = vmul.f32 %v5161_v47, %v4676_v22 }
 0x194   :  { %v5135_v27 = vpop.permute.xlu1 %505  ;;  %v5137_v16 = vpop.permute.xlu0 %603  ;;  %v1184_v34 = vrot.slane %v1172_v43, 2  ;;  %v1050_v43 = vmul.f32 %v5055_v55, %v4797_v33 }
 0x195   :  { %9499 = vst [vmem:[#allocation31_spill] sm:$0xff] %v5135_v27  ;;  %9500 = vst [vmem:[#allocation32_spill] sm:$0xff] %v5137_v16 }
 0x196   :  { %956 = vrot.lane.b32.xlu1 %v949_v24, %s4475_s17  ;;  %1146 = vrot.lane.b32.xlu0 %v1138_v46, %s4473_s13  ;;  %v1145_v46 = vsel %vm827_vm5, %v9384_v4, %v9383_v60  ;;  %v1023_v24 = vrot.slane %v1010_v1, 2  ;;  %v1186_v30 = vsel %vm827_vm5, %v1184_v34, %v9382_v5  ;;  %v1028_v1 = vrot.slane %v1013_v21, 2 }
 0x197   :  { %v5228_v34 = vstv %s4272_s9  ;;  %v1053_v60 = vmul.f32 %v5055_v55, %v4841_v53  ;;  %s4298_s9 = sld [smem:[#allocation3 + $0x32]] }
 0x198   :  { %v5163_v52 = vpop.permute.xlu1 %509  ;;  %v5165_v61 = vpop.permute.xlu0 %607  ;;  %v1024_v18 = vsel %vm827_vm5, %v1021_v40, %v1023_v24  ;;  %v9386_v24 = vrot.slane %v5211_v50, 2  ;;  %v5237_v21 = vmul.f32 %v5228_v34, %v4763_v11  ;;  %v1220_v63 = vmul.f32 %v5228_v34, %v4676_v22 }
 0x199   :  { %9501 = vst [vmem:[#allocation33_spill] sm:$0xff] %v5163_v52  ;;  %9502 = vst [vmem:[#allocation34_spill] sm:$0xff] %v5165_v61  ;;  %v5273_v57 = vmul.f32 %v5228_v34, %v4797_v33 }
 0x19a   :  { %992 = vrot.lane.b32.xlu1 %v984_v49, %s4476_s19  ;;  %1150 = vrot.lane.b32.xlu0 %v9387_v59, %s4473_s13 }
 0x19c   :  { %v5185_v62 = vpop.permute.xlu1 %531  ;;  %v5187_v7 = vpop.permute.xlu0 %637 }
 0x19d   :  { %9503 = vst [vmem:[#allocation35_spill] sm:$0xff] %v5185_v62  ;;  %9504 = vst [vmem:[#allocation36_spill] sm:$0xff] %v5187_v7 }
 0x19e   :  { %996 = vrot.lane.b32.xlu1 %v989_v8, %s4476_s19  ;;  %1154 = vrot.lane.b32.xlu0 %v1145_v46, %s4473_s13  ;;  %v5220_v8 = vmul.f32 %v5161_v47, %v4841_v53  ;;  %v5226_v46 = vmul.f32 %v5161_v47, %v4769_v15 }
 0x1a0   :  { %v5202_v49 = vpop.permute.xlu1 %535  ;;  %v5204_v10 = vpop.permute.xlu0 %641  ;;  %v9390_v5 = vrot.slane %v5220_v8, 2  ;;  %v9391_v4 = vrot.slane %v5226_v46, 2 }
 0x1a1   :  { %9505 = vst [vmem:[#allocation37_spill] sm:$0xff] %v5202_v49  ;;  %9506 = vst [vmem:[#allocation38_spill] sm:$0xff] %v5204_v10 }
 0x1a2   :  { %1032 = vrot.lane.b32.xlu1 %v1024_v18, %s4477_s21  ;;  %1194 = vrot.lane.b32.xlu0 %v1186_v30, %s4474_s15  ;;  %v1029_v30 = vsel %vm827_vm5, %v1026_v56, %v1028_v1  ;;  %v1063_v18 = vrot.slane %v1050_v43, 2  ;;  %v1193_v1 = vsel %vm827_vm5, %v9391_v4, %v9390_v5  ;;  %v1068_v43 = vrot.slane %v1053_v60, 2 }
 0x1a4   :  { %v5230_v25 = vpop.permute.xlu1 %557  ;;  %v5232_v40 = vpop.permute.xlu0 %645  ;;  %v1064_v55 = vsel %vm827_vm5, %v1061_v23, %v1063_v18  ;;  %v9513_v23 = vrot.slane %v5083_v29, 2  ;;  %v5291_v29 = vmul.f32 %v5228_v34, %v4769_v15 }
 0x1a5   :  { %9507 = vst [vmem:[#allocation39_spill] sm:$0xff] %v5230_v25  ;;  %9508 = vst [vmem:[#allocation40_spill] sm:$0xff] %v5232_v40 }
 0x1a6   :  { %1036 = vrot.lane.b32.xlu1 %v1029_v30, %s4477_s21  ;;  %1198 = vrot.lane.b32.xlu0 %v9386_v24, %s4474_s15  ;;  %v9389_v30 = vrot.slane %v5237_v21, 2  ;;  %v1232_v24 = vrot.slane %v1220_v63, 2  ;;  %v1069_v18 = vsel %vm827_vm5, %v9513_v23, %v1068_v43  ;;  %v1127_v63 = vmul.f32 %v5099_v6, %v4682_v26 }
 0x1a7   :  { %v5298_v23 = vstv %s4273_s10  ;;  %s4299_s10 = sld [smem:[#allocation3 + $0x33]] }
 0x1a8   :  { %v5252_v42 = vpop.permute.xlu1 %561  ;;  %v5254_v56 = vpop.permute.xlu0 %675  ;;  %v1234_v60 = vsel %vm827_vm5, %v1232_v24, %v9389_v30  ;;  %v9392_v24 = vrot.slane %v5273_v57, 2  ;;  %v9516_v30 = vrot.slane %v5144_v51, 2  ;;  %v5308_v5 = vmul.f32 %v5298_v23, %v4763_v11 }
 0x1a9   :  { %9509 = vst [vmem:[#allocation41_spill] sm:$0xff] %v5252_v42  ;;  %9510 = vst [vmem:[#allocation42_spill] sm:$0xff] %v5254_v56  ;;  %v1141_v4 = vrot.slane %v1127_v63, 2  ;;  %v9394_v42 = vrot.slane %v5291_v29, 2 }
 0x1aa   :  { %1072 = vrot.lane.b32.xlu1 %v1064_v55, %s4478_s23  ;;  %1202 = vrot.lane.b32.xlu0 %v1193_v1, %s4474_s15  ;;  %v5283_v55 = vmul.f32 %v5228_v34, %v4841_v53 }
 0x1ac   :  { %v5267_v59 = vpop.permute.xlu1 %601  ;;  %v5269_v36 = vpop.permute.xlu0 %679 }
 0x1ad   :  { %9511 = vst [vmem:[#allocation43_spill] sm:$0xff] %v5267_v59  ;;  %9512 = vst [vmem:[#allocation44_spill] sm:$0xff] %v5269_v36 }
 0x1ae   :  { %1076 = vrot.lane.b32.xlu1 %v1069_v18, %s4478_s23  ;;  %1242 = vrot.lane.b32.xlu0 %v1234_v60, %s4475_s17  ;;  %v9517_v18 = vrot.slane %v5106_v13, 2  ;;  %v1268_v13 = vmul.f32 %v5298_v23, %v4676_v22 }
 0x1b0   :  { %v5293_v1 = vpop.permute.xlu1 %605  ;;  %v5295_v43 = vpop.permute.xlu0 %683  ;;  %v1140_v60 = vsel %vm827_vm5, %v9517_v18, %v9516_v30  ;;  %v9520_v18 = vrot.slane %v5159_v44, 2  ;;  %v5338_v44 = vmul.f32 %v5298_v23, %v4797_v33 }
 0x1b1   :  { %9514 = vst [vmem:[#allocation45_spill] sm:$0xff] %v5293_v1  ;;  %9515 = vst [vmem:[#allocation46_spill] sm:$0xff] %v5295_v43 }
 0x1b2   :  { %1148 = vrot.lane.b32.xlu1 %v1140_v60, %s4473_s13  ;;  %1246 = vrot.lane.b32.xlu0 %v9392_v24, %s4475_s17  ;;  %v1143_v6 = vsel %vm827_vm5, %v1141_v4, %v9520_v18  ;;  %v9521_v60 = vrot.slane %v5283_v55, 2  ;;  %v9393_v24 = vrot.slane %v5308_v5, 2  ;;  %v5345_v18 = vmul.f32 %v5298_v23, %v4841_v53 }
 0x1b4   :  { %v5317_v51 = vpop.permute.xlu1 %609  ;;  %v5319_v30 = vpop.permute.xlu0 %713  ;;  %v1241_v63 = vsel %vm827_vm5, %v9394_v42, %v9521_v60  ;;  %v5355_v60 = vmul.f32 %v5298_v23, %v4769_v15  ;;  %v5362_v42 = vstv %s4274_s11  ;;  %s4300_s11 = sld [smem:[#allocation3 + $0x34]] }
 0x1b5   :  { %9518 = vst [vmem:[#allocation47_spill] sm:$0xff] %v5317_v51  ;;  %9519 = vst [vmem:[#allocation48_spill] sm:$0xff] %v5319_v30  ;;  %v1280_v51 = vrot.slane %v1268_v13, 2  ;;  %v1175_v13 = vmul.f32 %v5161_v47, %v4682_v26 }
 0x1b6   :  { %1152 = vrot.lane.b32.xlu1 %v1143_v6, %s4473_s13  ;;  %1250 = vrot.lane.b32.xlu0 %v1241_v63, %s4475_s17  ;;  %v9524_v6 = vrot.slane %v5153_v31, 2  ;;  %v9527_v31 = vrot.slane %v5211_v50, 2 }
 0x1b7   :  { %v1282_v4 = vsel %vm827_vm5, %v1280_v51, %v9393_v24  ;;  %v9395_v24 = vrot.slane %v5338_v44, 2 }
 0x1b8   :  { %v5332_v43 = vpop.permute.xlu1 %639  ;;  %v5334_v25 = vpop.permute.xlu0 %717 }
 0x1b9   :  { %9522 = vst [vmem:[#allocation49_spill] sm:$0xff] %v5332_v43  ;;  %9523 = vst [vmem:[#allocation50_spill] sm:$0xff] %v5334_v25  ;;  %v5372_v25 = vmul.f32 %v5362_v42, %v4763_v11 }
 0x1ba   :  { %1156 = vrot.lane.b32.xlu1 %v9524_v6, %s4473_s13  ;;  %1290 = vrot.lane.b32.xlu0 %v1282_v4, %s4476_s19  ;;  %v9528_v6 = vrot.slane %v5170_v48, 2  ;;  %v1316_v48 = vmul.f32 %v5362_v42, %v4676_v22 }
 0x1bb   :  { %v9561_v49 = vrot.slane %v5372_v25, 2 }
 0x1bc   :  { %v5357_v63 = vpop.permute.xlu1 %643  ;;  %v5359_v51 = vpop.permute.xlu0 %721  ;;  %v1188_v4 = vsel %vm827_vm5, %v9528_v6, %v9527_v31  ;;  %v9531_v6 = vrot.slane %v5226_v46, 2  ;;  %v1328_v22 = vrot.slane %v1316_v48, 2  ;;  %v5402_v46 = vmul.f32 %v5362_v42, %v4797_v33 }
 0x1bd   :  { %9525 = vst [vmem:[#allocation51_spill] sm:$0xff] %v5357_v63  ;;  %9526 = vst [vmem:[#allocation52_spill] sm:$0xff] %v5359_v51  ;;  %v1189_v51 = vrot.slane %v1175_v13, 2  ;;  %v9397_v63 = vrot.slane %v5355_v60, 2  ;;  %v1223_v48 = vmul.f32 %v5228_v34, %v4682_v26  ;;  %v9542_v26 = vrot.slane %v5291_v29, 2 }
 0x1be   :  { %1196 = vrot.lane.b32.xlu1 %v1188_v4, %s4474_s15  ;;  %1294 = vrot.lane.b32.xlu0 %v9395_v24, %s4476_s19  ;;  %v9532_v4 = vrot.slane %v5345_v18, 2  ;;  %v9396_v24 = vrot.slane %v5372_v25, 2 }
 0x1bf   :  { %v1191_v47 = vsel %vm827_vm5, %v1189_v51, %v9531_v6  ;;  %v5409_v6 = vmul.f32 %v5362_v42, %v4841_v53 }
 0x1c0   :  { %v5381_v50 = vpop.permute.xlu1 %647  ;;  %v5383_v31 = vpop.permute.xlu0 %751  ;;  %v1289_v13 = vsel %vm827_vm5, %v9397_v63, %v9532_v4  ;;  %v1330_v51 = vsel %vm827_vm5, %v1328_v22, %v9396_v24  ;;  %v5419_v4 = vmul.f32 %v5362_v42, %v4769_v15  ;;  %v9398_v24 = vrot.slane %v5402_v46, 2 }
 0x1c1   :  { %9529 = vst [vmem:[#allocation53_spill] sm:$0xff] %v5381_v50  ;;  %9530 = vst [vmem:[#allocation54_spill] sm:$0xff] %v5383_v31  ;;  %v5426_v63 = vstv %s4275_s12  ;;  %s4301_s12 = sld [smem:[#allocation3 + $0x35]] }
 0x1c2   :  { %1200 = vrot.lane.b32.xlu1 %v1191_v47, %s4474_s15  ;;  %1298 = vrot.lane.b32.xlu0 %v1289_v13, %s4476_s19  ;;  %v9535_v47 = vrot.slane %v5220_v8, 2  ;;  %v9538_v8 = vrot.slane %v5273_v57, 2  ;;  %v5436_v34 = vmul.f32 %v5426_v63, %v4763_v11  ;;  %v5443_v57 = vld [vmem:[#allocation2] sm:$0xff]  ;;  %v5468_v29 = vmul.f32 %v5426_v63, %v4797_v33 }
 0x1c4   :  { %v5396_v50 = vpop.permute.xlu1 %677  ;;  %v5398_v31 = vpop.permute.xlu0 %755 }
 0x1c5   :  { %9533 = vst [vmem:[#allocation55_spill] sm:$0xff] %v5396_v50  ;;  %9534 = vst [vmem:[#allocation56_spill] sm:$0xff] %v5398_v31  ;;  %v9543_v31 = vrot.slane %v5409_v6, 2 }
 0x1c6   :  { %1204 = vrot.lane.b32.xlu1 %v9535_v47, %s4474_s15  ;;  %1338 = vrot.lane.b32.xlu0 %v1330_v51, %s4477_s21  ;;  %v9539_v47 = vrot.slane %v5237_v21, 2  ;;  %v1364_v21 = vmul.f32 %v5443_v57, %v5426_v63 }
 0x1c8   :  { %v5421_v13 = vpop.permute.xlu1 %681  ;;  %v5423_v22 = vpop.permute.xlu0 %759  ;;  %v1236_v51 = vsel %vm827_vm5, %v9539_v47, %v9538_v8 }
 0x1c9   :  { %9536 = vst [vmem:[#allocation57_spill] sm:$0xff] %v5421_v13  ;;  %9537 = vst [vmem:[#allocation58_spill] sm:$0xff] %v5423_v22  ;;  %v1237_v22 = vrot.slane %v1223_v48, 2  ;;  %v9400_v13 = vrot.slane %v5419_v4, 2 }
 0x1ca   :  { %1244 = vrot.lane.b32.xlu1 %v1236_v51, %s4475_s17  ;;  %1342 = vrot.lane.b32.xlu0 %v9398_v24, %s4477_s21  ;;  %v9399_v24 = vrot.slane %v5436_v34, 2 }
 0x1cb   :  { %v1239_v51 = vsel %vm827_vm5, %v1237_v22, %v9542_v26  ;;  %v1337_v48 = vsel %vm827_vm5, %v9400_v13, %v9543_v31  ;;  %v5475_v31 = vmul.f32 %v5426_v63, %v4841_v53  ;;  %v9546_v26 = vrot.slane %v5283_v55, 2 }
 0x1cc   :  { %v5447_v8 = vpop.permute.xlu1 %685  ;;  %v5449_v47 = vpop.permute.xlu0 %789  ;;  %v9401_v13 = vrot.slane %v5468_v29, 2  ;;  %v9549_v55 = vrot.slane %v5338_v44, 2 }
 0x1cd   :  { %9540 = vst [vmem:[#allocation59_spill] sm:$0xff] %v5447_v8  ;;  %9541 = vst [vmem:[#allocation60_spill] sm:$0xff] %v5449_v47  ;;  %v1376_v8 = vrot.slane %v1364_v21, 2  ;;  %v5481_v21 = vld [vmem:[#allocation2 + $0x18] sm:$0xff] }
 0x1ce   :  { %1248 = vrot.lane.b32.xlu1 %v1239_v51, %s4475_s17  ;;  %1346 = vrot.lane.b32.xlu0 %v1337_v48, %s4477_s21  ;;  %v1271_v51 = vmul.f32 %v5481_v21, %v5298_v23  ;;  %v5487_v48 = vmul.f32 %v5426_v63, %v4769_v15 }
 0x1cf   :  { %v1378_v22 = vsel %vm827_vm5, %v1376_v8, %v9399_v24 }
 0x1d0   :  { %v5462_v50 = vpop.permute.xlu1 %715  ;;  %v5464_v47 = vpop.permute.xlu0 %793 }
 0x1d1   :  { %9544 = vst [vmem:[#allocation61_spill] sm:$0xff] %v5462_v50  ;;  %9545 = vst [vmem:[#allocation62_spill] sm:$0xff] %v5464_v47  ;;  %v5494_v47 = vstv %s4277_s14  ;;  %s4302_s14 = sld [smem:[#allocation3 + $0x36]] }
 0x1d2   :  { %1252 = vrot.lane.b32.xlu1 %v9546_v26, %s4475_s17  ;;  %1386 = vrot.lane.b32.xlu0 %v1378_v22, %s4478_s23  ;;  %v9550_v22 = vrot.slane %v5308_v5, 2  ;;  %v5504_v50 = vmul.f32 %v5494_v47, %v4763_v11  ;;  %v1444_v5 = vmul.f32 %v5443_v57, %v5494_v47  ;;  %v5528_v30 = vmul.f32 %v5494_v47, %v4769_v15 }
 0x1d4   :  { %v5489_v8 = vpop.permute.xlu1 %719  ;;  %v5491_v24 = vpop.permute.xlu0 %797  ;;  %v1284_v26 = vsel %vm827_vm5, %v9550_v22, %v9549_v55  ;;  %v9553_v22 = vrot.slane %v5355_v60, 2 }
 0x1d5   :  { %9547 = vst [vmem:[#allocation63_spill] sm:$0xff] %v5489_v8  ;;  %9548 = vst [vmem:[#allocation64_spill] sm:$0xff] %v5491_v24  ;;  %v1285_v24 = vrot.slane %v1271_v51, 2  ;;  %v9402_v8 = vrot.slane %v5487_v48, 2  ;;  %v9403_v51 = vrot.slane %v5504_v50, 4 }
 0x1d6   :  { %1292 = vrot.lane.b32.xlu1 %v1284_v26, %s4476_s19  ;;  %1390 = vrot.lane.b32.xlu0 %v9401_v13, %s4478_s23  ;;  %v9554_v26 = vrot.slane %v5475_v31, 2 }
 0x1d7   :  { %v1287_v23 = vsel %vm827_vm5, %v1285_v24, %v9553_v22  ;;  %v1447_v24 = vmul.f32 %v5481_v21, %v5494_v47 }
 0x1d8   :  { %v5513_v44 = vpop.permute.xlu1 %723  ;;  %v5515_v55 = vpop.permute.xlu0 %870  ;;  %v1385_v13 = vsel %vm827_vm5, %v9402_v8, %v9554_v26  ;;  %v9560_v8 = vrot.slane %v5402_v46, 2 }
 0x1d9   :  { %9551 = vst [vmem:[#allocation65_spill] sm:$0xff] %v5513_v44  ;;  %9552 = vst [vmem:[#allocation66_spill] sm:$0xff] %v5515_v55  ;;  %v1456_v44 = vrot.slane %v1444_v5, 4  ;;  %v5538_v55 = vstv %s4278_s16  ;;  %v1461_v5 = vrot.slane %v1447_v24, 4  ;;  %s4303_s16 = sld [smem:[#allocation3 + $0x37]] }
 0x1da   :  { %1296 = vrot.lane.b32.xlu1 %v1287_v23, %s4476_s19  ;;  %1394 = vrot.lane.b32.xlu0 %v1385_v13, %s4478_s23  ;;  %v5546_v13 = vmul.f32 %v5538_v55, %v4763_v11  ;;  %v9557_v23 = vrot.slane %v5345_v18, 2  ;;  %v1332_v18 = vsel %vm827_vm5, %v9561_v49, %v9560_v8  ;;  %v1487_v25 = vmul.f32 %v5481_v21, %v5538_v55 }
 0x1db   :  { %v1458_v26 = vsel %vm45_vm0, %v1456_v44, %v9403_v51 }
 0x1dc   :  { %v5534_v60 = vpop.permute.xlu1 %753  ;;  %v5536_v22 = vpop.permute.xlu0 %874 }
 0x1dd   :  { %9555 = vst [vmem:[#allocation67_spill] sm:$0xff] %v5534_v60  ;;  %9556 = vst [vmem:[#allocation68_spill] sm:$0xff] %v5536_v22  ;;  %v1319_v22 = vmul.f32 %v5481_v21, %v5362_v42  ;;  %v1484_v60 = vmul.f32 %v5443_v57, %v5538_v55  ;;  %v5571_v42 = vmul.f32 %v5538_v55, %v4769_v15 }
 0x1de   :  { %1300 = vrot.lane.b32.xlu1 %v9557_v23, %s4476_s19  ;;  %1466 = vrot.lane.b32.xlu0 %v1458_v26, %s4473_s13  ;;  %v9562_v23 = vrot.slane %v5528_v30, 4 }
 0x1df   :  { %v1496_v46 = vrot.slane %v1484_v60, 4  ;;  %v9404_v60 = vrot.slane %v5571_v42, 4 }
 0x1e0   :  { %v5556_v44 = vpop.permute.xlu1 %757  ;;  %v5558_v51 = vpop.permute.xlu0 %910  ;;  %v1463_v24 = vsel %vm45_vm0, %v1461_v5, %v9562_v23  ;;  %v5581_v5 = vstv %s4279_s18  ;;  %v9565_v23 = vrot.slane %v5419_v4, 2  ;;  %s4305_s18 = sld [smem:[#allocation3 + $0x39]] }
 0x1e1   :  { %9558 = vst [vmem:[#allocation69_spill] sm:$0xff] %v5556_v44  ;;  %9559 = vst [vmem:[#allocation70_spill] sm:$0xff] %v5558_v51  ;;  %v1333_v51 = vrot.slane %v1319_v22, 2  ;;  %v5592_v22 = vmul.f32 %v5581_v5, %v4763_v11  ;;  %v1524_v4 = vmul.f32 %v5443_v57, %v5581_v5 }
 0x1e2   :  { %1340 = vrot.lane.b32.xlu1 %v1332_v18, %s4477_s21  ;;  %1470 = vrot.lane.b32.xlu0 %v1463_v24, %s4473_s13  ;;  %v9566_v18 = vrot.slane %v5546_v13, 4 }
 0x1e3   :  { %v1335_v26 = vsel %vm827_vm5, %v1333_v51, %v9565_v23  ;;  %v9572_v23 = vrot.slane %v5468_v29, 2 }
 0x1e4   :  { %v5577_v49 = vpop.permute.xlu1 %761  ;;  %v5579_v8 = vpop.permute.xlu0 %914  ;;  %v1498_v24 = vsel %vm45_vm0, %v1496_v46, %v9566_v18  ;;  %v5608_v18 = vmul.f32 %v5581_v5, %v4769_v15  ;;  %v5622_v15 = vstv %s4280_s20  ;;  %s4306_s20 = sld [smem:[#allocation3 + $0x3a]] }
 0x1e5   :  { %9563 = vst [vmem:[#allocation71_spill] sm:$0xff] %v5577_v49  ;;  %9564 = vst [vmem:[#allocation72_spill] sm:$0xff] %v5579_v8  ;;  %v1501_v49 = vrot.slane %v1487_v25, 4  ;;  %v1367_v25 = vmul.f32 %v5481_v21, %v5426_v63  ;;  %v5635_v44 = vmul.f32 %v5622_v15, %v4763_v11 }
 0x1e6   :  { %1344 = vrot.lane.b32.xlu1 %v1335_v26, %s4477_s21  ;;  %1506 = vrot.lane.b32.xlu0 %v1498_v24, %s4474_s15  ;;  %v9569_v26 = vrot.slane %v5409_v6, 2  ;;  %v1536_v24 = vrot.slane %v1524_v4, 4  ;;  %v9573_v6 = vrot.slane %v5436_v34, 2  ;;  %v9405_v4 = vrot.slane %v5608_v18, 4 }
 0x1e7   :  { %v1503_v46 = vsel %vm45_vm0, %v1501_v49, %v9404_v60  ;;  %v1564_v34 = vmul.f32 %v5443_v57, %v5622_v15 }
 0x1e8   :  { %v5598_v8 = vpop.permute.xlu1 %791  ;;  %v5600_v51 = vpop.permute.xlu0 %950 }
 0x1e9   :  { %9567 = vst [vmem:[#allocation73_spill] sm:$0xff] %v5598_v8  ;;  %9568 = vst [vmem:[#allocation74_spill] sm:$0xff] %v5600_v51  ;;  %v1527_v51 = vmul.f32 %v5481_v21, %v5581_v5 }
 0x1ea   :  { %1348 = vrot.lane.b32.xlu1 %v9569_v26, %s4477_s21  ;;  %1510 = vrot.lane.b32.xlu0 %v1503_v46, %s4474_s15  ;;  %v1380_v46 = vsel %vm827_vm5, %v9573_v6, %v9572_v23  ;;  %v9574_v26 = vrot.slane %v5592_v22, 4 }
 0x1eb   :  { %v1541_v29 = vrot.slane %v1527_v51, 4  ;;  %v1446_v51 = vmul.f32 %v5494_v47, %v4797_v33 }
 0x1ec   :  { %v5618_v49 = vpop.permute.xlu1 %795  ;;  %v5620_v60 = vpop.permute.xlu0 %954  ;;  %v1538_v63 = vsel %vm45_vm0, %v1536_v24, %v9574_v26  ;;  %v9577_v24 = vrot.slane %v5487_v48, 2  ;;  %v1576_v48 = vrot.slane %v1564_v34, 4  ;;  %v9580_v34 = vrot.slane %v5635_v44, 4 }
 0x1ed   :  { %9570 = vst [vmem:[#allocation75_spill] sm:$0xff] %v5618_v49  ;;  %9571 = vst [vmem:[#allocation76_spill] sm:$0xff] %v5620_v60  ;;  %v1381_v60 = vrot.slane %v1367_v25, 2  ;;  %v1543_v11 = vsel %vm45_vm0, %v1541_v29, %v9405_v4  ;;  %v5654_v25 = vld [vmem:[#allocation2 + $0x20] sm:$0xff]  ;;  %v5664_v29 = vstv %s4281_s22  ;;  %s4307_s22 = sld [smem:[#allocation3 + $0x3b]] }
 0x1ee   :  { %1388 = vrot.lane.b32.xlu1 %v1380_v46, %s4478_s23  ;;  %1546 = vrot.lane.b32.xlu0 %v1538_v63, %s4475_s17  ;;  %v5658_v63 = vmul.f32 %v5654_v25, %v5622_v15  ;;  %v1449_v46 = vmul.f32 %v5494_v47, %v4841_v53 }
 0x1ef   :  { %v1383_v26 = vsel %vm827_vm5, %v1381_v60, %v9577_v24  ;;  %v1567_v60 = vmul.f32 %v5481_v21, %v5622_v15 }
 0x1f0   :  { %v5641_v23 = vpop.permute.xlu1 %799  ;;  %v5643_v6 = vpop.permute.xlu0 %990  ;;  %v9406_v49 = vrot.slane %v5658_v63, 4  ;;  %v1464_v36 = vrot.slane %v1449_v46, 4 }
 0x1f1   :  { %9575 = vst [vmem:[#allocation77_spill] sm:$0xff] %v5641_v23  ;;  %9576 = vst [vmem:[#allocation78_spill] sm:$0xff] %v5643_v6  ;;  %v5672_v23 = vld [vmem:[#allocation2 + $0x8] sm:$0xff]  ;;  %v1459_v6 = vrot.slane %v1446_v51, 4  ;;  %v1581_v47 = vrot.slane %v1567_v60, 4  ;;  %v9584_v51 = vrot.slane %v5504_v50, 4  ;;  %v5703_v60 = vmul.f32 %v5654_v25, %v5664_v29 }
 0x1f2   :  { %1392 = vrot.lane.b32.xlu1 %v1383_v26, %s4478_s23  ;;  %1550 = vrot.lane.b32.xlu0 %v1543_v11, %s4475_s17  ;;  %v5676_v26 = vmul.f32 %v5672_v23, %v5664_v29  ;;  %v1578_v11 = vsel %vm45_vm0, %v1576_v48, %v9580_v34  ;;  %v1607_v50 = vmul.f32 %v5481_v21, %v5664_v29 }
 0x1f3   :  { %v1460_v34 = vsel %vm45_vm0, %v9584_v51, %v1459_v6  ;;  %v1489_v51 = vmul.f32 %v5538_v55, %v4841_v53 }
 0x1f4   :  { %v5666_v24 = vpop.permute.xlu1 %872  ;;  %v5668_v4 = vpop.permute.xlu0 %994  ;;  %v9407_v48 = vrot.slane %v5676_v26, 4 }
 0x1f5   :  { %9578 = vst [vmem:[#allocation79_spill] sm:$0xff] %v5666_v24  ;;  %9579 = vst [vmem:[#allocation80_spill] sm:$0xff] %v5668_v4  ;;  %v9581_v4 = vrot.slane %v5475_v31, 2  ;;  %v1604_v24 = vmul.f32 %v5443_v57, %v5664_v29  ;;  %v1583_v31 = vsel %vm45_vm0, %v1581_v47, %v9406_v49  ;;  %v9587_v47 = vrot.slane %v5528_v30, 4 }
 0x1f6   :  { %1586 = vrot.lane.b32.xlu0 %v1578_v11, %s4476_s19  ;;  %v5718_v49 = vstv %s4282_s24  ;;  %s4308_s24 = sld [smem:[#allocation3 + $0x3c]] }
 0x1f7   :  { %1396 = vrot.lane.b32.xlu1 %v9581_v4, %s4478_s23  ;;  %v1486_v4 = vmul.f32 %v5538_v55, %v4797_v33  ;;  %v1616_v46 = vrot.slane %v1604_v24, 4  ;;  %v1465_v33 = vsel %vm45_vm0, %v9587_v47, %v1464_v36  ;;  %v1621_v36 = vrot.slane %v1607_v50, 4 }
 0x1f8   :  { %v5688_v8 = vpop.permute.xlu1 %876  ;;  %v5690_v1 = vpop.permute.xlu0 %1030  ;;  %v1644_v30 = vmul.f32 %v5443_v57, %v5718_v49 }
 0x1f9   :  { %9582 = vst [vmem:[#allocation81_spill] sm:$0xff] %v5688_v8  ;;  %9583 = vst [vmem:[#allocation82_spill] sm:$0xff] %v5690_v1  ;;  %v1618_v24 = vsel %vm45_vm0, %v1616_v46, %v9407_v48  ;;  %v1504_v46 = vrot.slane %v1489_v51, 4  ;;  %v5762_v1 = vstv %s4284_s25  ;;  %s4309_s25 = sld [smem:[#allocation3 + $0x3d]] }
 0x1fa   :  { %1590 = vrot.lane.b32.xlu0 %v1583_v31, %s4476_s19  ;;  %v9590_v31 = vrot.slane %v5546_v13, 4  ;;  %v1656_v51 = vrot.slane %v1644_v30, 4  ;;  %v1647_v13 = vmul.f32 %v5481_v21, %v5718_v49 }
 0x1fb   :  { %1468 = vrot.lane.b32.xlu1 %v1460_v34, %s4473_s13  ;;  %v1499_v34 = vrot.slane %v1486_v4, 4  ;;  %v5736_v4 = vld [vmem:[#allocation2 + $0x10] sm:$0x3f] }
 0x1fc   :  { %v5709_v6 = vpop.permute.xlu1 %912  ;;  %v5711_v11 = vpop.permute.xlu0 %1034  ;;  %v1526_v48 = vmul.f32 %v5736_v4, %v5581_v5 }
 0x1fd   :  { %9585 = vst [vmem:[#allocation83_spill] sm:$0xff] %v5709_v6  ;;  %9586 = vst [vmem:[#allocation84_spill] sm:$0xff] %v5711_v11  ;;  %v5726_v11 = vmul.f32 %v5672_v23, %v5718_v49 }
 0x1fe   :  { %1626 = vrot.lane.b32.xlu0 %v1618_v24, %s4477_s21  ;;  %v9591_v24 = vrot.slane %v5703_v60, 4 }
 0x1ff   :  { %1472 = vrot.lane.b32.xlu1 %v1465_v33, %s4473_s13  ;;  %v1500_v33 = vsel %vm45_vm0, %v9590_v31, %v1499_v34  ;;  %v9594_v31 = vrot.slane %v5571_v42, 4  ;;  %v9595_v6 = vrot.slane %v5726_v11, 4  ;;  %v1661_v42 = vrot.slane %v1647_v13, 4 }
 0x200   :  { %v5732_v55 = vpop.permute.xlu1 %916  ;;  %v5734_v47 = vpop.permute.xlu0 %1070  ;;  %v1623_v50 = vsel %vm45_vm0, %v1621_v36, %v9591_v24  ;;  %v1539_v24 = vrot.slane %v1526_v48, 4  ;;  %v1720_v48 = vmul.f32 %v5443_v57, %v5762_v1  ;;  %v1566_v13 = vmul.f32 %v5736_v4, %v5622_v15 }
 0x201   :  { %9588 = vst [vmem:[#allocation85_spill] sm:$0xff] %v5732_v55  ;;  %9589 = vst [vmem:[#allocation86_spill] sm:$0xff] %v5734_v47  ;;  %v5749_v55 = vmul.f32 %v5654_v25, %v5718_v49  ;;  %v1505_v36 = vsel %vm45_vm0, %v9594_v31, %v1504_v46 }
 0x202   :  { %1630 = vrot.lane.b32.xlu0 %v1623_v50, %s4477_s21  ;;  %v1529_v50 = vmul.f32 %v5581_v5, %v4841_v53 }
 0x203   :  { %1508 = vrot.lane.b32.xlu1 %v1500_v33, %s4474_s15  ;;  %v1658_v33 = vsel %vm45_vm0, %v1656_v51, %v9595_v6  ;;  %v9408_v30 = vrot.slane %v5749_v55, 4  ;;  %v9598_v51 = vrot.slane %v5592_v22, 4 }
 0x204   :  { %v5755_v47 = vpop.permute.xlu1 %952  ;;  %v5757_v34 = vpop.permute.xlu0 %1074  ;;  %v1544_v31 = vrot.slane %v1529_v50, 4 }
 0x205   :  { %9592 = vst [vmem:[#allocation87_spill] sm:$0xff] %v5755_v47  ;;  %9593 = vst [vmem:[#allocation88_spill] sm:$0xff] %v5757_v34  ;;  %v5772_v47 = vmul.f32 %v5672_v23, %v5762_v1  ;;  %v1540_v53 = vsel %vm45_vm0, %v9598_v51, %v1539_v24  ;;  %v1663_v5 = vsel %vm45_vm0, %v1661_v42, %v9408_v30  ;;  %v5801_v42 = vld [vmem:[#allocation2 + $0x28] sm:$0x3f]  ;;  %v9601_v51 = vrot.slane %v5608_v18, 4 }
 0x206   :  { %1666 = vrot.lane.b32.xlu0 %v1658_v33, %s4478_s23  ;;  %v1732_v33 = vrot.slane %v1720_v48, 4  ;;  %v5799_v24 = vmul.f32 %v5736_v4, %v5762_v1  ;;  %v1569_v50 = vmul.f32 %v5801_v42, %v5622_v15  ;;  %v5813_v30 = vmul.f32 %v5801_v42, %v5762_v1 }
 0x207   :  { %1512 = vrot.lane.b32.xlu1 %v1505_v36, %s4474_s15  ;;  %v9409_v36 = vrot.slane %v5772_v47, 4  ;;  %v5819_v15 = vmul.f32 %v5654_v25, %v5762_v1 }
 0x208   :  { %v5778_v46 = vpop.permute.xlu1 %956  ;;  %v5780_v6 = vpop.permute.xlu0 %1146 }
 0x209   :  { %9596 = vst [vmem:[#allocation89_spill] sm:$0xff] %v5778_v46  ;;  %9597 = vst [vmem:[#allocation90_spill] sm:$0xff] %v5780_v6  ;;  %v1734_v48 = vsel %vm45_vm0, %v1732_v33, %v9409_v36  ;;  %v1584_v33 = vrot.slane %v1569_v50, 4  ;;  %v9604_v36 = vrot.slane %v5635_v44, 4  ;;  %v9411_v50 = vrot.slane %v5819_v15, 4 }
 0x20a   :  { %1670 = vrot.lane.b32.xlu0 %v1663_v5, %s4478_s23  ;;  %v1579_v5 = vrot.slane %v1566_v13, 4  ;;  %v5826_v13 = vstv %s4285_s26  ;;  %v1609_v6 = vmul.f32 %v5801_v42, %v5664_v29  ;;  %s4310_s26 = sld [smem:[#allocation3 + $0x3e]] }
 0x20b   :  { %1548 = vrot.lane.b32.xlu1 %v1540_v53, %s4475_s17  ;;  %v1545_v53 = vsel %vm45_vm0, %v9601_v51, %v1544_v31  ;;  %v9410_v51 = vrot.slane %v5799_v24, 4  ;;  %v1768_v44 = vmul.f32 %v5443_v57, %v5826_v13 }
 0x20c   :  { %v5793_v34 = vpop.permute.xlu1 %992  ;;  %v5795_v22 = vpop.permute.xlu0 %1150 }
 0x20d   :  { %9599 = vst [vmem:[#allocation91_spill] sm:$0xff] %v5793_v34  ;;  %9600 = vst [vmem:[#allocation92_spill] sm:$0xff] %v5795_v22  ;;  %v1580_v22 = vsel %vm45_vm0, %v9604_v36, %v1579_v5  ;;  %v5836_v34 = vmul.f32 %v5672_v23, %v5826_v13 }
 0x20e   :  { %1742 = vrot.lane.b32.xlu0 %v1734_v48, %s4473_s13  ;;  %v1606_v48 = vmul.f32 %v5736_v4, %v5664_v29 }
 0x20f   :  { %1552 = vrot.lane.b32.xlu1 %v1545_v53, %s4475_s17  ;;  %v9607_v53 = vrot.slane %v5658_v63, 4  ;;  %v9412_v46 = vrot.slane %v5836_v34, 4  ;;  %v1780_v63 = vrot.slane %v1768_v44, 4  ;;  %v5880_v44 = vmul.f32 %v5801_v42, %v5826_v13 }
 0x210   :  { %v5821_v18 = vpop.permute.xlu1 %996  ;;  %v5823_v31 = vpop.permute.xlu0 %1154 }
 0x211   :  { %9602 = vst [vmem:[#allocation93_spill] sm:$0xff] %v5821_v18  ;;  %9603 = vst [vmem:[#allocation94_spill] sm:$0xff] %v5823_v31  ;;  %v1585_v31 = vsel %vm45_vm0, %v9607_v53, %v1584_v33  ;;  %v1619_v18 = vrot.slane %v1606_v48, 4  ;;  %v5868_v53 = vmul.f32 %v5736_v4, %v5826_v13  ;;  %v1646_v48 = vmul.f32 %v5736_v4, %v5718_v49 }
 0x212   :  { %1746 = vrot.lane.b32.xlu0 %v9410_v51, %s4473_s13 }
 0x213   :  { %1588 = vrot.lane.b32.xlu1 %v1580_v22, %s4476_s19  ;;  %v9608_v22 = vrot.slane %v5813_v30, 4 }
 0x214   :  { %v5845_v36 = vpop.permute.xlu1 %1032  ;;  %v5847_v5 = vpop.permute.xlu0 %1194 }
 0x215   :  { %9605 = vst [vmem:[#allocation95_spill] sm:$0xff] %v5845_v36  ;;  %9606 = vst [vmem:[#allocation96_spill] sm:$0xff] %v5847_v5  ;;  %v1741_v51 = vsel %vm45_vm0, %v9411_v50, %v9608_v22  ;;  %v9611_v22 = vrot.slane %v5676_v26, 4  ;;  %v5886_v50 = vmul.f32 %v5654_v25, %v5826_v13 }
 0x216   :  { %1750 = vrot.lane.b32.xlu0 %v1741_v51, %s4473_s13  ;;  %v1624_v51 = vrot.slane %v1609_v6, 4  ;;  %v5893_v6 = vstv %s4286_s27  ;;  %s4312_s27 = sld [smem:[#allocation3 + $0x40]] }
 0x217   :  { %1592 = vrot.lane.b32.xlu1 %v1585_v31, %s4476_s19  ;;  %v1620_v29 = vsel %vm45_vm0, %v9611_v22, %v1619_v18  ;;  %v1782_v31 = vsel %vm45_vm0, %v1780_v63, %v9412_v46  ;;  %v9413_v22 = vrot.slane %v5868_v53, 4  ;;  %v1659_v63 = vrot.slane %v1646_v48, 4 }
 0x218   :  { %v5862_v36 = vpop.permute.xlu1 %1036  ;;  %v5864_v33 = vpop.permute.xlu0 %1198  ;;  %v9614_v46 = vrot.slane %v5703_v60, 4  ;;  %v9415_v48 = vrot.slane %v5886_v50, 4  ;;  %v1816_v60 = vmul.f32 %v5443_v57, %v5893_v6 }
 0x219   :  { %9609 = vst [vmem:[#allocation97_spill] sm:$0xff] %v5862_v36  ;;  %9610 = vst [vmem:[#allocation98_spill] sm:$0xff] %v5864_v33  ;;  %v5903_v36 = vmul.f32 %v5672_v23, %v5893_v6 }
 0x21a   :  { %1790 = vrot.lane.b32.xlu0 %v1782_v31, %s4474_s15  ;;  %v1625_v33 = vsel %vm45_vm0, %v9614_v46, %v1624_v51  ;;  %v1649_v31 = vmul.f32 %v5801_v42, %v5718_v49  ;;  %v9617_v49 = vrot.slane %v5726_v11, 4  ;;  %v5933_v11 = vmul.f32 %v5736_v4, %v5893_v6 }
 0x21b   :  { %1628 = vrot.lane.b32.xlu1 %v1620_v29, %s4477_s21 }
 0x21c   :  { %v5888_v26 = vpop.permute.xlu1 %1072  ;;  %v5890_v18 = vpop.permute.xlu0 %1202  ;;  %v1660_v29 = vsel %vm45_vm0, %v9617_v49, %v1659_v63  ;;  %v9621_v63 = vrot.slane %v5749_v55, 4  ;;  %v5951_v55 = vmul.f32 %v5654_v25, %v5893_v6 }
 0x21d   :  { %9612 = vst [vmem:[#allocation99_spill] sm:$0xff] %v5888_v26  ;;  %9613 = vst [vmem:[#allocation100_spill] sm:$0xff] %v5890_v18  ;;  %v1664_v26 = vrot.slane %v1649_v31, 4  ;;  %v9414_v18 = vrot.slane %v5903_v36, 4 }
 0x21e   :  { %1794 = vrot.lane.b32.xlu0 %v9413_v22, %s4474_s15 }
 0x21f   :  { %1632 = vrot.lane.b32.xlu1 %v1625_v33, %s4477_s21  ;;  %v9618_v33 = vrot.slane %v5880_v44, 4  ;;  %v1665_v49 = vsel %vm45_vm0, %v9621_v63, %v1664_v26  ;;  %v9624_v63 = vrot.slane %v5799_v24, 4 }
 0x220   :  { %v5912_v46 = vpop.permute.xlu1 %1076  ;;  %v5914_v51 = vpop.permute.xlu0 %1242 }
 0x221   :  { %9615 = vst [vmem:[#allocation101_spill] sm:$0xff] %v5912_v46  ;;  %9616 = vst [vmem:[#allocation102_spill] sm:$0xff] %v5914_v51  ;;  %v1789_v22 = vsel %vm45_vm0, %v9415_v48, %v9618_v33  ;;  %v1828_v46 = vrot.slane %v1816_v60, 4  ;;  %v5958_v33 = vstv %s4287_s28  ;;  %s4313_s28 = sld [smem:[#allocation3 + $0x41]] }
 0x222   :  { %1798 = vrot.lane.b32.xlu0 %v1789_v22, %s4474_s15  ;;  %v5943_v22 = vmul.f32 %v5801_v42, %v5893_v6 }
 0x223   :  { %1668 = vrot.lane.b32.xlu1 %v1660_v29, %s4478_s23  ;;  %v1830_v31 = vsel %vm45_vm0, %v1828_v46, %v9414_v18  ;;  %v1723_v29 = vmul.f32 %v5481_v21, %v5762_v1  ;;  %v9416_v46 = vrot.slane %v5933_v11, 4  ;;  %v5968_v18 = vmul.f32 %v5672_v23, %v5958_v33 }
 0x224   :  { %v5927_v51 = vpop.permute.xlu1 %1148  ;;  %v5929_v5 = vpop.permute.xlu0 %1246 }
 0x225   :  { %9619 = vst [vmem:[#allocation103_spill] sm:$0xff] %v5927_v51  ;;  %9620 = vst [vmem:[#allocation104_spill] sm:$0xff] %v5929_v5  ;;  %v1737_v48 = vrot.slane %v1723_v29, 4 }
 0x226   :  { %1838 = vrot.lane.b32.xlu0 %v1830_v31, %s4475_s17 }
 0x227   :  { %1672 = vrot.lane.b32.xlu1 %v1665_v49, %s4478_s23  ;;  %v9625_v49 = vrot.slane %v5772_v47, 4  ;;  %v1864_v47 = vmul.f32 %v5443_v57, %v5958_v33 }
 0x228   :  { %v5953_v26 = vpop.permute.xlu1 %1152  ;;  %v5955_v60 = vpop.permute.xlu0 %1250 }
 0x229   :  { %9622 = vst [vmem:[#allocation105_spill] sm:$0xff] %v5953_v26  ;;  %9623 = vst [vmem:[#allocation106_spill] sm:$0xff] %v5955_v60  ;;  %v1736_v31 = vsel %vm45_vm0, %v9625_v49, %v9624_v63  ;;  %v9418_v60 = vrot.slane %v5951_v55, 4  ;;  %v9628_v49 = vrot.slane %v5819_v15, 4  ;;  %v5998_v15 = vmul.f32 %v5736_v4, %v5958_v33 }
 0x22a   :  { %1842 = vrot.lane.b32.xlu0 %v9416_v46, %s4475_s17  ;;  %v9417_v46 = vrot.slane %v5968_v18, 4 }
 0x22b   :  { %1744 = vrot.lane.b32.xlu1 %v1736_v31, %s4473_s13  ;;  %v1739_v1 = vsel %vm45_vm0, %v1737_v48, %v9628_v49  ;;  %v9629_v31 = vrot.slane %v5943_v22, 4  ;;  %v6005_v49 = vmul.f32 %v5801_v42, %v5958_v33 }
 0x22c   :  { %v5977_v24 = vpop.permute.xlu1 %1156  ;;  %v5979_v63 = vpop.permute.xlu0 %1290 }
 0x22d   :  { %9626 = vst [vmem:[#allocation107_spill] sm:$0xff] %v5977_v24  ;;  %9627 = vst [vmem:[#allocation108_spill] sm:$0xff] %v5979_v63  ;;  %v1837_v29 = vsel %vm45_vm0, %v9418_v60, %v9629_v31  ;;  %v1876_v24 = vrot.slane %v1864_v47, 4  ;;  %v1771_v47 = vmul.f32 %v5481_v21, %v5826_v13  ;;  %v6015_v31 = vmul.f32 %v5654_v25, %v5958_v33 }
 0x22e   :  { %1846 = vrot.lane.b32.xlu0 %v1837_v29, %s4475_s17  ;;  %v6022_v60 = vstv %s4288_s30  ;;  %s4314_s30 = sld [smem:[#allocation3 + $0x42]] }
 0x22f   :  { %1748 = vrot.lane.b32.xlu1 %v1739_v1, %s4473_s13  ;;  %v1878_v48 = vsel %vm45_vm0, %v1876_v24, %v9417_v46  ;;  %v9632_v1 = vrot.slane %v5813_v30, 4  ;;  %v9419_v46 = vrot.slane %v5998_v15, 4  ;;  %v9635_v30 = vrot.slane %v5868_v53, 4 }
 0x230   :  { %v5992_v5 = vpop.permute.xlu1 %1196  ;;  %v5994_v63 = vpop.permute.xlu0 %1294 }
 0x231   :  { %9630 = vst [vmem:[#allocation109_spill] sm:$0xff] %v5992_v5  ;;  %9631 = vst [vmem:[#allocation110_spill] sm:$0xff] %v5994_v63  ;;  %v6032_v63 = vmul.f32 %v5672_v23, %v6022_v60 }
 0x232   :  { %1886 = vrot.lane.b32.xlu0 %v1878_v48, %s4476_s19 }
 0x233   :  { %1752 = vrot.lane.b32.xlu1 %v9632_v1, %s4473_s13  ;;  %v9636_v1 = vrot.slane %v5836_v34, 4  ;;  %v1912_v34 = vmul.f32 %v5443_v57, %v6022_v60  ;;  %v9669_v5 = vrot.slane %v6032_v63, 4 }
 0x234   :  { %v6017_v29 = vpop.permute.xlu1 %1200  ;;  %v6019_v24 = vpop.permute.xlu0 %1298 }
 0x235   :  { %9633 = vst [vmem:[#allocation111_spill] sm:$0xff] %v6017_v29  ;;  %9634 = vst [vmem:[#allocation112_spill] sm:$0xff] %v6019_v24  ;;  %v1784_v48 = vsel %vm45_vm0, %v9636_v1, %v9635_v30  ;;  %v1785_v24 = vrot.slane %v1771_v47, 4  ;;  %v9421_v29 = vrot.slane %v6015_v31, 4  ;;  %v9639_v1 = vrot.slane %v5886_v50, 4 }
 0x236   :  { %1890 = vrot.lane.b32.xlu0 %v9419_v46, %s4476_s19  ;;  %v9420_v46 = vrot.slane %v6032_v63, 4  ;;  %v6062_v50 = vmul.f32 %v5736_v4, %v6022_v60 }
 0x237   :  { %1792 = vrot.lane.b32.xlu1 %v1784_v48, %s4474_s15  ;;  %v1787_v13 = vsel %vm45_vm0, %v1785_v24, %v9639_v1  ;;  %v9640_v48 = vrot.slane %v6005_v49, 4  ;;  %v6069_v1 = vmul.f32 %v5801_v42, %v6022_v60 }
 0x238   :  { %v6041_v53 = vpop.permute.xlu1 %1204  ;;  %v6043_v30 = vpop.permute.xlu0 %1338 }
 0x239   :  { %9637 = vst [vmem:[#allocation113_spill] sm:$0xff] %v6041_v53  ;;  %9638 = vst [vmem:[#allocation114_spill] sm:$0xff] %v6043_v30  ;;  %v1885_v47 = vsel %vm45_vm0, %v9421_v29, %v9640_v48  ;;  %v1924_v53 = vrot.slane %v1912_v34, 4  ;;  %v1819_v34 = vmul.f32 %v5481_v21, %v5893_v6  ;;  %v6079_v48 = vmul.f32 %v5654_v25, %v6022_v60 }
 0x23a   :  { %1894 = vrot.lane.b32.xlu0 %v1885_v47, %s4476_s19  ;;  %v6086_v29 = vstv %s4289_s3  ;;  %s4315_s3 = sld [smem:[#allocation3 + $0x43]] }
 0x23b   :  { %1796 = vrot.lane.b32.xlu1 %v1787_v13, %s4474_s15  ;;  %v1926_v24 = vsel %vm45_vm0, %v1924_v53, %v9420_v46  ;;  %v9643_v13 = vrot.slane %v5880_v44, 4  ;;  %v9422_v46 = vrot.slane %v6062_v50, 4  ;;  %v9646_v44 = vrot.slane %v5933_v11, 4 }
 0x23c   :  { %v6056_v26 = vpop.permute.xlu1 %1244  ;;  %v6058_v30 = vpop.permute.xlu0 %1342 }
 0x23d   :  { %9641 = vst [vmem:[#allocation115_spill] sm:$0xff] %v6056_v26  ;;  %9642 = vst [vmem:[#allocation116_spill] sm:$0xff] %v6058_v30  ;;  %v6096_v30 = vmul.f32 %v5672_v23, %v6086_v29 }
 0x23e   :  { %1934 = vrot.lane.b32.xlu0 %v1926_v24, %s4477_s21 }
 0x23f   :  { %1800 = vrot.lane.b32.xlu1 %v9643_v13, %s4474_s15  ;;  %v9647_v13 = vrot.slane %v5903_v36, 4  ;;  %v1960_v36 = vmul.f32 %v5443_v57, %v6086_v29 }
 0x240   :  { %v6081_v47 = vpop.permute.xlu1 %1248  ;;  %v6083_v53 = vpop.permute.xlu0 %1346 }
 0x241   :  { %9644 = vst [vmem:[#allocation117_spill] sm:$0xff] %v6081_v47  ;;  %9645 = vst [vmem:[#allocation118_spill] sm:$0xff] %v6083_v53  ;;  %v1832_v24 = vsel %vm45_vm0, %v9647_v13, %v9646_v44  ;;  %v1833_v53 = vrot.slane %v1819_v34, 4  ;;  %v9424_v47 = vrot.slane %v6079_v48, 4  ;;  %v9650_v13 = vrot.slane %v5951_v55, 4 }
 0x242   :  { %1938 = vrot.lane.b32.xlu0 %v9422_v46, %s4477_s21  ;;  %v9423_v46 = vrot.slane %v6096_v30, 4  ;;  %v6126_v55 = vmul.f32 %v5736_v4, %v6086_v29 }
 0x243   :  { %1840 = vrot.lane.b32.xlu1 %v1832_v24, %s4475_s17  ;;  %v1835_v6 = vsel %vm45_vm0, %v1833_v53, %v9650_v13  ;;  %v9651_v24 = vrot.slane %v6069_v1, 4  ;;  %v6133_v13 = vmul.f32 %v5801_v42, %v6086_v29 }
 0x244   :  { %v6105_v11 = vpop.permute.xlu1 %1252  ;;  %v6107_v44 = vpop.permute.xlu0 %1386 }
 0x245   :  { %9648 = vst [vmem:[#allocation119_spill] sm:$0xff] %v6105_v11  ;;  %9649 = vst [vmem:[#allocation120_spill] sm:$0xff] %v6107_v44  ;;  %v1933_v34 = vsel %vm45_vm0, %v9424_v47, %v9651_v24  ;;  %v1972_v11 = vrot.slane %v1960_v36, 4  ;;  %v1867_v36 = vmul.f32 %v5481_v21, %v5958_v33  ;;  %v6143_v24 = vmul.f32 %v5654_v25, %v6086_v29 }
 0x246   :  { %1942 = vrot.lane.b32.xlu0 %v1933_v34, %s4477_s21  ;;  %v6150_v47 = vstv %s4291_s1  ;;  %s4316_s1 = sld [smem:[#allocation3 + $0x44]] }
 0x247   :  { %1844 = vrot.lane.b32.xlu1 %v1835_v6, %s4475_s17  ;;  %v1974_v53 = vsel %vm45_vm0, %v1972_v11, %v9423_v46  ;;  %v9654_v6 = vrot.slane %v5943_v22, 4  ;;  %v9425_v46 = vrot.slane %v6126_v55, 4  ;;  %v9657_v22 = vrot.slane %v5998_v15, 4 }
 0x248   :  { %v6120_v26 = vpop.permute.xlu1 %1292  ;;  %v6122_v44 = vpop.permute.xlu0 %1390 }
 0x249   :  { %9652 = vst [vmem:[#allocation121_spill] sm:$0xff] %v6120_v26  ;;  %9653 = vst [vmem:[#allocation122_spill] sm:$0xff] %v6122_v44  ;;  %v6160_v44 = vmul.f32 %v5672_v23, %v6150_v47  ;;  %v6184_v26 = vmul.f32 %v5654_v25, %v6150_v47 }
 0x24a   :  { %1982 = vrot.lane.b32.xlu0 %v1974_v53, %s4478_s23  ;;  %v9658_v53 = vrot.slane %v5968_v18, 4  ;;  %v2041_v18 = vmul.f32 %v5443_v57, %v6150_v47 }
 0x24b   :  { %1848 = vrot.lane.b32.xlu1 %v9654_v6, %s4475_s17 }
 0x24c   :  { %v6145_v34 = vpop.permute.xlu1 %1296  ;;  %v6147_v11 = vpop.permute.xlu0 %1394  ;;  %v1880_v6 = vsel %vm45_vm0, %v9658_v53, %v9657_v22  ;;  %v9661_v53 = vrot.slane %v6015_v31, 4  ;;  %v2053_v31 = vrot.slane %v2041_v18, 6  ;;  %v9665_v18 = vrot.slane %v6005_v49, 4 }
 0x24d   :  { %9655 = vst [vmem:[#allocation123_spill] sm:$0xff] %v6145_v34  ;;  %9656 = vst [vmem:[#allocation124_spill] sm:$0xff] %v6147_v11  ;;  %v1881_v11 = vrot.slane %v1867_v36, 4  ;;  %v9426_v34 = vrot.slane %v6143_v24, 4  ;;  %v9427_v36 = vrot.slane %v6160_v44, 6  ;;  %v6914_v43 = vstv %s4316_s1  ;;  %s7902_s1 = sld [smem:[#allocation3 + $0x5d]] }
 0x24e   :  { %1986 = vrot.lane.b32.xlu0 %v9425_v46, %s4478_s23 }
 0x24f   :  { %1888 = vrot.lane.b32.xlu1 %v1880_v6, %s4476_s19  ;;  %v1883_v33 = vsel %vm45_vm0, %v1881_v11, %v9661_v53  ;;  %v9662_v6 = vrot.slane %v6133_v13, 4  ;;  %v2044_v11 = vmul.f32 %v5481_v21, %v6150_v47 }
 0x250   :  { %v6169_v15 = vpop.permute.xlu1 %1300  ;;  %v6171_v22 = vpop.permute.xlu0 %1466 }
 0x251   :  { %9659 = vst [vmem:[#allocation125_spill] sm:$0xff] %v6169_v15  ;;  %9660 = vst [vmem:[#allocation126_spill] sm:$0xff] %v6171_v22  ;;  %v1981_v46 = vsel %vm45_vm0, %v9426_v34, %v9662_v6  ;;  %v6194_v6 = vstv %s4292_s4  ;;  %v2055_v34 = vsel %vm2020_vm6, %v2053_v31, %v9427_v36  ;;  %v1915_v22 = vmul.f32 %v5481_v21, %v6022_v60  ;;  %s4317_s4 = sld [smem:[#allocation3 + $0x45]] }
 0x252   :  { %1990 = vrot.lane.b32.xlu0 %v1981_v46, %s4478_s23  ;;  %v6202_v46 = vmul.f32 %v5672_v23, %v6194_v6  ;;  %v6227_v60 = vmul.f32 %v5654_v25, %v6194_v6  ;;  %v2084_v63 = vmul.f32 %v5481_v21, %v6194_v6 }
 0x253   :  { %1892 = vrot.lane.b32.xlu1 %v1883_v33, %s4476_s19  ;;  %v9668_v33 = vrot.slane %v6062_v50, 4 }
 0x254   :  { %v6190_v53 = vpop.permute.xlu1 %1340  ;;  %v6192_v15 = vpop.permute.xlu0 %1470 }
 0x255   :  { %9663 = vst [vmem:[#allocation127_spill] sm:$0xff] %v6190_v53  ;;  %9664 = vst [vmem:[#allocation128_spill] sm:$0xff] %v6192_v15  ;;  %v2058_v15 = vrot.slane %v2044_v11, 6  ;;  %v2081_v53 = vmul.f32 %v5443_v57, %v6194_v6  ;;  %v1928_v49 = vsel %vm45_vm0, %v9669_v5, %v9668_v33 }
 0x256   :  { %2063 = vrot.lane.b32.xlu0 %v2055_v34, %s4473_s13 }
 0x257   :  { %1896 = vrot.lane.b32.xlu1 %v9665_v18, %s4476_s19  ;;  %v9670_v18 = vrot.slane %v6184_v26, 6  ;;  %v2093_v50 = vrot.slane %v2081_v53, 6 }
 0x258   :  { %v6212_v31 = vpop.permute.xlu1 %1344  ;;  %v6214_v36 = vpop.permute.xlu0 %1506 }
 0x259   :  { %9666 = vst [vmem:[#allocation129_spill] sm:$0xff] %v6212_v31  ;;  %9667 = vst [vmem:[#allocation130_spill] sm:$0xff] %v6214_v36  ;;  %v2060_v34 = vsel %vm2020_vm6, %v2058_v15, %v9670_v18  ;;  %v1929_v31 = vrot.slane %v1915_v22, 4  ;;  %v6237_v15 = vstv %s4293_s5  ;;  %v9673_v18 = vrot.slane %v6079_v48, 4  ;;  %s4319_s5 = sld [smem:[#allocation3 + $0x47]] }
 0x25a   :  { %2067 = vrot.lane.b32.xlu0 %v2060_v34, %s4473_s13  ;;  %v9428_v22 = vrot.slane %v6227_v60, 6  ;;  %v6248_v53 = vmul.f32 %v5672_v23, %v6237_v15  ;;  %v2121_v48 = vmul.f32 %v5443_v57, %v6237_v15  ;;  %v9680_v36 = vrot.slane %v6126_v55, 4 }
 0x25b   :  { %1936 = vrot.lane.b32.xlu1 %v1928_v49, %s4477_s21  ;;  %v1931_v11 = vsel %vm45_vm0, %v1929_v31, %v9673_v18  ;;  %v9674_v49 = vrot.slane %v6202_v46, 6  ;;  %v6278_v18 = vstv %s4294_s6  ;;  %s4320_s6 = sld [smem:[#allocation3 + $0x48]] }
 0x25c   :  { %v6233_v5 = vpop.permute.xlu1 %1348  ;;  %v6235_v33 = vpop.permute.xlu0 %1510 }
 0x25d   :  { %9671 = vst [vmem:[#allocation131_spill] sm:$0xff] %v6233_v5  ;;  %9672 = vst [vmem:[#allocation132_spill] sm:$0xff] %v6235_v33  ;;  %v2095_v34 = vsel %vm2020_vm6, %v2093_v50, %v9674_v49  ;;  %v2098_v5 = vrot.slane %v2084_v63, 6  ;;  %v6264_v49 = vmul.f32 %v5654_v25, %v6237_v15  ;;  %v2133_v63 = vrot.slane %v2121_v48, 6 }
 0x25e   :  { %2103 = vrot.lane.b32.xlu0 %v2095_v34, %s4474_s15  ;;  %v1963_v34 = vmul.f32 %v5481_v21, %v6086_v29  ;;  %v9682_v48 = vrot.slane %v6248_v53, 6 }
 0x25f   :  { %1940 = vrot.lane.b32.xlu1 %v1931_v11, %s4477_s21  ;;  %v2100_v50 = vsel %vm2020_vm6, %v2098_v5, %v9428_v22  ;;  %v9677_v11 = vrot.slane %v6069_v1, 4  ;;  %v9681_v1 = vrot.slane %v6096_v30, 4  ;;  %v2161_v30 = vmul.f32 %v5443_v57, %v6278_v18 }
 0x260   :  { %v6254_v33 = vpop.permute.xlu1 %1388  ;;  %v6256_v31 = vpop.permute.xlu0 %1546  ;;  %v2135_v29 = vsel %vm2020_vm6, %v2133_v63, %v9682_v48  ;;  %v2043_v63 = vmul.f32 %v5736_v4, %v6150_v47  ;;  %v9685_v48 = vrot.slane %v6143_v24, 4  ;;  %v2164_v24 = vmul.f32 %v5481_v21, %v6278_v18 }
 0x261   :  { %9675 = vst [vmem:[#allocation133_spill] sm:$0xff] %v6254_v33  ;;  %9676 = vst [vmem:[#allocation134_spill] sm:$0xff] %v6256_v31  ;;  %v2124_v31 = vmul.f32 %v5481_v21, %v6237_v15 }
 0x262   :  { %2107 = vrot.lane.b32.xlu0 %v2100_v50, %s4474_s15  ;;  %v1976_v50 = vsel %vm45_vm0, %v9681_v1, %v9680_v36 }
 0x263   :  { %1944 = vrot.lane.b32.xlu1 %v9677_v11, %s4477_s21  ;;  %v2138_v55 = vrot.slane %v2124_v31, 6  ;;  %v6324_v31 = vstv %s4295_s7  ;;  %s4321_s7 = sld [smem:[#allocation3 + $0x49]] }
 0x264   :  { %v6274_v5 = vpop.permute.xlu1 %1392  ;;  %v6276_v22 = vpop.permute.xlu0 %1550 }
 0x265   :  { %9678 = vst [vmem:[#allocation135_spill] sm:$0xff] %v6274_v5  ;;  %9679 = vst [vmem:[#allocation136_spill] sm:$0xff] %v6276_v22  ;;  %v6291_v5 = vmul.f32 %v5672_v23, %v6278_v18  ;;  %v1977_v22 = vrot.slane %v1963_v34, 4  ;;  %v6312_v34 = vmul.f32 %v5654_v25, %v6278_v18 }
 0x266   :  { %2143 = vrot.lane.b32.xlu0 %v2135_v29, %s4475_s17 }
 0x267   :  { %1984 = vrot.lane.b32.xlu1 %v1976_v50, %s4478_s23  ;;  %v1979_v11 = vsel %vm45_vm0, %v1977_v22, %v9685_v48  ;;  %v9686_v50 = vrot.slane %v6264_v49, 6  ;;  %v9694_v51 = vrot.slane %v6312_v34, 6 }
 0x268   :  { %v6299_v1 = vpop.permute.xlu0 %1586 }
 0x269   :  { %v6297_v36 = vpop.permute.xlu1 %1396  ;;  %9684 = vst [vmem:[#allocation138_spill] sm:$0xff] %v6299_v1  ;;  %v2140_v29 = vsel %vm2020_vm6, %v2138_v55, %v9686_v50  ;;  %v2056_v55 = vrot.slane %v2043_v63, 6  ;;  %v2046_v50 = vmul.f32 %v5801_v42, %v6150_v47  ;;  %v9689_v1 = vrot.slane %v6291_v5, 6 }
 0x26a   :  { %9683 = vst [vmem:[#allocation137_spill] sm:$0xff] %v6297_v36  ;;  %2147 = vrot.lane.b32.xlu0 %v2140_v29, %s4475_s17  ;;  %v2173_v36 = vrot.slane %v2161_v30, 6  ;;  %v6332_v29 = vmul.f32 %v5672_v23, %v6324_v31  ;;  %v2178_v63 = vrot.slane %v2164_v24, 6  ;;  %v2201_v47 = vmul.f32 %v5443_v57, %v6324_v31 }
 0x26b   :  { %1988 = vrot.lane.b32.xlu1 %v1979_v11, %s4478_s23  ;;  %v2061_v30 = vrot.slane %v2046_v50, 6  ;;  %v2083_v24 = vmul.f32 %v5736_v4, %v6194_v6  ;;  %v6361_v50 = vstv %s4296_s8  ;;  %s4322_s8 = sld [smem:[#allocation3 + $0x4a]] }
 0x26c   :  { %v6320_v48 = vpop.permute.xlu0 %1590  ;;  %v2175_v11 = vsel %vm2020_vm6, %v2173_v36, %v9689_v1  ;;  %v9693_v36 = vrot.slane %v6160_v44, 6  ;;  %v2213_v44 = vrot.slane %v2201_v47, 6 }
 0x26d   :  { %v6318_v22 = vpop.permute.xlu1 %1468  ;;  %9688 = vst [vmem:[#allocation140_spill] sm:$0xff] %v6320_v48 }
 0x26e   :  { %9687 = vst [vmem:[#allocation139_spill] sm:$0xff] %v6318_v22  ;;  %v9690_v22 = vrot.slane %v6133_v13, 4  ;;  %2183 = vrot.lane.b32.xlu0 %v2175_v11, %s4476_s19  ;;  %v2057_v1 = vsel %vm2020_vm6, %v9693_v36, %v2056_v55  ;;  %v2180_v13 = vsel %vm2020_vm6, %v2178_v63, %v9694_v51  ;;  %v6355_v11 = vmul.f32 %v5654_v25, %v6324_v31 }
 0x26f   :  { %v2204_v55 = vmul.f32 %v5481_v21, %v6324_v31  ;;  %v2086_v36 = vmul.f32 %v5801_v42, %v6194_v6 }
 0x270   :  { %1992 = vrot.lane.b32.xlu1 %v9690_v22, %s4478_s23  ;;  %v6342_v33 = vpop.permute.xlu0 %1626  ;;  %v6371_v22 = vmul.f32 %v5672_v23, %v6361_v50  ;;  %v2241_v23 = vmul.f32 %v5443_v57, %v6361_v50  ;;  %v6399_v57 = vmul.f32 %v5654_v25, %v6361_v50 }
 0x271   :  { %v6340_v48 = vpop.permute.xlu1 %1472  ;;  %9692 = vst [vmem:[#allocation142_spill] sm:$0xff] %v6342_v33  ;;  %v2218_v6 = vrot.slane %v2204_v55, 6  ;;  %v2123_v55 = vmul.f32 %v5736_v4, %v6237_v15 }
 0x272   :  { %9691 = vst [vmem:[#allocation141_spill] sm:$0xff] %v6340_v48  ;;  %2187 = vrot.lane.b32.xlu0 %v2180_v13, %s4476_s19  ;;  %v9698_v13 = vrot.slane %v6332_v29, 6  ;;  %v2096_v48 = vrot.slane %v2083_v24, 6  ;;  %v9701_v24 = vrot.slane %v6202_v46, 6  ;;  %v2244_v46 = vmul.f32 %v5481_v21, %v6361_v50 }
 0x274   :  { %2065 = vrot.lane.b32.xlu1 %v2057_v1, %s4473_s13  ;;  %v6365_v63 = vpop.permute.xlu0 %1630  ;;  %v9697_v1 = vrot.slane %v6184_v26, 6  ;;  %v2215_v33 = vsel %vm2020_vm6, %v2213_v44, %v9698_v13  ;;  %v2097_v44 = vsel %vm2020_vm6, %v9701_v24, %v2096_v48  ;;  %v9704_v13 = vrot.slane %v6227_v60, 6 }
 0x275   :  { %v6363_v51 = vpop.permute.xlu1 %1508  ;;  %9696 = vst [vmem:[#allocation144_spill] sm:$0xff] %v6365_v63  ;;  %v2136_v24 = vrot.slane %v2123_v55, 6  ;;  %v2258_v21 = vrot.slane %v2244_v46, 6  ;;  %v9707_v55 = vrot.slane %v6248_v53, 6  ;;  %v2163_v46 = vmul.f32 %v5736_v4, %v6278_v18 }
 0x276   :  { %9695 = vst [vmem:[#allocation143_spill] sm:$0xff] %v6363_v51  ;;  %v2062_v47 = vsel %vm2020_vm6, %v9697_v1, %v2061_v30  ;;  %v9431_v51 = vrot.slane %v6355_v11, 6  ;;  %2223 = vrot.lane.b32.xlu0 %v2215_v33, %s4477_s21  ;;  %v2101_v30 = vrot.slane %v2086_v36, 6  ;;  %v9429_v1 = vrot.slane %v6371_v22, 6 }
 0x277   :  { %v2253_v36 = vrot.slane %v2241_v23, 6  ;;  %v2126_v23 = vmul.f32 %v5801_v42, %v6237_v15 }
 0x278   :  { %2069 = vrot.lane.b32.xlu1 %v2062_v47, %s4473_s13  ;;  %v6386_v26 = vpop.permute.xlu0 %1666  ;;  %v2220_v33 = vsel %vm2020_vm6, %v2218_v6, %v9431_v51  ;;  %v2102_v6 = vsel %vm2020_vm6, %v9704_v13, %v2101_v30  ;;  %v6424_v30 = vstv %s4298_s9  ;;  %v6426_v13 = vld [vmem:[#allocation2 + $0x30] sm:$0xff]  ;;  %s4323_s9 = sld [smem:[#allocation3 + $0x4b]] }
 0x279   :  { %v6384_v63 = vpop.permute.xlu1 %1512  ;;  %9700 = vst [vmem:[#allocation146_spill] sm:$0xff] %v6386_v26  ;;  %v2255_v25 = vsel %vm2020_vm6, %v2253_v36, %v9429_v1  ;;  %v2137_v36 = vsel %vm2020_vm6, %v9707_v55, %v2136_v24  ;;  %v2297_v53 = vmul.f32 %v6424_v30, %v6426_v13  ;;  %v6444_v24 = vld [vmem:[#allocation2 + $0x48] sm:$0xff]  ;;  %v2176_v55 = vrot.slane %v2163_v46, 6 }
 0x27a   :  { %9699 = vst [vmem:[#allocation145_spill] sm:$0xff] %v6384_v63  ;;  %2227 = vrot.lane.b32.xlu0 %v2220_v33, %s4477_s21  ;;  %v2299_v51 = vmul.f32 %v6424_v30, %v6444_v24  ;;  %v6462_v46 = vstv %s4299_s10  ;;  %v2890_v59 = vmul.f32 %v6914_v43, %v6444_v24  ;;  %s4324_s10 = sld [smem:[#allocation3 + $0x4c]] }
 0x27c   :  { %2105 = vrot.lane.b32.xlu1 %v2097_v44, %s4474_s15  ;;  %v6407_v47 = vpop.permute.xlu0 %1670  ;;  %v9430_v44 = vrot.slane %v6399_v57, 6 }
 0x27d   :  { %v6405_v48 = vpop.permute.xlu1 %1548  ;;  %9703 = vst [vmem:[#allocation148_spill] sm:$0xff] %v6407_v47 }
 0x27e   :  { %9702 = vst [vmem:[#allocation147_spill] sm:$0xff] %v6405_v48  ;;  %2263 = vrot.lane.b32.xlu0 %v2255_v25, %s4478_s23  ;;  %v2260_v15 = vsel %vm2020_vm6, %v2258_v21, %v9430_v44  ;;  %v9710_v21 = vrot.slane %v6264_v49, 6  ;;  %v2166_v44 = vmul.f32 %v5801_v42, %v6278_v18  ;;  %v2203_v18 = vmul.f32 %v5736_v4, %v6324_v31 }
 0x280   :  { %2109 = vrot.lane.b32.xlu1 %v2102_v6, %s4474_s15  ;;  %v6422_v60 = vpop.permute.xlu0 %1742  ;;  %v2141_v6 = vrot.slane %v2126_v23, 6 }
 0x281   :  { %v6420_v33 = vpop.permute.xlu1 %1552  ;;  %9706 = vst [vmem:[#allocation150_spill] sm:$0xff] %v6422_v60 }
 0x282   :  { %9705 = vst [vmem:[#allocation149_spill] sm:$0xff] %v6420_v33  ;;  %2267 = vrot.lane.b32.xlu0 %v2260_v15, %s4478_s23  ;;  %v2142_v23 = vsel %vm2020_vm6, %v9710_v21, %v2141_v6  ;;  %v2181_v6 = vrot.slane %v2166_v44, 6 }
 0x284   :  { %2145 = vrot.lane.b32.xlu1 %v2137_v36, %s4475_s17  ;;  %v6440_v1 = vpop.permute.xlu0 %1746 }
 0x285   :  { %v6438_v25 = vpop.permute.xlu1 %1588  ;;  %9709 = vst [vmem:[#allocation152_spill] sm:$0xff] %v6440_v1  ;;  %v9713_v1 = vrot.slane %v6291_v5, 6  ;;  %v2323_v5 = vmul.f32 %v6462_v46, %v6426_v13 }
 0x286   :  { %9708 = vst [vmem:[#allocation151_spill] sm:$0xff] %v6438_v25  ;;  %2305 = vrot.lane.b32.xlu0 %v2297_v53, %s4473_s13 }
 0x287   :  { %v2177_v49 = vsel %vm2020_vm6, %v9713_v1, %v2176_v55  ;;  %v9716_v1 = vrot.slane %v6312_v34, 6  ;;  %v2206_v55 = vmul.f32 %v5801_v42, %v6324_v31  ;;  %v2243_v31 = vmul.f32 %v5736_v4, %v6361_v50 }
 0x288   :  { %2149 = vrot.lane.b32.xlu1 %v2142_v23, %s4475_s17  ;;  %v6455_v15 = vpop.permute.xlu0 %1750  ;;  %v2216_v23 = vrot.slane %v2203_v18, 6  ;;  %v6490_v18 = vstv %s4300_s11  ;;  %v2246_v4 = vmul.f32 %v5801_v42, %v6361_v50  ;;  %s4326_s11 = sld [smem:[#allocation3 + $0x4e]] }
 0x289   :  { %v6453_v36 = vpop.permute.xlu1 %1592  ;;  %9712 = vst [vmem:[#allocation154_spill] sm:$0xff] %v6455_v15  ;;  %v2182_v44 = vsel %vm2020_vm6, %v9716_v1, %v2181_v6  ;;  %v2221_v6 = vrot.slane %v2206_v55, 6 }
 0x28a   :  { %9711 = vst [vmem:[#allocation153_spill] sm:$0xff] %v6453_v36  ;;  %2309 = vrot.lane.b32.xlu0 %v2299_v51, %s4473_s13  ;;  %v2325_v36 = vmul.f32 %v6462_v46, %v6444_v24 }
 0x28c   :  { %2185 = vrot.lane.b32.xlu1 %v2177_v49, %s4476_s19  ;;  %v6470_v21 = vpop.permute.xlu0 %1790 }
 0x28d   :  { %v6468_v53 = vpop.permute.xlu1 %1628  ;;  %9715 = vst [vmem:[#allocation156_spill] sm:$0xff] %v6470_v21 }
 0x28e   :  { %9714 = vst [vmem:[#allocation155_spill] sm:$0xff] %v6468_v53  ;;  %2331 = vrot.lane.b32.xlu0 %v2323_v5, %s4474_s15  ;;  %v9719_v53 = vrot.slane %v6332_v29, 6  ;;  %v2349_v29 = vmul.f32 %v6490_v18, %v6426_v13 }
 0x290   :  { %2189 = vrot.lane.b32.xlu1 %v2182_v44, %s4476_s19  ;;  %v6483_v49 = vpop.permute.xlu0 %1794  ;;  %v2217_v34 = vsel %vm2020_vm6, %v9719_v53, %v2216_v23  ;;  %v9722_v53 = vrot.slane %v6355_v11, 6  ;;  %v2256_v23 = vrot.slane %v2243_v31, 6  ;;  %v6518_v31 = vstv %s4301_s12  ;;  %s4327_s12 = sld [smem:[#allocation3 + $0x4f]] }
 0x291   :  { %v6481_v51 = vpop.permute.xlu1 %1632  ;;  %9718 = vst [vmem:[#allocation158_spill] sm:$0xff] %v6483_v49  ;;  %v9725_v49 = vrot.slane %v6371_v22, 6  ;;  %v9728_v22 = vrot.slane %v6399_v57, 6 }
 0x292   :  { %9717 = vst [vmem:[#allocation157_spill] sm:$0xff] %v6481_v51  ;;  %2335 = vrot.lane.b32.xlu0 %v2325_v36, %s4474_s15  ;;  %v2222_v44 = vsel %vm2020_vm6, %v9722_v53, %v2221_v6  ;;  %v2261_v6 = vrot.slane %v2246_v4, 6  ;;  %v6528_v53 = vld [vmem:[#allocation2 + $0x38] sm:$0xff] }
 0x293   :  { %v2257_v11 = vsel %vm2020_vm6, %v9725_v49, %v2256_v23  ;;  %v2298_v4 = vmul.f32 %v6424_v30, %v6528_v53  ;;  %v6922_v52 = vmul.f32 %v6914_v43, %v6528_v53 }
 0x294   :  { %2225 = vrot.lane.b32.xlu1 %v2217_v34, %s4477_s21  ;;  %v6498_v1 = vpop.permute.xlu0 %1798  ;;  %v2351_v34 = vmul.f32 %v6490_v18, %v6444_v24  ;;  %v2262_v49 = vsel %vm2020_vm6, %v9728_v22, %v2261_v6 }
 0x295   :  { %v6496_v5 = vpop.permute.xlu1 %1668  ;;  %9721 = vst [vmem:[#allocation160_spill] sm:$0xff] %v6498_v1  ;;  %v9438_v27 = vrot.slane %v6922_v52, 2 }
 0x296   :  { %9720 = vst [vmem:[#allocation159_spill] sm:$0xff] %v6496_v5  ;;  %2357 = vrot.lane.b32.xlu0 %v2349_v29, %s4475_s17  ;;  %v2375_v29 = vmul.f32 %v6518_v31, %v6426_v13 }
 0x298   :  { %2229 = vrot.lane.b32.xlu1 %v2222_v44, %s4477_s21  ;;  %v6511_v55 = vpop.permute.xlu0 %1838 }
 0x299   :  { %v6509_v36 = vpop.permute.xlu1 %1672  ;;  %9724 = vst [vmem:[#allocation162_spill] sm:$0xff] %v6511_v55 }
 0x29a   :  { %9723 = vst [vmem:[#allocation161_spill] sm:$0xff] %v6509_v36  ;;  %2361 = vrot.lane.b32.xlu0 %v2351_v34, %s4475_s17  ;;  %v2377_v34 = vmul.f32 %v6518_v31, %v6444_v24 }
 0x29c   :  { %2265 = vrot.lane.b32.xlu1 %v2257_v11, %s4478_s23  ;;  %v6524_v50 = vpop.permute.xlu0 %1842  ;;  %v6543_v11 = vld [vmem:[#allocation2 + $0x50] sm:$0xff] }
 0x29d   :  { %v6522_v42 = vpop.permute.xlu1 %1744  ;;  %9727 = vst [vmem:[#allocation164_spill] sm:$0xff] %v6524_v50  ;;  %v2400_v50 = vstv %s4302_s14  ;;  %s4328_s14 = sld [smem:[#allocation3 + $0x50]] }
 0x29e   :  { %9726 = vst [vmem:[#allocation163_spill] sm:$0xff] %v6522_v42  ;;  %2383 = vrot.lane.b32.xlu0 %v2375_v29, %s4476_s19  ;;  %v2300_v29 = vmul.f32 %v6424_v30, %v6543_v11  ;;  %v2401_v22 = vmul.f32 %v2400_v50, %v6426_v13 }
 0x2a0   :  { %2269 = vrot.lane.b32.xlu1 %v2262_v49, %s4478_s23  ;;  %v6537_v23 = vpop.permute.xlu0 %1846 }
 0x2a1   :  { %v6535_v44 = vpop.permute.xlu1 %1748  ;;  %9730 = vst [vmem:[#allocation166_spill] sm:$0xff] %v6537_v23 }
 0x2a2   :  { %9729 = vst [vmem:[#allocation165_spill] sm:$0xff] %v6535_v44  ;;  %2387 = vrot.lane.b32.xlu0 %v2377_v34, %s4476_s19  ;;  %v2403_v34 = vmul.f32 %v2400_v50, %v6444_v24 }
 0x2a4   :  { %2307 = vrot.lane.b32.xlu1 %v2298_v4, %s4473_s13  ;;  %v6549_v6 = vpop.permute.xlu0 %1886  ;;  %v2324_v4 = vmul.f32 %v6462_v46, %v6528_v53 }
 0x2a5   :  { %v6547_v57 = vpop.permute.xlu1 %1752  ;;  %9732 = vst [vmem:[#allocation168_spill] sm:$0xff] %v6549_v6  ;;  %v6796_v6 = vstv %s4313_s28  ;;  %s7750_s28 = sld [smem:[#allocation3 + $0x46]] }
 0x2a6   :  { %9731 = vst [vmem:[#allocation167_spill] sm:$0xff] %v6547_v57  ;;  %2409 = vrot.lane.b32.xlu0 %v2401_v22, %s4477_s21  ;;  %v2426_v57 = vstv %s4303_s16  ;;  %v2326_v22 = vmul.f32 %v6462_v46, %v6543_v11  ;;  %s4329_s16 = sld [smem:[#allocation3 + $0x51]] }
 0x2a8   :  { %2311 = vrot.lane.b32.xlu1 %v2300_v29, %s4473_s13  ;;  %v6558_v36 = vpop.permute.xlu0 %1890 }
 0x2a9   :  { %v6556_v49 = vpop.permute.xlu1 %1792  ;;  %9734 = vst [vmem:[#allocation170_spill] sm:$0xff] %v6558_v36  ;;  %v2427_v36 = vmul.f32 %v2426_v57, %v6426_v13 }
 0x2aa   :  { %9733 = vst [vmem:[#allocation169_spill] sm:$0xff] %v6556_v49  ;;  %2413 = vrot.lane.b32.xlu0 %v2403_v34, %s4477_s21  ;;  %v2429_v34 = vmul.f32 %v2426_v57, %v6444_v24 }
 0x2ac   :  { %2333 = vrot.lane.b32.xlu1 %v2324_v4, %s4474_s15  ;;  %v6567_v29 = vpop.permute.xlu0 %1894  ;;  %v2350_v4 = vmul.f32 %v6490_v18, %v6528_v53 }
 0x2ad   :  { %v6565_v30 = vpop.permute.xlu1 %1796  ;;  %9736 = vst [vmem:[#allocation172_spill] sm:$0xff] %v6567_v29  ;;  %v6595_v29 = vld [vmem:[#allocation2 + $0x40] sm:$0x3f] }
 0x2ae   :  { %9735 = vst [vmem:[#allocation171_spill] sm:$0xff] %v6565_v30  ;;  %2435 = vrot.lane.b32.xlu0 %v2427_v36, %s4478_s23  ;;  %v6581_v30 = vstv %s4305_s18  ;;  %v2352_v36 = vmul.f32 %v6490_v18, %v6543_v11  ;;  %s4330_s18 = sld [smem:[#allocation3 + $0x52]] }
 0x2af   :  { %v2469_v18 = vmul.f32 %v6581_v30, %v6595_v29 }
 0x2b0   :  { %2337 = vrot.lane.b32.xlu1 %v2326_v22, %s4474_s15  ;;  %v6576_v23 = vpop.permute.xlu0 %1934 }
 0x2b1   :  { %v6574_v51 = vpop.permute.xlu1 %1800  ;;  %9738 = vst [vmem:[#allocation174_spill] sm:$0xff] %v6576_v23 }
 0x2b2   :  { %9737 = vst [vmem:[#allocation173_spill] sm:$0xff] %v6574_v51  ;;  %2439 = vrot.lane.b32.xlu0 %v2429_v34, %s4478_s23  ;;  %v2467_v51 = vmul.f32 %v6581_v30, %v6426_v13 }
 0x2b4   :  { %2359 = vrot.lane.b32.xlu1 %v2350_v4, %s4475_s17  ;;  %v6587_v22 = vpop.permute.xlu0 %1938 }
 0x2b5   :  { %v6585_v46 = vpop.permute.xlu1 %1840  ;;  %9740 = vst [vmem:[#allocation176_spill] sm:$0xff] %v6587_v22  ;;  %v2376_v22 = vmul.f32 %v6518_v31, %v6528_v53 }
 0x2b6   :  { %9739 = vst [vmem:[#allocation175_spill] sm:$0xff] %v6585_v46  ;;  %2479 = vrot.lane.b32.xlu0 %v2467_v51, %s4473_s13  ;;  %v2378_v51 = vmul.f32 %v6518_v31, %v6543_v11 }
 0x2b8   :  { %2363 = vrot.lane.b32.xlu1 %v2352_v36, %s4475_s17  ;;  %v6599_v34 = vpop.permute.xlu0 %1942 }
 0x2b9   :  { %v6597_v4 = vpop.permute.xlu1 %1844  ;;  %9742 = vst [vmem:[#allocation178_spill] sm:$0xff] %v6599_v34  ;;  %v2471_v34 = vmul.f32 %v6581_v30, %v6543_v11 }
 0x2ba   :  { %9741 = vst [vmem:[#allocation177_spill] sm:$0xff] %v6597_v4  ;;  %2483 = vrot.lane.b32.xlu0 %v2469_v18, %s4473_s13  ;;  %v6615_v4 = vstv %s4306_s20  ;;  %v2402_v18 = vmul.f32 %v2400_v50, %v6528_v53  ;;  %s4331_s20 = sld [smem:[#allocation3 + $0x53]] }
 0x2bc   :  { %2385 = vrot.lane.b32.xlu1 %v2376_v22, %s4476_s19  ;;  %v6609_v36 = vpop.permute.xlu0 %1982 }
 0x2bd   :  { %v6607_v23 = vpop.permute.xlu1 %1848  ;;  %9744 = vst [vmem:[#allocation180_spill] sm:$0xff] %v6609_v36 }
 0x2be   :  { %9743 = vst [vmem:[#allocation179_spill] sm:$0xff] %v6607_v23  ;;  %2487 = vrot.lane.b32.xlu0 %v2471_v34, %s4473_s13  ;;  %v2505_v23 = vmul.f32 %v6615_v4, %v6426_v13  ;;  %v2404_v34 = vmul.f32 %v2400_v50, %v6543_v11 }
 0x2c0   :  { %2389 = vrot.lane.b32.xlu1 %v2378_v51, %s4476_s19  ;;  %v6621_v22 = vpop.permute.xlu0 %1986  ;;  %v2507_v51 = vmul.f32 %v6615_v4, %v6595_v29 }
 0x2c1   :  { %v6619_v5 = vpop.permute.xlu1 %1888  ;;  %9746 = vst [vmem:[#allocation182_spill] sm:$0xff] %v6621_v22 }
 0x2c2   :  { %9745 = vst [vmem:[#allocation181_spill] sm:$0xff] %v6619_v5  ;;  %2517 = vrot.lane.b32.xlu0 %v2505_v23, %s4474_s15  ;;  %v2509_v23 = vmul.f32 %v6615_v4, %v6543_v11 }
 0x2c4   :  { %2411 = vrot.lane.b32.xlu1 %v2402_v18, %s4477_s21  ;;  %v6630_v36 = vpop.permute.xlu0 %1990  ;;  %v2428_v18 = vmul.f32 %v2426_v57, %v6528_v53 }
 0x2c5   :  { %v6628_v31 = vpop.permute.xlu1 %1892  ;;  %9748 = vst [vmem:[#allocation184_spill] sm:$0xff] %v6630_v36 }
 0x2c6   :  { %9747 = vst [vmem:[#allocation183_spill] sm:$0xff] %v6628_v31  ;;  %2521 = vrot.lane.b32.xlu0 %v2507_v51, %s4474_s15  ;;  %v6644_v31 = vstv %s4307_s22  ;;  %v2430_v51 = vmul.f32 %v2426_v57, %v6543_v11  ;;  %s4333_s22 = sld [smem:[#allocation3 + $0x55]] }
 0x2c8   :  { %2415 = vrot.lane.b32.xlu1 %v2404_v34, %s4477_s21  ;;  %v6639_v5 = vpop.permute.xlu0 %2063 }
 0x2c9   :  { %v6637_v22 = vpop.permute.xlu1 %1896  ;;  %9750 = vst [vmem:[#allocation186_spill] sm:$0xff] %v6639_v5 }
 0x2ca   :  { %9749 = vst [vmem:[#allocation185_spill] sm:$0xff] %v6637_v22  ;;  %2525 = vrot.lane.b32.xlu0 %v2509_v23, %s4474_s15  ;;  %v2543_v22 = vmul.f32 %v6644_v31, %v6426_v13  ;;  %v2545_v23 = vmul.f32 %v6644_v31, %v6595_v29 }
 0x2cc   :  { %2437 = vrot.lane.b32.xlu1 %v2428_v18, %s4478_s23  ;;  %v6650_v34 = vpop.permute.xlu0 %2067  ;;  %v2468_v18 = vmul.f32 %v6581_v30, %v6528_v53 }
 0x2cd   :  { %v6648_v50 = vpop.permute.xlu1 %1936  ;;  %9752 = vst [vmem:[#allocation188_spill] sm:$0xff] %v6650_v34 }
 0x2ce   :  { %9751 = vst [vmem:[#allocation187_spill] sm:$0xff] %v6648_v50  ;;  %2555 = vrot.lane.b32.xlu0 %v2543_v22, %s4475_s17  ;;  %v2470_v22 = vmul.f32 %v6581_v30, %v6444_v24 }
 0x2d0   :  { %2441 = vrot.lane.b32.xlu1 %v2430_v51, %s4478_s23  ;;  %v6659_v5 = vpop.permute.xlu0 %2103  ;;  %v2547_v51 = vmul.f32 %v6644_v31, %v6543_v11 }
 0x2d1   :  { %v6657_v36 = vpop.permute.xlu1 %1940  ;;  %9754 = vst [vmem:[#allocation190_spill] sm:$0xff] %v6659_v5  ;;  %v6679_v5 = vld [vmem:[#allocation2 + $0x58] sm:$0x3f] }
 0x2d2   :  { %9753 = vst [vmem:[#allocation189_spill] sm:$0xff] %v6657_v36  ;;  %2559 = vrot.lane.b32.xlu0 %v2545_v23, %s4475_s17  ;;  %v6675_v36 = vstv %s4308_s24  ;;  %v2892_v2 = vmul.f32 %v6914_v43, %v6679_v5  ;;  %s4297_s24 = sld [smem:[#allocation3 + $0x31]] }
 0x2d3   :  { %v2586_v46 = vmul.f32 %v6675_v36, %v6679_v5 }
 0x2d4   :  { %2481 = vrot.lane.b32.xlu1 %v2468_v18, %s4473_s13  ;;  %v6669_v34 = vpop.permute.xlu0 %2107 }
 0x2d5   :  { %v6667_v57 = vpop.permute.xlu1 %1944  ;;  %9756 = vst [vmem:[#allocation192_spill] sm:$0xff] %v6669_v34  ;;  %v2581_v34 = vmul.f32 %v6675_v36, %v6426_v13 }
 0x2d6   :  { %9755 = vst [vmem:[#allocation191_spill] sm:$0xff] %v6667_v57  ;;  %2563 = vrot.lane.b32.xlu0 %v2547_v51, %s4475_s17  ;;  %v2472_v57 = vmul.f32 %v6581_v30, %v6679_v5 }
 0x2d8   :  { %2485 = vrot.lane.b32.xlu1 %v2470_v22, %s4473_s13  ;;  %v6683_v23 = vpop.permute.xlu0 %2143 }
 0x2d9   :  { %v6681_v18 = vpop.permute.xlu1 %1984  ;;  %9758 = vst [vmem:[#allocation194_spill] sm:$0xff] %v6683_v23  ;;  %v2583_v23 = vmul.f32 %v6675_v36, %v6595_v29 }
 0x2da   :  { %9757 = vst [vmem:[#allocation193_spill] sm:$0xff] %v6681_v18  ;;  %2593 = vrot.lane.b32.xlu0 %v2581_v34, %s4476_s19  ;;  %v2506_v18 = vmul.f32 %v6615_v4, %v6528_v53  ;;  %v2508_v34 = vmul.f32 %v6615_v4, %v6444_v24 }
 0x2dc   :  { %2489 = vrot.lane.b32.xlu1 %v2472_v57, %s4473_s13  ;;  %v6693_v51 = vpop.permute.xlu0 %2147  ;;  %v2585_v57 = vmul.f32 %v6675_v36, %v6543_v11 }
 0x2dd   :  { %v6691_v22 = vpop.permute.xlu1 %1988  ;;  %9760 = vst [vmem:[#allocation196_spill] sm:$0xff] %v6693_v51  ;;  %v6709_v51 = vstv %s4309_s25  ;;  %s4311_s25 = sld [smem:[#allocation3 + $0x3f]] }
 0x2de   :  { %9759 = vst [vmem:[#allocation195_spill] sm:$0xff] %v6691_v22  ;;  %2597 = vrot.lane.b32.xlu0 %v2583_v23, %s4476_s19  ;;  %v2510_v23 = vmul.f32 %v6615_v4, %v6679_v5 }
 0x2e0   :  { %2519 = vrot.lane.b32.xlu1 %v2506_v18, %s4474_s15  ;;  %v6703_v50 = vpop.permute.xlu0 %2183 }
 0x2e1   :  { %9762 = vst [vmem:[#allocation198_spill] sm:$0xff] %v6703_v50 }
 0x2e2   :  { %v6701_v30 = vpop.permute.xlu1 %1992  ;;  %2601 = vrot.lane.b32.xlu0 %v2585_v57, %s4476_s19  ;;  %v2544_v57 = vmul.f32 %v6644_v31, %v6528_v53 }
 0x2e3   :  { %9761 = vst [vmem:[#allocation197_spill] sm:$0xff] %v6701_v30  ;;  %v2619_v30 = vmul.f32 %v6709_v51, %v6426_v13 }
 0x2e4   :  { %2523 = vrot.lane.b32.xlu1 %v2508_v34, %s4474_s15  ;;  %v6715_v18 = vpop.permute.xlu0 %2187 }
 0x2e5   :  { %9764 = vst [vmem:[#allocation200_spill] sm:$0xff] %v6715_v18 }
 0x2e6   :  { %v6713_v22 = vpop.permute.xlu1 %2065  ;;  %2631 = vrot.lane.b32.xlu0 %v2619_v30, %s4477_s21  ;;  %v2546_v30 = vmul.f32 %v6644_v31, %v6444_v24 }
 0x2e7   :  { %9763 = vst [vmem:[#allocation199_spill] sm:$0xff] %v6713_v22  ;;  %v2621_v22 = vmul.f32 %v6709_v51, %v6595_v29 }
 0x2e8   :  { %2527 = vrot.lane.b32.xlu1 %v2510_v23, %s4474_s15  ;;  %v6725_v34 = vpop.permute.xlu0 %2223  ;;  %v2623_v23 = vmul.f32 %v6709_v51, %v6543_v11 }
 0x2e9   :  { %9766 = vst [vmem:[#allocation202_spill] sm:$0xff] %v6725_v34 }
 0x2ea   :  { %v6723_v50 = vpop.permute.xlu1 %2069  ;;  %2635 = vrot.lane.b32.xlu0 %v2621_v22, %s4477_s21 }
 0x2eb   :  { %9765 = vst [vmem:[#allocation201_spill] sm:$0xff] %v6723_v50  ;;  %v6741_v50 = vstv %s4310_s26  ;;  %s4334_s26 = sld [smem:[#allocation3 + $0x56]] }
 0x2ec   :  { %2557 = vrot.lane.b32.xlu1 %v2544_v57, %s4475_s17  ;;  %v6735_v18 = vpop.permute.xlu0 %2227 }
 0x2ed   :  { %9768 = vst [vmem:[#allocation204_spill] sm:$0xff] %v6735_v18  ;;  %v2657_v18 = vmul.f32 %v6741_v50, %v6426_v13 }
 0x2ee   :  { %v6733_v4 = vpop.permute.xlu1 %2105  ;;  %2639 = vrot.lane.b32.xlu0 %v2623_v23, %s4477_s21  ;;  %v2659_v23 = vmul.f32 %v6741_v50, %v6595_v29 }
 0x2ef   :  { %9767 = vst [vmem:[#allocation203_spill] sm:$0xff] %v6733_v4  ;;  %v2548_v4 = vmul.f32 %v6644_v31, %v6679_v5 }
 0x2f0   :  { %2561 = vrot.lane.b32.xlu1 %v2546_v30, %s4475_s17  ;;  %v6747_v22 = vpop.permute.xlu0 %2263  ;;  %v2582_v30 = vmul.f32 %v6675_v36, %v6528_v53 }
 0x2f1   :  { %9770 = vst [vmem:[#allocation206_spill] sm:$0xff] %v6747_v22  ;;  %v2661_v22 = vmul.f32 %v6741_v50, %v6543_v11 }
 0x2f2   :  { %v6745_v57 = vpop.permute.xlu1 %2109  ;;  %2669 = vrot.lane.b32.xlu0 %v2657_v18, %s4478_s23 }
 0x2f3   :  { %9769 = vst [vmem:[#allocation205_spill] sm:$0xff] %v6745_v57  ;;  %v6763_v57 = vstv %s4312_s27  ;;  %s4304_s27 = sld [smem:[#allocation3 + $0x38]] }
 0x2f4   :  { %2565 = vrot.lane.b32.xlu1 %v2548_v4, %s4475_s17  ;;  %v6757_v1 = vpop.permute.xlu0 %2267  ;;  %v6767_v31 = vmul.f32 %v6763_v57, %v6528_v53  ;;  %v2727_v18 = vmul.f32 %v6763_v57, %v6426_v13  ;;  %v2732_v40 = vmul.f32 %v6763_v57, %v6679_v5 }
 0x2f5   :  { %9772 = vst [vmem:[#allocation208_spill] sm:$0xff] %v6757_v1  ;;  %v2584_v1 = vmul.f32 %v6675_v36, %v6444_v24  ;;  %v2767_v36 = vmul.f32 %v6796_v6, %v6426_v13 }
 0x2f6   :  { %v6755_v34 = vpop.permute.xlu1 %2145  ;;  %2673 = vrot.lane.b32.xlu0 %v2659_v23, %s4478_s23  ;;  %v2739_v23 = vrot.slane %v2727_v18, 2  ;;  %v9777_v15 = vrot.slane %v6767_v31, 2  ;;  %v6804_v18 = vmul.f32 %v6796_v6, %v6528_v53 }
 0x2f7   :  { %9771 = vst [vmem:[#allocation207_spill] sm:$0xff] %v6755_v34 }
 0x2f8   :  { %2595 = vrot.lane.b32.xlu1 %v2582_v30, %s4476_s19  ;;  %v6775_v34 = vpop.permute.xlu0 %2305  ;;  %v6784_v30 = vmul.f32 %v6763_v57, %v6543_v11  ;;  %v9433_v55 = vrot.slane %v6804_v18, 2 }
 0x2f9   :  { %9774 = vst [vmem:[#allocation210_spill] sm:$0xff] %v6775_v34 }
 0x2fa   :  { %v6773_v4 = vpop.permute.xlu1 %2149  ;;  %2677 = vrot.lane.b32.xlu0 %v2661_v22, %s4478_s23  ;;  %v9432_v22 = vrot.slane %v6784_v30, 2 }
 0x2fb   :  { %9773 = vst [vmem:[#allocation209_spill] sm:$0xff] %v6773_v4  ;;  %v2730_v4 = vmul.f32 %v6763_v57, %v6444_v24 }
 0x2fc   :  { %2599 = vrot.lane.b32.xlu1 %v2584_v1, %s4476_s19  ;;  %v6792_v33 = vpop.permute.xlu0 %2309  ;;  %v2741_v1 = vsel %vm827_vm5, %v2739_v23, %v9777_v15  ;;  %v2620_v15 = vmul.f32 %v6709_v51, %v6528_v53 }
 0x2fd   :  { %9776 = vst [vmem:[#allocation212_spill] sm:$0xff] %v6792_v33 }
 0x2fe   :  { %v6790_v44 = vpop.permute.xlu1 %2185  ;;  %2749 = vrot.lane.b32.xlu0 %v2741_v1, %s4473_s13  ;;  %v2770_v1 = vmul.f32 %v6796_v6, %v6444_v24 }
 0x2ff   :  { %9775 = vst [vmem:[#allocation211_spill] sm:$0xff] %v6790_v44  ;;  %v2744_v44 = vrot.slane %v2730_v4, 2  ;;  %v2779_v4 = vrot.slane %v2767_v36, 2 }
 0x300   :  { %2603 = vrot.lane.b32.xlu1 %v2586_v46, %s4476_s19  ;;  %v6812_v26 = vpop.permute.xlu0 %2331  ;;  %v6822_v46 = vmul.f32 %v6796_v6, %v6543_v11 }
 0x301   :  { %9779 = vst [vmem:[#allocation214_spill] sm:$0xff] %v6812_v26  ;;  %v2746_v23 = vsel %vm827_vm5, %v2744_v44, %v9432_v22  ;;  %v2622_v44 = vmul.f32 %v6709_v51, %v6444_v24  ;;  %v6834_v22 = vstv %s4314_s30  ;;  %s7759_s30 = sld [smem:[#allocation3 + $0x57]] }
 0x302   :  { %v6810_v47 = vpop.permute.xlu1 %2189  ;;  %2753 = vrot.lane.b32.xlu0 %v2746_v23, %s4473_s13  ;;  %v9434_v23 = vrot.slane %v6822_v46, 2  ;;  %v6842_v36 = vmul.f32 %v6834_v22, %v6528_v53  ;;  %v2807_v63 = vmul.f32 %v6834_v22, %v6426_v13 }
 0x303   :  { %9778 = vst [vmem:[#allocation213_spill] sm:$0xff] %v6810_v47 }
 0x304   :  { %2633 = vrot.lane.b32.xlu1 %v2620_v15, %s4477_s21  ;;  %v6830_v25 = vpop.permute.xlu0 %2335  ;;  %v2781_v15 = vsel %vm827_vm5, %v2779_v4, %v9433_v55  ;;  %v2624_v4 = vmul.f32 %v6709_v51, %v6679_v5  ;;  %v9435_v48 = vrot.slane %v6842_v36, 2 }
 0x305   :  { %9781 = vst [vmem:[#allocation216_spill] sm:$0xff] %v6830_v25 }
 0x306   :  { %v6828_v47 = vpop.permute.xlu1 %2225  ;;  %2789 = vrot.lane.b32.xlu0 %v2781_v15, %s4474_s15  ;;  %v2810_v15 = vmul.f32 %v6834_v22, %v6444_v24 }
 0x307   :  { %9780 = vst [vmem:[#allocation215_spill] sm:$0xff] %v6828_v47  ;;  %v2784_v47 = vrot.slane %v2770_v1, 2  ;;  %v2819_v1 = vrot.slane %v2807_v63, 2  ;;  %v7848_v33 = vstv %s7759_s30 }
 0x308   :  { %2637 = vrot.lane.b32.xlu1 %v2622_v44, %s4477_s21  ;;  %v6850_v21 = vpop.permute.xlu0 %2357  ;;  %v6860_v44 = vmul.f32 %v6834_v22, %v6543_v11 }
 0x309   :  { %9783 = vst [vmem:[#allocation218_spill] sm:$0xff] %v6850_v21  ;;  %v2786_v55 = vsel %vm827_vm5, %v2784_v47, %v9434_v23  ;;  %v2658_v47 = vmul.f32 %v6741_v50, %v6528_v53  ;;  %v6872_v23 = vstv %s4315_s3  ;;  %s7789_s3 = sld [smem:[#allocation3 + $0x5c]] }
 0x30a   :  { %v6848_v49 = vpop.permute.xlu1 %2229  ;;  %2793 = vrot.lane.b32.xlu0 %v2786_v55, %s4474_s15  ;;  %v9436_v55 = vrot.slane %v6860_v44, 2  ;;  %v6880_v63 = vmul.f32 %v6872_v23, %v6528_v53  ;;  %v2847_v42 = vmul.f32 %v6872_v23, %v6426_v13 }
 0x30b   :  { %9782 = vst [vmem:[#allocation217_spill] sm:$0xff] %v6848_v49 }
 0x30c   :  { %2641 = vrot.lane.b32.xlu1 %v2624_v4, %s4477_s21  ;;  %v6868_v51 = vpop.permute.xlu0 %2361  ;;  %v2821_v4 = vsel %vm827_vm5, %v2819_v1, %v9435_v48  ;;  %v2660_v1 = vmul.f32 %v6741_v50, %v6444_v24 }
 0x30d   :  { %9785 = vst [vmem:[#allocation220_spill] sm:$0xff] %v6868_v51 }
 0x30e   :  { %v6866_v49 = vpop.permute.xlu1 %2265  ;;  %2829 = vrot.lane.b32.xlu0 %v2821_v4, %s4475_s17  ;;  %v2859_v4 = vrot.slane %v2847_v42, 2 }
 0x30f   :  { %9784 = vst [vmem:[#allocation219_spill] sm:$0xff] %v6866_v49  ;;  %v2824_v49 = vrot.slane %v2810_v15, 2  ;;  %v6900_v15 = vmul.f32 %v6872_v23, %v6543_v11 }
 0x310   :  { %2671 = vrot.lane.b32.xlu1 %v2658_v47, %s4478_s23  ;;  %v6888_v8 = vpop.permute.xlu0 %2383  ;;  %v2729_v47 = vmul.f32 %v6763_v57, %v6595_v29  ;;  %v2887_v57 = vmul.f32 %v6914_v43, %v6426_v13 }
 0x311   :  { %9787 = vst [vmem:[#allocation222_spill] sm:$0xff] %v6888_v8  ;;  %v2826_v48 = vsel %vm827_vm5, %v2824_v49, %v9436_v55  ;;  %v2662_v55 = vmul.f32 %v6741_v50, %v6679_v5  ;;  %v9437_v56 = vrot.slane %v6900_v15, 2  ;;  %v2966_v8 = vstv %s7750_s28 }
 0x312   :  { %v6886_v60 = vpop.permute.xlu1 %2269  ;;  %2833 = vrot.lane.b32.xlu0 %v2826_v48, %s4475_s17  ;;  %v2742_v42 = vrot.slane %v2729_v47, 2  ;;  %v2769_v47 = vmul.f32 %v6796_v6, %v6595_v29  ;;  %v2899_v7 = vrot.slane %v2887_v57, 2  ;;  %v2772_v57 = vmul.f32 %v6796_v6, %v6679_v5 }
 0x313   :  { %9786 = vst [vmem:[#allocation221_spill] sm:$0xff] %v6886_v60  ;;  %v2850_v60 = vmul.f32 %v6872_v23, %v6444_v24 }
 0x314   :  { %2675 = vrot.lane.b32.xlu1 %v2660_v1, %s4478_s23  ;;  %v6908_v49 = vpop.permute.xlu0 %2387  ;;  %v9790_v1 = vrot.slane %v6880_v63, 2  ;;  %v2787_v16 = vrot.slane %v2772_v57, 2 }
 0x315   :  { %9789 = vst [vmem:[#allocation224_spill] sm:$0xff] %v6908_v49  ;;  %v2864_v50 = vrot.slane %v2850_v60, 2 }
 0x316   :  { %v6906_v62 = vpop.permute.xlu1 %2307  ;;  %v2861_v48 = vsel %vm827_vm5, %v2859_v4, %v9790_v1  ;;  %v6936_v4 = vmul.f32 %v6914_v43, %v6543_v11  ;;  %v9793_v1 = vrot.slane %v6767_v31, 2 }
 0x317   :  { %9788 = vst [vmem:[#allocation223_spill] sm:$0xff] %v6906_v62  ;;  %2869 = vrot.lane.b32.xlu0 %v2861_v48, %s4476_s19  ;;  %v2866_v60 = vsel %vm827_vm5, %v2864_v50, %v9437_v56  ;;  %v2747_v48 = vrot.slane %v2732_v40, 2  ;;  %v6954_v50 = vstv %s4317_s4  ;;  %v9796_v40 = vrot.slane %v6784_v30, 2  ;;  %s7962_s4 = sld [smem:[#allocation3 + $0x58]] }
 0x318   :  { %2679 = vrot.lane.b32.xlu1 %v2662_v55, %s4478_s23  ;;  %v6930_v61 = vpop.permute.xlu0 %2409  ;;  %v2743_v55 = vsel %vm827_vm5, %v9793_v1, %v2742_v42  ;;  %v2782_v42 = vrot.slane %v2769_v47, 2  ;;  %v9439_v1 = vrot.slane %v6936_v4, 2  ;;  %v6966_v56 = vmul.f32 %v6954_v50, %v6528_v53 }
 0x319   :  { %9792 = vst [vmem:[#allocation226_spill] sm:$0xff] %v6930_v61  ;;  %v2904_v47 = vrot.slane %v2890_v59, 2  ;;  %v2927_v30 = vmul.f32 %v6954_v50, %v6426_v13  ;;  %v2809_v59 = vmul.f32 %v6834_v22, %v6595_v29 }
 0x31a   :  { %v6928_v10 = vpop.permute.xlu1 %2311 }
 0x31b   :  { %9791 = vst [vmem:[#allocation225_spill] sm:$0xff] %v6928_v10  ;;  %2873 = vrot.lane.b32.xlu0 %v2866_v60, %s4476_s19  ;;  %v2901_v60 = vsel %vm827_vm5, %v2899_v7, %v9438_v27  ;;  %v9799_v7 = vrot.slane %v6804_v18, 2  ;;  %v2906_v27 = vsel %vm827_vm5, %v2904_v47, %v9439_v1  ;;  %v2939_v18 = vrot.slane %v2927_v30, 2 }
 0x31c   :  { %2751 = vrot.lane.b32.xlu1 %v2743_v55, %s4473_s13  ;;  %v6951_v31 = vpop.permute.xlu0 %2413  ;;  %v2748_v55 = vsel %vm827_vm5, %v9796_v40, %v2747_v48  ;;  %v2812_v1 = vmul.f32 %v6834_v22, %v6679_v5  ;;  %v9803_v30 = vrot.slane %v6966_v56, 2  ;;  %v2822_v12 = vrot.slane %v2809_v59, 2 }
 0x31d   :  { %9795 = vst [vmem:[#allocation228_spill] sm:$0xff] %v6951_v31  ;;  %v2783_v6 = vsel %vm827_vm5, %v9799_v7, %v2782_v42  ;;  %v2930_v42 = vmul.f32 %v6954_v50, %v6444_v24  ;;  %v6993_v7 = vstv %s4319_s5  ;;  %s8051_s5 = sld [smem:[#allocation3 + $0x5e]] }
 0x31e   :  { %v6949_v45 = vpop.permute.xlu1 %2333  ;;  %v2941_v37 = vsel %vm827_vm5, %v2939_v18, %v9803_v30  ;;  %v3003_v39 = vmul.f32 %v6993_v7, %v6426_v13 }
 0x31f   :  { %9794 = vst [vmem:[#allocation227_spill] sm:$0xff] %v6949_v45  ;;  %2909 = vrot.lane.b32.xlu0 %v2901_v60, %s4477_s21  ;;  %v6987_v60 = vmul.f32 %v6954_v50, %v6543_v11  ;;  %v2944_v22 = vrot.slane %v2930_v42, 2  ;;  %v2849_v42 = vmul.f32 %v6872_v23, %v6595_v29 }
 0x320   :  { %2755 = vrot.lane.b32.xlu1 %v2748_v55, %s4473_s13  ;;  %v6974_v40 = vpop.permute.xlu0 %2435  ;;  %v7003_v55 = vmul.f32 %v6993_v7, %v6528_v53 }
 0x321   :  { %9798 = vst [vmem:[#allocation230_spill] sm:$0xff] %v6974_v40  ;;  %v9441_v20 = vrot.slane %v6987_v60, 2 }
 0x322   :  { %v6972_v48 = vpop.permute.xlu1 %2337 }
 0x323   :  { %9797 = vst [vmem:[#allocation229_spill] sm:$0xff] %v6972_v48  ;;  %2913 = vrot.lane.b32.xlu0 %v2906_v27, %s4477_s21  ;;  %v2946_v18 = vsel %vm827_vm5, %v2944_v22, %v9441_v20  ;;  %v7040_v22 = vmul.f32 %v6993_v7, %v6595_v29 }
 0x324   :  { %2791 = vrot.lane.b32.xlu1 %v2783_v6, %s4474_s15  ;;  %v6997_v47 = vpop.permute.xlu0 %2439  ;;  %v9802_v6 = vrot.slane %v6822_v46, 2 }
 0x325   :  { %9801 = vst [vmem:[#allocation232_spill] sm:$0xff] %v6997_v47 }
 0x326   :  { %v6995_v57 = vpop.permute.xlu1 %2359  ;;  %v2788_v27 = vsel %vm827_vm5, %v9802_v6, %v2787_v16  ;;  %v2827_v16 = vrot.slane %v2812_v1, 2  ;;  %v9805_v6 = vrot.slane %v6842_v36, 2 }
 0x327   :  { %9800 = vst [vmem:[#allocation231_spill] sm:$0xff] %v6995_v57  ;;  %2949 = vrot.lane.b32.xlu0 %v2941_v37, %s4478_s23  ;;  %v9440_v37 = vrot.slane %v7003_v55, 2 }
 0x328   :  { %2795 = vrot.lane.b32.xlu1 %v2788_v27, %s4474_s15  ;;  %v7018_v46 = vpop.permute.xlu0 %2479  ;;  %v2823_v59 = vsel %vm827_vm5, %v9805_v6, %v2822_v12  ;;  %v3015_v27 = vrot.slane %v3003_v39, 2  ;;  %v9807_v12 = vrot.slane %v6860_v44, 2  ;;  %v2852_v39 = vmul.f32 %v6872_v23, %v6679_v5 }
 0x329   :  { %v7055_v44 = vmul.f32 %v6993_v7, %v6543_v11  ;;  %v2889_v23 = vmul.f32 %v6914_v43, %v6595_v29 }
 0x32a   :  { %v7016_v38 = vpop.permute.xlu1 %2363  ;;  %v2828_v36 = vsel %vm827_vm5, %v9807_v12, %v2827_v16  ;;  %v3017_v6 = vsel %vm827_vm5, %v3015_v27, %v9440_v37  ;;  %v7064_v27 = vstv %s4320_s6  ;;  %v9809_v37 = vrot.slane %v6880_v63, 2  ;;  %s8057_s6 = sld [smem:[#allocation3 + $0x4d]] }
 0x32b   :  { %9804 = vst [vmem:[#allocation233_spill] sm:$0xff] %v7016_v38  ;;  %2953 = vrot.lane.b32.xlu0 %v2946_v18, %s4478_s23  ;;  %v7049_v18 = vmul.f32 %v6993_v7, %v6679_v5  ;;  %v7072_v19 = vmul.f32 %v7064_v27, %v6528_v53  ;;  %v9443_v28 = vrot.slane %v7055_v44, 2  ;;  %v3051_v63 = vmul.f32 %v7064_v27, %v6426_v13 }
 0x32c   :  { %2831 = vrot.lane.b32.xlu1 %v2823_v59, %s4475_s17  ;;  %v7033_v30 = vpop.permute.xlu0 %2483  ;;  %v2862_v59 = vrot.slane %v2849_v42, 2  ;;  %v9442_v42 = vrot.slane %v7040_v22, 2 }
 0x32d   :  { %v9444_v35 = vrot.slane %v7072_v19, 2 }
 0x32e   :  { %v7031_v1 = vpop.permute.xlu1 %2385 }
 0x32f   :  { %9806 = vst [vmem:[#allocation234_spill] sm:$0xff] %v7031_v1  ;;  %3025 = vrot.lane.b32.xlu0 %v3017_v6, %s4473_s13  ;;  %v2867_v6 = vrot.slane %v2852_v39, 2  ;;  %v9811_v39 = vrot.slane %v6900_v15, 2 }
 0x330   :  { %2835 = vrot.lane.b32.xlu1 %v2828_v36, %s4475_s17  ;;  %v7059_v12 = vpop.permute.xlu0 %2487  ;;  %v2863_v36 = vsel %vm827_vm5, %v9809_v37, %v2862_v59  ;;  %v2902_v59 = vrot.slane %v2889_v23, 2  ;;  %v3063_v23 = vrot.slane %v3051_v63, 2  ;;  %v7116_v63 = vmul.f32 %v7064_v27, %v6679_v5 }
 0x331   :  { %v2868_v20 = vsel %vm827_vm5, %v9811_v39, %v2867_v6  ;;  %v7104_v6 = vmul.f32 %v7064_v27, %v6595_v29  ;;  %v2929_v39 = vmul.f32 %v6954_v50, %v6595_v29 }
 0x332   :  { %v7057_v16 = vpop.permute.xlu1 %2389 }
 0x333   :  { %9808 = vst [vmem:[#allocation235_spill] sm:$0xff] %v7057_v16  ;;  %3029 = vrot.lane.b32.xlu0 %v9442_v42, %s4473_s13 }
 0x334   :  { %2871 = vrot.lane.b32.xlu1 %v2863_v36, %s4476_s19  ;;  %v7083_v37 = vpop.permute.xlu0 %2517  ;;  %v9812_v36 = vrot.slane %v7049_v18, 2 }
 0x336   :  { %v7081_v14 = vpop.permute.xlu1 %2411  ;;  %v3024_v42 = vsel %vm827_vm5, %v9443_v28, %v9812_v36  ;;  %v9814_v36 = vrot.slane %v6922_v52, 2  ;;  %v7122_v28 = vmul.f32 %v7064_v27, %v6543_v11 }
 0x337   :  { %9810 = vst [vmem:[#allocation236_spill] sm:$0xff] %v7081_v14  ;;  %3033 = vrot.lane.b32.xlu0 %v3024_v42, %s4473_s13  ;;  %v2907_v42 = vrot.slane %v2892_v2, 2  ;;  %v7129_v2 = vstv %s4321_s7  ;;  %s8181_s7 = sld [smem:[#allocation3 + $0x59]] }
 0x338   :  { %2875 = vrot.lane.b32.xlu1 %v2868_v20, %s4476_s19  ;;  %v7100_v15 = vpop.permute.xlu0 %2521  ;;  %v2903_v43 = vsel %vm827_vm5, %v9814_v36, %v2902_v59  ;;  %v3065_v20 = vsel %vm827_vm5, %v3063_v23, %v9444_v35  ;;  %v9445_v36 = vrot.slane %v7104_v6, 2  ;;  %v2942_v23 = vrot.slane %v2929_v39, 2 }
 0x339   :  { %v9816_v35 = vrot.slane %v6936_v4, 2  ;;  %v7139_v32 = vmul.f32 %v7129_v2, %v6528_v53  ;;  %v9447_v39 = vrot.slane %v7122_v28, 2 }
 0x33a   :  { %v7098_v54 = vpop.permute.xlu1 %2415 }
 0x33b   :  { %9813 = vst [vmem:[#allocation237_spill] sm:$0xff] %v7098_v54  ;;  %3073 = vrot.lane.b32.xlu0 %v3065_v20, %s4474_s15  ;;  %v2908_v41 = vsel %vm827_vm5, %v9816_v35, %v2907_v42  ;;  %v2932_v20 = vmul.f32 %v6954_v50, %v6679_v5  ;;  %v3099_v35 = vmul.f32 %v7129_v2, %v6426_v13  ;;  %v9818_v50 = vrot.slane %v6966_v56, 2 }
 0x33c   :  { %2911 = vrot.lane.b32.xlu1 %v2903_v43, %s4477_s21  ;;  %v7126_v59 = vpop.permute.xlu0 %2525  ;;  %v9446_v9 = vrot.slane %v7139_v32, 2  ;;  %v7169_v56 = vmul.f32 %v7129_v2, %v6595_v29 }
 0x33d   :  { %v2943_v43 = vsel %vm827_vm5, %v9818_v50, %v2942_v23  ;;  %v2947_v17 = vrot.slane %v2932_v20, 2  ;;  %v3111_v3 = vrot.slane %v3099_v35, 2  ;;  %v9821_v23 = vrot.slane %v6987_v60, 2 }
 0x33e   :  { %v7124_v52 = vpop.permute.xlu1 %2437  ;;  %v7187_v60 = vmul.f32 %v7129_v2, %v6543_v11 }
 0x33f   :  { %9815 = vst [vmem:[#allocation238_spill] sm:$0xff] %v7124_v52  ;;  %3077 = vrot.lane.b32.xlu0 %v9445_v36, %s4474_s15  ;;  %v2948_v50 = vsel %vm827_vm5, %v9821_v23, %v2947_v17  ;;  %v3113_v20 = vsel %vm827_vm5, %v3111_v3, %v9446_v9  ;;  %v9448_v3 = vrot.slane %v7169_v56, 2  ;;  %v9823_v23 = vrot.slane %v7040_v22, 2 }
 0x340   :  { %2915 = vrot.lane.b32.xlu1 %v2908_v41, %s4477_s21  ;;  %v7150_v42 = vpop.permute.xlu0 %2555  ;;  %v9819_v41 = vrot.slane %v7116_v63, 2 }
 0x342   :  { %v7148_v4 = vpop.permute.xlu1 %2441  ;;  %v3072_v36 = vsel %vm827_vm5, %v9447_v39, %v9819_v41  ;;  %v7194_v41 = vstv %s4322_s8  ;;  %s8359_s8 = sld [smem:[#allocation3 + $0x5a]] }
 0x343   :  { %9817 = vst [vmem:[#allocation239_spill] sm:$0xff] %v7148_v4  ;;  %3081 = vrot.lane.b32.xlu0 %v3072_v36, %s4474_s15  ;;  %v7179_v36 = vmul.f32 %v7129_v2, %v6679_v5  ;;  %v7204_v9 = vmul.f32 %v7194_v41, %v6528_v53  ;;  %v9450_v4 = vrot.slane %v7187_v60, 2 }
 0x344   :  { %2951 = vrot.lane.b32.xlu1 %v2943_v43, %s4478_s23  ;;  %v7165_v58 = vpop.permute.xlu0 %2559  ;;  %v3006_v43 = vmul.f32 %v6993_v7, %v6444_v24 }
 0x346   :  { %v7163_v0 = vpop.permute.xlu1 %2481  ;;  %v3020_v39 = vrot.slane %v3006_v43, 2 }
 0x347   :  { %9820 = vst [vmem:[#allocation240_spill] sm:$0xff] %v7163_v0  ;;  %3121 = vrot.lane.b32.xlu0 %v3113_v20, %s4475_s17 }
 0x348   :  { %2955 = vrot.lane.b32.xlu1 %v2948_v50, %s4478_s23  ;;  %v7191_v35 = vpop.permute.xlu0 %2563  ;;  %v9824_v50 = vrot.slane %v7003_v55, 2  ;;  %v3147_v55 = vmul.f32 %v7194_v41, %v6426_v13 }
 0x34a   :  { %v7189_v17 = vpop.permute.xlu1 %2485  ;;  %v3019_v20 = vsel %vm827_vm5, %v9824_v50, %v9823_v23  ;;  %v9826_v50 = vrot.slane %v7055_v44, 2  ;;  %v3159_v54 = vrot.slane %v3147_v55, 2  ;;  %v7234_v44 = vmul.f32 %v7194_v41, %v6595_v29 }
 0x34b   :  { %9822 = vst [vmem:[#allocation241_spill] sm:$0xff] %v7189_v17  ;;  %3125 = vrot.lane.b32.xlu0 %v9448_v3, %s4475_s17  ;;  %v9449_v3 = vrot.slane %v7204_v9, 2  ;;  %v3054_v55 = vmul.f32 %v7064_v27, %v6444_v24 }
 0x34c   :  { %3027 = vrot.lane.b32.xlu1 %v3019_v20, %s4473_s13  ;;  %v7215_v23 = vpop.permute.xlu0 %2593  ;;  %v3022_v7 = vsel %vm827_vm5, %v3020_v39, %v9826_v50  ;;  %v9827_v20 = vrot.slane %v7179_v36, 2  ;;  %v7241_v50 = vmul.f32 %v7194_v41, %v6679_v5 }
 0x34d   :  { %v3161_v39 = vsel %vm827_vm5, %v3159_v54, %v9449_v3  ;;  %v9451_v3 = vrot.slane %v7234_v44, 2  ;;  %v3068_v38 = vrot.slane %v3054_v55, 2 }
 0x34e   :  { %v7213_v22 = vpop.permute.xlu1 %2489  ;;  %v3120_v43 = vsel %vm827_vm5, %v9450_v4, %v9827_v20  ;;  %v7251_v20 = vmul.f32 %v7194_v41, %v6543_v11  ;;  %v7258_v4 = vstv %s4323_s9  ;;  %s8492_s9 = sld [smem:[#allocation3 + $0x61]] }
 0x34f   :  { %9825 = vst [vmem:[#allocation242_spill] sm:$0xff] %v7213_v22  ;;  %3129 = vrot.lane.b32.xlu0 %v3120_v43, %s4475_s17  ;;  %v7268_v14 = vmul.f32 %v7258_v4, %v6528_v53 }
 0x350   :  { %3031 = vrot.lane.b32.xlu1 %v3022_v7, %s4473_s13  ;;  %v7230_v16 = vpop.permute.xlu0 %2597  ;;  %v9829_v7 = vrot.slane %v7049_v18, 2  ;;  %v9831_v18 = vrot.slane %v7104_v6, 2  ;;  %v9453_v1 = vrot.slane %v7251_v20, 2 }
 0x352   :  { %v7228_v52 = vpop.permute.xlu1 %2519 }
 0x353   :  { %9828 = vst [vmem:[#allocation243_spill] sm:$0xff] %v7228_v52  ;;  %3169 = vrot.lane.b32.xlu0 %v3161_v39, %s4476_s19  ;;  %v7434_v52 = vstv %s4327_s12  ;;  %s4255_s12 = sld [smem:[#allocation3 + $0x7]] }
 0x354   :  { %3035 = vrot.lane.b32.xlu1 %v9829_v7, %s4473_s13  ;;  %v7255_v54 = vpop.permute.xlu0 %2601  ;;  %v9832_v7 = vrot.slane %v7072_v19, 2  ;;  %v3195_v19 = vmul.f32 %v7258_v4, %v6426_v13 }
 0x356   :  { %v7253_v43 = vpop.permute.xlu1 %2523  ;;  %v3067_v39 = vsel %vm827_vm5, %v9832_v7, %v9831_v18  ;;  %v9834_v7 = vrot.slane %v7122_v28, 2  ;;  %v3207_v13 = vrot.slane %v3195_v19, 2  ;;  %v7298_v28 = vmul.f32 %v7258_v4, %v6595_v29 }
 0x357   :  { %9830 = vst [vmem:[#allocation244_spill] sm:$0xff] %v7253_v43  ;;  %3173 = vrot.lane.b32.xlu0 %v9451_v3, %s4476_s19  ;;  %v9452_v3 = vrot.slane %v7268_v14, 2  ;;  %v3102_v19 = vmul.f32 %v7129_v2, %v6444_v24  ;;  %v9843_v24 = vrot.slane %v7187_v60, 2 }
 0x358   :  { %3075 = vrot.lane.b32.xlu1 %v3067_v39, %s4474_s15  ;;  %v7279_v18 = vpop.permute.xlu0 %2631  ;;  %v3070_v27 = vsel %vm827_vm5, %v3068_v38, %v9834_v7  ;;  %v9835_v39 = vrot.slane %v7241_v50, 2  ;;  %v7305_v7 = vmul.f32 %v7258_v4, %v6679_v5 }
 0x359   :  { %v3209_v38 = vsel %vm827_vm5, %v3207_v13, %v9452_v3  ;;  %v9454_v3 = vrot.slane %v7298_v28, 2  ;;  %v3116_v10 = vrot.slane %v3102_v19, 2 }
 0x35a   :  { %v7277_v6 = vpop.permute.xlu1 %2527  ;;  %v3168_v55 = vsel %vm827_vm5, %v9453_v1, %v9835_v39  ;;  %v7315_v39 = vmul.f32 %v7258_v4, %v6543_v11  ;;  %v7322_v1 = vstv %s4324_s10  ;;  %v9844_v62 = vrot.slane %v7305_v7, 2  ;;  %s8505_s10 = sld [smem:[#allocation3 + $0x54]] }
 0x35b   :  { %9833 = vst [vmem:[#allocation245_spill] sm:$0xff] %v7277_v6  ;;  %3177 = vrot.lane.b32.xlu0 %v3168_v55, %s4476_s19  ;;  %v7332_v2 = vmul.f32 %v7322_v1, %v6528_v53 }
 0x35c   :  { %3079 = vrot.lane.b32.xlu1 %v3070_v27, %s4474_s15  ;;  %v7294_v57 = vpop.permute.xlu0 %2635  ;;  %v9838_v27 = vrot.slane %v7116_v63, 2  ;;  %v9840_v63 = vrot.slane %v7169_v56, 2  ;;  %v9456_v45 = vrot.slane %v7315_v39, 2  ;;  %v7339_v56 = vld [vmem:[#allocation2 + $0x30] sm:$0xff] }
 0x35d   :  { %9837 = vst [vmem:[#allocation247_spill] sm:$0xff] %v7294_v57  ;;  %v2967_v21 = vmul.f32 %v7339_v56, %v2966_v8 }
 0x35e   :  { %v7292_v48 = vpop.permute.xlu1 %2557  ;;  %v3216_v19 = vsel %vm827_vm5, %v9456_v45, %v9844_v62  ;;  %v7371_v62 = vmul.f32 %v7322_v1, %v6679_v5  ;;  %v7390_v45 = vstv %s4326_s11  ;;  %s4269_s11 = sld [smem:[#allocation3 + $0x15]] }
 0x35f   :  { %9836 = vst [vmem:[#allocation246_spill] sm:$0xff] %v7292_v48  ;;  %3217 = vrot.lane.b32.xlu0 %v3209_v38, %s4477_s21 }
 0x360   :  { %3083 = vrot.lane.b32.xlu1 %v9838_v27, %s4474_s15  ;;  %v7319_v13 = vpop.permute.xlu0 %2639  ;;  %v9841_v27 = vrot.slane %v7139_v32, 2  ;;  %v3243_v32 = vmul.f32 %v7339_v56, %v7322_v1 }
 0x362   :  { %v7317_v55 = vpop.permute.xlu1 %2561  ;;  %v3115_v38 = vsel %vm827_vm5, %v9841_v27, %v9840_v63 }
 0x363   :  { %9839 = vst [vmem:[#allocation248_spill] sm:$0xff] %v7317_v55  ;;  %3221 = vrot.lane.b32.xlu0 %v9454_v3, %s4477_s21  ;;  %v9455_v3 = vrot.slane %v7332_v2, 2  ;;  %v3255_v55 = vrot.slane %v3243_v32, 2  ;;  %v7377_v32 = vld [vmem:[#allocation2 + $0x48] sm:$0xff] }
 0x364   :  { %3123 = vrot.lane.b32.xlu1 %v3115_v38, %s4475_s17  ;;  %v7345_v27 = vpop.permute.xlu0 %2669  ;;  %v3118_v38 = vsel %vm827_vm5, %v3116_v10, %v9843_v24  ;;  %v7364_v10 = vmul.f32 %v7322_v1, %v6595_v29  ;;  %v9847_v24 = vrot.slane %v7179_v36, 2  ;;  %v3150_v29 = vmul.f32 %v7377_v32, %v7194_v41 }
 0x365   :  { %v3257_v60 = vsel %vm827_vm5, %v3255_v55, %v9455_v3  ;;  %v9849_v36 = vrot.slane %v7234_v44, 2 }
 0x366   :  { %v7343_v63 = vpop.permute.xlu1 %2565  ;;  %v9457_v3 = vrot.slane %v7364_v10, 2 }
 0x367   :  { %9842 = vst [vmem:[#allocation249_spill] sm:$0xff] %v7343_v63  ;;  %3225 = vrot.lane.b32.xlu0 %v3216_v19, %s4477_s21  ;;  %v7424_v63 = vmul.f32 %v7390_v45, %v6543_v11 }
 0x368   :  { %3127 = vrot.lane.b32.xlu1 %v3118_v38, %s4475_s17  ;;  %v7360_v48 = vpop.permute.xlu0 %2673  ;;  %v7383_v38 = vmul.f32 %v7322_v1, %v6543_v11 }
 0x369   :  { %9846 = vst [vmem:[#allocation251_spill] sm:$0xff] %v7360_v48 }
 0x36a   :  { %v7358_v43 = vpop.permute.xlu1 %2595  ;;  %v9458_v17 = vrot.slane %v7383_v38, 2 }
 0x36b   :  { %9845 = vst [vmem:[#allocation250_spill] sm:$0xff] %v7358_v43  ;;  %3265 = vrot.lane.b32.xlu0 %v3257_v60, %s4478_s23  ;;  %v9850_v60 = vrot.slane %v7204_v9, 2  ;;  %v7400_v43 = vmul.f32 %v7390_v45, %v6528_v53  ;;  %v3323_v9 = vmul.f32 %v7339_v56, %v7390_v45 }
 0x36c   :  { %3131 = vrot.lane.b32.xlu1 %v9847_v24, %s4475_s17  ;;  %v7387_v19 = vpop.permute.xlu0 %2677 }
 0x36d   :  { %v3163_v24 = vsel %vm827_vm5, %v9850_v60, %v9849_v36  ;;  %v9853_v60 = vrot.slane %v7251_v20, 2  ;;  %v3326_v20 = vmul.f32 %v7377_v32, %v7390_v45 }
 0x36e   :  { %v7385_v55 = vpop.permute.xlu1 %2599 }
 0x36f   :  { %9848 = vst [vmem:[#allocation252_spill] sm:$0xff] %v7385_v55  ;;  %3269 = vrot.lane.b32.xlu0 %v9457_v3, %s4478_s23  ;;  %v3164_v55 = vrot.slane %v3150_v29, 2  ;;  %v9459_v29 = vrot.slane %v7400_v43, 4 }
 0x370   :  { %3171 = vrot.lane.b32.xlu1 %v3163_v24, %s4476_s19  ;;  %v7411_v36 = vpop.permute.xlu0 %2749  ;;  %v9854_v24 = vrot.slane %v7371_v62, 2 }
 0x371   :  { %9852 = vst [vmem:[#allocation254_spill] sm:$0xff] %v7411_v36  ;;  %v3166_v41 = vsel %vm827_vm5, %v3164_v55, %v9853_v60 }
 0x372   :  { %v7409_v44 = vpop.permute.xlu1 %2603  ;;  %v3264_v3 = vsel %vm827_vm5, %v9458_v17, %v9854_v24  ;;  %v3198_v17 = vmul.f32 %v7377_v32, %v7258_v4  ;;  %v9861_v24 = vrot.slane %v7268_v14, 2  ;;  %v7465_v4 = vld [vmem:[#allocation2 + $0x50] sm:$0xff] }
 0x373   :  { %9851 = vst [vmem:[#allocation253_spill] sm:$0xff] %v7409_v44  ;;  %3273 = vrot.lane.b32.xlu0 %v3264_v3, %s4478_s23  ;;  %v3335_v44 = vrot.slane %v3323_v9, 4  ;;  %v7442_v3 = vmul.f32 %v7434_v52, %v6528_v53  ;;  %v3340_v9 = vrot.slane %v3326_v20, 4  ;;  %v9860_v53 = vrot.slane %v7298_v28, 2 }
 0x374   :  { %3175 = vrot.lane.b32.xlu1 %v3166_v41, %s4476_s19  ;;  %v7432_v60 = vpop.permute.xlu0 %2753  ;;  %v9857_v41 = vrot.slane %v7241_v50, 2  ;;  %v3212_v28 = vrot.slane %v3198_v17, 2 }
 0x375   :  { %9856 = vst [vmem:[#allocation256_spill] sm:$0xff] %v7432_v60  ;;  %v3337_v11 = vsel %vm45_vm0, %v3335_v44, %v9459_v29  ;;  %v3211_v50 = vsel %vm827_vm5, %v9861_v24, %v9860_v53  ;;  %v7469_v60 = vmul.f32 %v7465_v4, %v7434_v52  ;;  %v3366_v24 = vmul.f32 %v7377_v32, %v7434_v52 }
 0x376   :  { %v7430_v55 = vpop.permute.xlu1 %2633 }
 0x377   :  { %9855 = vst [vmem:[#allocation255_spill] sm:$0xff] %v7430_v55  ;;  %3345 = vrot.lane.b32.xlu0 %v3337_v11, %s4473_s13  ;;  %v3363_v55 = vmul.f32 %v7339_v56, %v7434_v52  ;;  %v9865_v11 = vrot.slane %v7315_v39, 2  ;;  %v9460_v17 = vrot.slane %v7469_v60, 4 }
 0x378   :  { %3179 = vrot.lane.b32.xlu1 %v9857_v41, %s4476_s19  ;;  %v7454_v29 = vpop.permute.xlu0 %2789  ;;  %v9862_v41 = vrot.slane %v7424_v63, 4 }
 0x379   :  { %9859 = vst [vmem:[#allocation258_spill] sm:$0xff] %v7454_v29  ;;  %v3375_v14 = vrot.slane %v3363_v55, 4  ;;  %v7488_v55 = vld [vmem:[#allocation2 + $0x38] sm:$0xff] }
 0x37a   :  { %v7452_v44 = vpop.permute.xlu1 %2637  ;;  %v3342_v20 = vsel %vm45_vm0, %v3340_v9, %v9862_v41  ;;  %v7479_v41 = vstv %s4328_s14  ;;  %s4276_s14 = sld [smem:[#allocation3 + $0x1c]] }
 0x37b   :  { %9858 = vst [vmem:[#allocation257_spill] sm:$0xff] %v7452_v44  ;;  %3349 = vrot.lane.b32.xlu0 %v3342_v20, %s4473_s13  ;;  %v3214_v44 = vsel %vm827_vm5, %v3212_v28, %v9865_v11  ;;  %v3403_v39 = vmul.f32 %v7339_v56, %v7479_v41  ;;  %v7508_v29 = vmul.f32 %v7465_v4, %v7479_v41 }
 0x37c   :  { %3219 = vrot.lane.b32.xlu1 %v3211_v50, %s4477_s21  ;;  %v7477_v9 = vpop.permute.xlu0 %2793  ;;  %v9866_v50 = vrot.slane %v7442_v3, 4 }
 0x37d   :  { %9864 = vst [vmem:[#allocation260_spill] sm:$0xff] %v7477_v9  ;;  %v3380_v9 = vrot.slane %v3366_v24, 4  ;;  %v3415_v24 = vrot.slane %v3403_v39, 4 }
 0x37e   :  { %v7475_v53 = vpop.permute.xlu1 %2641  ;;  %v3377_v20 = vsel %vm45_vm0, %v3375_v14, %v9866_v50  ;;  %v7522_v50 = vstv %s4329_s16  ;;  %s4283_s16 = sld [smem:[#allocation3 + $0x23]] }
 0x37f   :  { %9863 = vst [vmem:[#allocation259_spill] sm:$0xff] %v7475_v53  ;;  %v7492_v53 = vmul.f32 %v7488_v55, %v7479_v41  ;;  %3385 = vrot.lane.b32.xlu0 %v3377_v20, %s4474_s15  ;;  %v3382_v14 = vsel %vm45_vm0, %v3380_v9, %v9460_v17  ;;  %v3246_v20 = vmul.f32 %v7377_v32, %v7322_v1 }
 0x380   :  { %3223 = vrot.lane.b32.xlu1 %v3214_v44, %s4477_s21  ;;  %v7500_v28 = vpop.permute.xlu0 %2829  ;;  %v9869_v44 = vrot.slane %v7305_v7, 2  ;;  %v9873_v7 = vrot.slane %v7332_v2, 2  ;;  %v3443_v2 = vmul.f32 %v7339_v56, %v7522_v50 }
 0x381   :  { %9868 = vst [vmem:[#allocation262_spill] sm:$0xff] %v7500_v28  ;;  %v9872_v28 = vrot.slane %v7364_v10, 2  ;;  %v9874_v39 = vrot.slane %v7492_v53, 4 }
 0x382   :  { %v7498_v11 = vpop.permute.xlu1 %2671 }
 0x383   :  { %9867 = vst [vmem:[#allocation261_spill] sm:$0xff] %v7498_v11  ;;  %3389 = vrot.lane.b32.xlu0 %v3382_v14, %s4474_s15  ;;  %v3406_v11 = vmul.f32 %v7377_v32, %v7479_v41  ;;  %v3259_v14 = vsel %vm827_vm5, %v9873_v7, %v9872_v28  ;;  %v3417_v1 = vsel %vm45_vm0, %v3415_v24, %v9874_v39  ;;  %v7545_v24 = vld [vmem:[#allocation2 + $0x40] sm:$0x3f] }
 0x384   :  { %3227 = vrot.lane.b32.xlu1 %v9869_v44, %s4477_s21  ;;  %v7520_v17 = vpop.permute.xlu0 %2833  ;;  %v3325_v39 = vmul.f32 %v7545_v24, %v7390_v45  ;;  %v9877_v44 = vrot.slane %v7383_v38, 2  ;;  %v3446_v38 = vmul.f32 %v7377_v32, %v7522_v50 }
 0x385   :  { %9871 = vst [vmem:[#allocation264_spill] sm:$0xff] %v7520_v17  ;;  %v3260_v17 = vrot.slane %v3246_v20, 2  ;;  %v3420_v10 = vrot.slane %v3406_v11, 4 }
 0x386   :  { %v7518_v9 = vpop.permute.xlu1 %2675 }
 0x387   :  { %9870 = vst [vmem:[#allocation263_spill] sm:$0xff] %v7518_v9  ;;  %v7535_v9 = vmul.f32 %v7488_v55, %v7522_v50  ;;  %3425 = vrot.lane.b32.xlu0 %v3417_v1, %s4475_s17  ;;  %v9878_v1 = vrot.slane %v7508_v29, 4 }
 0x388   :  { %3267 = vrot.lane.b32.xlu1 %v3259_v14, %s4478_s23  ;;  %v3262_v14 = vsel %vm827_vm5, %v3260_v17, %v9877_v44  ;;  %v3338_v44 = vrot.slane %v3325_v39, 4 }
 0x389   :  { %v7543_v7 = vpop.permute.xlu0 %2869  ;;  %v3422_v11 = vsel %vm45_vm0, %v3420_v10, %v9878_v1  ;;  %v9461_v20 = vrot.slane %v7535_v9, 4  ;;  %v3328_v10 = vmul.f32 %v7390_v45, %v6679_v5  ;;  %v7570_v1 = vstv %s4330_s18  ;;  %s4290_s18 = sld [smem:[#allocation3 + $0x2a]] }
 0x38a   :  { %v7541_v28 = vpop.permute.xlu1 %2679  ;;  %9876 = vst [vmem:[#allocation266_spill] sm:$0xff] %v7543_v7  ;;  %v3455_v7 = vrot.slane %v3443_v2, 4  ;;  %v3460_v45 = vrot.slane %v3446_v38, 4  ;;  %v3483_v39 = vmul.f32 %v7339_v56, %v7570_v1  ;;  %v3365_v38 = vmul.f32 %v7545_v24, %v7434_v52 }
 0x38b   :  { %9875 = vst [vmem:[#allocation265_spill] sm:$0xff] %v7541_v28  ;;  %v7558_v28 = vmul.f32 %v7465_v4, %v7522_v50  ;;  %3429 = vrot.lane.b32.xlu0 %v3422_v11, %s4475_s17  ;;  %v7578_v11 = vmul.f32 %v7488_v55, %v7570_v1  ;;  %v3343_v2 = vrot.slane %v3328_v10, 4  ;;  %v3485_v22 = vmul.f32 %v7545_v24, %v7570_v1 }
 0x38c   :  { %3271 = vrot.lane.b32.xlu1 %v3262_v14, %s4478_s23  ;;  %v3457_v14 = vsel %vm45_vm0, %v3455_v7, %v9461_v20  ;;  %v9884_v7 = vrot.slane %v7400_v43, 4  ;;  %v3495_v43 = vrot.slane %v3483_v39, 4 }
 0x38d   :  { %v7566_v17 = vpop.permute.xlu0 %2873  ;;  %v9885_v0 = vrot.slane %v7558_v28, 4 }
 0x38e   :  { %v7564_v36 = vpop.permute.xlu1 %2751  ;;  %9880 = vst [vmem:[#allocation268_spill] sm:$0xff] %v7566_v17  ;;  %v3339_v20 = vsel %vm45_vm0, %v9884_v7, %v3338_v44  ;;  %v3486_v44 = vmul.f32 %v7377_v32, %v7570_v1 }
 0x38f   :  { %9879 = vst [vmem:[#allocation267_spill] sm:$0xff] %v7564_v36  ;;  %v9881_v36 = vrot.slane %v7371_v62, 2  ;;  %3465 = vrot.lane.b32.xlu0 %v3457_v14, %s4476_s19  ;;  %v3462_v62 = vsel %vm45_vm0, %v3460_v45, %v9885_v0  ;;  %v7601_v14 = vmul.f32 %v7465_v4, %v7570_v1  ;;  %v9888_v45 = vrot.slane %v7424_v63, 4 }
 0x390   :  { %v3500_v63 = vrot.slane %v3486_v44, 4  ;;  %v7658_v44 = vstv %s4333_s22 }
 0x391   :  { %3275 = vrot.lane.b32.xlu1 %v9881_v36, %s4478_s23  ;;  %v7588_v6 = vpop.permute.xlu0 %2909  ;;  %v3344_v7 = vsel %vm45_vm0, %v9888_v45, %v3343_v2  ;;  %v3368_v36 = vmul.f32 %v7434_v52, %v6679_v5  ;;  %v9892_v45 = vrot.slane %v7442_v3, 4 }
 0x392   :  { %v7586_v17 = vpop.permute.xlu1 %2755  ;;  %9883 = vst [vmem:[#allocation270_spill] sm:$0xff] %v7588_v6  ;;  %v9462_v6 = vrot.slane %v7601_v14, 4 }
 0x393   :  { %9882 = vst [vmem:[#allocation269_spill] sm:$0xff] %v7586_v17  ;;  %3469 = vrot.lane.b32.xlu0 %v3462_v62, %s4476_s19  ;;  %v7616_v17 = vstv %s4331_s20  ;;  %v3378_v62 = vrot.slane %v3365_v38, 4  ;;  %v3405_v38 = vmul.f32 %v7545_v24, %v7479_v41 }
 0x394   :  { %v3523_v5 = vmul.f32 %v7339_v56, %v7616_v17  ;;  %v3526_v3 = vmul.f32 %v7377_v32, %v7616_v17 }
 0x395   :  { %3347 = vrot.lane.b32.xlu1 %v3339_v20, %s4473_s13  ;;  %v7609_v0 = vpop.permute.xlu0 %2913  ;;  %v9889_v20 = vrot.slane %v7578_v11, 4 }
 0x396   :  { %v7607_v10 = vpop.permute.xlu1 %2791  ;;  %9887 = vst [vmem:[#allocation272_spill] sm:$0xff] %v7609_v0 }
 0x397   :  { %9886 = vst [vmem:[#allocation271_spill] sm:$0xff] %v7607_v10  ;;  %v3497_v39 = vsel %vm45_vm0, %v3495_v43, %v9889_v20  ;;  %v7624_v10 = vmul.f32 %v7488_v55, %v7616_v17  ;;  %v3383_v43 = vrot.slane %v3368_v36, 4  ;;  %v3379_v20 = vsel %vm45_vm0, %v9892_v45, %v3378_v62 }
 0x398   :  { %3505 = vrot.lane.b32.xlu0 %v3497_v39, %s4477_s21  ;;  %v7645_v39 = vmul.f32 %v7465_v4, %v7616_v17  ;;  %v3535_v36 = vrot.slane %v3523_v5, 4 }
 0x399   :  { %3351 = vrot.lane.b32.xlu1 %v3344_v7, %s4473_s13  ;;  %v7632_v2 = vpop.permute.xlu0 %2949  ;;  %v3502_v7 = vsel %vm45_vm0, %v3500_v63, %v9462_v6  ;;  %v9895_v63 = vrot.slane %v7469_v60, 4  ;;  %v3418_v6 = vrot.slane %v3405_v38, 4  ;;  %v9896_v0 = vrot.slane %v7624_v10, 4 }
 0x39a   :  { %v7630_v52 = vpop.permute.xlu1 %2795  ;;  %9891 = vst [vmem:[#allocation274_spill] sm:$0xff] %v7632_v2  ;;  %v9463_v5 = vrot.slane %v7645_v39, 4  ;;  %v3540_v60 = vrot.slane %v3526_v3, 4 }
 0x39b   :  { %9890 = vst [vmem:[#allocation273_spill] sm:$0xff] %v7630_v52  ;;  %v3384_v45 = vsel %vm45_vm0, %v9895_v63, %v3383_v43 }
 0x39c   :  { %3509 = vrot.lane.b32.xlu0 %v3502_v7, %s4477_s21  ;;  %v7664_v7 = vld [vmem:[#allocation2 + $0x58] sm:$0x3f]  ;;  %v3542_v63 = vsel %vm45_vm0, %v3540_v60, %v9463_v5  ;;  %v9902_v60 = vrot.slane %v7508_v29, 4  ;;  %v7717_v29 = vstv %s4311_s25 }
 0x39d   :  { %3387 = vrot.lane.b32.xlu1 %v3379_v20, %s4474_s15  ;;  %v7653_v62 = vpop.permute.xlu0 %2953  ;;  %v3537_v20 = vsel %vm45_vm0, %v3535_v36, %v9896_v0  ;;  %v3599_v0 = vmul.f32 %v7339_v56, %v7658_v44 }
 0x39e   :  { %v7651_v52 = vpop.permute.xlu1 %2831  ;;  %9894 = vst [vmem:[#allocation276_spill] sm:$0xff] %v7653_v62  ;;  %v7670_v62 = vmul.f32 %v7488_v55, %v7658_v44 }
 0x39f   :  { %9893 = vst [vmem:[#allocation275_spill] sm:$0xff] %v7651_v52  ;;  %v3408_v52 = vmul.f32 %v7664_v7, %v7479_v41  ;;  %v9899_v41 = vrot.slane %v7492_v53, 4 }
 0x3a0   :  { %3545 = vrot.lane.b32.xlu0 %v3537_v20, %s4478_s23  ;;  %v9464_v3 = vrot.slane %v7670_v62, 4  ;;  %v3445_v20 = vmul.f32 %v7545_v24, %v7522_v50 }
 0x3a1   :  { %3391 = vrot.lane.b32.xlu1 %v3384_v45, %s4474_s15  ;;  %v7678_v38 = vpop.permute.xlu0 %3025  ;;  %v3419_v36 = vsel %vm45_vm0, %v9899_v41, %v3418_v6  ;;  %v3423_v45 = vrot.slane %v3408_v52, 4  ;;  %v7697_v41 = vmul.f32 %v7545_v24, %v7658_v44  ;;  %v3448_v52 = vmul.f32 %v7664_v7, %v7522_v50 }
 0x3a2   :  { %v7676_v43 = vpop.permute.xlu1 %2835  ;;  %9898 = vst [vmem:[#allocation278_spill] sm:$0xff] %v7678_v38  ;;  %v7715_v50 = vmul.f32 %v7465_v4, %v7658_v44 }
 0x3a3   :  { %9897 = vst [vmem:[#allocation277_spill] sm:$0xff] %v7676_v43  ;;  %v3611_v43 = vrot.slane %v3599_v0, 4  ;;  %v3424_v5 = vsel %vm45_vm0, %v9902_v60, %v3423_v45  ;;  %v3458_v0 = vrot.slane %v3445_v20, 4  ;;  %v3463_v20 = vrot.slane %v3448_v52, 4 }
 0x3a4   :  { %3549 = vrot.lane.b32.xlu0 %v3542_v63, %s4478_s23  ;;  %v7709_v63 = vmul.f32 %v7664_v7, %v7658_v44  ;;  %v2452_v52 = vstv %s4304_s27  ;;  %v9911_v49 = vrot.slane %v7715_v50, 4 }
 0x3a5   :  { %3427 = vrot.lane.b32.xlu1 %v3419_v36, %s4475_s17  ;;  %v7693_v6 = vpop.permute.xlu0 %3029  ;;  %v3613_v36 = vsel %vm45_vm0, %v3611_v43, %v9464_v3  ;;  %v9465_v43 = vrot.slane %v7697_v41, 4  ;;  %v7724_v3 = vstv %s4334_s26  ;;  %v7821_v25 = vmul.f32 %v7465_v4, %v2452_v52 }
 0x3a6   :  { %v7691_v53 = vpop.permute.xlu1 %2871  ;;  %9901 = vst [vmem:[#allocation280_spill] sm:$0xff] %v7693_v6  ;;  %v7734_v47 = vmul.f32 %v7488_v55, %v7724_v3  ;;  %v3498_v6 = vrot.slane %v3485_v22, 4  ;;  %v7786_v22 = vmul.f32 %v7488_v55, %v7717_v29 }
 0x3a7   :  { %9900 = vst [vmem:[#allocation279_spill] sm:$0xff] %v7691_v53  ;;  %v2286_v53 = vstv %s4297_s24 }
 0x3a8   :  { %3621 = vrot.lane.b32.xlu0 %v3613_v36, %s4473_s13  ;;  %v7748_v2 = vmul.f32 %v7339_v56, %v2286_v53  ;;  %v7770_v61 = vmul.f32 %v7377_v32, %v2286_v53  ;;  %v7795_v51 = vmul.f32 %v7465_v4, %v2286_v53 }
 0x3a9   :  { %3431 = vrot.lane.b32.xlu1 %v3424_v5, %s4475_s17  ;;  %v7721_v60 = vpop.permute.xlu0 %3033  ;;  %v9905_v5 = vrot.slane %v7535_v9, 4  ;;  %v7742_v9 = vmul.f32 %v7339_v56, %v7717_v29 }
 0x3aa   :  { %v7719_v45 = vpop.permute.xlu1 %2875  ;;  %9904 = vst [vmem:[#allocation282_spill] sm:$0xff] %v7721_v60  ;;  %9906 = vst [vmem:[#allocation283_spill] sm:$0xff] %v7748_v2 }
 0x3ab   :  { %9903 = vst [vmem:[#allocation281_spill] sm:$0xff] %v7719_v45  ;;  %v3459_v36 = vsel %vm45_vm0, %v9905_v5, %v3458_v0  ;;  %v3647_v5 = vmul.f32 %v7339_v56, %v7724_v3  ;;  %v9910_v0 = vrot.slane %v7709_v63, 4  ;;  %9912 = vst [vmem:[#allocation286_spill] sm:$0xff] %v7770_v61 }
 0x3ac   :  { %3625 = vrot.lane.b32.xlu0 %v9465_v43, %s4473_s13  ;;  %v9909_v43 = vrot.slane %v7558_v28, 4  ;;  %v7773_v28 = vmul.f32 %v7339_v56, %v2452_v52  ;;  %9915 = vst [vmem:[#allocation289_spill] sm:$0xff] %v7795_v51 }
 0x3ad   :  { %3467 = vrot.lane.b32.xlu1 %v3459_v36, %s4476_s19  ;;  %v7754_v45 = vpop.permute.xlu0 %3073  ;;  %v3620_v40 = vsel %vm45_vm0, %v9911_v49, %v9910_v0  ;;  %v7782_v49 = vmul.f32 %v7377_v32, %v2452_v52  ;;  %v7792_v0 = vmul.f32 %v7488_v55, %v2286_v53 }
 0x3ae   :  { %v7752_v36 = vpop.permute.xlu1 %2911  ;;  %9908 = vst [vmem:[#allocation285_spill] sm:$0xff] %v7754_v45  ;;  %v3464_v31 = vsel %vm45_vm0, %v9909_v43, %v3463_v20  ;;  %v7777_v43 = vmul.f32 %v7377_v32, %v7717_v29  ;;  %v3659_v20 = vrot.slane %v3647_v5, 4  ;;  %v9918_v5 = vrot.slane %v7578_v11, 4 }
 0x3af   :  { %9907 = vst [vmem:[#allocation284_spill] sm:$0xff] %v7752_v36  ;;  %v3488_v36 = vmul.f32 %v7664_v7, %v7570_v1  ;;  %9913 = vst [vmem:[#allocation287_spill] sm:$0xff] %v7782_v49  ;;  %v2707_v1 = vrot.slane %v7742_v9, 2  ;;  %v7803_v49 = vmul.f32 %v7545_v24, %v7724_v3  ;;  %v3525_v9 = vmul.f32 %v7545_v24, %v7616_v17 }
 0x3b0   :  { %3629 = vrot.lane.b32.xlu0 %v3620_v40, %s4473_s13  ;;  %9914 = vst [vmem:[#allocation288_spill] sm:$0xff] %v7792_v0  ;;  %v3499_v45 = vsel %vm45_vm0, %v9918_v5, %v3498_v6  ;;  %v9919_v0 = vrot.slane %v7734_v47, 4  ;;  %v7825_v11 = vmul.f32 %v7465_v4, %v7717_v29  ;;  %v2712_v6 = vrot.slane %v7777_v43, 2 }
 0x3b1   :  { %3471 = vrot.lane.b32.xlu1 %v3464_v31, %s4476_s19  ;;  %v7799_v40 = vpop.permute.xlu0 %3077  ;;  %v3503_v51 = vrot.slane %v3488_v36, 4  ;;  %v7831_v36 = vmul.f32 %v7488_v55, %v2452_v52  ;;  %v7839_v5 = vmul.f32 %v7465_v4, %v7724_v3 }
 0x3b2   :  { %v7797_v31 = vpop.permute.xlu1 %2915  ;;  %9917 = vst [vmem:[#allocation291_spill] sm:$0xff] %v7799_v40  ;;  %v3661_v53 = vsel %vm45_vm0, %v3659_v20, %v9919_v0  ;;  %v7818_v40 = vmul.f32 %v7545_v24, %v2452_v52  ;;  %9920 = vst [vmem:[#allocation292_spill] sm:$0xff] %v7825_v11  ;;  %v7834_v20 = vmul.f32 %v7664_v7, %v2452_v52  ;;  %v2708_v0 = vrot.slane %v7786_v22, 2 }
 0x3b3   :  { %9916 = vst [vmem:[#allocation290_spill] sm:$0xff] %v7797_v31  ;;  %v7815_v31 = vmul.f32 %v7664_v7, %v7724_v3  ;;  %9921 = vst [vmem:[#allocation293_spill] sm:$0xff] %v7831_v36  ;;  %v9925_v52 = vrot.slane %v7601_v14, 4  ;;  %v7865_v14 = vmul.f32 %v7545_v24, %v2966_v8  ;;  %v7878_v22 = vstv %s7789_s3 }
 0x3b4   :  { %3669 = vrot.lane.b32.xlu0 %v3661_v53, %s4474_s15  ;;  %9922 = vst [vmem:[#allocation294_spill] sm:$0xff] %v7834_v20  ;;  %v3538_v53 = vrot.slane %v3525_v9, 4  ;;  %v3528_v20 = vmul.f32 %v7664_v7, %v7616_v17  ;;  %v2697_v9 = vmul.f32 %v7545_v24, %v7717_v29  ;;  %v7872_v17 = vmul.f32 %v7664_v7, %v2966_v8 }
 0x3b5   :  { %3507 = vrot.lane.b32.xlu1 %v3499_v45, %s4477_s21  ;;  %v7844_v43 = vpop.permute.xlu0 %3081  ;;  %v3504_v36 = vsel %vm45_vm0, %v9925_v52, %v3503_v51  ;;  %v2968_v45 = vmul.f32 %v7488_v55, %v2966_v8  ;;  %v9926_v51 = vrot.slane %v7803_v49, 4  ;;  %v7881_v61 = vsel %vm827_vm5, %v2707_v1, %v2708_v0 }
 0x3b6   :  { %v7842_v38 = vpop.permute.xlu1 %2951  ;;  %9924 = vst [vmem:[#allocation296_spill] sm:$0xff] %v7844_v43  ;;  %v3695_v43 = vmul.f32 %v7339_v56, %v7848_v33  ;;  %9927 = vst [vmem:[#allocation297_spill] sm:$0xff] %v7881_v61  ;;  %v7891_v48 = vmul.f32 %v7488_v55, %v7878_v22  ;;  %v9930_v52 = vrot.slane %v7624_v10, 4  ;;  %v9931_v57 = vrot.slane %v7815_v31, 4 }
 0x3b7   :  { %9923 = vst [vmem:[#allocation295_spill] sm:$0xff] %v7842_v38  ;;  %v7858_v38 = vmul.f32 %v7488_v55, %v7848_v33  ;;  %v9932_v1 = vrot.slane %v7839_v5, 4  ;;  %v3543_v34 = vrot.slane %v3528_v20, 4  ;;  %v2970_v10 = vmul.f32 %v7377_v32, %v2966_v8 }
 0x3b8   :  { %3673 = vrot.lane.b32.xlu0 %v9926_v51, %s4474_s15  ;;  %v3539_v26 = vsel %vm45_vm0, %v9930_v52, %v3538_v53  ;;  %v3919_v53 = vmul.f32 %v7339_v56, %v7878_v22  ;;  %v9933_v52 = vrot.slane %v7825_v11, 2 }
 0x3b9   :  { %3511 = vrot.lane.b32.xlu1 %v3504_v36, %s4477_s21  ;;  %v2971_v36 = vmul.f32 %v7465_v4, %v2966_v8  ;;  %v7887_v51 = vpop.permute.xlu0 %3121  ;;  %v3668_v61 = vsel %vm45_vm0, %v9932_v1, %v9931_v57  ;;  %v9467_v1 = vrot.slane %v7872_v17, 2  ;;  %v9935_v20 = vrot.slane %v7858_v38, 4 }
 0x3ba   :  { %v7885_v60 = vpop.permute.xlu1 %2955  ;;  %9929 = vst [vmem:[#allocation299_spill] sm:$0xff] %v7887_v51  ;;  %v2980_v51 = vrot.slane %v2968_v45, 2  ;;  %v7912_v57 = vsel %vm827_vm5, %v2712_v6, %v9933_v52  ;;  %v9934_v6 = vrot.slane %v7645_v39, 4  ;;  %v3931_v39 = vrot.slane %v3919_v53, 6 }
 0x3bb   :  { %9928 = vst [vmem:[#allocation298_spill] sm:$0xff] %v7885_v60  ;;  %v2710_v60 = vrot.slane %v2697_v9, 2  ;;  %v3707_v9 = vrot.slane %v3695_v43, 4  ;;  %v2985_v45 = vrot.slane %v2971_v36, 2 }
 0x3bc   :  { %3677 = vrot.lane.b32.xlu0 %v3668_v61, %s4474_s15  ;;  %v2979_v61 = vrot.slane %v2967_v21, 2  ;;  %v3544_v52 = vsel %vm45_vm0, %v9934_v6, %v3543_v34  ;;  %v7935_v21 = vmul.f32 %v7465_v4, %v7878_v22  ;;  %v2984_v34 = vrot.slane %v2970_v10, 2 }
 0x3bd   :  { %3547 = vrot.lane.b32.xlu1 %v3539_v26, %s4478_s23  ;;  %v7918_v26 = vmul.f32 %v7664_v7, %v7717_v29  ;;  %v7922_v2 = vpop.permute.xlu0 %3125  ;;  %v3709_v43 = vsel %vm45_vm0, %v3707_v9, %v9935_v20  ;;  %v3602_v29 = vmul.f32 %v7377_v32, %v7658_v44  ;;  %v7938_v36 = vsel %vm827_vm5, %v2708_v0, %v2710_v60 }
 0x3be   :  { %v7920_v8 = vpop.permute.xlu1 %3027  ;;  %9936 = vst [vmem:[#allocation300_spill] sm:$0xff] %v7938_v36  ;;  %v7941_v11 = vsel %vm827_vm5, %v2979_v61, %v2980_v51  ;;  %v7948_v44 = vsel %vm827_vm5, %v2985_v45, %v9467_v1  ;;  %v9937_v20 = vrot.slane %v7865_v14, 2  ;;  %v9938_v0 = vrot.slane %v7697_v41, 4 }
 0x3bf   :  { %v9939_v9 = vrot.slane %v7670_v62, 4  ;;  %v3922_v10 = vmul.f32 %v7377_v32, %v7878_v22  ;;  %v7965_v53 = vsel %vm827_vm5, %v2984_v34, %v2985_v45  ;;  %v3697_v62 = vmul.f32 %v7545_v24, %v7848_v33 }
 0x3c0   :  { %3717 = vrot.lane.b32.xlu0 %v3709_v43, %s4475_s17  ;;  %v7953_v60 = vsel %vm827_vm5, %v2980_v51, %v9937_v20  ;;  %v9941_v51 = vrot.slane %v7891_v48, 6  ;;  %v7978_v43 = vmul.f32 %v7664_v7, %v7848_v33  ;;  %v2501_v20 = vadd.f32 %v7059_v12, %v7821_v25 }
 0x3c1   :  { %3551 = vrot.lane.b32.xlu1 %v3544_v52, %s4478_s23  ;;  %v3615_v61 = vsel %vm45_vm0, %v9939_v9, %v9938_v0  ;;  %v7969_v52 = vpop.permute.xlu0 %3129  ;;  %v3616_v45 = vrot.slane %v3602_v29, 4  ;;  %v7984_v0 = vstv %s7902_s1  ;;  %v9943_v9 = vrot.slane %v7734_v47, 4 }
 0x3c2   :  { %v7967_v6 = vpop.permute.xlu1 %3031  ;;  %v3933_v41 = vsel %vm2020_vm6, %v3931_v39, %v9941_v51  ;;  %v9942_v39 = vrot.slane %v7803_v49, 4  ;;  %v7995_v1 = vmul.f32 %v7465_v4, %v7848_v33  ;;  %v3650_v25 = vmul.f32 %v7377_v32, %v7724_v3 }
 0x3c3   :  { %9940 = vst [vmem:[#allocation301_spill] sm:$0xff] %v7967_v6  ;;  %v2497_v12 = vadd.f32 %v7018_v46, %v7773_v28  ;;  %v2539_v29 = vadd.f32 %v7126_v59, %v2501_v20  ;;  %v9468_v34 = vrot.slane %v7978_v43, 4  ;;  %v3959_v3 = vmul.f32 %v7339_v56, %v7984_v0  ;;  %v9977_v6 = vld [vmem:[#allocation291_spill] sm:$0xff] }
 0x3c4   :  { %3941 = vrot.lane.b32.xlu0 %v3933_v41, %s4473_s13  ;;  %v3663_v51 = vsel %vm45_vm0, %v9943_v9, %v9942_v39  ;;  %v3936_v41 = vrot.slane %v3922_v10, 6  ;;  %v3710_v9 = vrot.slane %v3697_v62, 4  ;;  %v8014_v46 = vmul.f32 %v7488_v55, %v7984_v0 }
 0x3c5   :  { %3623 = vrot.lane.b32.xlu1 %v3615_v61, %s4473_s13  ;;  %v9944_v61 = vrot.slane %v7715_v50, 4  ;;  %v8007_v39 = vpop.permute.xlu0 %3169  ;;  %v2535_v59 = vadd.f32 %v7083_v37, %v2497_v12  ;;  %v2577_v50 = vadd.f32 %v7191_v35, %v2539_v29  ;;  %v9945_v28 = vrot.slane %v7935_v21, 6 }
 0x3c6   :  { %v8005_v47 = vpop.permute.xlu1 %3035  ;;  %v8023_v62 = vmul.f32 %v7465_v4, %v7984_v0  ;;  %v9469_v20 = vrot.slane %v7995_v1, 4  ;;  %v3962_v37 = vmul.f32 %v7377_v32, %v7984_v0  ;;  %v3921_v35 = vmul.f32 %v7545_v24, %v7878_v22 }
 0x3c7   :  { %v3618_v49 = vsel %vm45_vm0, %v3616_v45, %v9944_v61  ;;  %v3938_v10 = vsel %vm2020_vm6, %v3936_v41, %v9945_v28  ;;  %v3664_v45 = vrot.slane %v3650_v25, 4  ;;  %v2499_v12 = vadd.f32 %v7033_v30, %v7818_v40 }
 0x3c8   :  { %3945 = vrot.lane.b32.xlu0 %v3938_v10, %s4473_s13  ;;  %v2573_v29 = vadd.f32 %v7150_v42, %v2535_v59  ;;  %v2615_v61 = vadd.f32 %v7255_v54, %v2577_v50  ;;  %v8037_v41 = vstv %s7962_s4  ;;  %v3716_v25 = vsel %vm45_vm0, %v9469_v20, %v9468_v34 }
 0x3c9   :  { %3627 = vrot.lane.b32.xlu1 %v3618_v49, %s4473_s13  ;;  %v8041_v28 = vpop.permute.xlu0 %3173  ;;  %v3971_v10 = vrot.slane %v3959_v3, 6  ;;  %v9471_v36 = vrot.slane %v8014_v46, 6  ;;  %v3924_v30 = vmul.f32 %v7664_v7, %v7878_v22  ;;  %v2537_v42 = vadd.f32 %v7100_v15, %v2499_v12 }
 0x3ca   :  { %v8039_v49 = vpop.permute.xlu1 %3075  ;;  %v2611_v54 = vadd.f32 %v7215_v23, %v2573_v29  ;;  %v2653_v40 = vadd.f32 %v7319_v13, %v2615_v61  ;;  %v9470_v59 = vrot.slane %v8023_v62, 6  ;;  %v9946_v3 = vrot.slane %v7709_v63, 4 }
 0x3cb   :  { %v3976_v50 = vrot.slane %v3962_v37, 6  ;;  %v3743_v22 = vmul.f32 %v7339_v56, %v8037_v41  ;;  %v8067_v15 = vmul.f32 %v7488_v55, %v8037_v41  ;;  %v3934_v23 = vrot.slane %v3921_v35, 6 }
 0x3cc   :  { %3721 = vrot.lane.b32.xlu0 %v3710_v9, %s4475_s17  ;;  %v2575_v13 = vadd.f32 %v7165_v58, %v2537_v42  ;;  %v2649_v12 = vadd.f32 %v7279_v18, %v2611_v54  ;;  %v2691_v29 = vadd.f32 %v7387_v19, %v2653_v40  ;;  %v8074_v63 = vmul.f32 %v7545_v24, %v8037_v41 }
 0x3cd   :  { %3631 = vrot.lane.b32.xlu1 %v9946_v3, %s4473_s13  ;;  %v3178_v37 = vpop.permute.xlu0 %3177  ;;  %v9948_v3 = vrot.slane %v7839_v5, 4  ;;  %v9949_v20 = vrot.slane %v7858_v38, 4  ;;  %v3939_v58 = vrot.slane %v3924_v30, 6  ;;  %v8088_v18 = vmul.f32 %v7664_v7, %v8037_v41 }
 0x3ce   :  { %v8076_v61 = vpop.permute.xlu1 %3079  ;;  %v2613_v19 = vadd.f32 %v7230_v16, %v2575_v13  ;;  %v2687_v42 = vadd.f32 %v7345_v27, %v2649_v12  ;;  %v3973_v5 = vsel %vm2020_vm6, %v3971_v10, %v9471_v36  ;;  %v3978_v38 = vsel %vm2020_vm6, %v3976_v50, %v9470_v59  ;;  %v9954_v10 = vld [vmem:[#allocation247_spill] sm:$0xff] }
 0x3cf   :  { %9947 = vst [vmem:[#allocation302_spill] sm:$0xff] %v8076_v61  ;;  %v3666_v34 = vsel %vm45_vm0, %v3664_v45, %v9948_v3  ;;  %v8084_v35 = vsel %vm45_vm0, %v9949_v20, %v3710_v9  ;;  %9950 = vst [vmem:[#allocation303_spill] sm:$0xff] %v8088_v18  ;;  %v9951_v45 = vld [vmem:[#allocation283_spill] sm:$0xff]  ;;  %v9952_v9 = vld [vmem:[#allocation210_spill] sm:$0xff]  ;;  %v3755_v30 = vrot.slane %v3743_v22, 4  ;;  %v9472_v16 = vrot.slane %v8067_v15, 4 }
 0x3d0   :  { %v2317_v20 = vadd.f32 %v9952_v9, %v9951_v45  ;;  %3725 = vrot.lane.b32.xlu0 %v3716_v25, %s4475_s17  ;;  %v8105_v27 = vmul.f32 %v7465_v4, %v8037_v41  ;;  %v2651_v54 = vadd.f32 %v9954_v10, %v2613_v19  ;;  %v2999_v40 = vadd.f32 %v7948_v44, %v2691_v29  ;;  %v9956_v25 = vld [vmem:[#allocation214_spill] sm:$0xff]  ;;  %v9976_v61 = vld [vmem:[#allocation224_spill] sm:$0xff] }
 0x3d1   :  { %3671 = vrot.lane.b32.xlu1 %v3663_v51, %s4474_s15  ;;  %v9955_v50 = vrot.slane %v7891_v48, 6  ;;  %v3218_v3 = vpop.permute.xlu0 %3217  ;;  %v9957_v45 = vrot.slane %v7935_v21, 6  ;;  %v9474_v19 = vrot.slane %v8088_v18, 4  ;;  %v8125_v44 = vstv %s8051_s5  ;;  %v9958_v48 = vld [vmem:[#allocation251_spill] sm:$0xff]  ;;  %v9959_v10 = vld [vmem:[#allocation282_spill] sm:$0xff] }
 0x3d2   :  { %9953 = vst [vmem:[#allocation283_spill] sm:$0xff] %v8105_v27  ;;  %v2343_v22 = vadd.f32 %v9956_v25, %v2317_v20  ;;  %v8116_v12 = vpop.permute.xlu1 %3083  ;;  %v2689_v29 = vadd.f32 %v9958_v48, %v2651_v54  ;;  %v8131_v59 = vstv %s8057_s6  ;;  %v9960_v20 = vld [vmem:[#allocation218_spill] sm:$0xff]  ;;  %v3757_v21 = vsel %vm45_vm0, %v3755_v30, %v9472_v16 }
 0x3d3   :  { %v8112_v13 = vsel %vm2020_vm6, %v9955_v50, %v3934_v23  ;;  %v8121_v9 = vsel %vm2020_vm6, %v9957_v45, %v3939_v58  ;;  %v2995_v23 = vadd.f32 %v7941_v11, %v2687_v42  ;;  %v3047_v50 = vadd.f32 %v9959_v10, %v2999_v40  ;;  %v9961_v11 = vld [vmem:[#allocation286_spill] sm:$0xff]  ;;  %v9962_v42 = vld [vmem:[#allocation212_spill] sm:$0xff] }
 0x3d4   :  { %v2369_v25 = vadd.f32 %v9960_v20, %v2343_v22  ;;  %3981 = vrot.lane.b32.xlu0 %v3973_v5, %s4474_s15  ;;  %v9475_v58 = vrot.slane %v8105_v27, 4  ;;  %v8142_v54 = vmul.f32 %v7488_v55, %v8125_v44  ;;  %v2319_v40 = vadd.f32 %v9962_v42, %v9961_v11  ;;  %v9963_v45 = vld [vmem:[#allocation278_spill] sm:$0xff]  ;;  %v9964_v22 = vld [vmem:[#allocation296_spill] sm:$0xff] }
 0x3d5   :  { %3675 = vrot.lane.b32.xlu1 %v3666_v34, %s4474_s15  ;;  %v3043_v48 = vadd.f32 %v9963_v45, %v2995_v23  ;;  %v3095_v10 = vadd.f32 %v9964_v22, %v3047_v50  ;;  %v3698_v34 = vmul.f32 %v7377_v32, %v7848_v33  ;;  %v9965_v5 = vld [vmem:[#allocation222_spill] sm:$0xff]  ;;  %v3222_v30 = vpop.permute.xlu0 %3221  ;;  %v3999_v23 = vmul.f32 %v7339_v56, %v8125_v44  ;;  %v9967_v11 = vld [vmem:[#allocation216_spill] sm:$0xff]  ;;  %v9969_v45 = vld [vmem:[#allocation285_spill] sm:$0xff] }
 0x3d6   :  { %v2395_v20 = vadd.f32 %v9965_v5, %v2369_v25  ;;  %v8151_v36 = vpop.permute.xlu1 %3123  ;;  %v8158_v16 = vsel %vm45_vm0, %v9475_v58, %v9474_v19  ;;  %v3291_v50 = vmul.f32 %v7339_v56, %v8131_v59  ;;  %v2345_v33 = vadd.f32 %v9967_v11, %v2319_v40  ;;  %v9970_v51 = vld [vmem:[#allocation226_spill] sm:$0xff] }
 0x3d7   :  { %9966 = vst [vmem:[#allocation210_spill] sm:$0xff] %v8151_v36  ;;  %v9968_v25 = vrot.slane %v7865_v14, 2  ;;  %v3091_v22 = vadd.f32 %v9969_v45, %v3043_v48  ;;  %v3143_v5 = vadd.f32 %v7969_v52, %v3095_v10  ;;  %v9971_v19 = vrot.slane %v7815_v31, 4  ;;  %v9972_v52 = vld [vmem:[#allocation220_spill] sm:$0xff]  ;;  %v9974_v10 = vld [vmem:[#allocation299_spill] sm:$0xff] }
 0x3d8   :  { %v2421_v18 = vadd.f32 %v9970_v51, %v2395_v20  ;;  %3985 = vrot.lane.b32.xlu0 %v3978_v38, %s4474_s15  ;;  %v8177_v40 = vmul.f32 %v7488_v55, %v8131_v59  ;;  %v4002_v14 = vmul.f32 %v7377_v32, %v8125_v44  ;;  %v9973_v51 = vld [vmem:[#allocation280_spill] sm:$0xff]  ;;  %v9975_v20 = vld [vmem:[#allocation230_spill] sm:$0xff]  ;;  %v3712_v45 = vrot.slane %v3698_v34, 4 }
 0x3d9   :  { %v2997_v42 = vadd.f32 %v9968_v25, %v2689_v29  ;;  %3679 = vrot.lane.b32.xlu1 %v9971_v19, %s4474_s15  ;;  %v2371_v29 = vadd.f32 %v9972_v52, %v2345_v33  ;;  %v3139_v31 = vadd.f32 %v9974_v10, %v3091_v22  ;;  %v3191_v19 = vadd.f32 %v3178_v37, %v3143_v5  ;;  %v3226_v25 = vpop.permute.xlu0 %3225  ;;  %v9979_v5 = vld [vmem:[#allocation228_spill] sm:$0xff]  ;;  %v9983_v10 = vld [vmem:[#allocation294_spill] sm:$0xff] }
 0x3da   :  { %v2447_v38 = vadd.f32 %v9975_v20, %v2421_v18  ;;  %v8187_v11 = vpop.permute.xlu1 %3127  ;;  %v4011_v58 = vrot.slane %v3999_v23, 6  ;;  %v8191_v27 = vmul.f32 %v7465_v4, %v8125_v44  ;;  %v9978_v37 = vrot.slane %v7995_v1, 4 }
 0x3db   :  { %v3045_v48 = vadd.f32 %v9973_v51, %v2997_v42  ;;  %v2397_v36 = vadd.f32 %v9976_v61, %v2371_v29  ;;  %v3187_v42 = vadd.f32 %v8007_v39, %v3139_v31  ;;  %v3239_v52 = vadd.f32 %v3226_v25, %v3191_v19  ;;  %v9984_v31 = vld [vmem:[#allocation242_spill] sm:$0xff]  ;;  %v9986_v25 = vld [vmem:[#allocation240_spill] sm:$0xff] }
 0x3dc   :  { %3765 = vrot.lane.b32.xlu0 %v3757_v21, %s4476_s19  ;;  %v3714_v18 = vsel %vm45_vm0, %v3712_v45, %v9978_v37  ;;  %v3303_v34 = vrot.slane %v3291_v50, 4  ;;  %v9477_v23 = vrot.slane %v8177_v40, 4  ;;  %v4016_v22 = vrot.slane %v4002_v14, 6  ;;  %v9988_v37 = vld [vmem:[#allocation245_spill] sm:$0xff] }
 0x3dd   :  { %v3093_v33 = vadd.f32 %v9977_v6, %v3045_v48  ;;  %3719 = vrot.lane.b32.xlu1 %v8084_v35, %s4475_s17  ;;  %v2423_v61 = vadd.f32 %v9979_v5, %v2397_v36  ;;  %v3235_v29 = vadd.f32 %v3218_v3, %v3187_v42  ;;  %v9980_v39 = vrot.slane %v8142_v54, 6  ;;  %v9981_v35 = vld [vmem:[#allocation297_spill] sm:$0xff]  ;;  %v3266_v1 = vpop.permute.xlu0 %3265 }
 0x3de   :  { %v2721_v21 = vadd.f32 %v9981_v35, %v2447_v38  ;;  %v8209_v48 = vpop.permute.xlu1 %3131  ;;  %v4017_v50 = vrot.slane %v8191_v27, 6  ;;  %v3294_v14 = vmul.f32 %v7377_v32, %v8131_v59  ;;  %v8216_v36 = vmul.f32 %v7465_v4, %v8131_v59  ;;  %v9985_v38 = vld [vmem:[#allocation293_spill] sm:$0xff] }
 0x3df   :  { %v3141_v6 = vadd.f32 %v7922_v2, %v3093_v33  ;;  %v4013_v51 = vsel %vm2020_vm6, %v4011_v58, %v9980_v39  ;;  %v9982_v2 = vld [vmem:[#allocation232_spill] sm:$0xff]  ;;  %v2502_v58 = vadd.f32 %v9984_v31, %v9983_v10  ;;  %v8222_v20 = vadd.f32 %v3266_v1, %v3235_v29  ;;  %v9990_v39 = vld [vmem:[#allocation243_spill] sm:$0xff] }
 0x3e0   :  { %v2449_v3 = vadd.f32 %v9982_v2, %v2423_v61  ;;  %v2498_v45 = vadd.f32 %v9986_v25, %v9985_v38  ;;  %v9987_v32 = vrot.slane %v8074_v63, 4  ;;  %v8234_v33 = vsel %vm45_vm0, %v3303_v34, %v9477_v23  ;;  %v9989_v61 = vld [vmem:[#allocation254_spill] sm:$0xff]  ;;  %v9991_v38 = vld [vmem:[#allocation249_spill] sm:$0xff] }
 0x3e1   :  { %v3189_v19 = vadd.f32 %v8041_v28, %v3141_v6  ;;  %3943 = vrot.lane.b32.xlu1 %v8112_v13, %s4473_s13  ;;  %v3961_v28 = vmul.f32 %v7545_v24, %v7984_v0  ;;  %v8239_v42 = vstv %s8181_s7  ;;  %v2540_v5 = vadd.f32 %v9988_v37, %v2502_v58  ;;  %v3270_v2 = vpop.permute.xlu0 %3269  ;;  %v9995_v37 = vld [vmem:[#allocation246_spill] sm:$0xff] }
 0x3e2   :  { %3769 = vrot.lane.b32.xlu0 %v9987_v32, %s4476_s19  ;;  %v2761_v6 = vadd.f32 %v9989_v61, %v2721_v21  ;;  %v3964_v13 = vmul.f32 %v7664_v7, %v7984_v0  ;;  %v2536_v35 = vadd.f32 %v9990_v39, %v2498_v45  ;;  %v8246_v1 = vpop.permute.xlu1 %3171  ;;  %v4018_v34 = vsel %vm2020_vm6, %v4016_v22, %v4017_v50  ;;  %v9993_v0 = vld [vmem:[#allocation287_spill] sm:$0xff]  ;;  %v9994_v45 = vld [vmem:[#allocation241_spill] sm:$0xff] }
 0x3e3   :  { %v3237_v29 = vadd.f32 %v3222_v30, %v3189_v19  ;;  %v3308_v10 = vrot.slane %v3294_v14, 4  ;;  %v9478_v31 = vrot.slane %v8216_v36, 4  ;;  %v2578_v58 = vadd.f32 %v9991_v38, %v2540_v5  ;;  %v9992_v30 = vld [vmem:[#allocation258_spill] sm:$0xff]  ;;  %v9997_v5 = vld [vmem:[#allocation256_spill] sm:$0xff] }
 0x3e4   :  { %v2723_v21 = vadd.f32 %v7912_v57, %v2449_v3  ;;  %v2801_v19 = vadd.f32 %v9992_v30, %v2761_v6  ;;  %v2500_v32 = vadd.f32 %v9994_v45, %v9993_v0  ;;  %v2574_v61 = vadd.f32 %v9995_v37, %v2536_v35  ;;  %v9996_v57 = vld [vmem:[#allocation253_spill] sm:$0xff] }
 0x3e5   :  { %v8255_v25 = vadd.f32 %v3270_v2, %v3237_v29  ;;  %3947 = vrot.lane.b32.xlu1 %v8121_v9, %s4473_s13  ;;  %v3974_v22 = vrot.slane %v3961_v28, 6  ;;  %v8266_v14 = vmul.f32 %v7488_v55, %v8239_v42  ;;  %v2616_v3 = vadd.f32 %v9996_v57, %v2578_v58  ;;  %v9998_v29 = vld [vmem:[#allocation262_spill] sm:$0xff]  ;;  %v9999_v2 = vld [vmem:[#allocation244_spill] sm:$0xff]  ;;  %s8281_s13 = sld [smem:[#allocation3 + $0x5f]]  ;;  %v10001_v58 = vld [vmem:[#allocation259_spill] sm:$0xff] }
 0x3e6   :  { %3773 = vrot.lane.b32.xlu0 %v8158_v16, %s4476_s19  ;;  %v2763_v6 = vadd.f32 %v9997_v5, %v2723_v21  ;;  %v2841_v39 = vadd.f32 %v9998_v29, %v2801_v19  ;;  %v3791_v35 = vmul.f32 %v7339_v56, %v8239_v42  ;;  %v2538_v38 = vadd.f32 %v9999_v2, %v2500_v32  ;;  %v10000_v9 = vld [vmem:[#allocation250_spill] sm:$0xff]  ;;  %v8275_v0 = vpop.permute.xlu1 %3175  ;;  %v3274_v16 = vpop.permute.xlu0 %3273  ;;  %v10002_v19 = vld [vmem:[#allocation260_spill] sm:$0xff] }
 0x3e7   :  { %v2612_v30 = vadd.f32 %v10000_v9, %v2574_v61  ;;  %v3979_v28 = vrot.slane %v3964_v13, 6  ;;  %v8279_v45 = vmul.f32 %v7545_v24, %v8239_v42  ;;  %v2654_v21 = vadd.f32 %v10001_v58, %v2616_v3  ;;  %v10003_v57 = vld [vmem:[#allocation266_spill] sm:$0xff]  ;;  %v10004_v32 = vld [vmem:[#allocation248_spill] sm:$0xff] }
 0x3e8   :  { %v2803_v37 = vadd.f32 %v10002_v19, %v2763_v6  ;;  %v2881_v56 = vadd.f32 %v10003_v57, %v2841_v39  ;;  %v8286_v5 = vadd.f32 %v3274_v16, %v3239_v52  ;;  %v2576_v61 = vadd.f32 %v10004_v32, %v2538_v38  ;;  %v10007_v52 = vld [vmem:[#allocation255_spill] sm:$0xff]  ;;  %v10008_v38 = vld [vmem:[#allocation264_spill] sm:$0xff] }
 0x3e9   :  { %3723 = vrot.lane.b32.xlu1 %v3714_v18, %s4475_s17  ;;  %v3804_v13 = vrot.slane %v8266_v14, 4  ;;  %v10005_v29 = vrot.slane %v8074_v63, 4  ;;  %v10006_v2 = vrot.slane %v8067_v15, 4  ;;  %v8301_v6 = vmul.f32 %v7465_v4, %v8239_v42  ;;  %v10009_v18 = vld [vmem:[#allocation265_spill] sm:$0xff]  ;;  %v10011_v19 = vld [vmem:[#allocation252_spill] sm:$0xff] }
 0x3ea   :  { %4021 = vrot.lane.b32.xlu0 %v4013_v51, %s4475_s17  ;;  %v2650_v39 = vadd.f32 %v10007_v52, %v2612_v30  ;;  %v2843_v9 = vadd.f32 %v10008_v38, %v2803_v37  ;;  %v2692_v16 = vadd.f32 %v10009_v18, %v2654_v21  ;;  %v10010_v51 = vld [vmem:[#allocation270_spill] sm:$0xff]  ;;  %v2614_v57 = vadd.f32 %v10011_v19, %v2576_v61  ;;  %v3180_v63 = vpop.permute.xlu1 %3179  ;;  %v3346_v32 = vpop.permute.xlu0 %3345  ;;  %v10013_v30 = vld [vmem:[#allocation261_spill] sm:$0xff]  ;;  %v10014_v37 = vld [vmem:[#allocation268_spill] sm:$0xff] }
 0x3eb   :  { %v8297_v3 = vsel %vm45_vm0, %v10006_v2, %v10005_v29  ;;  %v2921_v58 = vadd.f32 %v10010_v51, %v2881_v56  ;;  %v3310_v15 = vsel %vm45_vm0, %v3308_v10, %v9478_v31  ;;  %v10012_v29 = vrot.slane %v8014_v46, 6  ;;  %v10015_v21 = vld [vmem:[#allocation274_spill] sm:$0xff]  ;;  %v10017_v51 = vld [vmem:[#allocation288_spill] sm:$0xff]  ;;  %v10018_v19 = vld [vmem:[#allocation223_spill] sm:$0xff] }
 0x3ec   :  { %v3803_v2 = vrot.slane %v3791_v35, 4  ;;  %v2688_v52 = vadd.f32 %v10013_v30, %v2650_v39  ;;  %v2883_v38 = vadd.f32 %v10014_v37, %v2843_v9  ;;  %v10016_v56 = vrot.slane %v8023_v62, 6  ;;  %v10019_v10 = vld [vmem:[#allocation257_spill] sm:$0xff]  ;;  %v10021_v62 = vld [vmem:[#allocation272_spill] sm:$0xff]  ;;  %v10024_v30 = vld [vmem:[#allocation263_spill] sm:$0xff] }
 0x3ed   :  { %v3975_v4 = vsel %vm2020_vm6, %v10012_v29, %v3974_v22  ;;  %v2961_v18 = vadd.f32 %v10015_v21, %v2921_v58  ;;  %v2318_v23 = vadd.f32 %v10018_v19, %v10017_v51  ;;  %v2652_v31 = vadd.f32 %v10019_v10, %v2614_v57  ;;  %v10023_v29 = vld [vmem:[#allocation227_spill] sm:$0xff]  ;;  %v10026_v10 = vld [vmem:[#allocation289_spill] sm:$0xff] }
 0x3ee   :  { %v3980_v61 = vsel %vm2020_vm6, %v10016_v56, %v3979_v28  ;;  %v2715_v46 = vrot.slane %v7918_v26, 2  ;;  %v10020_v22 = vrot.slane %v7978_v43, 4  ;;  %4025 = vrot.lane.b32.xlu0 %v4018_v34, %s4475_s17  ;;  %v8330_v35 = vmul.f32 %v7664_v7, %v8239_v42  ;;  %v3220_v34 = vpop.permute.xlu1 %3219  ;;  %v3350_v21 = vpop.permute.xlu0 %3349 }
 0x3ef   :  { %v2923_v28 = vadd.f32 %v10021_v62, %v2883_v38  ;;  %v10022_v39 = vrot.slane %v7872_v17, 2  ;;  %v3805_v58 = vsel %vm45_vm0, %v3803_v2, %v3804_v13  ;;  %v3806_v57 = vrot.slane %v8279_v45, 4  ;;  %v10025_v38 = vld [vmem:[#allocation276_spill] sm:$0xff] }
 0x3f0   :  { %3727 = vrot.lane.b32.xlu1 %v10020_v22, %s4475_s17  ;;  %v2344_v43 = vadd.f32 %v10023_v29, %v2318_v23  ;;  %v2690_v37 = vadd.f32 %v10024_v30, %v2652_v31  ;;  %v3809_v56 = vrot.slane %v8301_v6, 4  ;;  %v8343_v51 = vstv %s8281_s13  ;;  %v10027_v22 = vld [vmem:[#allocation225_spill] sm:$0xff]  ;;  %v10028_v23 = vld [vmem:[#allocation231_spill] sm:$0xff] }
 0x3f1   :  { %v3000_v9 = vadd.f32 %v10022_v39, %v2692_v16  ;;  %v2963_v19 = vadd.f32 %v10025_v38, %v2923_v28  ;;  %v2996_v17 = vadd.f32 %v7953_v60, %v2688_v52  ;;  %v3317_v2 = vadd.f32 %v8234_v33, %v2961_v18  ;;  %v8355_v29 = vld [vmem:[#allocation2 + $0x48] sm:$0xff]  ;;  %v8363_v18 = vld [vmem:[#allocation2 + $0x30] sm:$0xff]  ;;  %v10029_v28 = vld [vmem:[#allocation229_spill] sm:$0xff] }
 0x3f2   :  { %v2320_v62 = vadd.f32 %v10027_v22, %v10026_v10  ;;  %v2370_v39 = vadd.f32 %v10028_v23, %v2344_v43  ;;  %3813 = vrot.lane.b32.xlu0 %v3805_v58, %s4477_s21  ;;  %v3811_v31 = vrot.slane %v8330_v35, 4  ;;  %v3746_v60 = vmul.f32 %v8355_v29, %v8037_v41  ;;  %v10030_v58 = vld [vmem:[#allocation234_spill] sm:$0xff]  ;;  %v3224_v38 = vpop.permute.xlu1 %3223  ;;  %v3386_v41 = vpop.permute.xlu0 %3385  ;;  %v10032_v22 = vld [vmem:[#allocation236_spill] sm:$0xff] }
 0x3f3   :  { %v3048_v16 = vadd.f32 %v8005_v47, %v3000_v9  ;;  %v3044_v47 = vadd.f32 %v7920_v8, %v2996_v17  ;;  %v3357_v52 = vadd.f32 %v3346_v32, %v3317_v2  ;;  %v2998_v30 = vadd.f32 %v7965_v53, %v2690_v37  ;;  %v8382_v37 = vld [vmem:[#allocation2 + $0x50] sm:$0xff] }
 0x3f4   :  { %3983 = vrot.lane.b32.xlu1 %v3975_v4, %s4474_s15  ;;  %v4039_v4 = vmul.f32 %v8363_v18, %v8343_v51  ;;  %v2346_v9 = vadd.f32 %v10029_v28, %v2320_v62  ;;  %v2396_v43 = vadd.f32 %v10030_v58, %v2370_v39  ;;  %v8372_v10 = vmul.f32 %v7488_v55, %v8343_v51 }
 0x3f5   :  { %v3096_v33 = vadd.f32 %v8116_v12, %v3048_v16  ;;  %v3092_v8 = vadd.f32 %v8039_v49, %v3044_v47  ;;  %v3319_v32 = vadd.f32 %v3310_v15, %v2963_v19  ;;  %v3397_v17 = vadd.f32 %v3386_v41, %v3357_v52  ;;  %v10031_v16 = vld [vmem:[#allocation233_spill] sm:$0xff]  ;;  %v10034_v15 = vld [vmem:[#allocation210_spill] sm:$0xff]  ;;  %v10035_v47 = vld [vmem:[#allocation235_spill] sm:$0xff] }
 0x3f6   :  { %v2372_v2 = vadd.f32 %v10031_v16, %v2346_v9  ;;  %v2422_v62 = vadd.f32 %v10032_v22, %v2396_v43  ;;  %3817 = vrot.lane.b32.xlu0 %v3806_v57, %s4477_s21  ;;  %v3760_v53 = vrot.slane %v3746_v60, 4  ;;  %v8386_v55 = vmul.f32 %v8382_v37, %v8343_v51  ;;  %v10033_v49 = vld [vmem:[#allocation301_spill] sm:$0xff]  ;;  %v3228_v28 = vpop.permute.xlu1 %3227  ;;  %v3390_v9 = vpop.permute.xlu0 %3389  ;;  %v10037_v43 = vld [vmem:[#allocation302_spill] sm:$0xff] }
 0x3f7   :  { %v3144_v12 = vadd.f32 %v8209_v48, %v3096_v33  ;;  %v3046_v48 = vadd.f32 %v10033_v49, %v2998_v30  ;;  %v3140_v19 = vadd.f32 %v10034_v15, %v3092_v8  ;;  %v3359_v39 = vadd.f32 %v3350_v21, %v3319_v32  ;;  %v10036_v33 = vld [vmem:[#allocation238_spill] sm:$0xff]  ;;  %v10039_v49 = vld [vmem:[#allocation283_spill] sm:$0xff]  ;;  %v10041_v15 = vld [vmem:[#allocation300_spill] sm:$0xff] }
 0x3f8   :  { %3987 = vrot.lane.b32.xlu1 %v3980_v61, %s4474_s15  ;;  %v2398_v61 = vadd.f32 %v10035_v47, %v2372_v2  ;;  %v2448_v52 = vadd.f32 %v10036_v33, %v2422_v62  ;;  %v3812_v60 = vsel %vm45_vm0, %v3809_v56, %v3811_v31  ;;  %v4052_v58 = vrot.slane %v8372_v10, 6  ;;  %v10038_v2 = vld [vmem:[#allocation237_spill] sm:$0xff]  ;;  %s8435_s15 = sld [smem:[#allocation3 + $0x60]] }
 0x3f9   :  { %v3192_v23 = vadd.f32 %v3180_v63, %v3144_v12  ;;  %v3094_v30 = vadd.f32 %v10037_v43, %v3046_v48  ;;  %v3188_v63 = vadd.f32 %v8246_v1, %v3140_v19  ;;  %v3399_v41 = vadd.f32 %v3390_v9, %v3359_v39  ;;  %v8420_v47 = vld [vmem:[#allocation2 + $0x38] sm:$0xff] }
 0x3fa   :  { %3821 = vrot.lane.b32.xlu0 %v3812_v60, %s4477_s21  ;;  %v4051_v8 = vrot.slane %v4039_v4, 6  ;;  %v4042_v12 = vmul.f32 %v8355_v29, %v8343_v51  ;;  %v4001_v32 = vmul.f32 %v7545_v24, %v8125_v44  ;;  %v8408_v16 = vstv %s8359_s8  ;;  %v3268_v4 = vpop.permute.xlu1 %3267  ;;  %v10043_v60 = vld [vmem:[#allocation267_spill] sm:$0xff] }
 0x3fb   :  { %v3240_v21 = vadd.f32 %v3228_v28, %v3192_v23  ;;  %v2424_v22 = vadd.f32 %v10038_v2, %v2398_v61  ;;  %v3142_v1 = vadd.f32 %v8187_v11, %v3094_v30  ;;  %v3236_v62 = vadd.f32 %v3220_v34, %v3188_v63  ;;  %v3426_v23 = vpop.permute.xlu0 %3425  ;;  %v10042_v34 = vld [vmem:[#allocation239_spill] sm:$0xff] }
 0x3fc   :  { %3767 = vrot.lane.b32.xlu1 %v8297_v3, %s4476_s19  ;;  %v10040_v48 = vrot.slane %v10039_v49, 4  ;;  %v2722_v19 = vadd.f32 %v10041_v15, %v2448_v52  ;;  %v4053_v39 = vsel %vm2020_vm6, %v4051_v8, %v4052_v58  ;;  %v4057_v24 = vrot.slane %v8386_v55, 6 }
 0x3fd   :  { %v8424_v11 = vmul.f32 %v8420_v47, %v8408_v16  ;;  %v2450_v61 = vadd.f32 %v10042_v34, %v2424_v22  ;;  %v8428_v33 = vadd.f32 %v3268_v4, %v3236_v62  ;;  %v3437_v52 = vadd.f32 %v3426_v23, %v3397_v17  ;;  %v10046_v62 = vld [vmem:[#allocation271_spill] sm:$0xff] }
 0x3fe   :  { %v3762_v3 = vsel %vm45_vm0, %v3760_v53, %v10040_v48  ;;  %v3190_v53 = vadd.f32 %v8275_v0, %v3142_v1  ;;  %4061 = vrot.lane.b32.xlu0 %v4053_v39, %s4476_s19  ;;  %v4056_v28 = vrot.slane %v4042_v12, 6  ;;  %v3839_v9 = vmul.f32 %v8363_v18, %v8408_v16  ;;  %v10044_v0 = vld [vmem:[#allocation292_spill] sm:$0xff]  ;;  %v3272_v2 = vpop.permute.xlu1 %3271  ;;  %v10050_v23 = vld [vmem:[#allocation275_spill] sm:$0xff] }
 0x3ff   :  { %v2762_v43 = vadd.f32 %v10043_v60, %v2722_v19  ;;  %v4014_v63 = vrot.slane %v4001_v32, 6  ;;  %v10045_v8 = vrot.slane %v10044_v0, 2  ;;  %v3430_v22 = vpop.permute.xlu0 %3429  ;;  %v3852_v1 = vrot.slane %v8424_v11, 4  ;;  %v10049_v19 = vld [vmem:[#allocation269_spill] sm:$0xff]  ;;  %v10053_v0 = vld [vmem:[#allocation279_spill] sm:$0xff] }
 0x400   :  { %3771 = vrot.lane.b32.xlu1 %v3762_v3, %s4476_s19  ;;  %v3238_v30 = vadd.f32 %v3224_v38, %v3190_v53  ;;  %v4058_v12 = vsel %vm2020_vm6, %v4056_v28, %v4057_v24  ;;  %v4004_v38 = vmul.f32 %v7664_v7, %v8125_v44  ;;  %v3439_v26 = vadd.f32 %v3430_v22, %v3399_v41  ;;  %v10047_v3 = vld [vmem:[#allocation303_spill] sm:$0xff] }
 0x401   :  { %v2716_v17 = vsel %vm827_vm5, %v10045_v8, %v2715_v46  ;;  %v2802_v49 = vadd.f32 %v10046_v62, %v2762_v43  ;;  %v10048_v46 = vrot.slane %v10047_v3, 4  ;;  %v3851_v15 = vrot.slane %v3839_v9, 4 }
 0x402   :  { %v2724_v32 = vadd.f32 %v2716_v17, %v2450_v61  ;;  %v8449_v48 = vadd.f32 %v3272_v2, %v3238_v30  ;;  %4065 = vrot.lane.b32.xlu0 %v4058_v12, %s4476_s19  ;;  %v10051_v34 = vrot.slane %v8142_v54, 6  ;;  %v8460_v61 = vld [vmem:[#allocation2 + $0x40] sm:$0x3f]  ;;  %v4019_v60 = vrot.slane %v4004_v38, 6  ;;  %v10052_v30 = vld [vmem:[#allocation273_spill] sm:$0xff] }
 0x403   :  { %v2842_v39 = vadd.f32 %v10050_v23, %v2802_v49  ;;  %v3293_v41 = vmul.f32 %v8460_v61, %v8131_v59  ;;  %v3276_v53 = vpop.permute.xlu1 %3275  ;;  %v3466_v28 = vpop.permute.xlu0 %3465  ;;  %v3853_v9 = vsel %vm45_vm0, %v3851_v15, %v3852_v1  ;;  %v8469_v43 = vmul.f32 %v8460_v61, %v8408_v16  ;;  %v10054_v12 = vld [vmem:[#allocation277_spill] sm:$0xff]  ;;  %v10057_v23 = vld [vmem:[#allocation295_spill] sm:$0xff] }
 0x404   :  { %3775 = vrot.lane.b32.xlu1 %v10048_v46, %s4476_s19  ;;  %v2764_v4 = vadd.f32 %v10049_v19, %v2724_v32  ;;  %v4015_v44 = vsel %vm2020_vm6, %v10051_v34, %v4014_v63  ;;  %v8473_v54 = vmul.f32 %v7664_v7, %v8408_v16  ;;  %v8477_v17 = vadd.f32 %v3276_v53, %v3240_v21  ;;  %v10055_v32 = vld [vmem:[#allocation284_spill] sm:$0xff]  ;;  %v10056_v19 = vld [vmem:[#allocation281_spill] sm:$0xff] }
 0x405   :  { %v2882_v8 = vadd.f32 %v10053_v0, %v2842_v39  ;;  %v3477_v2 = vadd.f32 %v3466_v28, %v3437_v52  ;;  %v3296_v22 = vmul.f32 %v7664_v7, %v8131_v59  ;;  %v8487_v49 = vmul.f32 %v8382_v37, %v8408_v16 }
 0x406   :  { %v2804_v63 = vadd.f32 %v10052_v30, %v2764_v4  ;;  %3861 = vrot.lane.b32.xlu0 %v3853_v9, %s4478_s23  ;;  %v8490_v3 = vstv %s8435_s15  ;;  %v3306_v21 = vrot.slane %v3293_v41, 4  ;;  %v4020_v15 = vsel %vm2020_vm6, %v4017_v50, %v4019_v60  ;;  %v10058_v41 = vld [vmem:[#allocation290_spill] sm:$0xff] }
 0x407   :  { %v2922_v62 = vadd.f32 %v10055_v32, %v2882_v8  ;;  %v3348_v52 = vpop.permute.xlu1 %3347  ;;  %v3470_v46 = vpop.permute.xlu0 %3469  ;;  %v3854_v7 = vrot.slane %v8469_v43, 4  ;;  %v8500_v59 = vmul.f32 %v8420_v47, %v8490_v3  ;;  %v3794_v27 = vmul.f32 %v8355_v29, %v8239_v42 }
 0x408   :  { %4023 = vrot.lane.b32.xlu1 %v4015_v44, %s4475_s17  ;;  %v2844_v38 = vadd.f32 %v10054_v12, %v2804_v63  ;;  %v3479_v34 = vadd.f32 %v3470_v46, %v3439_v26  ;;  %v3859_v44 = vrot.slane %v8473_v54, 4  ;;  %v4079_v50 = vmul.f32 %v8363_v18, %v8490_v3 }
 0x409   :  { %v2962_v39 = vadd.f32 %v10057_v23, %v2922_v62  ;;  %v3311_v28 = vrot.slane %v3296_v22, 4  ;;  %v3857_v26 = vrot.slane %v8487_v49, 4  ;;  %v10059_v9 = vrot.slane %v8177_v40, 4  ;;  %v10060_v22 = vld [vmem:[#allocation298_spill] sm:$0xff] }
 0x40a   :  { %v2884_v4 = vadd.f32 %v10056_v19, %v2844_v38  ;;  %3865 = vrot.lane.b32.xlu0 %v3854_v7, %s4478_s23  ;;  %v3807_v42 = vsel %vm45_vm0, %v3804_v13, %v3806_v57  ;;  %v4092_v0 = vrot.slane %v8500_v59, 6  ;;  %v8528_v8 = vmul.f32 %v8382_v37, %v8490_v3 }
 0x40b   :  { %v3307_v60 = vsel %vm45_vm0, %v10059_v9, %v3306_v21  ;;  %v3352_v30 = vpop.permute.xlu1 %3351  ;;  %v3506_v63 = vpop.permute.xlu0 %3505  ;;  %v3860_v45 = vsel %vm45_vm0, %v3857_v26, %v3859_v44  ;;  %v3808_v14 = vrot.slane %v3794_v27, 4  ;;  %v4091_v13 = vrot.slane %v4079_v50, 6 }
 0x40c   :  { %4027 = vrot.lane.b32.xlu1 %v4020_v15, %s4475_s17  ;;  %v2924_v53 = vadd.f32 %v10058_v41, %v2884_v4  ;;  %v3318_v40 = vadd.f32 %v3307_v60, %v2962_v39  ;;  %v3517_v38 = vadd.f32 %v3506_v63, %v3477_v2  ;;  %v4082_v57 = vmul.f32 %v8355_v29, %v8490_v3  ;;  %s4339_s17 = sld [smem:[#allocation3 + $0x5b]] }
 0x40d   :  { %v10061_v62 = vrot.slane %v8216_v36, 4  ;;  %v4041_v21 = vmul.f32 %v8460_v61, %v8343_v51  ;;  %v8546_v46 = vstv %s8492_s9  ;;  %v3810_v4 = vsel %vm45_vm0, %v3808_v14, %v3809_v56 }
 0x40e   :  { %v2964_v12 = vadd.f32 %v10060_v22, %v2924_v53  ;;  %3869 = vrot.lane.b32.xlu0 %v3860_v45, %s4478_s23  ;;  %v3358_v32 = vadd.f32 %v3348_v52, %v3318_v40  ;;  %v4093_v23 = vsel %vm2020_vm6, %v4091_v13, %v4092_v0  ;;  %v4097_v52 = vrot.slane %v8528_v8, 6  ;;  %v8575_v22 = vld [vmem:[#allocation2 + $0x58] sm:$0x3f] }
 0x40f   :  { %v3312_v2 = vsel %vm45_vm0, %v10061_v62, %v3311_v28  ;;  %v3388_v15 = vpop.permute.xlu1 %3387  ;;  %v3510_v19 = vpop.permute.xlu0 %3509  ;;  %v8557_v36 = vmul.f32 %v8420_v47, %v8546_v46  ;;  %v8560_v41 = vstv %s8505_s10  ;;  %v4096_v6 = vrot.slane %v4082_v57, 6 }
 0x410   :  { %3815 = vrot.lane.b32.xlu1 %v3807_v42, %s4477_s21  ;;  %v3320_v39 = vadd.f32 %v3312_v2, %v2964_v12  ;;  %v3398_v27 = vadd.f32 %v3388_v15, %v3358_v32  ;;  %v3519_v50 = vadd.f32 %v3510_v19, %v3479_v34  ;;  %v8566_v56 = vmul.f32 %v8420_v47, %v8560_v41 }
 0x411   :  { %v4119_v28 = vmul.f32 %v8363_v18, %v8546_v46  ;;  %v4098_v34 = vsel %vm2020_vm6, %v4096_v6, %v4097_v52  ;;  %v4054_v63 = vrot.slane %v4041_v21, 6  ;;  %v3563_v42 = vmul.f32 %v8363_v18, %v8560_v41 }
 0x412   :  { %4101 = vrot.lane.b32.xlu0 %v4093_v23, %s4477_s21  ;;  %v3360_v53 = vadd.f32 %v3352_v30, %v3320_v39  ;;  %v4044_v12 = vmul.f32 %v8575_v22, %v8343_v51  ;;  %v4132_v45 = vrot.slane %v8557_v36, 6  ;;  %v8584_v14 = vmul.f32 %v8382_v37, %v8546_v46 }
 0x413   :  { %v3392_v9 = vpop.permute.xlu1 %3391  ;;  %v3546_v60 = vpop.permute.xlu0 %3545  ;;  %v3576_v13 = vrot.slane %v8566_v56, 4  ;;  %v4131_v57 = vrot.slane %v4119_v28, 6  ;;  %v4122_v51 = vmul.f32 %v8355_v29, %v8546_v46  ;;  %v4055_v62 = vsel %vm2020_vm6, %v4052_v58, %v4054_v63 }
 0x414   :  { %3819 = vrot.lane.b32.xlu1 %v3810_v4, %s4477_s21  ;;  %v3400_v40 = vadd.f32 %v3392_v9, %v3360_v53  ;;  %v8579_v30 = vadd.f32 %v3546_v60, %v3517_v38  ;;  %v3575_v2 = vrot.slane %v3563_v42, 4  ;;  %v4059_v21 = vrot.slane %v4044_v12, 6 }
 0x415   :  { %v8598_v35 = vmul.f32 %v8460_v61, %v8560_v41  ;;  %v4133_v19 = vsel %vm2020_vm6, %v4131_v57, %v4132_v45  ;;  %v4137_v4 = vrot.slane %v8584_v14, 6  ;;  %v8613_v58 = vmul.f32 %v8575_v22, %v8560_v41 }
 0x416   :  { %4105 = vrot.lane.b32.xlu0 %v4098_v34, %s4477_s21  ;;  %v3577_v10 = vsel %vm45_vm0, %v3575_v2, %v3576_v13  ;;  %v4136_v39 = vrot.slane %v4122_v51, 6  ;;  %v4060_v6 = vsel %vm2020_vm6, %v4057_v24, %v4059_v21  ;;  %v8621_v53 = vmul.f32 %v8382_v37, %v8560_v41 }
 0x417   :  { %v3428_v38 = vpop.permute.xlu1 %3427  ;;  %v3550_v32 = vpop.permute.xlu0 %3549  ;;  %v3591_v23 = vadd.f32 %v3577_v10, %v8222_v20  ;;  %v3578_v34 = vrot.slane %v8598_v35, 4  ;;  %v3583_v20 = vrot.slane %v8613_v58, 4  ;;  %v3842_v24 = vmul.f32 %v8355_v29, %v8408_v16 }
 0x418   :  { %3823 = vrot.lane.b32.xlu1 %v3811_v31, %s4477_s21  ;;  %v3438_v31 = vadd.f32 %v3428_v38, %v3398_v27  ;;  %v8600_v15 = vadd.f32 %v3550_v32, %v3519_v50  ;;  %v4138_v60 = vsel %vm2020_vm6, %v4136_v39, %v4137_v4  ;;  %v3581_v12 = vrot.slane %v8621_v53, 4 }
 0x419   :  { %v3593_v55 = vadd.f32 %v3578_v34, %v8255_v25  ;;  %v3855_v51 = vsel %vm45_vm0, %v3852_v1, %v3854_v7  ;;  %v3856_v38 = vrot.slane %v3842_v24, 4  ;;  %v4081_v1 = vmul.f32 %v8460_v61, %v8490_v3 }
 0x41a   :  { %4141 = vrot.lane.b32.xlu0 %v4133_v19, %s4478_s23  ;;  %v3584_v25 = vsel %vm45_vm0, %v3581_v12, %v3583_v20  ;;  %v4121_v39 = vmul.f32 %v8460_v61, %v8546_v46  ;;  %v3596_v53 = vadd.f32 %v3583_v20, %v8477_v17  ;;  %v8742_v58 = vstv %s4290_s18  ;;  %v4395_v20 = vld [vmem:[#allocation2 + $0x18] sm:$0xff] }
 0x41b   :  { %v3432_v27 = vpop.permute.xlu1 %3431  ;;  %v3622_v50 = vpop.permute.xlu0 %3621  ;;  %v3595_v16 = vadd.f32 %v3584_v25, %v8286_v5  ;;  %v3858_v11 = vsel %vm45_vm0, %v3856_v38, %v3857_v26  ;;  %v4084_v5 = vmul.f32 %v8575_v22, %v8490_v3  ;;  %v4094_v10 = vrot.slane %v4081_v1, 6 }
 0x41c   :  { %4063 = vrot.lane.b32.xlu1 %v4055_v62, %s4476_s19  ;;  %v3440_v28 = vadd.f32 %v3432_v27, %v3400_v40  ;;  %v3639_v9 = vadd.f32 %v3622_v50, %v3591_v23  ;;  %v8664_v3 = vstv %s4339_s17 }
 0x41d   :  { %v4099_v23 = vrot.slane %v4084_v5, 6  ;;  %v8669_v54 = vmul.f32 %v8420_v47, %v8664_v3  ;;  %v3890_v8 = vmul.f32 %v8355_v29, %v8664_v3  ;;  %v8730_v5 = vstv %s4269_s11 }
 0x41e   :  { %4145 = vrot.lane.b32.xlu0 %v4138_v60, %s4478_s23  ;;  %v3887_v60 = vmul.f32 %v8363_v18, %v8664_v3 }
 0x41f   :  { %v3468_v63 = vpop.permute.xlu1 %3467  ;;  %v3626_v42 = vpop.permute.xlu0 %3625  ;;  %v4100_v59 = vsel %vm2020_vm6, %v4097_v52, %v4099_v23  ;;  %v3900_v47 = vrot.slane %v8669_v54, 6 }
 0x420   :  { %4067 = vrot.lane.b32.xlu1 %v4060_v6, %s4476_s19  ;;  %v3478_v40 = vadd.f32 %v3468_v63, %v3438_v31  ;;  %v3641_v57 = vadd.f32 %v3626_v42, %v3593_v55  ;;  %v4095_v6 = vsel %vm2020_vm6, %v4092_v0, %v4094_v10  ;;  %v4124_v0 = vmul.f32 %v8575_v22, %v8546_v46  ;;  %s4262_s19 = sld [smem:[#allocation3 + $0xe]]  ;;  %v4394_v10 = vld [vmem:[#allocation2] sm:$0xff] }
 0x421   :  { %v8686_v63 = vmul.f32 %v8382_v37, %v8664_v3  ;;  %v3579_v37 = vsel %vm45_vm0, %v3576_v13, %v3578_v34 }
 0x422   :  { %v4139_v25 = vrot.slane %v4124_v0, 6 }
 0x423   :  { %v3472_v32 = vpop.permute.xlu1 %3471  ;;  %v3630_v62 = vpop.permute.xlu0 %3629 }
 0x424   :  { %3863 = vrot.lane.b32.xlu1 %v3855_v51, %s4478_s23  ;;  %v3480_v2 = vadd.f32 %v3472_v32, %v3440_v28  ;;  %v3643_v21 = vadd.f32 %v3630_v62, %v3595_v16  ;;  %v3592_v16 = vadd.f32 %v3579_v37, %v8428_v33  ;;  %v3904_v62 = vrot.slane %v3890_v8, 6 }
 0x425   :  { %v4140_v13 = vsel %vm2020_vm6, %v4137_v4, %v4139_v25  ;;  %v8780_v8 = vmul.f32 %v4395_v20, %v8742_v58 }
 0x427   :  { %v3508_v43 = vpop.permute.xlu1 %3507  ;;  %v3670_v7 = vpop.permute.xlu0 %3669 }
 0x428   :  { %3867 = vrot.lane.b32.xlu1 %v3858_v11, %s4478_s23  ;;  %v3518_v31 = vadd.f32 %v3508_v43, %v3478_v40  ;;  %v3687_v19 = vadd.f32 %v3670_v7, %v3639_v9  ;;  %v4134_v9 = vrot.slane %v4121_v39, 6  ;;  %v3899_v40 = vrot.slane %v3887_v60, 6 }
 0x429   :  { %v8747_v39 = vmul.f32 %v4394_v10, %v8730_v5 }
 0x42a   :  { %v4135_v51 = vsel %vm2020_vm6, %v4132_v45, %v4134_v9 }
 0x42b   :  { %v3512_v49 = vpop.permute.xlu1 %3511  ;;  %v3674_v26 = vpop.permute.xlu0 %3673 }
 0x42c   :  { %3871 = vrot.lane.b32.xlu1 %v3859_v44, %s4478_s23  ;;  %v3520_v27 = vadd.f32 %v3512_v49, %v3480_v2  ;;  %v3689_v50 = vadd.f32 %v3674_v26, %v3641_v57  ;;  %v3566_v57 = vmul.f32 %v8355_v29, %v8560_v41  ;;  %v3901_v29 = vsel %vm2020_vm6, %v3899_v40, %v3900_v47 }
 0x42d   :  { %v9479_v41 = vrot.slane %v8686_v63, 6  ;;  %v3913_v36 = vadd.f32 %v3901_v29, %v8579_v30  ;;  %v8740_v26 = vstv %s4283_s16  ;;  %v1100_v29 = vrot.slane %v8747_v39, 2 }
 0x42e   :  { %v3580_v32 = vrot.slane %v3566_v57, 4  ;;  %v8774_v57 = vmul.f32 %v4395_v20, %v8740_v26 }
 0x42f   :  { %v3548_v44 = vpop.permute.xlu1 %3547  ;;  %v3678_v28 = vpop.permute.xlu0 %3677  ;;  %v3906_v30 = vsel %vm2020_vm6, %v3904_v62, %v9479_v41  ;;  %v8793_v62 = vld [vmem:[#allocation2 + $0x10] sm:$0x3f] }
 0x430   :  { %4103 = vrot.lane.b32.xlu1 %v4095_v6, %s4477_s21  ;;  %v8673_v55 = vadd.f32 %v3548_v44, %v3518_v31  ;;  %v8675_v24 = vadd.f32 %v3678_v28, %v3643_v21  ;;  %v3582_v33 = vsel %vm45_vm0, %v3580_v32, %v3581_v12  ;;  %v3915_v14 = vadd.f32 %v3906_v30, %v8600_v15  ;;  %v8799_v30 = vld [vmem:[#allocation2 + $0x28] sm:$0x3f] }
 0x431   :  { %v3594_v34 = vadd.f32 %v3582_v33, %v8449_v48  ;;  %v814_v12 = vstv %s4262_s19  ;;  %v8734_v48 = vstv %s4276_s14  ;;  %v8736_v15 = vstv %s4255_s12 }
 0x432   :  { %v8738_v49 = vmul.f32 %v4394_v10, %v814_v12  ;;  %v8744_v23 = vmul.f32 %v4395_v20, %v814_v12  ;;  %v8753_v28 = vmul.f32 %v4394_v10, %v8734_v48  ;;  %v8764_v0 = vmul.f32 %v4395_v20, %v8736_v15 }
 0x433   :  { %v3552_v18 = vpop.permute.xlu1 %3551  ;;  %v3718_v42 = vpop.permute.xlu0 %3717 }
 0x434   :  { %4107 = vrot.lane.b32.xlu1 %v4100_v59, %s4477_s21  ;;  %v8692_v52 = vadd.f32 %v3552_v18, %v3520_v27  ;;  %v8694_v46 = vadd.f32 %v3718_v42, %v3687_v19  ;;  %s405_s21 = sld [smem:[#allocation3]]  ;;  %v8750_v27 = vmul.f32 %v4395_v20, %v8730_v5  ;;  %v8761_v59 = vmul.f32 %v4394_v10, %v8736_v15 }
 0x435   :  { %v8767_v18 = vmul.f32 %v4395_v20, %v8734_v48  ;;  %v8770_v42 = vmul.f32 %v4394_v10, %v8740_v26  ;;  %v828_v40 = vrot.slane %v8738_v49, 2  ;;  %v833_v37 = vrot.slane %v8744_v23, 2 }
 0x437   :  { %v3624_v45 = vpop.permute.xlu1 %3623  ;;  %v3942_v38 = vpop.permute.xlu0 %3941 }
 0x438   :  { %4143 = vrot.lane.b32.xlu1 %v4135_v51, %s4478_s23  ;;  %v3640_v56 = vadd.f32 %v3624_v45, %v3592_v16  ;;  %v8711_v35 = vadd.f32 %v3942_v38, %v3913_v36  ;;  %v8782_v51 = vld [vmem:[#allocation2 + $0x8] sm:$0xff]  ;;  %v8790_v38 = vld [vmem:[#allocation2 + $0x20] sm:$0xff] }
 0x439   :  { %v816_v25 = vmul.f32 %v8782_v51, %v814_v12  ;;  %v819_v32 = vmul.f32 %v8790_v38, %v814_v12  ;;  %v8821_v49 = vmul.f32 %v8790_v38, %v8736_v15  ;;  %v8827_v39 = vmul.f32 %v8782_v51, %v8736_v15 }
 0x43a   :  { %v406_v7 = vstv %s405_s21  ;;  %v1416_v54 = vmul.f32 %v8790_v38, %v8734_v48 }
 0x43b   :  { %v3628_v2 = vpop.permute.xlu1 %3627  ;;  %v3946_v4 = vpop.permute.xlu0 %3945  ;;  %v407_v17 = vmul.f32 %v4394_v10, %v406_v7  ;;  %v409_v44 = vmul.f32 %v4395_v20, %v406_v7 }
 0x43c   :  { %4147 = vrot.lane.b32.xlu1 %v4140_v13, %s4478_s23  ;;  %v3642_v21 = vadd.f32 %v3628_v2, %v3594_v34  ;;  %v8725_v11 = vadd.f32 %v3946_v4, %v3915_v14  ;;  %v820_v34 = vmul.f32 %v8799_v30, %v814_v12  ;;  %v3889_v4 = vmul.f32 %v8460_v61, %v8664_v3  ;;  %v10066_v14 = vld [vmem:[#allocation13_spill] sm:$0xff]  ;;  %s4479_s23 = smov [#allocation8]  }
 0x43d   :  { %v829_v61 = vrot.slane %v816_v25, 2  ;;  %v3892_v2 = vmul.f32 %v8575_v22, %v8664_v3  ;;  %v439_v25 = vadd.f32 %v10066_v14, %v409_v44  ;;  %v8837_v13 = vmul.f32 %v8793_v62, %v8736_v15  ;;  %v10068_v14 = vld [vmem:[#allocation15_spill] sm:$0xff]  ;;  %s4236_s20 = sshll.u32 %s4479_s23, 4  ;;  %s4237_s20 = int_to_ptr.vmem [resolvable:$true] %s4236_s20 }
 0x43e   :  { %10062 = vst [vmem:[#allocation247_spill] sm:$0xff] %v8725_v11  ;;  %v1092_v3 = vmul.f32 %v8790_v38, %v8730_v5  ;;  %v10090_v11 = vld [vmem:[#allocation25_spill] sm:$0xff]  ;;  %s4432_s22 = scalar_lea.vmem %s4237_s20, 512  ;;  %p4437_p12 = scmp.lt.s32.totalorder %s4237_s20, %s4237_s20 }
 0x43f   :  { %v3632_v1 = vpop.permute.xlu1 %3631  ;;  %v3722_v43 = vpop.permute.xlu0 %3721  ;;  %v830_v22 = vsel %vm827_vm5, %v828_v40, %v829_v61  ;;  %v3907_v41 = vrot.slane %v3892_v2, 6  ;;  %p4433_p11 = scmp.ne.s32.totalorder %s4237_s20, %s4432_s22  ;;  %p4438_p13 = scmp.lt.s32.totalorder %s4432_s22, %s4432_s22 }
 0x440   :  { %v3644_v31 = vadd.f32 %v3632_v1, %v3596_v53  ;;  %v8732_v19 = vadd.f32 %v3722_v43, %v3689_v50  ;;  %v8808_v53 = vmul.f32 %v8782_v51, %v8730_v5  ;;  %v10065_v43 = vld [vmem:[#allocation12_spill] sm:$0xff]  ;;  %v3902_v1 = vrot.slane %v3889_v4, 6 }
 0x441   :  { %v465_v4 = vadd.f32 %v10068_v14, %v439_v25  ;;  %v10070_v25 = vld [vmem:[#allocation17_spill] sm:$0xff]  ;;  %p4439_p0 = por %p4438_p13, %p4437_p12 }
 0x442   :  { %v1101_v16 = vrot.slane %v8808_v53, 2 }
 0x443   :  { %v3672_v50 = vpop.permute.xlu1 %3671  ;;  %v3726_v6 = vpop.permute.xlu0 %3725  ;;  %v491_v14 = vadd.f32 %v10070_v25, %v465_v4  ;;  %v10075_v25 = vrot.slane %v8686_v63, 6  ;;  %v1688_v63 = vmul.f32 %v8790_v38, %v8740_v26  ;;  %p4440_p1 = pnand %p4439_p0, %p4433_p11 }
 0x444   :  { %v8755_v9 = vadd.f32 %v3672_v50, %v3640_v56  ;;  %v8758_v60 = vadd.f32 %v3726_v6, %v8675_v24  ;;  %v8777_v24 = vmul.f32 %v4394_v10, %v8742_v58  ;;  %v817_v56 = vmul.f32 %v8793_v62, %v814_v12 }
 0x445   :  { %v8814_v10 = vmul.f32 %v8782_v51, %v406_v7  ;;  %v8817_v12 = vmul.f32 %v8790_v38, %v406_v7  ;;  %v834_v50 = vrot.slane %v819_v32, 2  ;;  %v836_v7 = vrot.slane %v820_v34, 2 }
 0x446   :  { %v831_v6 = vrot.slane %v817_v56, 2  ;;  %v8842_v32 = vmul.f32 %v8793_v62, %v8730_v5 }
 0x447   :  { %v3676_v36 = vpop.permute.xlu1 %3675  ;;  %v8788_v45 = vpop.permute.xlu0 %3981  ;;  %v835_v53 = vsel %vm827_vm5, %v833_v37, %v834_v50  ;;  %v8874_v37 = vsel %vm827_vm5, %v1100_v29, %v1101_v16  ;;  %v8918_v29 = vmul.f32 %v8782_v51, %v8742_v58 }
 0x448   :  { %v8797_v33 = vadd.f32 %v3676_v36, %v3642_v21  ;;  %v437_v21 = vadd.f32 %v10065_v43, %v407_v17  ;;  %v8847_v17 = vmul.f32 %v8799_v30, %v8736_v15  ;;  %v8859_v43 = vsel %vm827_vm5, %v829_v61, %v831_v6  ;;  %v10071_v6 = vld [vmem:[#allocation18_spill] sm:$0xff] }
 0x449   :  { %v8863_v15 = vmul.f32 %v8799_v30, %v8730_v5 }
 0x44a   :  { %10063 = vst [vmem:[#allocation214_spill] sm:$0xff] %v8797_v33 }
 0x44b   :  { %v3680_v20 = vpop.permute.xlu1 %3679  ;;  %v8823_v23 = vpop.permute.xlu0 %3985 }
 0x44c   :  { %10064 = vst [vmem:[#allocation251_spill] sm:$0xff] %v8823_v23  ;;  %v8829_v36 = vadd.f32 %v3680_v20, %v3644_v31  ;;  %v10067_v31 = vld [vmem:[#allocation14_spill] sm:$0xff]  ;;  %v8867_v20 = vsel %vm827_vm5, %v834_v50, %v836_v7  ;;  %v1413_v50 = vmul.f32 %v8782_v51, %v8734_v48 }
 0x44d   :  { %v463_v56 = vadd.f32 %v10067_v31, %v437_v21  ;;  %v10069_v21 = vld [vmem:[#allocation16_spill] sm:$0xff]  ;;  %v3903_v31 = vsel %vm2020_vm6, %v3900_v47, %v3902_v1  ;;  %v10072_v1 = vld [vmem:[#allocation19_spill] sm:$0xff] }
 0x44e   :  { %v3914_v5 = vadd.f32 %v3903_v31, %v8673_v55  ;;  %v517_v7 = vadd.f32 %v10072_v1, %v491_v14  ;;  %v10074_v55 = vld [vmem:[#allocation20_spill] sm:$0xff]  ;;  %v1417_v31 = vmul.f32 %v8799_v30, %v8734_v48  ;;  %v10076_v14 = vld [vmem:[#allocation22_spill] sm:$0xff] }
 0x44f   :  { %v8852_v44 = vpop.permute.xlu1 %3719  ;;  %v8854_v34 = vpop.permute.xlu0 %3765  ;;  %v489_v40 = vadd.f32 %v10069_v21, %v463_v56  ;;  %v1106_v56 = vrot.slane %v1092_v3, 2  ;;  %v1414_v3 = vmul.f32 %v8793_v62, %v8734_v48  ;;  %v8908_v48 = vmul.f32 %v8793_v62, %v8740_v26 }
 0x450   :  { %v543_v1 = vadd.f32 %v10076_v14, %v517_v7  ;;  %v10079_v14 = vld [vmem:[#allocation27_spill] sm:$0xff] }
 0x451   :  { %v515_v23 = vadd.f32 %v10071_v6, %v489_v40  ;;  %v3908_v6 = vsel %vm2020_vm6, %v10075_v25, %v3907_v41 }
 0x452   :  { %v569_v61 = vadd.f32 %v10079_v14, %v543_v1  ;;  %v10083_v1 = vrot.slane %v8750_v27, 2  ;;  %v10084_v14 = vrot.slane %v8753_v28, 4 }
 0x453   :  { %v3944_v47 = vpop.permute.xlu1 %3943  ;;  %v541_v40 = vadd.f32 %v10074_v55, %v515_v23  ;;  %v3916_v23 = vadd.f32 %v3908_v6, %v8692_v52  ;;  %v10078_v55 = vld [vmem:[#allocation24_spill] sm:$0xff] }
 0x454   :  { %v3770_v2 = vpop.permute.xlu0 %3769  ;;  %v8885_v4 = vadd.f32 %v3944_v47, %v3914_v5  ;;  %v1685_v5 = vmul.f32 %v8782_v51, %v8740_v26  ;;  %v1425_v47 = vrot.slane %v1413_v50, 4  ;;  %v10081_v50 = vrot.slane %v8863_v15, 2 }
 0x455   :  { %v8888_v21 = vadd.f32 %v3770_v2, %v8732_v19  ;;  %v8903_v19 = vmul.f32 %v8799_v30, %v8740_v26  ;;  %v1430_v2 = vrot.slane %v1416_v54, 4  ;;  %v567_v25 = vadd.f32 %v10078_v55, %v541_v40 }
 0x456   :  { %10073 = vst [vmem:[#allocation282_spill] sm:$0xff] %v8885_v4  ;;  %v8925_v54 = vsel %vm827_vm5, %v1106_v56, %v10081_v50  ;;  %v10082_v26 = vrot.slane %v8842_v32, 2  ;;  %v1427_v4 = vrot.slane %v1414_v3, 4  ;;  %v1432_v40 = vrot.slane %v1417_v31, 4 }
 0x457   :  { %v3948_v41 = vpop.permute.xlu1 %3947  ;;  %v8935_v55 = vsel %vm827_vm5, %v10083_v1, %v1106_v56  ;;  %v1697_v51 = vrot.slane %v1685_v5, 4  ;;  %v8945_v50 = vsel %vm45_vm0, %v10084_v14, %v1425_v47  ;;  %v1702_v56 = vrot.slane %v1688_v63, 4 }
 0x458   :  { %v8912_v7 = vpop.permute.xlu0 %3773  ;;  %v8920_v52 = vadd.f32 %v3948_v41, %v3916_v23  ;;  %v8930_v6 = vsel %vm827_vm5, %v1101_v16, %v10082_v26  ;;  %v8940_v41 = vmul.f32 %v8790_v38, %v8742_v58  ;;  %v10085_v16 = vrot.slane %v8767_v18, 4  ;;  %v10087_v38 = vld [vmem:[#allocation21_spill] sm:$0xff]  ;;  %v10089_v23 = vld [vmem:[#allocation23_spill] sm:$0xff] }
 0x459   :  { %10077 = vst [vmem:[#allocation218_spill] sm:$0xff] %v8912_v7  ;;  %v438_v26 = vadd.f32 %v10087_v38, %v8814_v10  ;;  %v8959_v1 = vadd.f32 %v830_v22, %v567_v25  ;;  %v8961_v28 = vadd.f32 %v835_v53, %v569_v61  ;;  %v2022_v14 = vrot.slane %v8918_v29, 6  ;;  %v10088_v18 = vld [vmem:[#allocation29_spill] sm:$0xff]  ;;  %v10093_v29 = vld [vmem:[#allocation26_spill] sm:$0xff]  ;;  %v10097_v38 = vld [vmem:[#allocation28_spill] sm:$0xff] }
 0x45a   :  { %10080 = vst [vmem:[#allocation286_spill] sm:$0xff] %v8920_v52  ;;  %v8950_v3 = vsel %vm45_vm0, %v10085_v16, %v1430_v2  ;;  %v617_v16 = vadd.f32 %v10088_v18, %v8761_v59  ;;  %v440_v27 = vadd.f32 %v10089_v23, %v8817_v12  ;;  %v8969_v63 = vsel %vm45_vm0, %v1425_v47, %v1427_v4  ;;  %v10121_v7 = vld [vmem:[#allocation50_spill] sm:$0xff] }
 0x45b   :  { %v8953_v31 = vpop.permute.xlu1 %3723  ;;  %v8972_v52 = vsel %vm45_vm0, %v1430_v2, %v1432_v40  ;;  %v464_v10 = vadd.f32 %v10090_v11, %v438_v26  ;;  %v10091_v22 = vrot.slane %v8770_v42, 4  ;;  %v10092_v61 = vrot.slane %v8903_v19, 4 }
 0x45c   :  { %10086 = vst [vmem:[#allocation212_spill] sm:$0xff] %v8953_v31  ;;  %v8955_v5 = vpop.permute.xlu0 %4021  ;;  %v2027_v12 = vrot.slane %v8940_v41, 6  ;;  %v466_v4 = vadd.f32 %v10093_v29, %v440_v27  ;;  %v10094_v47 = vrot.slane %v8908_v48, 4  ;;  %v10095_v11 = vrot.slane %v8774_v57, 4  ;;  %v10098_v27 = vld [vmem:[#allocation32_spill] sm:$0xff]  ;;  %v10103_v29 = vld [vmem:[#allocation43_spill] sm:$0xff] }
 0x45d   :  { %v8978_v53 = vsel %vm45_vm0, %v10091_v22, %v1697_v51  ;;  %v8983_v59 = vsel %vm45_vm0, %v1702_v56, %v10092_v61  ;;  %v2010_v25 = vmul.f32 %v8793_v62, %v8742_v58  ;;  %v490_v41 = vadd.f32 %v10097_v38, %v464_v10  ;;  %v10102_v61 = vld [vmem:[#allocation36_spill] sm:$0xff]  ;;  %v10120_v31 = vld [vmem:[#allocation46_spill] sm:$0xff] }
 0x45e   :  { %v8990_v2 = vsel %vm45_vm0, %v1697_v51, %v10094_v47  ;;  %v8995_v42 = vsel %vm45_vm0, %v10095_v11, %v1702_v56  ;;  %v619_v26 = vadd.f32 %v10098_v27, %v8837_v13  ;;  %v10099_v18 = vrot.slane %v8777_v24, 6  ;;  %v10101_v56 = vld [vmem:[#allocation30_spill] sm:$0xff]  ;;  %v10104_v11 = vld [vmem:[#allocation31_spill] sm:$0xff] }
 0x45f   :  { %v492_v22 = vadd.f32 %v10101_v56, %v466_v4  ;;  %v655_v62 = vadd.f32 %v10102_v61, %v617_v16  ;;  %v618_v47 = vadd.f32 %v10103_v29, %v8827_v39  ;;  %v2013_v10 = vmul.f32 %v8799_v30, %v8742_v58  ;;  %v10105_v24 = vld [vmem:[#allocation34_spill] sm:$0xff]  ;;  %v10108_v4 = vld [vmem:[#allocation33_spill] sm:$0xff] }
 0x460   :  { %v8999_v23 = vpop.permute.xlu0 %4025  ;;  %v9007_v51 = vsel %vm2020_vm6, %v10099_v18, %v2022_v14  ;;  %v516_v13 = vadd.f32 %v10104_v11, %v490_v41  ;;  %v621_v38 = vadd.f32 %v10105_v24, %v8821_v49  ;;  %v10106_v27 = vld [vmem:[#allocation38_spill] sm:$0xff]  ;;  %v10110_v39 = vld [vmem:[#allocation49_spill] sm:$0xff]  ;;  %v10112_v41 = vld [vmem:[#allocation35_spill] sm:$0xff] }
 0x461   :  { %10096 = vst [vmem:[#allocation278_spill] sm:$0xff] %v8999_v23  ;;  %v657_v18 = vadd.f32 %v10106_v27, %v619_v26  ;;  %v518_v16 = vadd.f32 %v10108_v4, %v492_v22  ;;  %v10109_v56 = vld [vmem:[#allocation42_spill] sm:$0xff]  ;;  %v656_v29 = vadd.f32 %v10110_v39, %v618_v47  ;;  %v10113_v11 = vld [vmem:[#allocation40_spill] sm:$0xff]  ;;  %v10115_v27 = vld [vmem:[#allocation45_spill] sm:$0xff] }
 0x462   :  { %v3728_v40 = vpop.permute.xlu1 %3727  ;;  %v693_v61 = vadd.f32 %v10109_v56, %v655_v62  ;;  %v542_v49 = vadd.f32 %v10112_v41, %v516_v13  ;;  %v659_v26 = vadd.f32 %v10113_v11, %v621_v38  ;;  %v10114_v24 = vld [vmem:[#allocation44_spill] sm:$0xff]  ;;  %v10116_v23 = vld [vmem:[#allocation37_spill] sm:$0xff]  ;;  %v10118_v56 = vld [vmem:[#allocation55_spill] sm:$0xff] }
 0x463   :  { %v9010_v57 = vadd.f32 %v3728_v40, %v8829_v36  ;;  %v10107_v36 = vrot.slane %v8780_v8, 6  ;;  %v695_v8 = vadd.f32 %v10114_v24, %v657_v18  ;;  %v544_v22 = vadd.f32 %v10116_v23, %v518_v16  ;;  %v10117_v4 = vld [vmem:[#allocation48_spill] sm:$0xff]  ;;  %v10119_v39 = vld [vmem:[#allocation39_spill] sm:$0xff]  ;;  %v10123_v11 = vld [vmem:[#allocation41_spill] sm:$0xff] }
 0x464   :  { %v9032_v30 = vpop.permute.xlu0 %3813  ;;  %v731_v62 = vadd.f32 %v10117_v4, %v693_v61  ;;  %v694_v47 = vadd.f32 %v10118_v56, %v656_v29  ;;  %v697_v33 = vadd.f32 %v10120_v31, %v659_v26  ;;  %v10122_v41 = vld [vmem:[#allocation51_spill] sm:$0xff]  ;;  %v10126_v16 = vld [vmem:[#allocation61_spill] sm:$0xff]  ;;  %v10127_v29 = vld [vmem:[#allocation52_spill] sm:$0xff] }
 0x465   :  { %10100 = vst [vmem:[#allocation296_spill] sm:$0xff] %v9010_v57  ;;  %v9025_v40 = vsel %vm2020_vm6, %v10107_v36, %v2027_v12  ;;  %v2024_v57 = vrot.slane %v2010_v25, 6  ;;  %v620_v36 = vadd.f32 %v10115_v27, %v8764_v0  ;;  %v2029_v25 = vrot.slane %v2013_v10, 6  ;;  %v10124_v24 = vld [vmem:[#allocation47_spill] sm:$0xff]  ;;  %v10125_v27 = vld [vmem:[#allocation54_spill] sm:$0xff]  ;;  %v10128_v31 = vld [vmem:[#allocation56_spill] sm:$0xff] }
 0x466   :  { %v9030_v58 = vpop.permute.xlu1 %3983  ;;  %v733_v13 = vadd.f32 %v10121_v7, %v695_v8  ;;  %v570_v18 = vadd.f32 %v10123_v11, %v544_v22  ;;  %v622_v0 = vadd.f32 %v10124_v24, %v8847_v17  ;;  %v769_v23 = vadd.f32 %v10125_v27, %v731_v62  ;;  %v10129_v7 = vld [vmem:[#allocation57_spill] sm:$0xff]  ;;  %v10131_v17 = vld [vmem:[#allocation60_spill] sm:$0xff]  ;;  %v10132_v62 = vld [vmem:[#allocation67_spill] sm:$0xff] }
 0x467   :  { %10111 = vst [vmem:[#allocation222_spill] sm:$0xff] %v9030_v58  ;;  %v568_v58 = vadd.f32 %v10119_v39, %v542_v49  ;;  %v658_v38 = vadd.f32 %v10122_v41, %v620_v36  ;;  %v732_v61 = vadd.f32 %v10126_v16, %v694_v47  ;;  %v735_v49 = vadd.f32 %v10127_v29, %v697_v33  ;;  %v10130_v22 = vld [vmem:[#allocation53_spill] sm:$0xff]  ;;  %v10133_v11 = vld [vmem:[#allocation58_spill] sm:$0xff]  ;;  %v10135_v16 = vld [vmem:[#allocation63_spill] sm:$0xff] }
 0x468   :  { %v9053_v10 = vpop.permute.xlu0 %3817  ;;  %v771_v26 = vadd.f32 %v10128_v31, %v733_v13  ;;  %v9059_v36 = vsel %vm2020_vm6, %v2022_v14, %v2024_v57  ;;  %v660_v56 = vadd.f32 %v10130_v22, %v622_v0  ;;  %v807_v39 = vadd.f32 %v10131_v17, %v769_v23  ;;  %v10134_v27 = vld [vmem:[#allocation62_spill] sm:$0xff]  ;;  %v10137_v14 = vld [vmem:[#allocation68_spill] sm:$0xff]  ;;  %v10138_v0 = vld [vmem:[#allocation73_spill] sm:$0xff] }
 0x469   :  { %v696_v8 = vadd.f32 %v10129_v7, %v658_v38  ;;  %v770_v41 = vadd.f32 %v10132_v62, %v732_v61  ;;  %v9065_v47 = vsel %vm2020_vm6, %v2027_v12, %v2029_v25  ;;  %v773_v24 = vadd.f32 %v10133_v11, %v735_v49  ;;  %v10136_v38 = vld [vmem:[#allocation66_spill] sm:$0xff]  ;;  %v10139_v49 = vld [vmem:[#allocation59_spill] sm:$0xff]  ;;  %v10140_v7 = vld [vmem:[#allocation64_spill] sm:$0xff] }
 0x46a   :  { %v9051_v4 = vpop.permute.xlu1 %3987  ;;  %v809_v33 = vadd.f32 %v10134_v27, %v771_v26  ;;  %v882_v29 = vadd.f32 %v10136_v38, %v8959_v1  ;;  %v884_v57 = vadd.f32 %v10137_v14, %v8961_v28  ;;  %v843_v23 = vadd.f32 %v8859_v43, %v568_v58  ;;  %v10141_v22 = vld [vmem:[#allocation69_spill] sm:$0xff]  ;;  %v10142_v1 = vld [vmem:[#allocation70_spill] sm:$0xff]  ;;  %v10143_v11 = vld [vmem:[#allocation72_spill] sm:$0xff] }
 0x46b   :  { %v734_v13 = vadd.f32 %v10135_v16, %v696_v8  ;;  %v808_v31 = vadd.f32 %v10138_v0, %v770_v41  ;;  %v845_v61 = vadd.f32 %v8867_v20, %v570_v18  ;;  %v698_v26 = vadd.f32 %v10139_v49, %v660_v56  ;;  %v10144_v27 = vld [vmem:[#allocation79_spill] sm:$0xff]  ;;  %v10145_v16 = vld [vmem:[#allocation81_spill] sm:$0xff]  ;;  %v10147_v38 = vld [vmem:[#allocation74_spill] sm:$0xff] }
 0x46c   :  { %v9079_v25 = vpop.permute.xlu0 %3821  ;;  %v811_v8 = vadd.f32 %v10140_v7, %v773_v24  ;;  %v922_v62 = vadd.f32 %v10142_v1, %v882_v29  ;;  %v924_v28 = vadd.f32 %v10143_v11, %v884_v57  ;;  %v883_v41 = vadd.f32 %v10144_v27, %v843_v23  ;;  %v10146_v58 = vld [vmem:[#allocation65_spill] sm:$0xff]  ;;  %v10148_v0 = vld [vmem:[#allocation75_spill] sm:$0xff] }
 0x46d   :  { %v772_v17 = vadd.f32 %v10141_v22, %v734_v13  ;;  %v885_v43 = vadd.f32 %v10145_v16, %v845_v61  ;;  %v1116_v20 = vadd.f32 %v8874_v37, %v807_v39  ;;  %v736_v18 = vadd.f32 %v10146_v58, %v698_v26  ;;  %v10150_v13 = vld [vmem:[#allocation76_spill] sm:$0xff]  ;;  %v10151_v29 = vld [vmem:[#allocation83_spill] sm:$0xff]  ;;  %v10152_v57 = vld [vmem:[#allocation85_spill] sm:$0xff] }
 0x46e   :  { %v9077_v12 = vpop.permute.xlu1 %3767  ;;  %v962_v14 = vadd.f32 %v10147_v38, %v922_v62  ;;  %v10149_v24 = vrot.slane %v8842_v32, 2  ;;  %v964_v7 = vadd.f32 %v10150_v13, %v924_v28  ;;  %v923_v22 = vadd.f32 %v10151_v29, %v883_v41  ;;  %v10153_v39 = vld [vmem:[#allocation71_spill] sm:$0xff]  ;;  %v10154_v62 = vld [vmem:[#allocation78_spill] sm:$0xff]  ;;  %v10158_v58 = vld [vmem:[#allocation89_spill] sm:$0xff] }
 0x46f   :  { %v810_v56 = vadd.f32 %v10148_v0, %v772_v17  ;;  %v925_v1 = vadd.f32 %v10152_v57, %v885_v43  ;;  %v1117_v23 = vadd.f32 %v8930_v6, %v808_v31  ;;  %v774_v26 = vadd.f32 %v10153_v39, %v736_v18  ;;  %v10155_v17 = vld [vmem:[#allocation90_spill] sm:$0xff]  ;;  %v10157_v16 = vld [vmem:[#allocation87_spill] sm:$0xff]  ;;  %v10160_v31 = vld [vmem:[#allocation77_spill] sm:$0xff] }
 0x470   :  { %v1118_v49 = vadd.f32 %v10149_v24, %v809_v33  ;;  %v9100_v37 = vpop.permute.xlu0 %4061  ;;  %v1002_v11 = vadd.f32 %v10154_v62, %v962_v14  ;;  %v1164_v27 = vadd.f32 %v10155_v17, %v1116_v20  ;;  %v1120_v32 = vadd.f32 %v8925_v54, %v811_v8  ;;  %v10156_v33 = vld [vmem:[#allocation80_spill] sm:$0xff]  ;;  %v10159_v38 = vld [vmem:[#allocation103_spill] sm:$0xff]  ;;  %v10161_v24 = vld [vmem:[#allocation82_spill] sm:$0xff] }
 0x471   :  { %v1004_v28 = vadd.f32 %v10156_v33, %v964_v7  ;;  %v963_v41 = vadd.f32 %v10157_v16, %v923_v22  ;;  %v965_v43 = vadd.f32 %v10158_v58, %v925_v1  ;;  %v1165_v6 = vadd.f32 %v10159_v38, %v1117_v23  ;;  %v10162_v29 = vld [vmem:[#allocation96_spill] sm:$0xff]  ;;  %v10164_v39 = vld [vmem:[#allocation91_spill] sm:$0xff]  ;;  %v10165_v8 = vld [vmem:[#allocation93_spill] sm:$0xff] }
 0x472   :  { %v9098_v61 = vpop.permute.xlu1 %3771  ;;  %v812_v0 = vadd.f32 %v10160_v31, %v774_v26  ;;  %v1042_v13 = vadd.f32 %v10161_v24, %v1002_v11  ;;  %v1212_v18 = vadd.f32 %v10162_v29, %v1164_v27  ;;  %v1119_v14 = vadd.f32 %v8935_v55, %v810_v56  ;;  %v10163_v57 = vld [vmem:[#allocation84_spill] sm:$0xff]  ;;  %v10166_v62 = vld [vmem:[#allocation109_spill] sm:$0xff]  ;;  %v10167_v23 = vld [vmem:[#allocation86_spill] sm:$0xff] }
 0x473   :  { %v1044_v20 = vadd.f32 %v10163_v57, %v1004_v28  ;;  %v1003_v54 = vadd.f32 %v10164_v39, %v963_v41  ;;  %v1005_v7 = vadd.f32 %v10165_v8, %v965_v43  ;;  %v1213_v22 = vadd.f32 %v10166_v62, %v1165_v6  ;;  %v10168_v33 = vld [vmem:[#allocation92_spill] sm:$0xff]  ;;  %v10169_v16 = vld [vmem:[#allocation94_spill] sm:$0xff]  ;;  %v10172_v38 = vld [vmem:[#allocation95_spill] sm:$0xff] }
 0x474   :  { %v9120_v1 = vpop.permute.xlu0 %4065  ;;  %v1082_v26 = vadd.f32 %v10167_v23, %v1042_v13  ;;  %v1166_v11 = vadd.f32 %v10168_v33, %v1118_v49  ;;  %v1168_v27 = vadd.f32 %v10169_v16, %v1120_v32  ;;  %v10170_v58 = vld [vmem:[#allocation102_spill] sm:$0xff]  ;;  %v10171_v56 = vld [vmem:[#allocation88_spill] sm:$0xff]  ;;  %v10173_v31 = vld [vmem:[#allocation97_spill] sm:$0xff] }
 0x475   :  { %v1260_v55 = vadd.f32 %v10170_v58, %v1212_v18  ;;  %v1084_v28 = vadd.f32 %v10171_v56, %v1044_v20  ;;  %v1043_v41 = vadd.f32 %v10172_v38, %v1003_v54  ;;  %v1045_v43 = vadd.f32 %v10173_v31, %v1005_v7  ;;  %v10174_v24 = vld [vmem:[#allocation115_spill] sm:$0xff]  ;;  %v10175_v29 = vld [vmem:[#allocation98_spill] sm:$0xff]  ;;  %v10176_v39 = vld [vmem:[#allocation100_spill] sm:$0xff] }
 0x476   :  { %v9118_v17 = vpop.permute.xlu1 %3775  ;;  %v1261_v6 = vadd.f32 %v10174_v24, %v1213_v22  ;;  %v1214_v57 = vadd.f32 %v10175_v29, %v1166_v11  ;;  %v1216_v8 = vadd.f32 %v10176_v39, %v1168_v27  ;;  %v10177_v62 = vld [vmem:[#allocation105_spill] sm:$0xff]  ;;  %v10178_v23 = vld [vmem:[#allocation108_spill] sm:$0xff]  ;;  %v10179_v33 = vld [vmem:[#allocation99_spill] sm:$0xff]  ;;  %v10181_v20 = vrot.slane %v8863_v15, 2 }
 0x477   :  { %v1167_v13 = vadd.f32 %v10177_v62, %v1119_v14  ;;  %v1308_v49 = vadd.f32 %v10178_v23, %v1260_v55  ;;  %v1083_v32 = vadd.f32 %v10179_v33, %v1043_v41  ;;  %v10180_v16 = vld [vmem:[#allocation101_spill] sm:$0xff]  ;;  %v10183_v11 = vld [vmem:[#allocation104_spill] sm:$0xff]  ;;  %v10184_v27 = vld [vmem:[#allocation106_spill] sm:$0xff] }
 0x478   :  { %v1085_v18 = vadd.f32 %v10180_v16, %v1045_v43  ;;  %v1121_v58 = vadd.f32 %v10181_v20, %v812_v0  ;;  %v10182_v54 = vld [vmem:[#allocation121_spill] sm:$0xff]  ;;  %v9141_v22 = vpop.permute.xlu0 %3861  ;;  %v1262_v38 = vadd.f32 %v10183_v11, %v1214_v57  ;;  %v1264_v31 = vadd.f32 %v10184_v27, %v1216_v8  ;;  %v10185_v14 = vld [vmem:[#allocation111_spill] sm:$0xff]  ;;  %v10186_v55 = vld [vmem:[#allocation114_spill] sm:$0xff] }
 0x479   :  { %v1309_v56 = vadd.f32 %v10182_v54, %v1261_v6  ;;  %v1215_v24 = vadd.f32 %v10185_v14, %v1167_v13  ;;  %v1356_v29 = vadd.f32 %v10186_v55, %v1308_v49  ;;  %v10187_v41 = vld [vmem:[#allocation107_spill] sm:$0xff]  ;;  %v1438_v43 = vadd.f32 %v8945_v50, %v1082_v26  ;;  %v10189_v62 = vld [vmem:[#allocation110_spill] sm:$0xff]  ;;  %v10190_v33 = vld [vmem:[#allocation112_spill] sm:$0xff] }
 0x47a   :  { %v9139_v7 = vpop.permute.xlu1 %4023  ;;  %v1169_v39 = vadd.f32 %v10187_v41, %v1121_v58  ;;  %v10188_v15 = vld [vmem:[#allocation127_spill] sm:$0xff]  ;;  %v1440_v6 = vadd.f32 %v8950_v3, %v1084_v28  ;;  %v1310_v23 = vadd.f32 %v10189_v62, %v1262_v38  ;;  %v1312_v16 = vadd.f32 %v10190_v33, %v1264_v31  ;;  %v10191_v20 = vld [vmem:[#allocation117_spill] sm:$0xff]  ;;  %v10192_v54 = vld [vmem:[#allocation120_spill] sm:$0xff] }
 0x47b   :  { %v1357_v0 = vadd.f32 %v10188_v15, %v1309_v56  ;;  %v1263_v57 = vadd.f32 %v10191_v20, %v1215_v24  ;;  %v1404_v8 = vadd.f32 %v10192_v54, %v1356_v29  ;;  %v10193_v11 = vld [vmem:[#allocation113_spill] sm:$0xff]  ;;  %v10194_v27 = vld [vmem:[#allocation126_spill] sm:$0xff]  ;;  %v10195_v14 = vld [vmem:[#allocation128_spill] sm:$0xff]  ;;  %v1439_v24 = vadd.f32 %v8969_v63, %v1083_v32 }
 0x47c   :  { %v1217_v13 = vadd.f32 %v10193_v11, %v1169_v39  ;;  %v1478_v49 = vadd.f32 %v10194_v27, %v1438_v43  ;;  %v1480_v58 = vadd.f32 %v10195_v14, %v1440_v6  ;;  %v10196_v55 = vld [vmem:[#allocation133_spill] sm:$0xff]  ;;  %v9161_v56 = vpop.permute.xlu0 %3865  ;;  %v10197_v3 = vld [vmem:[#allocation118_spill] sm:$0xff]  ;;  %v10198_v38 = vld [vmem:[#allocation123_spill] sm:$0xff]  ;;  %v1441_v29 = vadd.f32 %v8972_v52, %v1085_v18 }
 0x47d   :  { %v1405_v50 = vadd.f32 %v10196_v55, %v1357_v0  ;;  %v1360_v28 = vadd.f32 %v10197_v3, %v1312_v16  ;;  %v1311_v31 = vadd.f32 %v10198_v38, %v1263_v57  ;;  %v10199_v41 = vld [vmem:[#allocation116_spill] sm:$0xff]  ;;  %v10200_v15 = vld [vmem:[#allocation119_spill] sm:$0xff]  ;;  %v10201_v62 = vld [vmem:[#allocation130_spill] sm:$0xff]  ;;  %v1712_v57 = vadd.f32 %v8978_v53, %v1404_v8 }
 0x47e   :  { %v9159_v26 = vpop.permute.xlu1 %4027  ;;  %v1358_v39 = vadd.f32 %v10199_v41, %v1310_v23  ;;  %v1265_v43 = vadd.f32 %v10200_v15, %v1217_v13  ;;  %v1518_v6 = vadd.f32 %v10201_v62, %v1478_v49  ;;  %v10202_v33 = vld [vmem:[#allocation132_spill] sm:$0xff]  ;;  %v10204_v11 = vld [vmem:[#allocation129_spill] sm:$0xff]  ;;  %v10205_v14 = vld [vmem:[#allocation139_spill] sm:$0xff] }
 0x47f   :  { %v1520_v0 = vadd.f32 %v10202_v33, %v1480_v58  ;;  %v10203_v20 = vld [vmem:[#allocation124_spill] sm:$0xff]  ;;  %v1359_v27 = vadd.f32 %v10204_v11, %v1311_v31  ;;  %v1479_v16 = vadd.f32 %v10205_v14, %v1439_v24  ;;  %v10206_v55 = vld [vmem:[#allocation125_spill] sm:$0xff]  ;;  %v10207_v32 = vld [vmem:[#allocation134_spill] sm:$0xff]  ;;  %v1713_v13 = vadd.f32 %v8990_v2, %v1405_v50 }
 0x480   :  { %v1408_v54 = vadd.f32 %v10203_v20, %v1360_v28  ;;  %v1313_v63 = vadd.f32 %v10206_v55, %v1265_v43  ;;  %v1558_v52 = vadd.f32 %v10207_v32, %v1518_v6  ;;  %v10208_v18 = vld [vmem:[#allocation136_spill] sm:$0xff]  ;;  %v10209_v49 = vld [vmem:[#allocation122_spill] sm:$0xff]  ;;  %v10210_v38 = vld [vmem:[#allocation135_spill] sm:$0xff]  ;;  %v9185_v62 = vpop.permute.xlu0 %3869 }
 0x481   :  { %v1560_v23 = vadd.f32 %v10208_v18, %v1520_v0  ;;  %v1406_v58 = vadd.f32 %v10209_v49, %v1358_v39  ;;  %v1407_v28 = vadd.f32 %v10210_v38, %v1359_v27  ;;  %v10211_v41 = vld [vmem:[#allocation143_spill] sm:$0xff]  ;;  %v10212_v15 = vld [vmem:[#allocation150_spill] sm:$0xff]  ;;  %v10215_v33 = vld [vmem:[#allocation140_spill] sm:$0xff] }
 0x482   :  { %v9179_v3 = vpop.permute.xlu1 %3815  ;;  %v1519_v31 = vadd.f32 %v10211_v41, %v1479_v16  ;;  %v1760_v24 = vadd.f32 %v10212_v15, %v1712_v57  ;;  %v10213_v53 = vld [vmem:[#allocation131_spill] sm:$0xff]  ;;  %v10214_v43 = vld [vmem:[#allocation138_spill] sm:$0xff]  ;;  %v10217_v50 = vld [vmem:[#allocation141_spill] sm:$0xff]  ;;  %v1716_v27 = vadd.f32 %v8983_v59, %v1408_v54 }
 0x483   :  { %v1361_v8 = vadd.f32 %v10213_v53, %v1313_v63  ;;  %v1598_v6 = vadd.f32 %v10214_v43, %v1558_v52  ;;  %v1600_v0 = vadd.f32 %v10215_v33, %v1560_v23  ;;  %v10216_v20 = vld [vmem:[#allocation163_spill] sm:$0xff]  ;;  %v1481_v11 = vadd.f32 %v10217_v50, %v1441_v29  ;;  %v10219_v55 = vld [vmem:[#allocation156_spill] sm:$0xff]  ;;  %v10220_v32 = vld [vmem:[#allocation137_spill] sm:$0xff] }
 0x484   :  { %v1761_v2 = vadd.f32 %v10216_v20, %v1713_v13  ;;  %v10218_v14 = vld [vmem:[#allocation147_spill] sm:$0xff]  ;;  %v1808_v16 = vadd.f32 %v10219_v55, %v1760_v24  ;;  %v10221_v18 = vld [vmem:[#allocation142_spill] sm:$0xff]  ;;  %v10222_v38 = vld [vmem:[#allocation144_spill] sm:$0xff]  ;;  %v1715_v59 = vadd.f32 %v8995_v42, %v1407_v28  ;;  %v10235_v42 = vrot.slane %v8908_v48, 4 }
 0x485   :  { %v1559_v39 = vadd.f32 %v10218_v14, %v1519_v31  ;;  %v1409_v57 = vadd.f32 %v10220_v32, %v1361_v8  ;;  %v1638_v49 = vadd.f32 %v10221_v18, %v1598_v6  ;;  %v1640_v63 = vadd.f32 %v10222_v38, %v1600_v0  ;;  %v10223_v41 = vld [vmem:[#allocation169_spill] sm:$0xff]  ;;  %v10225_v53 = vld [vmem:[#allocation151_spill] sm:$0xff]  ;;  %v10226_v43 = vld [vmem:[#allocation162_spill] sm:$0xff] }
 0x486   :  { %v1809_v52 = vadd.f32 %v10223_v41, %v1761_v2  ;;  %v9199_v15 = vpop.permute.xlu1 %3819  ;;  %v10224_v23 = vld [vmem:[#allocation145_spill] sm:$0xff]  ;;  %v1856_v31 = vadd.f32 %v10226_v43, %v1808_v16  ;;  %v10227_v54 = vld [vmem:[#allocation146_spill] sm:$0xff]  ;;  %v10228_v33 = vld [vmem:[#allocation148_spill] sm:$0xff]  ;;  %v9213_v41 = vpop.permute.xlu0 %4101  ;;  %v1714_v28 = vadd.f32 %v10235_v42, %v1406_v58 }
 0x487   :  { %v1521_v13 = vadd.f32 %v10224_v23, %v1481_v11  ;;  %v1599_v29 = vadd.f32 %v10225_v53, %v1559_v39  ;;  %v1678_v24 = vadd.f32 %v10227_v54, %v1638_v49  ;;  %v1680_v8 = vadd.f32 %v10228_v33, %v1640_v63  ;;  %v10229_v20 = vld [vmem:[#allocation154_spill] sm:$0xff]  ;;  %v10230_v50 = vld [vmem:[#allocation175_spill] sm:$0xff]  ;;  %v10231_v14 = vld [vmem:[#allocation149_spill] sm:$0xff] }
 0x488   :  { %v1764_v6 = vadd.f32 %v10229_v20, %v1716_v27  ;;  %v1857_v0 = vadd.f32 %v10230_v50, %v1809_v52  ;;  %v10232_v55 = vld [vmem:[#allocation155_spill] sm:$0xff]  ;;  %v10233_v18 = vld [vmem:[#allocation165_spill] sm:$0xff]  ;;  %v10234_v38 = vld [vmem:[#allocation168_spill] sm:$0xff]  ;;  %v10237_v63 = vrot.slane %v8903_v19, 4 }
 0x489   :  { %v1561_v2 = vadd.f32 %v10231_v14, %v1521_v13  ;;  %v1639_v32 = vadd.f32 %v10232_v55, %v1599_v29  ;;  %v1763_v11 = vadd.f32 %v10233_v18, %v1715_v59  ;;  %v1904_v39 = vadd.f32 %v10234_v38, %v1856_v31  ;;  %v10236_v16 = vld [vmem:[#allocation160_spill] sm:$0xff]  ;;  %v10238_v23 = vld [vmem:[#allocation181_spill] sm:$0xff]  ;;  %v10240_v43 = vld [vmem:[#allocation159_spill] sm:$0xff] }
 0x48a   :  { %v1812_v49 = vadd.f32 %v10236_v16, %v1764_v6  ;;  %v1717_v27 = vadd.f32 %v10237_v63, %v1409_v57  ;;  %v1905_v52 = vadd.f32 %v10238_v23, %v1857_v0  ;;  %v9221_v53 = vpop.permute.xlu1 %3823  ;;  %v10239_v13 = vld [vmem:[#allocation153_spill] sm:$0xff]  ;;  %v10241_v54 = vld [vmem:[#allocation171_spill] sm:$0xff]  ;;  %v10242_v33 = vld [vmem:[#allocation174_spill] sm:$0xff]  ;;  %v2035_v19 = vadd.f32 %v9007_v51, %v1678_v24 }
 0x48b   :  { %v1601_v29 = vadd.f32 %v10239_v13, %v1561_v2  ;;  %v1679_v59 = vadd.f32 %v10240_v43, %v1639_v32  ;;  %v1811_v31 = vadd.f32 %v10241_v54, %v1763_v11  ;;  %v1952_v20 = vadd.f32 %v10242_v33, %v1904_v39  ;;  %v10243_v48 = vld [vmem:[#allocation152_spill] sm:$0xff]  ;;  %v10244_v50 = vld [vmem:[#allocation166_spill] sm:$0xff]  ;;  %v10245_v57 = vld [vmem:[#allocation187_spill] sm:$0xff] }
 0x48c   :  { %v1762_v58 = vadd.f32 %v10243_v48, %v1714_v28  ;;  %v1860_v6 = vadd.f32 %v10244_v50, %v1812_v49  ;;  %v1953_v14 = vadd.f32 %v10245_v57, %v1905_v52  ;;  %v10246_v0 = vld [vmem:[#allocation157_spill] sm:$0xff]  ;;  %v10248_v2 = vld [vmem:[#allocation180_spill] sm:$0xff]  ;;  %v2037_v32 = vadd.f32 %v9025_v40, %v1680_v8  ;;  %v10249_v11 = vld [vmem:[#allocation158_spill] sm:$0xff]  ;;  %v4106_v8 = vpop.permute.xlu0 %4105 }
 0x48d   :  { %v1641_v55 = vadd.f32 %v10246_v0, %v1601_v29  ;;  %v10247_v18 = vld [vmem:[#allocation177_spill] sm:$0xff]  ;;  %v2000_v42 = vadd.f32 %v10248_v2, %v1952_v20  ;;  %v10250_v39 = vld [vmem:[#allocation172_spill] sm:$0xff]  ;;  %v10251_v28 = vld [vmem:[#allocation186_spill] sm:$0xff]  ;;  %v9251_v40 = vadd.f32 %v9059_v36, %v1679_v59  ;;  %v3736_v36 = vadd.f32 %v8852_v44, %v8755_v9 }
 0x48e   :  { %v1859_v38 = vadd.f32 %v10247_v18, %v1811_v31  ;;  %v9236_v16 = vadd.f32 %v10249_v11, %v1762_v58  ;;  %v1908_v63 = vadd.f32 %v10250_v39, %v1860_v6  ;;  %v2075_v23 = vadd.f32 %v10251_v28, %v2035_v19  ;;  %v10252_v49 = vld [vmem:[#allocation193_spill] sm:$0xff]  ;;  %v9243_v51 = vpop.permute.xlu1 %4063  ;;  %v10254_v29 = vld [vmem:[#allocation183_spill] sm:$0xff]  ;;  %v10255_v54 = vld [vmem:[#allocation188_spill] sm:$0xff] }
 0x48f   :  { %v9241_v13 = vadd.f32 %v10252_v49, %v1953_v14  ;;  %v10253_v24 = vld [vmem:[#allocation161_spill] sm:$0xff]  ;;  %v2077_v31 = vadd.f32 %v10255_v54, %v2037_v32  ;;  %v10256_v33 = vld [vmem:[#allocation167_spill] sm:$0xff]  ;;  %v10257_v48 = vld [vmem:[#allocation178_spill] sm:$0xff]  ;;  %v3783_v19 = vadd.f32 %v8854_v34, %v8694_v46  ;;  %v4164_v57 = vrot.slane %v2000_v42, 1 }
 0x490   :  { %v9246_v52 = vadd.f32 %v10253_v24, %v1641_v55  ;;  %v1907_v43 = vadd.f32 %v10254_v29, %v1859_v38  ;;  %v9254_v20 = vadd.f32 %v10256_v33, %v1717_v27  ;;  %v1956_v58 = vadd.f32 %v10257_v48, %v1908_v63  ;;  %v10258_v50 = vld [vmem:[#allocation190_spill] sm:$0xff]  ;;  %v10259_v14 = vld [vmem:[#allocation189_spill] sm:$0xff]  ;;  %v10260_v55 = vld [vmem:[#allocation192_spill] sm:$0xff] }
 0x491   :  { %v2115_v6 = vadd.f32 %v10258_v50, %v2075_v23  ;;  %v2117_v18 = vadd.f32 %v10260_v55, %v2077_v31  ;;  %v4165_v59 = vrot.slane %v9241_v13, 1  ;;  %v10261_v38 = vld [vmem:[#allocation194_spill] sm:$0xff]  ;;  %v3993_v2 = vadd.f32 %v8788_v45, %v8711_v35  ;;  %v10262_v46 = vld [vmem:[#allocation184_spill] sm:$0xff]  ;;  %v10263_v42 = vld [vmem:[#allocation195_spill] sm:$0xff] }
 0x492   :  { %v1955_v0 = vadd.f32 %v10259_v14, %v1907_v43  ;;  %v3831_v32 = vadd.f32 %v9032_v30, %v3783_v19  ;;  %v9269_v11 = vpop.permute.xlu1 %4067  ;;  %v9272_v34 = vadd.f32 %v10262_v46, %v1956_v58  ;;  %v3833_v63 = vadd.f32 %v9053_v10, %v8888_v21  ;;  %v10264_v44 = vld [vmem:[#allocation196_spill] sm:$0xff]  ;;  %v10265_v23 = vld [vmem:[#allocation198_spill] sm:$0xff]  ;;  %v4142_v10 = vpop.permute.xlu0 %4141  ;;  %v10271_v58 = vld [vmem:[#allocation251_spill] sm:$0xff] }
 0x493   :  { %v2155_v27 = vadd.f32 %v10261_v38, %v2115_v6  ;;  %v3784_v9 = vadd.f32 %v9077_v12, %v3736_v36  ;;  %v2157_v28 = vadd.f32 %v10264_v44, %v2117_v18  ;;  %v4033_v35 = vadd.f32 %v8955_v5, %v3993_v2  ;;  %v10266_v30 = vld [vmem:[#allocation218_spill] sm:$0xff]  ;;  %v10268_v43 = vld [vmem:[#allocation212_spill] sm:$0xff]  ;;  %v10270_v5 = vld [vmem:[#allocation247_spill] sm:$0xff] }
 0x494   :  { %v2003_v39 = vadd.f32 %v10263_v42, %v1955_v0  ;;  %v3879_v45 = vadd.f32 %v9141_v22, %v3831_v32  ;;  %v3787_v24 = vadd.f32 %v10266_v30, %v8758_v60  ;;  %v10267_v29 = vld [vmem:[#allocation214_spill] sm:$0xff]  ;;  %v3881_v31 = vadd.f32 %v9161_v56, %v3833_v63  ;;  %v10272_v6 = vld [vmem:[#allocation200_spill] sm:$0xff] }
 0x495   :  { %v2195_v49 = vadd.f32 %v10265_v23, %v2155_v27  ;;  %v3738_v54 = vadd.f32 %v10268_v43, %v10267_v29  ;;  %v3832_v21 = vadd.f32 %v9179_v3, %v3784_v9  ;;  %v10269_v12 = vld [vmem:[#allocation202_spill] sm:$0xff]  ;;  %v4166_v48 = vsel %vm4163_vm7, %v4164_v57, %v4165_v59  ;;  %v10275_v42 = vld [vmem:[#allocation204_spill] sm:$0xff] }
 0x496   :  { %v3995_v22 = vadd.f32 %v10271_v58, %v10270_v5  ;;  %v4073_v50 = vadd.f32 %v9100_v37, %v4033_v35  ;;  %v3864_v60 = vpop.permute.xlu1 %3863  ;;  %v2197_v19 = vadd.f32 %v10272_v6, %v2157_v28  ;;  %v3835_v14 = vadd.f32 %v9079_v25, %v3787_v24  ;;  %v10273_v0 = vld [vmem:[#allocation206_spill] sm:$0xff]  ;;  %v10276_v44 = vld [vmem:[#allocation296_spill] sm:$0xff]  ;;  %v4146_v23 = vpop.permute.xlu0 %4145 }
 0x497   :  { %v2235_v33 = vadd.f32 %v10269_v12, %v2195_v49  ;;  %v3786_v56 = vadd.f32 %v9098_v61, %v3738_v54  ;;  %v3880_v3 = vadd.f32 %v3864_v60, %v3832_v21  ;;  %v10274_v18 = vld [vmem:[#allocation278_spill] sm:$0xff]  ;;  %v4188_v38 = vrot.slane %v3879_v45, 1 }
 0x498   :  { %v4035_v36 = vadd.f32 %v10274_v18, %v3995_v22  ;;  %v4113_v57 = vadd.f32 %v9213_v41, %v4073_v50  ;;  %v4191_v27 = vrot.slane %v3881_v31, 1  ;;  %v3883_v2 = vadd.f32 %v9185_v62, %v3835_v14  ;;  %v10279_v31 = vld [vmem:[#allocation199_spill] sm:$0xff] }
 0x499   :  { %v2275_v55 = vadd.f32 %v10273_v0, %v2235_v33  ;;  %v3834_v37 = vadd.f32 %v9199_v15, %v3786_v56  ;;  %v4189_v32 = vrot.slane %v3880_v3, 1  ;;  %v4169_v46 = vrot.slane %v2003_v39, 1  ;;  %v10277_v15 = vld [vmem:[#allocation208_spill] sm:$0xff]  ;;  %v10281_v22 = vld [vmem:[#allocation203_spill] sm:$0xff] }
 0x49a   :  { %v2237_v63 = vadd.f32 %v10275_v42, %v2197_v19  ;;  %v4075_v25 = vadd.f32 %v9120_v1, %v4035_v36  ;;  %v4153_v61 = vadd.f32 %v4142_v10, %v4113_v57  ;;  %v3868_v9 = vpop.permute.xlu1 %3867  ;;  %v3788_v28 = vadd.f32 %v9118_v17, %v10276_v44  ;;  %v10278_v17 = vld [vmem:[#allocation164_spill] sm:$0xff]  ;;  %v10282_v19 = vld [vmem:[#allocation170_spill] sm:$0xff]  ;;  %v10283_v3 = vld [vmem:[#allocation179_spill] sm:$0xff] }
 0x49b   :  { %v4190_v49 = vsel %vm4163_vm7, %v4188_v38, %v4189_v32  ;;  %v3882_v41 = vadd.f32 %v3868_v9, %v3834_v37  ;;  %v9309_v35 = vsel %vm4163_vm7, %v4189_v32, %v4191_v27  ;;  %v4178_v62 = vadd.f32 %v4166_v48, %v2275_v55  ;;  %v10280_v48 = vld [vmem:[#allocation173_spill] sm:$0xff]  ;;  %v10284_v0 = vld [vmem:[#allocation207_spill] sm:$0xff]  ;;  %v10285_v38 = vld [vmem:[#allocation176_spill] sm:$0xff] }
 0x49c   :  { %v2277_v45 = vadd.f32 %v10277_v15, %v2237_v63  ;;  %v4115_v39 = vadd.f32 %v4106_v8, %v4075_v25  ;;  %v4202_v30 = vadd.f32 %v4190_v49, %v4153_v61  ;;  %v4170_v24 = vrot.slane %v9272_v34, 1  ;;  %v10286_v27 = vld [vmem:[#allocation201_spill] sm:$0xff]  ;;  %v10287_v37 = vld [vmem:[#allocation282_spill] sm:$0xff]  ;;  %v10294_v15 = vld [vmem:[#allocation215_spill] sm:$0xff] }
 0x49d   :  { %v4194_v1 = vrot.slane %v3883_v2, 1  ;;  %v3836_v29 = vadd.f32 %v9221_v53, %v3788_v28  ;;  %v4193_v43 = vrot.slane %v3882_v41, 1  ;;  %v1858_v54 = vadd.f32 %v10278_v17, %v9236_v16  ;;  %v10288_v32 = vld [vmem:[#allocation222_spill] sm:$0xff]  ;;  %v10289_v63 = vld [vmem:[#allocation185_spill] sm:$0xff]  ;;  %v10293_v41 = vld [vmem:[#allocation191_spill] sm:$0xff] }
 0x49e   :  { %v2076_v21 = vadd.f32 %v10279_v31, %v9251_v40  ;;  %v4155_v10 = vadd.f32 %v4146_v23, %v4115_v39  ;;  %v4206_v12 = vadd.f32 %v4202_v30, %v4178_v62  ;;  %v3872_v33 = vpop.permute.xlu1 %3871  ;;  %v1813_v5 = vadd.f32 %v10280_v48, %v9254_v20  ;;  %v10291_v9 = vld [vmem:[#allocation182_spill] sm:$0xff]  ;;  %v10292_v28 = vld [vmem:[#allocation205_spill] sm:$0xff] }
 0x49f   :  { %v4171_v8 = vsel %vm4163_vm7, %v4169_v46, %v4170_v24  ;;  %v4195_v58 = vsel %vm4163_vm7, %v4193_v43, %v4194_v1  ;;  %v3884_v53 = vadd.f32 %v3872_v33, %v3836_v29  ;;  %v1906_v40 = vadd.f32 %v10282_v19, %v1858_v54  ;;  %v10295_v30 = vld [vmem:[#allocation209_spill] sm:$0xff] }
 0x4a0   :  { %v2116_v50 = vadd.f32 %v10281_v22, %v2076_v21  ;;  %v4180_v60 = vadd.f32 %v4171_v8, %v2277_v45  ;;  %v4210_v16 = vmul.f32 0.5, %v4206_v12  ;;  %v4204_v6 = vadd.f32 %v4195_v58, %v4155_v10  ;;  %v10297_v54 = vld [vmem:[#allocation197_spill] sm:$0xff]  ;;  %v10298_v21 = vld [vmem:[#allocation219_spill] sm:$0xff] }
 0x4a1   :  { %v2038_v14 = vadd.f32 %v9065_v47, %v9246_v52  ;;  %v4196_v56 = vrot.slane %v3884_v53, 1  ;;  %v1861_v20 = vadd.f32 %v10283_v3, %v1813_v5  ;;  %v1954_v57 = vadd.f32 %v10285_v38, %v1906_v40  ;;  %v10290_v47 = vld [vmem:[#allocation211_spill] sm:$0xff]  ;;  %v10299_v33 = vld [vmem:[#allocation213_spill] sm:$0xff] }
 0x4a2   :  { %v2156_v55 = vadd.f32 %v10284_v0, %v2116_v50  ;;  %4368 = vtanh.f32 %v4210_v16  ;;  %v4208_v18 = vadd.f32 %v4204_v6, %v4180_v60  ;;  %v4104_v36 = vpop.permute.xlu1 %4103  ;;  %v3994_v46 = vadd.f32 %v10288_v32, %v10287_v37  ;;  %v10300_v58 = vld [vmem:[#allocation217_spill] sm:$0xff] }
 0x4a3   :  { %v2078_v2 = vadd.f32 %v10286_v27, %v2038_v14  ;;  %v4197_v42 = vsel %vm4163_vm7, %v4194_v1, %v4196_v56  ;;  %v1909_v25 = vadd.f32 %v10289_v63, %v1861_v20  ;;  %v2002_v44 = vadd.f32 %v10291_v9, %v1954_v57  ;;  %v10296_v1 = vld [vmem:[#allocation286_spill] sm:$0xff]  ;;  %v10301_v6 = vld [vmem:[#allocation221_spill] sm:$0xff] }
 0x4a4   :  { %v2196_v52 = vadd.f32 %v10290_v47, %v2156_v55  ;;  %v4212_v61 = vmul.f32 0.5, %v4208_v18  ;;  %v4034_v49 = vadd.f32 %v9139_v7, %v3994_v46  ;;  %v3996_v43 = vadd.f32 %v9051_v4, %v10296_v1 }
 0x4a5   :  { %v2118_v23 = vadd.f32 %v10292_v28, %v2078_v2  ;;  %v1957_v62 = vadd.f32 %v10293_v41, %v1909_v25  ;;  %v4167_v12 = vrot.slane %v2002_v44, 1 }
 0x4a6   :  { %v2236_v45 = vadd.f32 %v10294_v15, %v2196_v52  ;;  %4370 = vtanh.f32 %v4212_v61  ;;  %v4108_v39 = vpop.permute.xlu1 %4107  ;;  %v4074_v17 = vadd.f32 %v9243_v51, %v4034_v49  ;;  %v4036_v48 = vadd.f32 %v9159_v26, %v3996_v43 }
 0x4a7   :  { %v2158_v29 = vadd.f32 %v10295_v30, %v2118_v23  ;;  %v2005_v31 = vadd.f32 %v10297_v54, %v1957_v62  ;;  %v4168_v22 = vsel %vm4163_vm7, %v4165_v59, %v4167_v12 }
 0x4a8   :  { %v2276_v10 = vadd.f32 %v10298_v21, %v2236_v45  ;;  %v4114_v5 = vadd.f32 %v4104_v36, %v4074_v17  ;;  %v4076_v4 = vadd.f32 %v9269_v11, %v4036_v48 }
 0x4a9   :  { %v2198_v7 = vadd.f32 %v10299_v33, %v2158_v29  ;;  %v4172_v60 = vrot.slane %v2005_v31, 1 }
 0x4aa   :  { %v4144_v8 = vpop.permute.xlu1 %4143  ;;  %v4179_v16 = vadd.f32 %v4168_v22, %v2276_v10  ;;  %v4116_v40 = vadd.f32 %v4108_v39, %v4076_v4 }
 0x4ab   :  { %v2238_v53 = vadd.f32 %v10300_v58, %v2198_v7  ;;  %v4154_v51 = vadd.f32 %v4144_v8, %v4114_v5  ;;  %v4173_v59 = vsel %vm4163_vm7, %v4170_v24, %v4172_v60 }
 0x4ac   :  { %v4369_v50 = vpop.eup %4368 }
 0x4ad   :  { %v2278_v19 = vadd.f32 %v10301_v6, %v2238_v53  ;;  %v4203_v14 = vadd.f32 %v9309_v35, %v4154_v51  ;;  %v4218_v26 = vadd.f32 1.0, %v4369_v50 }
 0x4ae   :  { %v4148_v56 = vpop.permute.xlu1 %4147 }
 0x4af   :  { %v4207_v3 = vadd.f32 %v4203_v14, %v4179_v16  ;;  %v4156_v20 = vadd.f32 %v4148_v56, %v4116_v40  ;;  %v4222_v0 = vmul.f32 0.5, %v4218_v26  ;;  %v4181_v11 = vadd.f32 %v4173_v59, %v2278_v19 }
 0x4b0   :  { %v4371_v13 = vpop.eup %4370 }
 0x4b1   :  { %v4211_v55 = vmul.f32 0.5, %v4207_v3  ;;  %v4205_v18 = vadd.f32 %v4197_v42, %v4156_v20  ;;  %v4220_v36 = vadd.f32 1.0, %v4371_v13  ;;  %4227 = vst.msk [vmem:[#allocation8] sm:$0xff] %vm4226_vm8, %v4222_v0 }
 0x4b3   :  { %4372 = vtanh.f32 %v4211_v55  ;;  %v4209_v38 = vadd.f32 %v4205_v18, %v4181_v11  ;;  %v4224_v35 = vmul.f32 0.5, %v4220_v36 }
 0x4b5   :  { %v4213_v57 = vmul.f32 0.5, %v4209_v38  ;;  %4229 = vst.msk [vmem:[#allocation8 + $0x10] sm:$0xff] %vm4226_vm8, %v4224_v35 }
 0x4b7   :  { %4374 = vtanh.f32 %v4213_v57 }
 0x4bd   :  { %v4373_v27 = vpop.eup %4372 }
 0x4be   :  { %v4219_v2 = vadd.f32 1.0, %v4373_v27 }
 0x4c0   :  { %v4223_v37 = vmul.f32 0.5, %v4219_v2 }
 0x4c1   :  { %v4375_v32 = vpop.eup %4374 }
 0x4c2   :  { %v4221_v34 = vadd.f32 1.0, %v4375_v32  ;;  %4228 = vst.msk [vmem:[#allocation8 + $0x8] sm:$0xff] %vm4226_vm8, %v4223_v37 }
 0x4c4   :  { %v4225_v24 = vmul.f32 0.5, %v4221_v34 }
 0x4c6   :  { %4230 = vst.msk [vmem:[#allocation8 + $0x18] sm:$0xff] %vm4226_vm8, %v4225_v24 }
 0x4c7   :  { %4443 = shalt.err (!%p4440_p1)
}
 0x4c8   :  { %s4444_s26 = scalar_lea.hbm %s9381_s2, 512 }
 0x4c9   :  { %p4445_p2 = scmp.ne.s32.totalorder %s9381_s2, %s4444_s26  ;;  %p4448_p3 = scmp.lt.u32.totalorder %s4444_s26, %s9381_s2 }
 0x4cb   :  { %p4450_p4 = pnand %p4448_p3, %p4445_p2 }
 0x4cd   :  { %4453 = shalt.err (!%p4450_p4)
}
 0x4ce   :  { %4242 = dma.vmem_to_hbm [thread:$0]  %s4237_s20, 512, %s9381_s2, [#allocation5], %s4462_s0, %s4462_s0, %s4463_s29  }
 0x4cf   :  { %4458 = dma.done.wait [#allocation5], 512  }
 0x4d0   :  { %4459 = vsyncadd [#allocation5], 4294966784 }
 0x4d1   :  { %4246 = vsyncpa [#allocation4], 1 }
 0x4d2   :  { %4247 = vsyncpa [#allocation5], 1 }
 0x4d3   :  { %4248 = vsyncpa [#allocation6], 1 }

</bundles_post_ra>
